<compile_context>
chip_gen: v7x
topology: tpu7x:2x2x1
jax: 0.10.0
libtpu: 0.0.40
codegen_flags: <defaults>
</compile_context>

<pallas_src>
import math

import jax
import jax.numpy as jnp
from jax.experimental import pallas as pl
from jax.experimental.pallas import tpu as pltpu

EPS = 1e-5
IN_DIM = 2048
HID = 1024
K_BLOCK = 1024            # layer-1 K split: 2048 -> 2 pipelined chunks


def _bn_train(h, gamma, beta):
    # BatchNorm1d, training mode: batch mean + biased variance in ONE pass
    # (sum and sum-of-squares share the data read; var = E[h^2] - mean^2).
    n = h.shape[0]
    s1 = jnp.sum(h, axis=0, keepdims=True)
    s2 = jnp.sum(h * h, axis=0, keepdims=True)
    mean = s1 * (1.0 / n)
    var = jnp.maximum(s2 * (1.0 / n) - mean * mean, 0.0)
    return (h - mean) * jax.lax.rsqrt(var + EPS) * gamma + beta


def _elu(h):
    # nn.ELU(alpha=1.0); exp only sees clamped (<=0) inputs -> no inf on the
    # positive branch.
    return jnp.where(h > 0, h, jnp.exp(jnp.minimum(h, 0.0)) - 1.0)


def discriminator_kernel(alpha_ref, x_ref,
                         w1_ref, b1_ref, g1_ref, be1_ref,
                         w2_ref, b2_ref, g2_ref, be2_ref,
                         w3_ref, b3_ref,
                         out_ref, acc_ref):
    k = pl.program_id(0)

    @pl.when(k == 0)
    def _():
        acc_ref[...] = jnp.zeros_like(acc_ref)

    # Layer-1 partial matmul over this K chunk (bf16 MXU inputs, f32 acc).
    acc_ref[...] += jnp.dot(x_ref[...].astype(jnp.bfloat16), w1_ref[...],
                            preferred_element_type=jnp.float32)

    @pl.when(k == pl.num_programs(0) - 1)
    def _():
        alpha = alpha_ref[0]
        # GRL forward (x * alpha) folded in after the matmul:
        #   Linear(alpha * x) = alpha * (x @ W1) + b1
        h = alpha * acc_ref[...] + b1_ref[...]
        h = _elu(_bn_train(h, g1_ref[...], be1_ref[...]))

        # Linear(1024, 1024) + BatchNorm1d + ELU.
        h = jnp.dot(h.astype(jnp.bfloat16), w2_ref[...],
                    preferred_element_type=jnp.float32) + b2_ref[...]
        h = _elu(_bn_train(h, g2_ref[...], be2_ref[...]))

        # Linear(1024, 1) + Sigmoid: N=1 matmul replaced by VPU multiply +
        # lane reduction (keeps the MXU slot free, uses all 128 lanes).
        logit = jnp.sum(h * w3_ref[...], axis=-1, keepdims=True) + b3_ref[...]
        out_ref[...] = jax.nn.sigmoid(logit)


def d_forward(x, alpha, params):
    """Full discriminator forward in one Pallas kernel (K-split grid)."""
    B = x.shape[0]
    alpha_arr = jnp.asarray(alpha, jnp.float32).reshape(1)

    # Weight DMA dominates at small batch: carry the two big matrices as bf16.
    w1 = params["w1"].astype(jnp.bfloat16)
    w2 = params["w2"].astype(jnp.bfloat16)
    # Final layer is evaluated on the VPU in f32; present w3 as a lane row.
    w3_row = params["w3"].reshape(1, HID).astype(jnp.float32)

    n_k = IN_DIM // K_BLOCK

    def full(shape):
        return pl.BlockSpec(shape, lambda k, _s=shape: (0,) * len(_s))

    grid_spec = pltpu.PrefetchScalarGridSpec(
        num_scalar_prefetch=0,
        grid=(n_k,),
        in_specs=[
            pl.BlockSpec(memory_space=pltpu.MemorySpace.SMEM),     # alpha
            pl.BlockSpec((B, K_BLOCK), lambda k: (0, k)),          # x  (K-chunked)
            pl.BlockSpec((K_BLOCK, HID), lambda k: (k, 0)),        # w1 (K-chunked)
            full((1, HID)),                                        # b1
            full((1, HID)),                                        # g1
            full((1, HID)),                                        # be1
            full((HID, HID)),                                      # w2
            full((1, HID)),                                        # b2
            full((1, HID)),                                        # g2
            full((1, HID)),                                        # be2
            full((1, HID)),                                        # w3 (row)
            full((1, 1)),                                          # b3
        ],
        out_specs=pl.BlockSpec((B, 1), lambda k: (0, 0)),
        scratch_shapes=[pltpu.VMEM((B, HID), jnp.float32)],
    )

    return pl.pallas_call(
        discriminator_kernel,
        out_shape=jax.ShapeDtypeStruct((B, 1), jnp.float32),
        grid_spec=grid_spec,
        compiler_params=pltpu.CompilerParams(
            dimension_semantics=("arbitrary",),
            vmem_limit_bytes=24 * 1024 * 1024),
    )(alpha_arr, x,
      w1, params["b1"], params["g1"], params["be1"],
      w2, params["b2"], params["g2"], params["be2"],
      w3_row, params["b3"])


def d_reference(x, alpha, params):
    """Pure-JAX f32 reference (matches the PyTorch module's forward)."""
    def bn(h):
        mean = jnp.mean(h, axis=0, keepdims=True)
        var = jnp.mean((h - mean) ** 2, axis=0, keepdims=True)
        return (h - mean) * jax.lax.rsqrt(var + EPS)

    def elu(h):
        return jnp.where(h > 0, h, jnp.exp(jnp.minimum(h, 0.0)) - 1.0)

    h = (x * alpha) @ params["w1"] + params["b1"]
    h = elu(bn(h) * params["g1"] + params["be1"])
    h = h @ params["w2"] + params["b2"]
    h = elu(bn(h) * params["g2"] + params["be2"])
    logit = h @ params["w3"] + params["b3"]
    return jax.nn.sigmoid(logit)


def init_params(key):
    """Deterministic init matching the module's shapes (PyTorch defaults)."""
    def linear(k, fan_in, fan_out):
        kw, kb = jax.random.split(k)
        bound = 1.0 / math.sqrt(fan_in)
        w = jax.random.uniform(kw, (fan_in, fan_out), jnp.float32, -bound, bound)
        b = jax.random.uniform(kb, (1, fan_out), jnp.float32, -bound, bound)
        return w, b

    k1, k2, k3 = jax.random.split(key, 3)
    w1, b1 = linear(k1, IN_DIM, HID)
    w2, b2 = linear(k2, HID, HID)
    w3, b3 = linear(k3, HID, 1)

    return dict(
        w1=w1, b1=b1,
        g1=jnp.ones((1, HID), jnp.float32), be1=jnp.zeros((1, HID), jnp.float32),
        w2=w2, b2=b2,
        g2=jnp.ones((1, HID), jnp.float32), be2=jnp.zeros((1, HID), jnp.float32),
        w3=w3, b3=b3,
    )


if __name__ == "__main__":
    key = jax.random.PRNGKey(0)
    kx, kp = jax.random.split(key)

    B = 8  # small batch; feature dim 2048 is fixed by the module
    x = jax.random.normal(kx, (B, IN_DIM), jnp.float32)
    alpha = 0.5
    params = init_params(kp)

    out = d_forward(x, alpha, params)
    out = jax.block_until_ready(out)

    assert out.shape == (B, 1)
    assert jnp.all(jnp.isfinite(out))
    assert jnp.all((out >= 0.0) & (out <= 1.0))  # sigmoid output

    # Correctness vs pure-JAX f32 reference (bf16 weights -> loose tolerance).
    ref = d_reference(x, alpha, params)
    assert jnp.max(jnp.abs(out - ref)) < 5e-2

    print("KERNEL_OK")
</pallas_src>

<mosaic_0001>
module attributes {stable_mosaic.version = 11 : i64} {
  func.func @discriminator_kernel(%arg0: i32, %arg1: memref<1xf32, #tpu.memory_space<smem>>, %arg2: memref<8x1024xf32, #tpu.memory_space<vmem>>, %arg3: memref<1024x1024xbf16, #tpu.memory_space<vmem>>, %arg4: memref<1x1024xf32, #tpu.memory_space<vmem>>, %arg5: memref<1x1024xf32, #tpu.memory_space<vmem>>, %arg6: memref<1x1024xf32, #tpu.memory_space<vmem>>, %arg7: memref<1024x1024xbf16, #tpu.memory_space<vmem>>, %arg8: memref<1x1024xf32, #tpu.memory_space<vmem>>, %arg9: memref<1x1024xf32, #tpu.memory_space<vmem>>, %arg10: memref<1x1024xf32, #tpu.memory_space<vmem>>, %arg11: memref<1x1024xf32, #tpu.memory_space<vmem>>, %arg12: memref<1x1xf32, #tpu.memory_space<vmem>>, %arg13: memref<8x1xf32, #tpu.memory_space<vmem>>, %arg14: memref<8x1024xf32, #tpu.memory_space<vmem>>) attributes {dimension_semantics = [#tpu.dimension_semantics<arbitrary>], iteration_bounds = array<i64: 2>, scalar_prefetch = 0 : i64, scratch_operands = 1 : i64, tpu.core_type = #tpu.core_type<tc>, window_params = [{transform_indices = @transform_0, window_bounds = array<i64: 1>}, {transform_indices = @transform_1, window_bounds = array<i64: 8, 1024>}, {transform_indices = @transform_2, window_bounds = array<i64: 1024, 1024>}, {pipeline_mode = #tpu.pipeline_mode<synchronous>, transform_indices = @transform_3, window_bounds = array<i64: 1, 1024>}, {pipeline_mode = #tpu.pipeline_mode<synchronous>, transform_indices = @transform_4, window_bounds = array<i64: 1, 1024>}, {pipeline_mode = #tpu.pipeline_mode<synchronous>, transform_indices = @transform_5, window_bounds = array<i64: 1, 1024>}, {pipeline_mode = #tpu.pipeline_mode<synchronous>, transform_indices = @transform_6, window_bounds = array<i64: 1024, 1024>}, {pipeline_mode = #tpu.pipeline_mode<synchronous>, transform_indices = @transform_7, window_bounds = array<i64: 1, 1024>}, {pipeline_mode = #tpu.pipeline_mode<synchronous>, transform_indices = @transform_8, window_bounds = array<i64: 1, 1024>}, {pipeline_mode = #tpu.pipeline_mode<synchronous>, transform_indices = @transform_9, window_bounds = array<i64: 1, 1024>}, {pipeline_mode = #tpu.pipeline_mode<synchronous>, transform_indices = @transform_10, window_bounds = array<i64: 1, 1024>}, {pipeline_mode = #tpu.pipeline_mode<synchronous>, transform_indices = @transform_11, window_bounds = array<i64: 1, 1>}, {pipeline_mode = #tpu.pipeline_mode<synchronous>, transform_indices = @transform_12, window_bounds = array<i64: 8, 1>}]} {
    %c0_i32 = arith.constant 0 : i32
    %0 = arith.cmpi eq, %arg0, %c0_i32 : i32
    %1 = arith.extui %0 : i1 to i32
    %c0_i32_0 = arith.constant 0 : i32
    %2 = arith.cmpi ne, %1, %c0_i32_0 : i32
    scf.if %2 {
      %cst_9 = arith.constant 0.000000e+00 : f32
      %13 = vector.broadcast %cst_9 : f32 to vector<8x1024xf32>
      %c0_10 = arith.constant 0 : index
      %c0_11 = arith.constant 0 : index
      %14 = vector.load %arg14[%c0_10, %c0_11] : memref<8x1024xf32, #tpu.memory_space<vmem>>, vector<8x1024xf32>
      tpu.vector_store %arg14[%c0_10, %c0_11], %13 {strides = array<i32>} : memref<8x1024xf32, #tpu.memory_space<vmem>>, vector<8x1024xf32>,
    } else {
    }
    %c0 = arith.constant 0 : index
    %c0_1 = arith.constant 0 : index
    %3 = vector.load %arg14[%c0, %c0_1] : memref<8x1024xf32, #tpu.memory_space<vmem>>, vector<8x1024xf32>
    %c0_2 = arith.constant 0 : index
    %c0_3 = arith.constant 0 : index
    %4 = vector.load %arg2[%c0_2, %c0_3] : memref<8x1024xf32, #tpu.memory_space<vmem>>, vector<8x1024xf32>
    %5 = arith.truncf %4 : vector<8x1024xf32> to vector<8x1024xbf16>
    %c0_4 = arith.constant 0 : index
    %c0_5 = arith.constant 0 : index
    %6 = vector.load %arg3[%c0_4, %c0_5] : memref<1024x1024xbf16, #tpu.memory_space<vmem>>, vector<1024x1024xbf16>
    %cst = arith.constant dense<0.000000e+00> : vector<8x1024xf32>
    %7 = tpu.matmul %5, %6, %cst {dimension_numbers = #tpu.dot_dimension_numbers<[1], [0], [0], [1], [0, 0, 1, 1], [], []>} : vector<8x1024xbf16>, vector<1024x1024xbf16>, vector<8x1024xf32> -> vector<8x1024xf32>
    %8 = arith.addf %3, %7 : vector<8x1024xf32>
    %c0_6 = arith.constant 0 : index
    %c0_7 = arith.constant 0 : index
    %9 = vector.load %arg14[%c0_6, %c0_7] : memref<8x1024xf32, #tpu.memory_space<vmem>>, vector<8x1024xf32>
    tpu.vector_store %arg14[%c0_6, %c0_7], %8 {strides = array<i32>} : memref<8x1024xf32, #tpu.memory_space<vmem>>, vector<8x1024xf32>,
    %c1_i32 = arith.constant 1 : i32
    %10 = arith.cmpi eq, %arg0, %c1_i32 : i32
    %11 = arith.extui %10 : i1 to i32
    %c0_i32_8 = arith.constant 0 : i32
    %12 = arith.cmpi ne, %11, %c0_i32_8 : i32
    scf.if %12 {
      %c0_9 = arith.constant 0 : index
      %13 = memref.load %arg1[%c0_9] : memref<1xf32, #tpu.memory_space<smem>>
      %c0_10 = arith.constant 0 : index
      %c0_11 = arith.constant 0 : index
      %14 = vector.load %arg14[%c0_10, %c0_11] : memref<8x1024xf32, #tpu.memory_space<vmem>>, vector<8x1024xf32>
      %15 = vector.broadcast %13 : f32 to vector<8x1024xf32>
      %16 = arith.mulf %15, %14 : vector<8x1024xf32>
      %c0_12 = arith.constant 0 : index
      %c0_13 = arith.constant 0 : index
      %17 = vector.load %arg4[%c0_12, %c0_13] : memref<1x1024xf32, #tpu.memory_space<vmem>>, vector<1x1024xf32>
      %18 = vector.broadcast %17 : vector<1x1024xf32> to vector<8x1024xf32>
      %19 = arith.addf %16, %18 : vector<8x1024xf32>
      %c0_14 = arith.constant 0 : index
      %c0_15 = arith.constant 0 : index
      %20 = vector.load %arg5[%c0_14, %c0_15] : memref<1x1024xf32, #tpu.memory_space<vmem>>, vector<1x1024xf32>
      %c0_16 = arith.constant 0 : index
      %c0_17 = arith.constant 0 : index
      %21 = vector.load %arg6[%c0_16, %c0_17] : memref<1x1024xf32, #tpu.memory_space<vmem>>, vector<1x1024xf32>
      %cst_18 = arith.constant dense<0.000000e+00> : vector<1024xf32>
      %22 = vector.multi_reduction <add>, %19, %cst_18 [0] : vector<8x1024xf32> to vector<1024xf32>
      %23 = vector.shape_cast %22 : vector<1024xf32> to vector<1x1024xf32>
      %24 = arith.mulf %19, %19 : vector<8x1024xf32>
      %cst_19 = arith.constant dense<0.000000e+00> : vector<1024xf32>
      %25 = vector.multi_reduction <add>, %24, %cst_19 [0] : vector<8x1024xf32> to vector<1024xf32>
      %26 = vector.shape_cast %25 : vector<1024xf32> to vector<1x1024xf32>
      %cst_20 = arith.constant 1.250000e-01 : f32
      %27 = vector.broadcast %cst_20 : f32 to vector<1x1024xf32>
      %28 = arith.mulf %23, %27 : vector<1x1024xf32>
      %cst_21 = arith.constant 1.250000e-01 : f32
      %29 = vector.broadcast %cst_21 : f32 to vector<1x1024xf32>
      %30 = arith.mulf %26, %29 : vector<1x1024xf32>
      %31 = arith.mulf %28, %28 : vector<1x1024xf32>
      %32 = arith.subf %30, %31 : vector<1x1024xf32>
      %cst_22 = arith.constant 0.000000e+00 : f32
      %33 = vector.broadcast %cst_22 : f32 to vector<1x1024xf32>
      %34 = arith.maximumf %32, %33 : vector<1x1024xf32>
      %35 = vector.broadcast %28 : vector<1x1024xf32> to vector<8x1024xf32>
      %36 = arith.subf %19, %35 : vector<8x1024xf32>
      %cst_23 = arith.constant 9.99999974E-6 : f32
      %37 = vector.broadcast %cst_23 : f32 to vector<1x1024xf32>
      %38 = arith.addf %34, %37 : vector<1x1024xf32>
      %39 = math.rsqrt %38 : vector<1x1024xf32>
      %40 = vector.broadcast %39 : vector<1x1024xf32> to vector<8x1024xf32>
      %41 = arith.mulf %36, %40 : vector<8x1024xf32>
      %42 = vector.broadcast %20 : vector<1x1024xf32> to vector<8x1024xf32>
      %43 = arith.mulf %41, %42 : vector<8x1024xf32>
      %44 = vector.broadcast %21 : vector<1x1024xf32> to vector<8x1024xf32>
      %45 = arith.addf %43, %44 : vector<8x1024xf32>
      %cst_24 = arith.constant 0.000000e+00 : f32
      %46 = vector.broadcast %cst_24 : f32 to vector<8x1024xf32>
      %47 = arith.cmpf ogt, %45, %46 : vector<8x1024xf32>
      %cst_25 = arith.constant 0.000000e+00 : f32
      %48 = vector.broadcast %cst_25 : f32 to vector<8x1024xf32>
      %49 = arith.minimumf %45, %48 : vector<8x1024xf32>
      %50 = math.exp %49 : vector<8x1024xf32>
      %cst_26 = arith.constant 1.000000e+00 : f32
      %51 = vector.broadcast %cst_26 : f32 to vector<8x1024xf32>
      %52 = arith.subf %50, %51 : vector<8x1024xf32>
      %53 = arith.select %47, %45, %52 : vector<8x1024xi1>, vector<8x1024xf32>
      %54 = arith.truncf %53 : vector<8x1024xf32> to vector<8x1024xbf16>
      %c0_27 = arith.constant 0 : index
      %c0_28 = arith.constant 0 : index
      %55 = vector.load %arg7[%c0_27, %c0_28] : memref<1024x1024xbf16, #tpu.memory_space<vmem>>, vector<1024x1024xbf16>
      %cst_29 = arith.constant dense<0.000000e+00> : vector<8x1024xf32>
      %56 = tpu.matmul %54, %55, %cst_29 {dimension_numbers = #tpu.dot_dimension_numbers<[1], [0], [0], [1], [0, 0, 1, 1], [], []>} : vector<8x1024xbf16>, vector<1024x1024xbf16>, vector<8x1024xf32> -> vector<8x1024xf32>
      %c0_30 = arith.constant 0 : index
      %c0_31 = arith.constant 0 : index
      %57 = vector.load %arg8[%c0_30, %c0_31] : memref<1x1024xf32, #tpu.memory_space<vmem>>, vector<1x1024xf32>
      %58 = vector.broadcast %57 : vector<1x1024xf32> to vector<8x1024xf32>
      %59 = arith.addf %56, %58 : vector<8x1024xf32>
      %c0_32 = arith.constant 0 : index
      %c0_33 = arith.constant 0 : index
      %60 = vector.load %arg9[%c0_32, %c0_33] : memref<1x1024xf32, #tpu.memory_space<vmem>>, vector<1x1024xf32>
      %c0_34 = arith.constant 0 : index
      %c0_35 = arith.constant 0 : index
      %61 = vector.load %arg10[%c0_34, %c0_35] : memref<1x1024xf32, #tpu.memory_space<vmem>>, vector<1x1024xf32>
      %cst_36 = arith.constant dense<0.000000e+00> : vector<1024xf32>
      %62 = vector.multi_reduction <add>, %59, %cst_36 [0] : vector<8x1024xf32> to vector<1024xf32>
      %63 = vector.shape_cast %62 : vector<1024xf32> to vector<1x1024xf32>
      %64 = arith.mulf %59, %59 : vector<8x1024xf32>
      %cst_37 = arith.constant dense<0.000000e+00> : vector<1024xf32>
      %65 = vector.multi_reduction <add>, %64, %cst_37 [0] : vector<8x1024xf32> to vector<1024xf32>
      %66 = vector.shape_cast %65 : vector<1024xf32> to vector<1x1024xf32>
      %cst_38 = arith.constant 1.250000e-01 : f32
      %67 = vector.broadcast %cst_38 : f32 to vector<1x1024xf32>
      %68 = arith.mulf %63, %67 : vector<1x1024xf32>
      %cst_39 = arith.constant 1.250000e-01 : f32
      %69 = vector.broadcast %cst_39 : f32 to vector<1x1024xf32>
      %70 = arith.mulf %66, %69 : vector<1x1024xf32>
      %71 = arith.mulf %68, %68 : vector<1x1024xf32>
      %72 = arith.subf %70, %71 : vector<1x1024xf32>
      %cst_40 = arith.constant 0.000000e+00 : f32
      %73 = vector.broadcast %cst_40 : f32 to vector<1x1024xf32>
      %74 = arith.maximumf %72, %73 : vector<1x1024xf32>
      %75 = vector.broadcast %68 : vector<1x1024xf32> to vector<8x1024xf32>
      %76 = arith.subf %59, %75 : vector<8x1024xf32>
      %cst_41 = arith.constant 9.99999974E-6 : f32
      %77 = vector.broadcast %cst_41 : f32 to vector<1x1024xf32>
      %78 = arith.addf %74, %77 : vector<1x1024xf32>
      %79 = math.rsqrt %78 : vector<1x1024xf32>
      %80 = vector.broadcast %79 : vector<1x1024xf32> to vector<8x1024xf32>
      %81 = arith.mulf %76, %80 : vector<8x1024xf32>
      %82 = vector.broadcast %60 : vector<1x1024xf32> to vector<8x1024xf32>
      %83 = arith.mulf %81, %82 : vector<8x1024xf32>
      %84 = vector.broadcast %61 : vector<1x1024xf32> to vector<8x1024xf32>
      %85 = arith.addf %83, %84 : vector<8x1024xf32>
      %cst_42 = arith.constant 0.000000e+00 : f32
      %86 = vector.broadcast %cst_42 : f32 to vector<8x1024xf32>
      %87 = arith.cmpf ogt, %85, %86 : vector<8x1024xf32>
      %cst_43 = arith.constant 0.000000e+00 : f32
      %88 = vector.broadcast %cst_43 : f32 to vector<8x1024xf32>
      %89 = arith.minimumf %85, %88 : vector<8x1024xf32>
      %90 = math.exp %89 : vector<8x1024xf32>
      %cst_44 = arith.constant 1.000000e+00 : f32
      %91 = vector.broadcast %cst_44 : f32 to vector<8x1024xf32>
      %92 = arith.subf %90, %91 : vector<8x1024xf32>
      %93 = arith.select %87, %85, %92 : vector<8x1024xi1>, vector<8x1024xf32>
      %c0_45 = arith.constant 0 : index
      %c0_46 = arith.constant 0 : index
      %94 = vector.load %arg11[%c0_45, %c0_46] : memref<1x1024xf32, #tpu.memory_space<vmem>>, vector<1x1024xf32>
      %95 = vector.broadcast %94 : vector<1x1024xf32> to vector<8x1024xf32>
      %96 = arith.mulf %93, %95 : vector<8x1024xf32>
      %cst_47 = arith.constant dense<0.000000e+00> : vector<8xf32>
      %97 = vector.multi_reduction <add>, %96, %cst_47 [1] : vector<8x1024xf32> to vector<8xf32>
      %98 = vector.shape_cast %97 : vector<8xf32> to vector<8x1xf32>
      %c0_48 = arith.constant 0 : index
      %c0_49 = arith.constant 0 : index
      %99 = vector.load %arg12[%c0_48, %c0_49] : memref<1x1xf32, #tpu.memory_space<vmem>>, vector<1x1xf32>
      %100 = vector.broadcast %99 : vector<1x1xf32> to vector<8x1xf32>
      %101 = arith.addf %98, %100 : vector<8x1xf32>
      %102 = arith.negf %101 : vector<8x1xf32>
      %103 = math.exp %102 : vector<8x1xf32>
      %cst_50 = arith.constant 1.000000e+00 : f32
      %104 = vector.broadcast %cst_50 : f32 to vector<8x1xf32>
      %105 = arith.addf %104, %103 : vector<8x1xf32>
      %106 = arith.divf %104, %105 : vector<8x1xf32>
      %c0_51 = arith.constant 0 : index
      %c0_52 = arith.constant 0 : index
      %107 = vector.load %arg13[%c0_51, %c0_52] : memref<8x1xf32, #tpu.memory_space<vmem>>, vector<8x1xf32>
      tpu.vector_store %arg13[%c0_51, %c0_52], %106 {strides = array<i32>} : memref<8x1xf32, #tpu.memory_space<vmem>>, vector<8x1xf32>,
    } else {
    }
    return
  }
  func.func @transform_0(%arg0: i32) -> i32 {
    %c0_i32 = arith.constant 0 : i32
    %c0_i32_0 = arith.constant 0 : i32
    return %c0_i32 : i32
  }
  func.func @transform_1(%arg0: i32) -> (i32, i32) {
    %c0_i32 = arith.constant 0 : i32
    %c0_i32_0 = arith.constant 0 : i32
    return %c0_i32, %arg0 : i32, i32
  }
  func.func @transform_2(%arg0: i32) -> (i32, i32) {
    %c0_i32 = arith.constant 0 : i32
    %c0_i32_0 = arith.constant 0 : i32
    return %arg0, %c0_i32 : i32, i32
  }
  func.func @transform_3(%arg0: i32) -> (i32, i32) {
    %c0_i32 = arith.constant 0 : i32
    %c0_i32_0 = arith.constant 0 : i32
    %c0_i32_1 = arith.constant 0 : i32
    return %c0_i32, %c0_i32_0 : i32, i32
  }
  func.func @transform_4(%arg0: i32) -> (i32, i32) {
    %c0_i32 = arith.constant 0 : i32
    %c0_i32_0 = arith.constant 0 : i32
    %c0_i32_1 = arith.constant 0 : i32
    return %c0_i32, %c0_i32_0 : i32, i32
  }
  func.func @transform_5(%arg0: i32) -> (i32, i32) {
    %c0_i32 = arith.constant 0 : i32
    %c0_i32_0 = arith.constant 0 : i32
    %c0_i32_1 = arith.constant 0 : i32
    return %c0_i32, %c0_i32_0 : i32, i32
  }
  func.func @transform_6(%arg0: i32) -> (i32, i32) {
    %c0_i32 = arith.constant 0 : i32
    %c0_i32_0 = arith.constant 0 : i32
    %c0_i32_1 = arith.constant 0 : i32
    return %c0_i32, %c0_i32_0 : i32, i32
  }
  func.func @transform_7(%arg0: i32) -> (i32, i32) {
    %c0_i32 = arith.constant 0 : i32
    %c0_i32_0 = arith.constant 0 : i32
    %c0_i32_1 = arith.constant 0 : i32
    return %c0_i32, %c0_i32_0 : i32, i32
  }
  func.func @transform_8(%arg0: i32) -> (i32, i32) {
    %c0_i32 = arith.constant 0 : i32
    %c0_i32_0 = arith.constant 0 : i32
    %c0_i32_1 = arith.constant 0 : i32
    return %c0_i32, %c0_i32_0 : i32, i32
  }
  func.func @transform_9(%arg0: i32) -> (i32, i32) {
    %c0_i32 = arith.constant 0 : i32
    %c0_i32_0 = arith.constant 0 : i32
    %c0_i32_1 = arith.constant 0 : i32
    return %c0_i32, %c0_i32_0 : i32, i32
  }
  func.func @transform_10(%arg0: i32) -> (i32, i32) {
    %c0_i32 = arith.constant 0 : i32
    %c0_i32_0 = arith.constant 0 : i32
    %c0_i32_1 = arith.constant 0 : i32
    return %c0_i32, %c0_i32_0 : i32, i32
  }
  func.func @transform_11(%arg0: i32) -> (i32, i32) {
    %c0_i32 = arith.constant 0 : i32
    %c0_i32_0 = arith.constant 0 : i32
    %c0_i32_1 = arith.constant 0 : i32
    return %c0_i32, %c0_i32_0 : i32, i32
  }
  func.func @transform_12(%arg0: i32) -> (i32, i32) {
    %c0_i32 = arith.constant 0 : i32
    %c0_i32_0 = arith.constant 0 : i32
    %c0_i32_1 = arith.constant 0 : i32
    return %c0_i32, %c0_i32_0 : i32, i32
  }
}

</mosaic_0001>

<bundles_post_ra>
// kernel: tpu_custom_call.1
= control target key start
LH: loop header
LB: loop body
LE: loop exit
PB: predicated region body
PF: predicated region fallthrough
CT: control target
= control target key end

     0   :  { %s12340_s0 = inlined_call_operand.<no memory space> [shape: f32[1], index: 0, kind: input, shape index: {}]   ;;  %s12341_s1 = inlined_call_operand.hbm [shape: f32[8,2048], index: 1, kind: input, shape index: {}]   ;;  %s12342_s2 = inlined_call_operand.hbm [shape: bf16[2048,1024], index: 2, kind: input, shape index: {}]   ;;  %s12343_s3 = inlined_call_operand.hbm [shape: f32[1,1024], index: 3, kind: input, shape index: {}]   ;;  %s12344_s4 = inlined_call_operand.hbm [shape: f32[1,1024], index: 4, kind: input, shape index: {}]   ;;  %s12345_s5 = inlined_call_operand.hbm [shape: f32[1,1024], index: 5, kind: input, shape index: {}]   ;;  %s12346_s6 = inlined_call_operand.hbm [shape: bf16[1024,1024], index: 6, kind: input, shape index: {}]   ;;  %s12347_s7 = inlined_call_operand.hbm [shape: f32[1,1024], index: 7, kind: input, shape index: {}]   ;;  %s12348_s8 = inlined_call_operand.hbm [shape: f32[1,1024], index: 8, kind: input, shape index: {}]   ;;  %s12349_s9 = inlined_call_operand.hbm [shape: f32[1,1024], index: 9, kind: input, shape index: {}]   ;;  %s12350_s10 = inlined_call_operand.hbm [shape: f32[1,1024], index: 10, kind: input, shape index: {}]   ;;  %s12351_s11 = inlined_call_operand.<no memory space> [shape: f32[1,1], index: 11, kind: input, shape index: {}]   ;;  %s12352_s12 = inlined_call_operand.vmem [shape: f32[8,1], index: 12, kind: output, shape index: {}]  }
   0x1   :  { %12357 = sst [smem:[#allocation29_spill]] %s12343_s3  ;;  %v18_v0 = vstv %s12351_s11 }
   0x2   :  { %12358 = sst [smem:[#allocation30_spill]] %s12344_s4  ;;  %19 = vst [vmem:[#allocation4] sm:$0x1] %v18_v0 }
   0x3   :  { %12359 = sst [smem:[#allocation31_spill]] %s12352_s12 }
   0x4   :  { %17 = sst [smem:[#allocation3]] %s12340_s0 }
   0x5   :  { %20 = vsyncpa [#allocation6], 0 }
   0x6   :  { %22 = vsyncpa [#allocation6 + $0x1], 0 }
   0x7   :  { %23 = vsyncpa [#allocation8], 0 }
   0x8   :  { %25 = vsyncpa [#allocation8 + $0x1], 0 }
   0x9   :  { %26 = vsyncpa [#allocation11], 0 }
   0xa   :  { %27 = vsyncpa [#allocation14], 0 }
   0xb   :  { %28 = vsyncpa [#allocation17], 0 }
   0xc   :  { %29 = vsyncpa [#allocation20], 0  ;;  %s10817_s25 = smov 0   ;;  %s10819_s26 = smov 0  }
   0xd   :  { %s10821_s27 = smov 0   ;;  %s10823_s0 = smov 0  }
   0xe LB: > { %s10733_s11 = smov [#allocation9]   ;;  %s10838_s29 = sadd.s32 4294967295, %s10731_s0   ;;  %s10731_s0 = sphi %s10823_s0, %s12396_s0   ;;  %s10727_s27 = sphi %s10821_s27, %s12395_s27   ;;  %s10723_s26 = sphi %s10819_s26, %s12394_s26   ;;  %s10719_s25 = sphi %s10817_s25, %s12393_s25  }
   0xf   : > { %s339_s28 = sshll.u32 %s10733_s11, 4  ;;  %p9057_p0 = scmp.ge.s32.totalorder %s10731_s0, 1  ;;  %s340_s28 = int_to_ptr.vmem [resolvable:$true] %s339_s28 }
  0x10   : > { %p12353_p1 = scmp.eq.s32.totalorder %s10838_s29, 0  ;;  %p323_p2 = scmp.lt.s32.totalorder %s10731_s0, 3 }
  0x11   : > { %s10734_s13 = smov [#allocation10]   ;;  %s10735_s15 = smov [#allocation13]  }
  0x12   : > { %p10844_p4 = pnand %p9057_p0, %p323_p2  ;;  %s350_s14 = sshll.u32 %s10734_s13, 4  ;;  %s10850_s14 = int_to_ptr.vmem [resolvable:$true] %s350_s14 }
  0x13   : > { %s371_s16 = sshll.u32 %s10735_s15, 4  ;;  %s12363_s3 = sld [smem:[#allocation29_spill]]  ;;  %s10858_s16 = int_to_ptr.vmem [resolvable:$true] %s371_s16 }
  0x14   : > { %s12360_s30 = scalar_select %p10844_p4, 1, 0 }
  0x15   : > { %p10226_p5 = pneg %p10844_p4 }
  0x16   : > { %12361 = sst [smem:[#allocation28_spill]] %s12360_s30 }
  0x17   : > { %p10854_p6 = pnand %p10226_p5, %p12353_p1 }
  0x19   : > { %s10389_s20 = scalar_lea.hbm %s12363_s3, 128  ;;  %p10868_p8 = pneg %p10854_p6 }
  0x1a   : > { %p10390_p7 = scmp.ne.s32.totalorder %s12363_s3, %s10389_s20  ;;  %p10396_p11 = scmp.lt.u32.totalorder %s10389_s20, %s12363_s3 }
  0x1c   : > { %p10392_p9 = pnand %p10868_p8, %p10390_p7 }
  0x1e   : > { %p10393_p10 = pneg %p10392_p9 }
  0x20   : > { %p10398_p12 = pnand %p10396_p11, %p10393_p10 }
  0x22   : > { %10401 = shalt.err (!%p10398_p12)
}
  0x23   : > { %s10402_s13 = scalar_lea.vmem %s340_s28, 128  ;;  %p10410_p5 = scmp.lt.s32.totalorder %s340_s28, %s340_s28 }
  0x24   : > { %p10403_p13 = scmp.ne.s32.totalorder %s340_s28, %s10402_s13  ;;  %p10411_p3 = scmp.lt.s32.totalorder %s10402_s13, %s10402_s13 }
  0x26   : > { %p10405_p0 = pnand %p10403_p13, %p10868_p8  ;;  %p10412_p1 = por %p10411_p3, %p10410_p5 }
  0x28   : > { %p10406_p2 = pneg %p10405_p0 }
  0x2a   : > { %p10413_p4 = pnand %p10412_p1, %p10406_p2 }
  0x2c   : > { %10416 = shalt.err (!%p10413_p4)
}
  0x2d   : > { %10229 = dma.hbm_to_vmem [thread:$0]  (!%p10854_p6), %s12363_s3, 128, %s340_s28, [#allocation8]  }
  0x2e   : > { %s12365_s4 = sld [smem:[#allocation30_spill]] }
  0x34   : > { %s10417_s21 = scalar_lea.hbm %s12365_s4, 128 }
  0x35   : > { %p10418_p7 = scmp.ne.s32.totalorder %s12365_s4, %s10417_s21  ;;  %p10424_p1 = scmp.lt.u32.totalorder %s10417_s21, %s12365_s4 }
  0x37   : > { %p10420_p9 = pnand %p10418_p7, %p10868_p8 }
  0x39   : > { %p10421_p3 = pneg %p10420_p9 }
  0x3b   : > { %p10426_p4 = pnand %p10424_p1, %p10421_p3 }
  0x3d   : > { %10429 = shalt.err (!%p10426_p4)
}
  0x3e   : > { %s10430_s28 = scalar_lea.vmem %s10850_s14, 128  ;;  %p10438_p13 = scmp.lt.s32.totalorder %s10850_s14, %s10850_s14 }
  0x3f   : > { %p10431_p10 = scmp.ne.s32.totalorder %s10850_s14, %s10430_s28  ;;  %p10439_p0 = scmp.lt.s32.totalorder %s10430_s28, %s10430_s28 }
  0x41   : > { %p10433_p11 = pnand %p10431_p10, %p10868_p8  ;;  %p10440_p2 = por %p10439_p0, %p10438_p13 }
  0x43   : > { %p10434_p12 = pneg %p10433_p11 }
  0x45   : > { %p10441_p5 = pnand %p10440_p2, %p10434_p12 }
  0x47   : > { %10444 = shalt.err (!%p10441_p5)
}
  0x48   : > { %10232 = dma.hbm_to_vmem [thread:$0]  (!%p10854_p6), %s12365_s4, 128, %s10850_s14, [#allocation11]  }
  0x49   : > { %s10445_s21 = scalar_lea.hbm %s12346_s6, 65536 }
  0x4a   : > { %p10446_p7 = scmp.ne.s32.totalorder %s12346_s6, %s10445_s21  ;;  %p10452_p1 = scmp.lt.u32.totalorder %s10445_s21, %s12346_s6 }
  0x4c   : > { %p10448_p9 = pnand %p10446_p7, %p10868_p8 }
  0x4e   : > { %p10449_p3 = pneg %p10448_p9 }
  0x50   : > { %p10454_p4 = pnand %p10452_p1, %p10449_p3 }
  0x52   : > { %10457 = shalt.err (!%p10454_p4)
}
  0x53   : > { %s10458_s14 = scalar_lea.vmem %s10858_s16, 65536  ;;  %p10466_p13 = scmp.lt.s32.totalorder %s10858_s16, %s10858_s16 }
  0x54   : > { %p10459_p10 = scmp.ne.s32.totalorder %s10858_s16, %s10458_s14  ;;  %p10467_p0 = scmp.lt.s32.totalorder %s10458_s14, %s10458_s14 }
  0x56   : > { %p10461_p11 = pnand %p10459_p10, %p10868_p8  ;;  %p10468_p2 = por %p10467_p0, %p10466_p13 }
  0x58   : > { %p10462_p12 = pneg %p10461_p11 }
  0x5a   : > { %p10469_p5 = pnand %p10468_p2, %p10462_p12 }
  0x5c   : > { %10472 = shalt.err (!%p10469_p5)
}
  0x5d   : > { %s12356_s28 = smov 512   ;;  %s10737_s15 = smov 32  }
  0x5e   : > { %10238 = dma.hbm_to_vmem [thread:$0]  (!%p10854_p6), %s12346_s6, 65536, %s10858_s16, [#allocation14], %s12356_s28, %s12356_s28, %s10737_s15  }
  0x5f   : > { %s10738_s20 = smov [#allocation16]   ;;  %s10739_s22 = smov [#allocation12]  }
  0x60   : > { %s396_s21 = sshll.u32 %s10738_s20, 4  ;;  %s361_s24 = sshll.u32 %s10739_s22, 4  ;;  %s397_s21 = int_to_ptr.vmem [resolvable:$true] %s396_s21  ;;  %s362_s24 = int_to_ptr.vmem [resolvable:$true] %s361_s24 }
  0x61   : > { %s10473_s14 = scalar_lea.hbm %s12348_s8, 128 }
  0x62   : > { %p10474_p7 = scmp.ne.s32.totalorder %s12348_s8, %s10473_s14  ;;  %p10480_p1 = scmp.lt.u32.totalorder %s10473_s14, %s12348_s8 }
  0x64   : > { %p10476_p9 = pnand %p10474_p7, %p10868_p8 }
  0x66   : > { %p10477_p3 = pneg %p10476_p9 }
  0x68   : > { %p10482_p4 = pnand %p10480_p1, %p10477_p3 }
  0x6a   : > { %10485 = shalt.err (!%p10482_p4)
}
  0x6b   : > { %s10486_s16 = scalar_lea.vmem %s397_s21, 128  ;;  %p10494_p13 = scmp.lt.s32.totalorder %s397_s21, %s397_s21 }
  0x6c   : > { %p10487_p10 = scmp.ne.s32.totalorder %s397_s21, %s10486_s16  ;;  %p10495_p0 = scmp.lt.s32.totalorder %s10486_s16, %s10486_s16 }
  0x6e   : > { %p10489_p11 = pnand %p10487_p10, %p10868_p8  ;;  %p10496_p2 = por %p10495_p0, %p10494_p13 }
  0x70   : > { %p10490_p12 = pneg %p10489_p11 }
  0x72   : > { %p10497_p5 = pnand %p10496_p2, %p10490_p12 }
  0x74   : > { %10500 = shalt.err (!%p10497_p5)
}
  0x75   : > { %10244 = dma.hbm_to_vmem [thread:$0]  (!%p10854_p6), %s12348_s8, 128, %s397_s21, [#allocation17]  }
  0x76   : > { %s10501_s18 = scalar_lea.hbm %s12345_s5, 128 }
  0x77   : > { %p10502_p7 = scmp.ne.s32.totalorder %s12345_s5, %s10501_s18  ;;  %p10508_p1 = scmp.lt.u32.totalorder %s10501_s18, %s12345_s5 }
  0x79   : > { %p10504_p9 = pnand %p10502_p7, %p10868_p8 }
  0x7b   : > { %p10505_p3 = pneg %p10504_p9 }
  0x7d   : > { %p10510_p4 = pnand %p10508_p1, %p10505_p3 }
  0x7f   : > { %10513 = shalt.err (!%p10510_p4)
}
  0x80   : > { %s10514_s13 = scalar_lea.vmem %s362_s24, 128  ;;  %p10522_p13 = scmp.lt.s32.totalorder %s362_s24, %s362_s24 }
  0x81   : > { %p10515_p10 = scmp.ne.s32.totalorder %s362_s24, %s10514_s13  ;;  %p10523_p0 = scmp.lt.s32.totalorder %s10514_s13, %s10514_s13 }
  0x83   : > { %p10517_p11 = pnand %p10515_p10, %p10868_p8  ;;  %p10524_p2 = por %p10523_p0, %p10522_p13 }
  0x85   : > { %p10518_p12 = pneg %p10517_p11 }
  0x87   : > { %p10525_p5 = pnand %p10524_p2, %p10518_p12 }
  0x89   : > { %10528 = shalt.err (!%p10525_p5)
}
  0x8a   : > { %10235 = dma.hbm_to_vmem [thread:$0]  (!%p10854_p6), %s12345_s5, 128, %s362_s24, [#allocation11]  }
  0x8b   : > { %s10740_s16 = smov [#allocation15]   ;;  %s10741_s4 = smov [#allocation18]  }
  0x8c   : > { %s385_s3 = sshll.u32 %s10740_s16, 4  ;;  %s407_s12 = sshll.u32 %s10741_s4, 4  ;;  %s386_s3 = int_to_ptr.vmem [resolvable:$true] %s385_s3  ;;  %s408_s12 = int_to_ptr.vmem [resolvable:$true] %s407_s12 }
  0x8d   : > { %s10529_s19 = scalar_lea.hbm %s12347_s7, 128 }
  0x8e   : > { %p10530_p7 = scmp.ne.s32.totalorder %s12347_s7, %s10529_s19  ;;  %p10536_p1 = scmp.lt.u32.totalorder %s10529_s19, %s12347_s7 }
  0x90   : > { %p10532_p9 = pnand %p10530_p7, %p10868_p8 }
  0x92   : > { %p10533_p3 = pneg %p10532_p9 }
  0x94   : > { %p10538_p4 = pnand %p10536_p1, %p10533_p3 }
  0x96   : > { %10541 = shalt.err (!%p10538_p4)
}
  0x97   : > { %s10542_s24 = scalar_lea.vmem %s386_s3, 128  ;;  %p10550_p13 = scmp.lt.s32.totalorder %s386_s3, %s386_s3 }
  0x98   : > { %p10543_p10 = scmp.ne.s32.totalorder %s386_s3, %s10542_s24  ;;  %p10551_p0 = scmp.lt.s32.totalorder %s10542_s24, %s10542_s24 }
  0x9a   : > { %p10545_p11 = pnand %p10543_p10, %p10868_p8  ;;  %p10552_p2 = por %p10551_p0, %p10550_p13 }
  0x9c   : > { %p10546_p12 = pneg %p10545_p11 }
  0x9e   : > { %p10553_p5 = pnand %p10552_p2, %p10546_p12 }
  0xa0   : > { %10556 = shalt.err (!%p10553_p5)
}
  0xa1   : > { %10241 = dma.hbm_to_vmem [thread:$0]  (!%p10854_p6), %s12347_s7, 128, %s386_s3, [#allocation14]  }
  0xa2   : > { %s10557_s30 = scalar_lea.hbm %s12349_s9, 128 }
  0xa3   : > { %p10558_p7 = scmp.ne.s32.totalorder %s12349_s9, %s10557_s30  ;;  %p10564_p1 = scmp.lt.u32.totalorder %s10557_s30, %s12349_s9 }
  0xa5   : > { %p10560_p9 = pnand %p10558_p7, %p10868_p8 }
  0xa7   : > { %p10561_p3 = pneg %p10560_p9 }
  0xa9   : > { %p10566_p4 = pnand %p10564_p1, %p10561_p3 }
  0xab   : > { %10569 = shalt.err (!%p10566_p4)
}
  0xac   : > { %s10570_s11 = scalar_lea.vmem %s408_s12, 128  ;;  %p10578_p13 = scmp.lt.s32.totalorder %s408_s12, %s408_s12 }
  0xad   : > { %p10571_p10 = scmp.ne.s32.totalorder %s408_s12, %s10570_s11  ;;  %p10579_p0 = scmp.lt.s32.totalorder %s10570_s11, %s10570_s11 }
  0xaf   : > { %p10573_p11 = pnand %p10571_p10, %p10868_p8  ;;  %p10580_p2 = por %p10579_p0, %p10578_p13 }
  0xb1   : > { %p10574_p12 = pneg %p10573_p11 }
  0xb3   : > { %p10581_p5 = pnand %p10580_p2, %p10574_p12 }
  0xb5   : > { %10584 = shalt.err (!%p10581_p5)
}
  0xb6   : > { %10247 = dma.hbm_to_vmem [thread:$0]  (!%p10854_p6), %s12349_s9, 128, %s408_s12, [#allocation17]  }
  0xb7   : > { %s10742_s24 = smov [#allocation19]   ;;  %s10585_s4 = scalar_lea.hbm %s12350_s10, 128 }
  0xb8   : > { %s418_s21 = sshll.u32 %s10742_s24, 4  ;;  %p10586_p7 = scmp.ne.s32.totalorder %s12350_s10, %s10585_s4  ;;  %s419_s21 = int_to_ptr.vmem [resolvable:$true] %s418_s21 }
  0xb9   : > { %p10592_p1 = scmp.lt.u32.totalorder %s10585_s4, %s12350_s10 }
  0xba   : > { %p10588_p9 = pnand %p10586_p7, %p10868_p8 }
  0xbc   : > { %p10589_p3 = pneg %p10588_p9 }
  0xbe   : > { %p10594_p4 = pnand %p10592_p1, %p10589_p3 }
  0xc0   : > { %10597 = shalt.err (!%p10594_p4)
}
  0xc1   : > { %s10598_s12 = scalar_lea.vmem %s419_s21, 128  ;;  %p10606_p13 = scmp.lt.s32.totalorder %s419_s21, %s419_s21 }
  0xc2   : > { %p10599_p10 = scmp.ne.s32.totalorder %s419_s21, %s10598_s12  ;;  %p10607_p0 = scmp.lt.s32.totalorder %s10598_s12, %s10598_s12 }
  0xc4   : > { %p10601_p11 = pnand %p10599_p10, %p10868_p8  ;;  %p10608_p2 = por %p10607_p0, %p10606_p13 }
  0xc6   : > { %p10602_p12 = pneg %p10601_p11 }
  0xc8   : > { %p10609_p5 = pnand %p10608_p2, %p10602_p12 }
  0xca   : > { %10612 = shalt.err (!%p10609_p5)
}
  0xcb   : > { %10250 = dma.hbm_to_vmem [thread:$0]  (!%p10854_p6), %s12350_s10, 128, %s419_s21, [#allocation20]  }
  0xcc   : > { %s11024_s23 = sadd.s32 1, %s10731_s0   ;;  %s63_s17 = sadd.s32 1, %s10727_s27 }
  0xcd   : > { %s60_s3 = ssub.s32 %s10731_s0, %s11024_s23  ;;  %p70_p8 = scmp.ne.s32.totalorder %s10727_s27, %s10723_s26 }
  0xce   : > { %p61_p7 = scmp.eq.s32.totalorder %s60_s3, 0  ;;  %p71_p9 = scmp.eq.s32.totalorder %s10731_s0, 0 }
  0xcf   : > { %p76_p3 = scmp.ne.s32.totalorder %s10723_s26, %s10719_s25  ;;  %p10266_p1 = scmp.lt.s32.totalorder %s10731_s0, 2 }
  0xd0   : > { %s11036_s13 = scalar_select %p61_p7, %s10727_s27, %s63_s17  }
  0xd1   : > { %p72_p4 = por %p71_p9, %p70_p8  ;;  %p12366_p10 = scmp.eq.s32.totalorder %s10838_s29, 0 }
  0xd2   : > { %s11045_s14 = sand.u32 1, %s10727_s27   ;;  %s10131_s21 = sshll.u32 %s10731_s0, 10 }
  0xd3   : > { %p11040_p11 = por %p12366_p10, %p76_p3  ;;  %s9067_s16 = sshll.u32 %s11045_s14, 6 }
  0xd4   : > { %s11052_s25 = scalar_lea.hbm %s12341_s1, %s10131_s21  ;;  %s436_s18 = scalar_lea.vmem [#allocation5], %s9067_s16 }
  0xd5   : > { %s444_s19 = sshll.u32 %s436_s18, 4  ;;  %p11054_p6 = pnand %p10266_p1, %p72_p4  ;;  %s11058_s19 = int_to_ptr.vmem [resolvable:$true] %s444_s19 }
  0xd6   : > { %s9070_s12 = sshll.u32 %s11045_s14, 12  ;;  %s433_s22 = scalar_lea.sflag [#allocation6], %s11045_s14 }
  0xd7   : > { %s10613_s11 = scalar_lea.hbm %s11052_s25, 1024  ;;  %p10615_p13 = pneg %p11054_p6 }
  0xd8   : > { %p10614_p12 = scmp.ne.s32.totalorder %s11052_s25, %s10613_s11  ;;  %s10618_s21 = scalar_lea.hbm %s12341_s1, 2048 }
  0xd9   : > { %p10619_p5 = scmp.lt.u32.totalorder %s11052_s25, %s12341_s1  ;;  %p10620_p8 = scmp.lt.u32.totalorder %s10618_s21, %s10613_s11 }
  0xda   : > { %p10616_p0 = pnand %p10615_p13, %p10614_p12  ;;  %p10622_p9 = scmp.lt.u32.totalorder %s10613_s11, %s11052_s25 }
  0xdb   : > { %p10621_p7 = por %p10620_p8, %p10619_p5 }
  0xdc   : > { %p10617_p2 = pneg %p10616_p0 }
  0xdd   : > { %p10623_p3 = por %p10622_p9, %p10621_p7 }
  0xdf   : > { %p10624_p1 = pnand %p10623_p3, %p10617_p2 }
  0xe1   : > { %10627 = shalt.err (!%p10624_p1)
}
  0xe2   : > { %s10628_s30 = scalar_lea.vmem %s11058_s19, 1024  ;;  %s10743_s18 = smov [#allocation5]  }
  0xe3   : > { %p10629_p4 = scmp.ne.s32.totalorder %s11058_s19, %s10628_s30  ;;  %s10633_s17 = sshll.u32 %s10743_s18, 4  ;;  %s10634_s17 = int_to_ptr.vmem [resolvable:$false] %s10633_s17 }
  0xe4   : > { %s10635_s3 = scalar_lea.vmem %s10634_s17, 2048  ;;  %p10636_p0 = scmp.lt.s32.totalorder %s11058_s19, %s10634_s17 }
  0xe5   : > { %p10631_p10 = pnand %p10629_p4, %p10615_p13  ;;  %p10637_p5 = scmp.lt.s32.totalorder %s10635_s3, %s10628_s30 }
  0xe7   : > { %p10632_p12 = pneg %p10631_p10  ;;  %p10638_p8 = por %p10637_p5, %p10636_p0 }
  0xe9   : > { %p10639_p7 = pnand %p10638_p8, %p10632_p12 }
  0xeb   : > { %10642 = shalt.err (!%p10639_p7)
}
  0xec   : > { %10254 = dma.hbm_to_vmem [thread:$0]  (!%p11054_p6), %s11052_s25, 1024, %s11058_s19, %s433_s22  }
  0xed   : > { %s455_s11 = scalar_lea.vmem [#allocation7], %s9070_s12  ;;  %s451_s16 = sand.u32 1, %s10731_s0  }
  0xee   : > { %s463_s21 = sshll.u32 %s455_s11, 4  ;;  %s10133_s4 = sshll.u32 %s10731_s0, 16  ;;  %s11090_s21 = int_to_ptr.vmem [resolvable:$true] %s463_s21 }
  0xef   : > { %s11096_s17 = scalar_lea.hbm %s12342_s2, %s10133_s4  ;;  %s11098_s3 = scalar_lea.sflag [#allocation8], %s451_s16 }
  0xf0   : > { %s10643_s28 = scalar_lea.hbm %s11096_s17, 65536  ;;  %s10648_s0 = scalar_lea.hbm %s12342_s2, 131072 }
  0xf1   : > { %p10644_p2 = scmp.ne.s32.totalorder %s11096_s17, %s10643_s28  ;;  %p10649_p1 = scmp.lt.u32.totalorder %s11096_s17, %s12342_s2 }
  0xf2   : > { %p10650_p4 = scmp.lt.u32.totalorder %s10648_s0, %s10643_s28  ;;  %p10652_p12 = scmp.lt.u32.totalorder %s10643_s28, %s11096_s17 }
  0xf3   : > { %p10646_p9 = pnand %p10644_p2, %p10615_p13 }
  0xf4   : > { %p10651_p10 = por %p10650_p4, %p10649_p1 }
  0xf5   : > { %p10647_p3 = pneg %p10646_p9 }
  0xf6   : > { %p10653_p0 = por %p10652_p12, %p10651_p10 }
  0xf8   : > { %p10654_p5 = pnand %p10653_p0, %p10647_p3 }
  0xfa   : > { %10657 = shalt.err (!%p10654_p5)
}
  0xfb   : > { %s10658_s22 = scalar_lea.vmem %s11090_s21, 65536  ;;  %s10744_s11 = smov [#allocation7]  }
  0xfc   : > { %p10659_p8 = scmp.ne.s32.totalorder %s11090_s21, %s10658_s22  ;;  %s10663_s16 = sshll.u32 %s10744_s11, 4  ;;  %s10664_s16 = int_to_ptr.vmem [resolvable:$false] %s10663_s16 }
  0xfd   : > { %s10665_s4 = scalar_lea.vmem %s10664_s16, 131072  ;;  %p10666_p9 = scmp.lt.s32.totalorder %s11090_s21, %s10664_s16 }
  0xfe   : > { %p10661_p7 = pnand %p10659_p8, %p10615_p13  ;;  %p10667_p1 = scmp.lt.s32.totalorder %s10665_s4, %s10658_s22 }
 0x100   : > { %p10662_p2 = pneg %p10661_p7  ;;  %p10668_p4 = por %p10667_p1, %p10666_p9 }
 0x102   : > { %p10669_p10 = pnand %p10668_p4, %p10662_p2 }
 0x104   : > { %10672 = shalt.err (!%p10669_p10)
}
 0x105   : > { %s12369_s28 = smov 512   ;;  %s12370_s30 = sld [smem:[#allocation28_spill]] }
 0x106   : > { %10257 = dma.hbm_to_vmem [thread:$0]  (!%p11054_p6), %s11096_s17, 65536, %s11090_s21, %s11098_s3, %s12369_s28, %s12369_s28, %s10737_s15  }
 0x10b   : > { %p12371_p13 = scmp.ne.s32.totalorder %s12370_s30, 0 }
 0x10c   : > { %s477_s18 = sand.u32 (!%p12371_p13), 1, %s10723_s26  }
 0x10d   : > { %475 = sbr.rel (%p12371_p13) target bundleno = 2010 (0x7da), region = 68  ;;  %s9075_s14 = sshll.u32 (!%p12371_p13), %s477_s18, 6 }
 0x10e   : > { %s478_s25 = scalar_lea.sflag (!%p12371_p13), [#allocation6], %s477_s18  ;;  %s11130_s0 = scalar_lea.vmem (!%p12371_p13), [#allocation5], %s9075_s14 }
 0x114   : > { %10690 = dma.done.wait (%p11040_p11), %s478_s25, 1024  }
 0x115   : > { %10692 = vsyncadd (%p11040_p11), %s478_s25, 4294966272  ;;  %s486_s20 = sand.u32 1, %s10838_s29   ;;  %s9076_s19 = sshll.u32 %s477_s18, 12 }
 0x116   : > { %s487_s15 = scalar_lea.sflag [#allocation8], %s486_s20  ;;  %s11137_s21 = scalar_lea.vmem [#allocation7], %s9076_s19 }
 0x117   : > { %10694 = dma.done.wait (%p11040_p11), %s487_s15, 65536  }
 0x118   : > { %10696 = vsyncadd (%p11040_p11), %s487_s15, 4294901760  ;;  %p12372_p6 = scmp.eq.s32.totalorder %s10838_s29, 0 }
 0x11a   : > { %10698 = dma.done.wait (%p12372_p6), [#allocation8], 128   ;;  %p12373_p3 = pmov %p12372_p6 }
 0x11c   : > { %10700 = vsyncadd (%p12373_p3), [#allocation8], 4294967168  ;;  %p12374_p12 = pmov %p12373_p3 }
 0x11d   : > { %p12375_p0 = pmov %p12373_p3 }
 0x11e   : > { %10702 = dma.done.wait (%p12374_p12), [#allocation11], 256  }
 0x11f   : > { %10704 = vsyncadd (%p12375_p0), [#allocation11], 4294967040  ;;  %p12376_p5 = pmov %p12375_p0 }
 0x120   : > { %p12377_p8 = pmov %p12375_p0 }
 0x121   : > { %10706 = dma.done.wait (%p12376_p5), [#allocation14], 65664  }
 0x122   : > { %10708 = vsyncadd (%p12377_p8), [#allocation14], 4294901632  ;;  %p12378_p11 = pmov %p12375_p0 }
 0x123   : > { %p12379_p7 = pmov %p12375_p0 }
 0x124   : > { %10710 = dma.done.wait (%p12378_p11), [#allocation17], 256  }
 0x125   : > { %10712 = vsyncadd (%p12379_p7), [#allocation17], 4294967040  ;;  %p12380_p2 = pmov %p12375_p0 }
 0x126   : > { %p12381_p9 = pmov %p12375_p0 }
 0x127   : > { %10714 = dma.done.wait (%p12380_p2), [#allocation20], 128  }
 0x128   : > { %10716 = vsyncadd (%p12381_p9), [#allocation20], 4294967168  ;;  %p12382_p1 = scmp.ne.s32.totalorder %s10838_s29, 0 }
 0x129   : > { %v10745_v1 = vmov (!%p12382_p1), 0.0  }
 0x12a   : > { %568 = sbr.rel (%p12382_p1) target bundleno = 305 (0x131), region = 112  ;;  %569 = vst [vmem:[#allocation2] sm:$0xff] (!%p12382_p1), %v10745_v1  ;;  %570 = vst [vmem:[#allocation2 + $0x8] sm:$0xff] (!%p12382_p1), %v10745_v1 }
 0x12b   : > { %571 = vst [vmem:[#allocation2 + $0x10] sm:$0xff] (!%p12382_p1), %v10745_v1  ;;  %572 = vst [vmem:[#allocation2 + $0x18] sm:$0xff] (!%p12382_p1), %v10745_v1 }
 0x12c   : > { %573 = vst [vmem:[#allocation2 + $0x20] sm:$0xff] (!%p12382_p1), %v10745_v1  ;;  %574 = vst [vmem:[#allocation2 + $0x28] sm:$0xff] (!%p12382_p1), %v10745_v1 }
 0x12d   : > { %575 = vst [vmem:[#allocation2 + $0x30] sm:$0xff] (!%p12382_p1), %v10745_v1  ;;  %576 = vst [vmem:[#allocation2 + $0x38] sm:$0xff] (!%p12382_p1), %v10745_v1 }
 0x131 PF: > { %v601_v2 = vld [vmem:[%s11137_s21] sm:$0xff]  ;;  %v586_v55 = vld [vmem:[%s11130_s0 + $0x8] sm:$0xff]  ;;  %v588_v56 = vld [vmem:[%s11130_s0 + $0x18] sm:$0xff]  ;;  %p9598_p4 = scmp.ne.s32.totalorder %s10838_s29, 1 }
 0x132   : > { %v605_v3 = vld [vmem:[%s11137_s21 + $0x20] sm:$0xff]  ;;  %v11197_v60 = vpack.c.bf16 %v586_v55, %v586_v55  ;;  %v11199_v61 = vpack.c.bf16 %v588_v56, %v588_v56  ;;  %s4349_s29 = sld [smem:[#allocation3]] (!%p9598_p4)  ;;  %s12392_s3 = sld [smem:[#allocation31_spill]] (!%p9598_p4) }
 0x133   : > { %v729_v4 = vld [vmem:[%s11137_s21 + $0x400] sm:$0xff]  ;;  %v9087_v5 = vcombine.high %v601_v2, %v605_v3  ;;  %v9086_v7 = vcombine.low %v601_v2, %v605_v3 }
 0x134   : > { %v733_v6 = vld [vmem:[%s11137_s21 + $0x420] sm:$0xff]  ;;  %3705 = vmatprep.mubr.bf16.mxu0 %v11197_v60  ;;  %3746 = vmatprep.mubr.bf16.mxu1 %v11199_v61 }
 0x135   : > { %v609_v8 = vld [vmem:[%s11137_s21 + $0x40] sm:$0xff]  ;;  %v9215_v10 = vcombine.high %v729_v4, %v733_v6  ;;  %v9214_v11 = vcombine.low %v729_v4, %v733_v6  ;;  %3673 = vmatprep.subr.bf16.mxu0 %v9087_v5 }
 0x136   : > { %v613_v9 = vld [vmem:[%s11137_s21 + $0x60] sm:$0xff]  ;;  %3674 = vmatpush1.bf16.msra.mxu0 %v9086_v7 }
 0x137   : > { %v9095_v12 = vcombine.high %v609_v8, %v613_v9  ;;  %v737_v13 = vld [vmem:[%s11137_s21 + $0x440] sm:$0xff]  ;;  %3714 = vmatprep.subr.bf16.mxu1 %v9215_v10  ;;  %v9094_v20 = vcombine.low %v609_v8, %v613_v9 }
 0x138   : > { %v741_v14 = vld [vmem:[%s11137_s21 + $0x460] sm:$0xff]  ;;  %3715 = vmatpush1.bf16.msra.mxu1 %v9214_v11 }
 0x139   : > { %v617_v15 = vld [vmem:[%s11137_s21 + $0x80] sm:$0xff]  ;;  %v9223_v16 = vcombine.high %v737_v13, %v741_v14  ;;  %3675 = vmatprep.subr.bf16.mxu0 %v9095_v12  ;;  %v9222_v21 = vcombine.low %v737_v13, %v741_v14 }
 0x13a   : > { %v621_v17 = vld [vmem:[%s11137_s21 + $0xa0] sm:$0xff]  ;;  %3676 = vmatpush1.bf16.msra.mxu0 %v9094_v20 }
 0x13b   : > { %v745_v18 = vld [vmem:[%s11137_s21 + $0x480] sm:$0xff]  ;;  %v9103_v22 = vcombine.high %v617_v15, %v621_v17  ;;  %3716 = vmatprep.subr.bf16.mxu1 %v9223_v16  ;;  %v9102_v28 = vcombine.low %v617_v15, %v621_v17 }
 0x13c   : > { %v749_v19 = vld [vmem:[%s11137_s21 + $0x4a0] sm:$0xff]  ;;  %3717 = vmatpush1.bf16.msra.mxu1 %v9222_v21 }
 0x13d   : > { %v9231_v23 = vcombine.high %v745_v18, %v749_v19  ;;  %v625_v24 = vld [vmem:[%s11137_s21 + $0xc0] sm:$0xff]  ;;  %3677 = vmatprep.subr.bf16.mxu0 %v9103_v22  ;;  %v9230_v29 = vcombine.low %v745_v18, %v749_v19 }
 0x13e   : > { %v629_v25 = vld [vmem:[%s11137_s21 + $0xe0] sm:$0xff]  ;;  %3678 = vmatpush1.bf16.msra.mxu0 %v9102_v28 }
 0x13f   : > { %v753_v26 = vld [vmem:[%s11137_s21 + $0x4c0] sm:$0xff]  ;;  %v9111_v30 = vcombine.high %v625_v24, %v629_v25  ;;  %3718 = vmatprep.subr.bf16.mxu1 %v9231_v23  ;;  %v9110_v36 = vcombine.low %v625_v24, %v629_v25 }
 0x140   : > { %v757_v27 = vld [vmem:[%s11137_s21 + $0x4e0] sm:$0xff]  ;;  %3719 = vmatpush1.bf16.msra.mxu1 %v9230_v29 }
 0x141   : > { %v9239_v31 = vcombine.high %v753_v26, %v757_v27  ;;  %v633_v32 = vld [vmem:[%s11137_s21 + $0x100] sm:$0xff]  ;;  %3679 = vmatprep.subr.bf16.mxu0 %v9111_v30  ;;  %v9238_v37 = vcombine.low %v753_v26, %v757_v27 }
 0x142   : > { %v637_v33 = vld [vmem:[%s11137_s21 + $0x120] sm:$0xff]  ;;  %3680 = vmatpush1.bf16.msra.mxu0 %v9110_v36 }
 0x143   : > { %v761_v34 = vld [vmem:[%s11137_s21 + $0x500] sm:$0xff]  ;;  %v9119_v38 = vcombine.high %v633_v32, %v637_v33  ;;  %3720 = vmatprep.subr.bf16.mxu1 %v9239_v31  ;;  %v9118_v44 = vcombine.low %v633_v32, %v637_v33 }
 0x144   : > { %v765_v35 = vld [vmem:[%s11137_s21 + $0x520] sm:$0xff]  ;;  %3721 = vmatpush1.bf16.msra.mxu1 %v9238_v37 }
 0x145   : > { %v9247_v39 = vcombine.high %v761_v34, %v765_v35  ;;  %v641_v40 = vld [vmem:[%s11137_s21 + $0x140] sm:$0xff]  ;;  %3681 = vmatprep.subr.bf16.mxu0 %v9119_v38  ;;  %v9246_v45 = vcombine.low %v761_v34, %v765_v35 }
 0x146   : > { %v645_v41 = vld [vmem:[%s11137_s21 + $0x160] sm:$0xff]  ;;  %3682 = vmatpush1.bf16.msra.mxu0 %v9118_v44 }
 0x147   : > { %v769_v42 = vld [vmem:[%s11137_s21 + $0x540] sm:$0xff]  ;;  %v9127_v46 = vcombine.high %v641_v40, %v645_v41  ;;  %3722 = vmatprep.subr.bf16.mxu1 %v9247_v39  ;;  %v9126_v52 = vcombine.low %v641_v40, %v645_v41 }
 0x148   : > { %v773_v43 = vld [vmem:[%s11137_s21 + $0x560] sm:$0xff]  ;;  %3723 = vmatpush1.bf16.msra.mxu1 %v9246_v45 }
 0x149   : > { %v9255_v47 = vcombine.high %v769_v42, %v773_v43  ;;  %v649_v48 = vld [vmem:[%s11137_s21 + $0x180] sm:$0xff]  ;;  %3683 = vmatprep.subr.bf16.mxu0 %v9127_v46  ;;  %v9254_v53 = vcombine.low %v769_v42, %v773_v43 }
 0x14a   : > { %v653_v49 = vld [vmem:[%s11137_s21 + $0x1a0] sm:$0xff]  ;;  %3684 = vmatpush1.bf16.msra.mxu0 %v9126_v52 }
 0x14b   : > { %v777_v50 = vld [vmem:[%s11137_s21 + $0x580] sm:$0xff]  ;;  %v9135_v54 = vcombine.high %v649_v48, %v653_v49  ;;  %3724 = vmatprep.subr.bf16.mxu1 %v9255_v47  ;;  %v9134_v0 = vcombine.low %v649_v48, %v653_v49 }
 0x14c   : > { %v781_v51 = vld [vmem:[%s11137_s21 + $0x5a0] sm:$0xff]  ;;  %3725 = vmatpush1.bf16.msra.mxu1 %v9254_v53 }
 0x14d   : > { %v9263_v57 = vcombine.high %v777_v50, %v781_v51  ;;  %v657_v58 = vld [vmem:[%s11137_s21 + $0x1c0] sm:$0xff]  ;;  %3685 = vmatprep.subr.bf16.mxu0 %v9135_v54  ;;  %v9262_v1 = vcombine.low %v777_v50, %v781_v51 }
 0x14e   : > { %v661_v59 = vld [vmem:[%s11137_s21 + $0x1e0] sm:$0xff]  ;;  %3686 = vmatpush1.bf16.msra.mxu0 %v9134_v0 }
 0x14f   : > { %v785_v62 = vld [vmem:[%s11137_s21 + $0x5c0] sm:$0xff]  ;;  %v9143_v2 = vcombine.high %v657_v58, %v661_v59  ;;  %3726 = vmatprep.subr.bf16.mxu1 %v9263_v57  ;;  %v9142_v8 = vcombine.low %v657_v58, %v661_v59 }
 0x150   : > { %v789_v63 = vld [vmem:[%s11137_s21 + $0x5e0] sm:$0xff]  ;;  %3727 = vmatpush1.bf16.msra.mxu1 %v9262_v1 }
 0x151   : > { %v9271_v3 = vcombine.high %v785_v62, %v789_v63  ;;  %v665_v4 = vld [vmem:[%s11137_s21 + $0x200] sm:$0xff]  ;;  %3687 = vmatprep.subr.bf16.mxu0 %v9143_v2  ;;  %v9270_v9 = vcombine.low %v785_v62, %v789_v63 }
 0x152   : > { %v669_v5 = vld [vmem:[%s11137_s21 + $0x220] sm:$0xff]  ;;  %3688 = vmatpush1.bf16.msra.mxu0 %v9142_v8 }
 0x153   : > { %v793_v6 = vld [vmem:[%s11137_s21 + $0x600] sm:$0xff]  ;;  %v9151_v10 = vcombine.high %v665_v4, %v669_v5  ;;  %3728 = vmatprep.subr.bf16.mxu1 %v9271_v3  ;;  %v9150_v16 = vcombine.low %v665_v4, %v669_v5 }
 0x154   : > { %v797_v7 = vld [vmem:[%s11137_s21 + $0x620] sm:$0xff]  ;;  %3729 = vmatpush1.bf16.msra.mxu1 %v9270_v9 }
 0x155   : > { %v9279_v11 = vcombine.high %v793_v6, %v797_v7  ;;  %v673_v12 = vld [vmem:[%s11137_s21 + $0x240] sm:$0xff]  ;;  %3689 = vmatprep.subr.bf16.mxu0 %v9151_v10  ;;  %v9278_v17 = vcombine.low %v793_v6, %v797_v7 }
 0x156   : > { %v677_v13 = vld [vmem:[%s11137_s21 + $0x260] sm:$0xff]  ;;  %3690 = vmatpush1.bf16.msra.mxu0 %v9150_v16 }
 0x157   : > { %v801_v14 = vld [vmem:[%s11137_s21 + $0x640] sm:$0xff]  ;;  %v9159_v18 = vcombine.high %v673_v12, %v677_v13  ;;  %3730 = vmatprep.subr.bf16.mxu1 %v9279_v11  ;;  %v9158_v24 = vcombine.low %v673_v12, %v677_v13  ;;  %v587_v13 = vld [vmem:[%s11130_s0 + $0x10] sm:$0xff] }
 0x158   : > { %v805_v15 = vld [vmem:[%s11137_s21 + $0x660] sm:$0xff]  ;;  %3731 = vmatpush1.bf16.msra.mxu1 %v9278_v17 }
 0x159   : > { %v9287_v19 = vcombine.high %v801_v14, %v805_v15  ;;  %v681_v20 = vld [vmem:[%s11137_s21 + $0x280] sm:$0xff]  ;;  %3691 = vmatprep.subr.bf16.mxu0 %v9159_v18  ;;  %v9286_v25 = vcombine.low %v801_v14, %v805_v15 }
 0x15a   : > { %v685_v21 = vld [vmem:[%s11137_s21 + $0x2a0] sm:$0xff]  ;;  %3692 = vmatpush1.bf16.msra.mxu0 %v9158_v24  ;;  %v592_v24 = vld [vmem:[%s11130_s0 + $0x38] sm:$0xff] }
 0x15b   : > { %v809_v22 = vld [vmem:[%s11137_s21 + $0x680] sm:$0xff]  ;;  %v9167_v26 = vcombine.high %v681_v20, %v685_v21  ;;  %3732 = vmatprep.subr.bf16.mxu1 %v9287_v19  ;;  %v9166_v32 = vcombine.low %v681_v20, %v685_v21  ;;  %v590_v21 = vld [vmem:[%s11130_s0 + $0x28] sm:$0xff] }
 0x15c   : > { %v813_v23 = vld [vmem:[%s11137_s21 + $0x6a0] sm:$0xff]  ;;  %3733 = vmatpush1.bf16.msra.mxu1 %v9286_v25 }
 0x15d   : > { %v9295_v27 = vcombine.high %v809_v22, %v813_v23  ;;  %v689_v28 = vld [vmem:[%s11137_s21 + $0x2c0] sm:$0xff]  ;;  %3693 = vmatprep.subr.bf16.mxu0 %v9167_v26  ;;  %v9294_v33 = vcombine.low %v809_v22, %v813_v23  ;;  %v11250_v22 = vpack.c.bf16 %v587_v13, %v587_v13 }
 0x15e   : > { %v693_v29 = vld [vmem:[%s11137_s21 + $0x2e0] sm:$0xff]  ;;  %3694 = vmatpush1.bf16.msra.mxu0 %v9166_v32 }
 0x15f   : > { %v817_v30 = vld [vmem:[%s11137_s21 + $0x6c0] sm:$0xff]  ;;  %v9175_v34 = vcombine.high %v689_v28, %v693_v29  ;;  %3734 = vmatprep.subr.bf16.mxu1 %v9295_v27  ;;  %v9174_v40 = vcombine.low %v689_v28, %v693_v29 }
 0x160   : > { %v821_v31 = vld [vmem:[%s11137_s21 + $0x6e0] sm:$0xff]  ;;  %3735 = vmatpush1.bf16.msra.mxu1 %v9294_v33  ;;  %v11260_v33 = vpack.c.bf16 %v592_v24, %v592_v24 }
 0x161   : > { %v9303_v35 = vcombine.high %v817_v30, %v821_v31  ;;  %v697_v36 = vld [vmem:[%s11137_s21 + $0x300] sm:$0xff]  ;;  %3695 = vmatprep.subr.bf16.mxu0 %v9175_v34  ;;  %v9302_v41 = vcombine.low %v817_v30, %v821_v31  ;;  %v11255_v30 = vpack.c.bf16 %v590_v21, %v590_v21 }
 0x162   : > { %v701_v37 = vld [vmem:[%s11137_s21 + $0x320] sm:$0xff]  ;;  %3696 = vmatpush1.bf16.msra.mxu0 %v9174_v40 }
 0x163   : > { %v825_v38 = vld [vmem:[%s11137_s21 + $0x700] sm:$0xff]  ;;  %v9183_v42 = vcombine.high %v697_v36, %v701_v37  ;;  %3736 = vmatprep.subr.bf16.mxu1 %v9303_v35  ;;  %v9182_v48 = vcombine.low %v697_v36, %v701_v37 }
 0x164   : > { %v829_v39 = vld [vmem:[%s11137_s21 + $0x720] sm:$0xff]  ;;  %3737 = vmatpush1.bf16.msra.mxu1 %v9302_v41 }
 0x165   : > { %v9311_v43 = vcombine.high %v825_v38, %v829_v39  ;;  %v705_v44 = vld [vmem:[%s11137_s21 + $0x340] sm:$0xff]  ;;  %3697 = vmatprep.subr.bf16.mxu0 %v9183_v42  ;;  %v9310_v49 = vcombine.low %v825_v38, %v829_v39 }
 0x166   : > { %v709_v45 = vld [vmem:[%s11137_s21 + $0x360] sm:$0xff]  ;;  %3698 = vmatpush1.bf16.msra.mxu0 %v9182_v48 }
 0x167   : > { %v833_v46 = vld [vmem:[%s11137_s21 + $0x740] sm:$0xff]  ;;  %v9191_v50 = vcombine.high %v705_v44, %v709_v45  ;;  %3738 = vmatprep.subr.bf16.mxu1 %v9311_v43  ;;  %v9190_v56 = vcombine.low %v705_v44, %v709_v45 }
 0x168   : > { %v837_v47 = vld [vmem:[%s11137_s21 + $0x760] sm:$0xff]  ;;  %3739 = vmatpush1.bf16.msra.mxu1 %v9310_v49 }
 0x169   : > { %v9319_v51 = vcombine.high %v833_v46, %v837_v47  ;;  %v713_v52 = vld [vmem:[%s11137_s21 + $0x380] sm:$0xff]  ;;  %3699 = vmatprep.subr.bf16.mxu0 %v9191_v50  ;;  %v9318_v57 = vcombine.low %v833_v46, %v837_v47 }
 0x16a   : > { %v717_v53 = vld [vmem:[%s11137_s21 + $0x3a0] sm:$0xff]  ;;  %3700 = vmatpush1.bf16.msra.mxu0 %v9190_v56 }
 0x16b   : > { %v841_v54 = vld [vmem:[%s11137_s21 + $0x780] sm:$0xff]  ;;  %v9199_v58 = vcombine.high %v713_v52, %v717_v53  ;;  %3740 = vmatprep.subr.bf16.mxu1 %v9319_v51  ;;  %v9198_v2 = vcombine.low %v713_v52, %v717_v53 }
 0x16c   : > { %v845_v55 = vld [vmem:[%s11137_s21 + $0x7a0] sm:$0xff]  ;;  %3741 = vmatpush1.bf16.msra.mxu1 %v9318_v57 }
 0x16d   : > { %v9327_v59 = vcombine.high %v841_v54, %v845_v55  ;;  %v721_v62 = vld [vmem:[%s11137_s21 + $0x3c0] sm:$0xff]  ;;  %3701 = vmatprep.subr.bf16.mxu0 %v9199_v58  ;;  %v9326_v3 = vcombine.low %v841_v54, %v845_v55 }
 0x16e   : > { %v725_v63 = vld [vmem:[%s11137_s21 + $0x3e0] sm:$0xff]  ;;  %3702 = vmatpush1.bf16.msra.mxu0 %v9198_v2 }
 0x16f   : > { %v849_v0 = vld [vmem:[%s11137_s21 + $0x7c0] sm:$0xff]  ;;  %v9207_v4 = vcombine.high %v721_v62, %v725_v63  ;;  %3742 = vmatprep.subr.bf16.mxu1 %v9327_v59  ;;  %v9206_v10 = vcombine.low %v721_v62, %v725_v63 }
 0x170   : > { %v853_v1 = vld [vmem:[%s11137_s21 + $0x7e0] sm:$0xff]  ;;  %3743 = vmatpush1.bf16.msra.mxu1 %v9326_v3 }
 0x171   : > { %v9335_v5 = vcombine.high %v849_v0, %v853_v1  ;;  %v857_v6 = vld [vmem:[%s11137_s21 + $0x800] sm:$0xff]  ;;  %3703 = vmatprep.subr.bf16.mxu0 %v9207_v4  ;;  %v9334_v12 = vcombine.low %v849_v0, %v853_v1 }
 0x172   : > { %v861_v7 = vld [vmem:[%s11137_s21 + $0x820] sm:$0xff]  ;;  %3704 = vmatpush1.bf16.msra.mxu0 %v9206_v10 }
 0x173   : > { %v985_v8 = vld [vmem:[%s11137_s21 + $0xc00] sm:$0xff]  ;;  %v9343_v14 = vcombine.high %v857_v6, %v861_v7  ;;  %3744 = vmatprep.subr.bf16.mxu1 %v9335_v5  ;;  %v9342_v23 = vcombine.low %v857_v6, %v861_v7 }
 0x174   : > { %v989_v9 = vld [vmem:[%s11137_s21 + $0xc20] sm:$0xff]  ;;  %3745 = vmatpush1.bf16.msra.mxu1 %v9334_v12 }
 0x175   : > { %v585_v11 = vld [vmem:[%s11130_s0] sm:$0xff]  ;;  %v9471_v15 = vcombine.high %v985_v8, %v989_v9  ;;  %3755 = vmatprep.subr.bf16.mxu0 %v9343_v14  ;;  %v9470_v25 = vcombine.low %v985_v8, %v989_v9 }
 0x176   : > { %v865_v16 = vld [vmem:[%s11137_s21 + $0x840] sm:$0xff]  ;;  %v11245_v18 = vpack.c.bf16 %v585_v11, %v585_v11 }
 0x177   : > { %v869_v17 = vld [vmem:[%s11137_s21 + $0x860] sm:$0xff]  ;;  %3796 = vmatprep.subr.bf16.mxu1 %v9471_v15  ;;  %3747 = vmatmul.mubr.bf16.vlgmr.msra.gmra.mrb[0].mxu1 %v11250_v22 }
 0x178   : > { %v993_v19 = vld [vmem:[%s11137_s21 + $0xc40] sm:$0xff]  ;;  %v9351_v26 = vcombine.high %v865_v16, %v869_v17  ;;  %3706 = vmatmul.mubr.bf16.vlgmr.msra.gmra.mrb[0].mxu0 %v11245_v18  ;;  %v9350_v34 = vcombine.low %v865_v16, %v869_v17  ;;  %3797 = vmatpush1.bf16.msra.mxu1 %v9470_v25 }
 0x179   : > { %v997_v20 = vld [vmem:[%s11137_s21 + $0xc60] sm:$0xff]  ;;  %3756 = vmatpush1.bf16.msra.mxu0 %v9342_v23  ;;  %3787 = vmatprep.mubr.bf16.mxu0 %v11255_v30 }
 0x17a   : > { %v9479_v27 = vcombine.high %v993_v19, %v997_v20  ;;  %v873_v28 = vld [vmem:[%s11137_s21 + $0x880] sm:$0xff]  ;;  %3757 = vmatprep.subr.bf16.mxu0 %v9351_v26  ;;  %v9478_v35 = vcombine.low %v993_v19, %v997_v20  ;;  %3828 = vmatprep.mubr.bf16.mxu1 %v11260_v33 }
 0x17b   : > { %v877_v29 = vld [vmem:[%s11137_s21 + $0x8a0] sm:$0xff] }
 0x17c   : > { %v1001_v31 = vld [vmem:[%s11137_s21 + $0xc80] sm:$0xff]  ;;  %v9359_v36 = vcombine.high %v873_v28, %v877_v29  ;;  %3798 = vmatprep.subr.bf16.mxu1 %v9479_v27  ;;  %v9358_v42 = vcombine.low %v873_v28, %v877_v29 }
 0x17d   : > { %v1005_v32 = vld [vmem:[%s11137_s21 + $0xca0] sm:$0xff]  ;;  %3758 = vmatpush1.bf16.msra.mxu0 %v9350_v34  ;;  %3799 = vmatpush1.bf16.msra.mxu1 %v9478_v35 }
 0x17e   : > { %v9487_v37 = vcombine.high %v1001_v31, %v1005_v32  ;;  %v881_v38 = vld [vmem:[%s11137_s21 + $0x8c0] sm:$0xff]  ;;  %3759 = vmatprep.subr.bf16.mxu0 %v9359_v36  ;;  %v9486_v43 = vcombine.low %v1001_v31, %v1005_v32 }
 0x17f   : > { %v885_v39 = vld [vmem:[%s11137_s21 + $0x8e0] sm:$0xff] }
 0x180   : > { %v1009_v40 = vld [vmem:[%s11137_s21 + $0xcc0] sm:$0xff]  ;;  %v9367_v44 = vcombine.high %v881_v38, %v885_v39  ;;  %3800 = vmatprep.subr.bf16.mxu1 %v9487_v37  ;;  %v9366_v50 = vcombine.low %v881_v38, %v885_v39 }
 0x181   : > { %v1013_v41 = vld [vmem:[%s11137_s21 + $0xce0] sm:$0xff]  ;;  %3760 = vmatpush1.bf16.msra.mxu0 %v9358_v42  ;;  %3801 = vmatpush1.bf16.msra.mxu1 %v9486_v43 }
 0x182   : > { %v9495_v45 = vcombine.high %v1009_v40, %v1013_v41  ;;  %v889_v46 = vld [vmem:[%s11137_s21 + $0x900] sm:$0xff]  ;;  %3761 = vmatprep.subr.bf16.mxu0 %v9367_v44  ;;  %v9494_v51 = vcombine.low %v1009_v40, %v1013_v41 }
 0x183   : > { %v893_v47 = vld [vmem:[%s11137_s21 + $0x920] sm:$0xff] }
 0x184   : > { %v1017_v48 = vld [vmem:[%s11137_s21 + $0xd00] sm:$0xff]  ;;  %v9375_v52 = vcombine.high %v889_v46, %v893_v47  ;;  %3802 = vmatprep.subr.bf16.mxu1 %v9495_v45  ;;  %v9374_v58 = vcombine.low %v889_v46, %v893_v47 }
 0x185   : > { %v1021_v49 = vld [vmem:[%s11137_s21 + $0xd20] sm:$0xff]  ;;  %3762 = vmatpush1.bf16.msra.mxu0 %v9366_v50  ;;  %3803 = vmatpush1.bf16.msra.mxu1 %v9494_v51 }
 0x186   : > { %v9503_v53 = vcombine.high %v1017_v48, %v1021_v49  ;;  %v897_v54 = vld [vmem:[%s11137_s21 + $0x940] sm:$0xff]  ;;  %3763 = vmatprep.subr.bf16.mxu0 %v9375_v52  ;;  %v9502_v59 = vcombine.low %v1017_v48, %v1021_v49 }
 0x187   : > { %v901_v55 = vld [vmem:[%s11137_s21 + $0x960] sm:$0xff] }
 0x188   : > { %v1025_v56 = vld [vmem:[%s11137_s21 + $0xd40] sm:$0xff]  ;;  %v9383_v62 = vcombine.high %v897_v54, %v901_v55  ;;  %3804 = vmatprep.subr.bf16.mxu1 %v9503_v53  ;;  %v9382_v4 = vcombine.low %v897_v54, %v901_v55 }
 0x189   : > { %v1029_v57 = vld [vmem:[%s11137_s21 + $0xd60] sm:$0xff]  ;;  %3764 = vmatpush1.bf16.msra.mxu0 %v9374_v58  ;;  %3805 = vmatpush1.bf16.msra.mxu1 %v9502_v59 }
 0x18a   : > { %v9511_v63 = vcombine.high %v1025_v56, %v1029_v57  ;;  %v905_v0 = vld [vmem:[%s11137_s21 + $0x980] sm:$0xff]  ;;  %3765 = vmatprep.subr.bf16.mxu0 %v9383_v62  ;;  %v9510_v5 = vcombine.low %v1025_v56, %v1029_v57 }
 0x18b   : > { %v909_v1 = vld [vmem:[%s11137_s21 + $0x9a0] sm:$0xff] }
 0x18c   : > { %v1033_v2 = vld [vmem:[%s11137_s21 + $0xd80] sm:$0xff]  ;;  %v9391_v6 = vcombine.high %v905_v0, %v909_v1  ;;  %3806 = vmatprep.subr.bf16.mxu1 %v9511_v63  ;;  %v9390_v12 = vcombine.low %v905_v0, %v909_v1 }
 0x18d   : > { %v1037_v3 = vld [vmem:[%s11137_s21 + $0xda0] sm:$0xff]  ;;  %3766 = vmatpush1.bf16.msra.mxu0 %v9382_v4  ;;  %3807 = vmatpush1.bf16.msra.mxu1 %v9510_v5 }
 0x18e   : > { %v9519_v7 = vcombine.high %v1033_v2, %v1037_v3  ;;  %v913_v8 = vld [vmem:[%s11137_s21 + $0x9c0] sm:$0xff]  ;;  %3767 = vmatprep.subr.bf16.mxu0 %v9391_v6  ;;  %v9518_v13 = vcombine.low %v1033_v2, %v1037_v3 }
 0x18f   : > { %v917_v9 = vld [vmem:[%s11137_s21 + $0x9e0] sm:$0xff] }
 0x190   : > { %v1041_v10 = vld [vmem:[%s11137_s21 + $0xdc0] sm:$0xff]  ;;  %v9399_v14 = vcombine.high %v913_v8, %v917_v9  ;;  %3808 = vmatprep.subr.bf16.mxu1 %v9519_v7  ;;  %v9398_v21 = vcombine.low %v913_v8, %v917_v9 }
 0x191   : > { %v1045_v11 = vld [vmem:[%s11137_s21 + $0xde0] sm:$0xff]  ;;  %3768 = vmatpush1.bf16.msra.mxu0 %v9390_v12  ;;  %3809 = vmatpush1.bf16.msra.mxu1 %v9518_v13 }
 0x192   : > { %v9527_v15 = vcombine.high %v1041_v10, %v1045_v11  ;;  %v921_v16 = vld [vmem:[%s11137_s21 + $0xa00] sm:$0xff]  ;;  %3769 = vmatprep.subr.bf16.mxu0 %v9399_v14  ;;  %v9526_v23 = vcombine.low %v1041_v10, %v1045_v11 }
 0x193   : > { %v925_v17 = vld [vmem:[%s11137_s21 + $0xa20] sm:$0xff] }
 0x194   : > { %v1049_v19 = vld [vmem:[%s11137_s21 + $0xe00] sm:$0xff]  ;;  %v9407_v24 = vcombine.high %v921_v16, %v925_v17  ;;  %3810 = vmatprep.subr.bf16.mxu1 %v9527_v15  ;;  %v9406_v31 = vcombine.low %v921_v16, %v925_v17 }
 0x195   : > { %v1053_v20 = vld [vmem:[%s11137_s21 + $0xe20] sm:$0xff]  ;;  %3770 = vmatpush1.bf16.msra.mxu0 %v9398_v21  ;;  %3811 = vmatpush1.bf16.msra.mxu1 %v9526_v23 }
 0x196   : > { %v9535_v25 = vcombine.high %v1049_v19, %v1053_v20  ;;  %v929_v26 = vld [vmem:[%s11137_s21 + $0xa40] sm:$0xff]  ;;  %3771 = vmatprep.subr.bf16.mxu0 %v9407_v24  ;;  %v9534_v32 = vcombine.low %v1049_v19, %v1053_v20  ;;  %v602_v24 = vld [vmem:[%s11137_s21 + $0x8] sm:$0xff] }
 0x197   : > { %v933_v27 = vld [vmem:[%s11137_s21 + $0xa60] sm:$0xff] }
 0x198   : > { %v1057_v28 = vld [vmem:[%s11137_s21 + $0xe40] sm:$0xff]  ;;  %v9415_v34 = vcombine.high %v929_v26, %v933_v27  ;;  %3812 = vmatprep.subr.bf16.mxu1 %v9535_v25  ;;  %v9414_v40 = vcombine.low %v929_v26, %v933_v27  ;;  %v606_v25 = vld [vmem:[%s11137_s21 + $0x28] sm:$0xff] }
 0x199   : > { %v1061_v29 = vld [vmem:[%s11137_s21 + $0xe60] sm:$0xff]  ;;  %3772 = vmatpush1.bf16.msra.mxu0 %v9406_v31  ;;  %3813 = vmatpush1.bf16.msra.mxu1 %v9534_v32  ;;  %v730_v26 = vld [vmem:[%s11137_s21 + $0x408] sm:$0xff]  ;;  %v591_v32 = vld [vmem:[%s11130_s0 + $0x30] sm:$0xff] }
 0x19a   : > { %v9543_v35 = vcombine.high %v1057_v28, %v1061_v29  ;;  %v937_v36 = vld [vmem:[%s11137_s21 + $0xa80] sm:$0xff]  ;;  %3773 = vmatprep.subr.bf16.mxu0 %v9415_v34  ;;  %v9542_v41 = vcombine.low %v1057_v28, %v1061_v29  ;;  %v734_v27 = vld [vmem:[%s11137_s21 + $0x428] sm:$0xff]  ;;  %v9089_v34 = vcombine.high %v602_v24, %v606_v25 }
 0x19b   : > { %v941_v37 = vld [vmem:[%s11137_s21 + $0xaa0] sm:$0xff] }
 0x19c   : > { %v1065_v38 = vld [vmem:[%s11137_s21 + $0xe80] sm:$0xff]  ;;  %v9423_v42 = vcombine.high %v937_v36, %v941_v37  ;;  %3814 = vmatprep.subr.bf16.mxu1 %v9543_v35  ;;  %v9422_v48 = vcombine.low %v937_v36, %v941_v37  ;;  %v9217_v35 = vcombine.high %v730_v26, %v734_v27  ;;  %v610_v36 = vld [vmem:[%s11137_s21 + $0x48] sm:$0xff] }
 0x19d   : > { %v1069_v39 = vld [vmem:[%s11137_s21 + $0xea0] sm:$0xff]  ;;  %3774 = vmatpush1.bf16.msra.mxu0 %v9414_v40  ;;  %3815 = vmatpush1.bf16.msra.mxu1 %v9542_v41  ;;  %v614_v37 = vld [vmem:[%s11137_s21 + $0x68] sm:$0xff]  ;;  %v11329_v41 = vpack.c.bf16 %v591_v32, %v591_v32 }
 0x19e   : > { %v9551_v43 = vcombine.high %v1065_v38, %v1069_v39  ;;  %v945_v44 = vld [vmem:[%s11137_s21 + $0xac0] sm:$0xff]  ;;  %3775 = vmatprep.subr.bf16.mxu0 %v9423_v42  ;;  %v9550_v49 = vcombine.low %v1065_v38, %v1069_v39  ;;  %v738_v39 = vld [vmem:[%s11137_s21 + $0x448] sm:$0xff]  ;;  %v9088_v42 = vcombine.low %v602_v24, %v606_v25 }
 0x19f   : > { %v949_v45 = vld [vmem:[%s11137_s21 + $0xae0] sm:$0xff]  ;;  %v742_v40 = vld [vmem:[%s11137_s21 + $0x468] sm:$0xff] }
 0x1a0   : > { %v1073_v46 = vld [vmem:[%s11137_s21 + $0xec0] sm:$0xff]  ;;  %v9431_v50 = vcombine.high %v945_v44, %v949_v45  ;;  %3816 = vmatprep.subr.bf16.mxu1 %v9551_v43  ;;  %v9430_v56 = vcombine.low %v945_v44, %v949_v45  ;;  %v9216_v43 = vcombine.low %v730_v26, %v734_v27  ;;  %v9097_v44 = vcombine.high %v610_v36, %v614_v37  ;;  %v658_v26 = vld [vmem:[%s11137_s21 + $0x1c8] sm:$0xff] }
 0x1a1   : > { %v1077_v47 = vld [vmem:[%s11137_s21 + $0xee0] sm:$0xff]  ;;  %3776 = vmatpush1.bf16.msra.mxu0 %v9422_v48  ;;  %3817 = vmatpush1.bf16.msra.mxu1 %v9550_v49  ;;  %v9225_v45 = vcombine.high %v738_v39, %v742_v40  ;;  %v746_v48 = vld [vmem:[%s11137_s21 + $0x488] sm:$0xff] }
 0x1a2   : > { %v9559_v51 = vcombine.high %v1073_v46, %v1077_v47  ;;  %v953_v52 = vld [vmem:[%s11137_s21 + $0xb00] sm:$0xff]  ;;  %3777 = vmatprep.subr.bf16.mxu0 %v9431_v50  ;;  %v9558_v57 = vcombine.low %v1073_v46, %v1077_v47  ;;  %v618_v46 = vld [vmem:[%s11137_s21 + $0x88] sm:$0xff]  ;;  %v9096_v50 = vcombine.low %v610_v36, %v614_v37 }
 0x1a3   : > { %v957_v53 = vld [vmem:[%s11137_s21 + $0xb20] sm:$0xff]  ;;  %v622_v47 = vld [vmem:[%s11137_s21 + $0xa8] sm:$0xff] }
 0x1a4   : > { %v1081_v54 = vld [vmem:[%s11137_s21 + $0xf00] sm:$0xff]  ;;  %v9439_v58 = vcombine.high %v953_v52, %v957_v53  ;;  %3818 = vmatprep.subr.bf16.mxu1 %v9559_v51  ;;  %v9438_v2 = vcombine.low %v953_v52, %v957_v53  ;;  %v750_v49 = vld [vmem:[%s11137_s21 + $0x4a8] sm:$0xff]  ;;  %v9224_v51 = vcombine.low %v738_v39, %v742_v40  ;;  %v9105_v52 = vcombine.high %v618_v46, %v622_v47 }
 0x1a5   : > { %v1085_v55 = vld [vmem:[%s11137_s21 + $0xf20] sm:$0xff]  ;;  %3778 = vmatpush1.bf16.msra.mxu0 %v9430_v56  ;;  %3819 = vmatpush1.bf16.msra.mxu1 %v9558_v57  ;;  %v9233_v53 = vcombine.high %v746_v48, %v750_v49  ;;  %v754_v56 = vld [vmem:[%s11137_s21 + $0x4c8] sm:$0xff] }
 0x1a6   : > { %v9567_v59 = vcombine.high %v1081_v54, %v1085_v55  ;;  %v961_v62 = vld [vmem:[%s11137_s21 + $0xb40] sm:$0xff]  ;;  %3779 = vmatprep.subr.bf16.mxu0 %v9439_v58  ;;  %v9566_v3 = vcombine.low %v1081_v54, %v1085_v55  ;;  %v626_v54 = vld [vmem:[%s11137_s21 + $0xc8] sm:$0xff]  ;;  %v9104_v58 = vcombine.low %v618_v46, %v622_v47 }
 0x1a7   : > { %v965_v63 = vld [vmem:[%s11137_s21 + $0xb60] sm:$0xff]  ;;  %v630_v55 = vld [vmem:[%s11137_s21 + $0xe8] sm:$0xff] }
 0x1a8   : > { %v1089_v0 = vld [vmem:[%s11137_s21 + $0xf40] sm:$0xff]  ;;  %v9447_v4 = vcombine.high %v961_v62, %v965_v63  ;;  %3820 = vmatprep.subr.bf16.mxu1 %v9567_v59  ;;  %v9446_v10 = vcombine.low %v961_v62, %v965_v63  ;;  %v758_v57 = vld [vmem:[%s11137_s21 + $0x4e8] sm:$0xff]  ;;  %v9232_v59 = vcombine.low %v746_v48, %v750_v49  ;;  %v9113_v62 = vcombine.high %v626_v54, %v630_v55 }
 0x1a9   : > { %v1093_v1 = vld [vmem:[%s11137_s21 + $0xf60] sm:$0xff]  ;;  %3780 = vmatpush1.bf16.msra.mxu0 %v9438_v2  ;;  %3821 = vmatpush1.bf16.msra.mxu1 %v9566_v3  ;;  %v9241_v63 = vcombine.high %v754_v56, %v758_v57  ;;  %v762_v2 = vld [vmem:[%s11137_s21 + $0x508] sm:$0xff] }
 0x1aa   : > { %v9575_v5 = vcombine.high %v1089_v0, %v1093_v1  ;;  %v969_v6 = vld [vmem:[%s11137_s21 + $0xb80] sm:$0xff]  ;;  %3781 = vmatprep.subr.bf16.mxu0 %v9447_v4  ;;  %v9574_v11 = vcombine.low %v1089_v0, %v1093_v1  ;;  %v634_v0 = vld [vmem:[%s11137_s21 + $0x108] sm:$0xff]  ;;  %v9112_v4 = vcombine.low %v626_v54, %v630_v55 }
 0x1ab   : > { %v973_v7 = vld [vmem:[%s11137_s21 + $0xba0] sm:$0xff]  ;;  %v638_v1 = vld [vmem:[%s11137_s21 + $0x128] sm:$0xff] }
 0x1ac   : > { %v1097_v8 = vld [vmem:[%s11137_s21 + $0xf80] sm:$0xff]  ;;  %v9455_v12 = vcombine.high %v969_v6, %v973_v7  ;;  %3822 = vmatprep.subr.bf16.mxu1 %v9575_v5  ;;  %v9454_v19 = vcombine.low %v969_v6, %v973_v7  ;;  %v766_v3 = vld [vmem:[%s11137_s21 + $0x528] sm:$0xff]  ;;  %v9240_v5 = vcombine.low %v754_v56, %v758_v57  ;;  %v9121_v6 = vcombine.high %v634_v0, %v638_v1 }
 0x1ad   : > { %v1101_v9 = vld [vmem:[%s11137_s21 + $0xfa0] sm:$0xff]  ;;  %3782 = vmatpush1.bf16.msra.mxu0 %v9446_v10  ;;  %3823 = vmatpush1.bf16.msra.mxu1 %v9574_v11  ;;  %v9249_v7 = vcombine.high %v762_v2, %v766_v3  ;;  %v770_v10 = vld [vmem:[%s11137_s21 + $0x548] sm:$0xff] }
 0x1ae   : > { %v9583_v13 = vcombine.high %v1097_v8, %v1101_v9  ;;  %v977_v14 = vld [vmem:[%s11137_s21 + $0xbc0] sm:$0xff]  ;;  %3783 = vmatprep.subr.bf16.mxu0 %v9455_v12  ;;  %v9582_v20 = vcombine.low %v1097_v8, %v1101_v9  ;;  %v642_v8 = vld [vmem:[%s11137_s21 + $0x148] sm:$0xff]  ;;  %v9120_v12 = vcombine.low %v634_v0, %v638_v1 }
 0x1af   : > { %v981_v15 = vld [vmem:[%s11137_s21 + $0xbe0] sm:$0xff]  ;;  %v646_v9 = vld [vmem:[%s11137_s21 + $0x168] sm:$0xff] }
 0x1b0   : > { %v1105_v16 = vld [vmem:[%s11137_s21 + $0xfc0] sm:$0xff]  ;;  %v9463_v21 = vcombine.high %v977_v14, %v981_v15  ;;  %3824 = vmatprep.subr.bf16.mxu1 %v9583_v13  ;;  %v9462_v28 = vcombine.low %v977_v14, %v981_v15  ;;  %v774_v11 = vld [vmem:[%s11137_s21 + $0x568] sm:$0xff]  ;;  %v9248_v13 = vcombine.low %v762_v2, %v766_v3  ;;  %v9129_v14 = vcombine.high %v642_v8, %v646_v9 }
 0x1b1   : > { %v1109_v17 = vld [vmem:[%s11137_s21 + $0xfe0] sm:$0xff]  ;;  %3784 = vmatpush1.bf16.msra.mxu0 %v9454_v19  ;;  %3825 = vmatpush1.bf16.msra.mxu1 %v9582_v20  ;;  %v9257_v15 = vcombine.high %v770_v10, %v774_v11  ;;  %v778_v19 = vld [vmem:[%s11137_s21 + $0x588] sm:$0xff] }
 0x1b2   : > { %v9591_v23 = vcombine.high %v1105_v16, %v1109_v17  ;;  %v589_v29 = vld [vmem:[%s11130_s0 + $0x20] sm:$0xff]  ;;  %3785 = vmatprep.subr.bf16.mxu0 %v9463_v21  ;;  %v9590_v31 = vcombine.low %v1105_v16, %v1109_v17  ;;  %v650_v16 = vld [vmem:[%s11137_s21 + $0x188] sm:$0xff]  ;;  %v9128_v21 = vcombine.low %v642_v8, %v646_v9 }
 0x1b3   : > { %v11325_v38 = vpack.c.bf16 %v589_v29, %v589_v29  ;;  %v654_v17 = vld [vmem:[%s11137_s21 + $0x1a8] sm:$0xff] }
 0x1b4   : > { %3826 = vmatprep.subr.bf16.mxu1 %v9591_v23  ;;  %v782_v20 = vld [vmem:[%s11137_s21 + $0x5a8] sm:$0xff]  ;;  %v9256_v23 = vcombine.low %v770_v10, %v774_v11  ;;  %v9137_v24 = vcombine.high %v650_v16, %v654_v17 }
 0x1b5   : > { %3786 = vmatpush1.bf16.msra.mxu0 %v9462_v28  ;;  %3827 = vmatpush1.bf16.msra.mxu1 %v9590_v31  ;;  %v9265_v25 = vcombine.high %v778_v19, %v782_v20  ;;  %v662_v27 = vld [vmem:[%s11137_s21 + $0x1e8] sm:$0xff]  ;;  %v9136_v31 = vcombine.low %v650_v16, %v654_v17  ;;  %v9264_v32 = vcombine.low %v778_v19, %v782_v20 }
 0x1b6   : > { %3837 = vmatprep.subr.bf16.mxu0 %v9089_v34  ;;  %3878 = vmatprep.subr.bf16.mxu1 %v9217_v35  ;;  %v786_v28 = vld [vmem:[%s11137_s21 + $0x5c8] sm:$0xff]  ;;  %v9145_v34 = vcombine.high %v658_v26, %v662_v27 }
 0x1b7   : > { %v790_v29 = vld [vmem:[%s11137_s21 + $0x5e8] sm:$0xff] }
 0x1b8   : > { %3788 = vmatmul.mubr.bf16.vlgmr.msra.gmra.mrb[4].mxu0 %v11325_v38  ;;  %3829 = vmatmul.mubr.bf16.vlgmr.msra.gmra.mrb[4].mxu1 %v11329_v41  ;;  %v9273_v35 = vcombine.high %v786_v28, %v790_v29  ;;  %v666_v36 = vld [vmem:[%s11137_s21 + $0x208] sm:$0xff] }
 0x1b9   : > { %3838 = vmatpush1.bf16.msra.mxu0 %v9088_v42  ;;  %3879 = vmatpush1.bf16.msra.mxu1 %v9216_v43  ;;  %v670_v37 = vld [vmem:[%s11137_s21 + $0x228] sm:$0xff]  ;;  %v9144_v42 = vcombine.low %v658_v26, %v662_v27  ;;  %v9272_v43 = vcombine.low %v786_v28, %v790_v29 }
 0x1ba   : > { %3839 = vmatprep.subr.bf16.mxu0 %v9097_v44  ;;  %3880 = vmatprep.subr.bf16.mxu1 %v9225_v45  ;;  %v794_v39 = vld [vmem:[%s11137_s21 + $0x608] sm:$0xff]  ;;  %v9153_v44 = vcombine.high %v666_v36, %v670_v37 }
 0x1bb   : > { %3869 = vmatprep.mubr.bf16.mxu0 %v11197_v60  ;;  %3910 = vmatprep.mubr.bf16.mxu1 %v11199_v61  ;;  %v798_v40 = vld [vmem:[%s11137_s21 + $0x628] sm:$0xff] }
 0x1bc   : > { %v9281_v45 = vcombine.high %v794_v39, %v798_v40  ;;  %v674_v46 = vld [vmem:[%s11137_s21 + $0x248] sm:$0xff] }
 0x1bd   : > { %3840 = vmatpush1.bf16.msra.mxu0 %v9096_v50  ;;  %3881 = vmatpush1.bf16.msra.mxu1 %v9224_v51  ;;  %v678_v47 = vld [vmem:[%s11137_s21 + $0x268] sm:$0xff]  ;;  %v9152_v50 = vcombine.low %v666_v36, %v670_v37  ;;  %v9280_v51 = vcombine.low %v794_v39, %v798_v40 }
 0x1be   : > { %3841 = vmatprep.subr.bf16.mxu0 %v9105_v52  ;;  %3882 = vmatprep.subr.bf16.mxu1 %v9233_v53  ;;  %v802_v48 = vld [vmem:[%s11137_s21 + $0x648] sm:$0xff]  ;;  %v9161_v52 = vcombine.high %v674_v46, %v678_v47 }
 0x1bf   : > { %v806_v49 = vld [vmem:[%s11137_s21 + $0x668] sm:$0xff] }
 0x1c0   : > { %v9289_v53 = vcombine.high %v802_v48, %v806_v49  ;;  %v682_v54 = vld [vmem:[%s11137_s21 + $0x288] sm:$0xff] }
 0x1c1   : > { %3842 = vmatpush1.bf16.msra.mxu0 %v9104_v58  ;;  %3883 = vmatpush1.bf16.msra.mxu1 %v9232_v59  ;;  %v686_v55 = vld [vmem:[%s11137_s21 + $0x2a8] sm:$0xff]  ;;  %v9160_v58 = vcombine.low %v674_v46, %v678_v47  ;;  %v9288_v59 = vcombine.low %v802_v48, %v806_v49 }
 0x1c2   : > { %3843 = vmatprep.subr.bf16.mxu0 %v9113_v62  ;;  %3884 = vmatprep.subr.bf16.mxu1 %v9241_v63  ;;  %v810_v56 = vld [vmem:[%s11137_s21 + $0x688] sm:$0xff]  ;;  %v9169_v62 = vcombine.high %v682_v54, %v686_v55 }
 0x1c3   : > { %v814_v57 = vld [vmem:[%s11137_s21 + $0x6a8] sm:$0xff] }
 0x1c4   : > { %v9297_v63 = vcombine.high %v810_v56, %v814_v57  ;;  %v690_v0 = vld [vmem:[%s11137_s21 + $0x2c8] sm:$0xff] }
 0x1c5   : > { %3844 = vmatpush1.bf16.msra.mxu0 %v9112_v4  ;;  %3885 = vmatpush1.bf16.msra.mxu1 %v9240_v5  ;;  %v694_v1 = vld [vmem:[%s11137_s21 + $0x2e8] sm:$0xff]  ;;  %v9168_v4 = vcombine.low %v682_v54, %v686_v55  ;;  %v9296_v5 = vcombine.low %v810_v56, %v814_v57 }
 0x1c6   : > { %3845 = vmatprep.subr.bf16.mxu0 %v9121_v6  ;;  %3886 = vmatprep.subr.bf16.mxu1 %v9249_v7  ;;  %v818_v2 = vld [vmem:[%s11137_s21 + $0x6c8] sm:$0xff]  ;;  %v9177_v6 = vcombine.high %v690_v0, %v694_v1 }
 0x1c7   : > { %v822_v3 = vld [vmem:[%s11137_s21 + $0x6e8] sm:$0xff] }
 0x1c8   : > { %v9305_v7 = vcombine.high %v818_v2, %v822_v3  ;;  %v698_v8 = vld [vmem:[%s11137_s21 + $0x308] sm:$0xff] }
 0x1c9   : > { %3846 = vmatpush1.bf16.msra.mxu0 %v9120_v12  ;;  %3887 = vmatpush1.bf16.msra.mxu1 %v9248_v13  ;;  %v702_v9 = vld [vmem:[%s11137_s21 + $0x328] sm:$0xff]  ;;  %v9176_v12 = vcombine.low %v690_v0, %v694_v1  ;;  %v9304_v13 = vcombine.low %v818_v2, %v822_v3 }
 0x1ca   : > { %3847 = vmatprep.subr.bf16.mxu0 %v9129_v14  ;;  %3888 = vmatprep.subr.bf16.mxu1 %v9257_v15  ;;  %v826_v10 = vld [vmem:[%s11137_s21 + $0x708] sm:$0xff]  ;;  %v9185_v14 = vcombine.high %v698_v8, %v702_v9 }
 0x1cb   : > { %v830_v11 = vld [vmem:[%s11137_s21 + $0x728] sm:$0xff] }
 0x1cc   : > { %v9313_v15 = vcombine.high %v826_v10, %v830_v11  ;;  %v706_v16 = vld [vmem:[%s11137_s21 + $0x348] sm:$0xff] }
 0x1cd   : > { %3848 = vmatpush1.bf16.msra.mxu0 %v9128_v21  ;;  %3889 = vmatpush1.bf16.msra.mxu1 %v9256_v23  ;;  %v710_v17 = vld [vmem:[%s11137_s21 + $0x368] sm:$0xff]  ;;  %v9184_v21 = vcombine.low %v698_v8, %v702_v9  ;;  %v9312_v23 = vcombine.low %v826_v10, %v830_v11 }
 0x1ce   : > { %3849 = vmatprep.subr.bf16.mxu0 %v9137_v24  ;;  %3890 = vmatprep.subr.bf16.mxu1 %v9265_v25  ;;  %v834_v19 = vld [vmem:[%s11137_s21 + $0x748] sm:$0xff]  ;;  %v9193_v24 = vcombine.high %v706_v16, %v710_v17 }
 0x1cf   : > { %v838_v20 = vld [vmem:[%s11137_s21 + $0x768] sm:$0xff] }
 0x1d0   : > { %v9321_v25 = vcombine.high %v834_v19, %v838_v20  ;;  %v714_v26 = vld [vmem:[%s11137_s21 + $0x388] sm:$0xff] }
 0x1d1   : > { %3850 = vmatpush1.bf16.msra.mxu0 %v9136_v31  ;;  %3891 = vmatpush1.bf16.msra.mxu1 %v9264_v32  ;;  %v718_v27 = vld [vmem:[%s11137_s21 + $0x3a8] sm:$0xff]  ;;  %v9192_v31 = vcombine.low %v706_v16, %v710_v17  ;;  %v9320_v32 = vcombine.low %v834_v19, %v838_v20 }
 0x1d2   : > { %3851 = vmatprep.subr.bf16.mxu0 %v9145_v34  ;;  %3892 = vmatprep.subr.bf16.mxu1 %v9273_v35  ;;  %v842_v28 = vld [vmem:[%s11137_s21 + $0x788] sm:$0xff]  ;;  %v9201_v34 = vcombine.high %v714_v26, %v718_v27 }
 0x1d3   : > { %v846_v29 = vld [vmem:[%s11137_s21 + $0x7a8] sm:$0xff] }
 0x1d4   : > { %v9329_v35 = vcombine.high %v842_v28, %v846_v29  ;;  %v722_v36 = vld [vmem:[%s11137_s21 + $0x3c8] sm:$0xff] }
 0x1d5   : > { %3852 = vmatpush1.bf16.msra.mxu0 %v9144_v42  ;;  %3893 = vmatpush1.bf16.msra.mxu1 %v9272_v43  ;;  %v726_v37 = vld [vmem:[%s11137_s21 + $0x3e8] sm:$0xff]  ;;  %v9200_v42 = vcombine.low %v714_v26, %v718_v27  ;;  %v9328_v43 = vcombine.low %v842_v28, %v846_v29 }
 0x1d6   : > { %3853 = vmatprep.subr.bf16.mxu0 %v9153_v44  ;;  %3894 = vmatprep.subr.bf16.mxu1 %v9281_v45  ;;  %v850_v39 = vld [vmem:[%s11137_s21 + $0x7c8] sm:$0xff]  ;;  %v9209_v44 = vcombine.high %v722_v36, %v726_v37 }
 0x1d7   : > { %v854_v40 = vld [vmem:[%s11137_s21 + $0x7e8] sm:$0xff] }
 0x1d8   : > { %v9337_v45 = vcombine.high %v850_v39, %v854_v40  ;;  %v858_v46 = vld [vmem:[%s11137_s21 + $0x808] sm:$0xff] }
 0x1d9   : > { %3854 = vmatpush1.bf16.msra.mxu0 %v9152_v50  ;;  %3895 = vmatpush1.bf16.msra.mxu1 %v9280_v51  ;;  %v862_v47 = vld [vmem:[%s11137_s21 + $0x828] sm:$0xff]  ;;  %v9208_v50 = vcombine.low %v722_v36, %v726_v37  ;;  %v9336_v51 = vcombine.low %v850_v39, %v854_v40 }
 0x1da   : > { %3855 = vmatprep.subr.bf16.mxu0 %v9161_v52  ;;  %3896 = vmatprep.subr.bf16.mxu1 %v9289_v53  ;;  %v986_v48 = vld [vmem:[%s11137_s21 + $0xc08] sm:$0xff]  ;;  %v9345_v52 = vcombine.high %v858_v46, %v862_v47 }
 0x1db   : > { %v990_v49 = vld [vmem:[%s11137_s21 + $0xc28] sm:$0xff] }
 0x1dc   : > { %v9473_v53 = vcombine.high %v986_v48, %v990_v49  ;;  %v866_v54 = vld [vmem:[%s11137_s21 + $0x848] sm:$0xff] }
 0x1dd   : > { %3856 = vmatpush1.bf16.msra.mxu0 %v9160_v58  ;;  %3897 = vmatpush1.bf16.msra.mxu1 %v9288_v59  ;;  %v870_v55 = vld [vmem:[%s11137_s21 + $0x868] sm:$0xff]  ;;  %v9344_v58 = vcombine.low %v858_v46, %v862_v47  ;;  %v9472_v59 = vcombine.low %v986_v48, %v990_v49 }
 0x1de   : > { %3857 = vmatprep.subr.bf16.mxu0 %v9169_v62  ;;  %3898 = vmatprep.subr.bf16.mxu1 %v9297_v63  ;;  %v994_v56 = vld [vmem:[%s11137_s21 + $0xc48] sm:$0xff]  ;;  %v9353_v62 = vcombine.high %v866_v54, %v870_v55 }
 0x1df   : > { %v998_v57 = vld [vmem:[%s11137_s21 + $0xc68] sm:$0xff] }
 0x1e0   : > { %v9481_v63 = vcombine.high %v994_v56, %v998_v57  ;;  %v874_v0 = vld [vmem:[%s11137_s21 + $0x888] sm:$0xff] }
 0x1e1   : > { %3858 = vmatpush1.bf16.msra.mxu0 %v9168_v4  ;;  %3899 = vmatpush1.bf16.msra.mxu1 %v9296_v5  ;;  %v878_v1 = vld [vmem:[%s11137_s21 + $0x8a8] sm:$0xff]  ;;  %v9352_v4 = vcombine.low %v866_v54, %v870_v55  ;;  %v9480_v5 = vcombine.low %v994_v56, %v998_v57 }
 0x1e2   : > { %3859 = vmatprep.subr.bf16.mxu0 %v9177_v6  ;;  %3900 = vmatprep.subr.bf16.mxu1 %v9305_v7  ;;  %v1002_v2 = vld [vmem:[%s11137_s21 + $0xc88] sm:$0xff]  ;;  %v9361_v6 = vcombine.high %v874_v0, %v878_v1 }
 0x1e3   : > { %v1006_v3 = vld [vmem:[%s11137_s21 + $0xca8] sm:$0xff] }
 0x1e4   : > { %v9489_v7 = vcombine.high %v1002_v2, %v1006_v3  ;;  %v882_v8 = vld [vmem:[%s11137_s21 + $0x8c8] sm:$0xff] }
 0x1e5   : > { %3860 = vmatpush1.bf16.msra.mxu0 %v9176_v12  ;;  %3901 = vmatpush1.bf16.msra.mxu1 %v9304_v13  ;;  %v886_v9 = vld [vmem:[%s11137_s21 + $0x8e8] sm:$0xff]  ;;  %v9360_v12 = vcombine.low %v874_v0, %v878_v1  ;;  %v9488_v13 = vcombine.low %v1002_v2, %v1006_v3 }
 0x1e6   : > { %3861 = vmatprep.subr.bf16.mxu0 %v9185_v14  ;;  %3902 = vmatprep.subr.bf16.mxu1 %v9313_v15  ;;  %v1010_v10 = vld [vmem:[%s11137_s21 + $0xcc8] sm:$0xff]  ;;  %v9369_v14 = vcombine.high %v882_v8, %v886_v9 }
 0x1e7   : > { %v1014_v11 = vld [vmem:[%s11137_s21 + $0xce8] sm:$0xff] }
 0x1e8   : > { %v9497_v15 = vcombine.high %v1010_v10, %v1014_v11  ;;  %v890_v16 = vld [vmem:[%s11137_s21 + $0x908] sm:$0xff] }
 0x1e9   : > { %3862 = vmatpush1.bf16.msra.mxu0 %v9184_v21  ;;  %3903 = vmatpush1.bf16.msra.mxu1 %v9312_v23  ;;  %v894_v17 = vld [vmem:[%s11137_s21 + $0x928] sm:$0xff]  ;;  %v9368_v21 = vcombine.low %v882_v8, %v886_v9  ;;  %v9496_v23 = vcombine.low %v1010_v10, %v1014_v11 }
 0x1ea   : > { %3863 = vmatprep.subr.bf16.mxu0 %v9193_v24  ;;  %3904 = vmatprep.subr.bf16.mxu1 %v9321_v25  ;;  %v1018_v19 = vld [vmem:[%s11137_s21 + $0xd08] sm:$0xff]  ;;  %v9377_v24 = vcombine.high %v890_v16, %v894_v17 }
 0x1eb   : > { %v1022_v20 = vld [vmem:[%s11137_s21 + $0xd28] sm:$0xff] }
 0x1ec   : > { %v9505_v25 = vcombine.high %v1018_v19, %v1022_v20  ;;  %v898_v26 = vld [vmem:[%s11137_s21 + $0x948] sm:$0xff] }
 0x1ed   : > { %3864 = vmatpush1.bf16.msra.mxu0 %v9192_v31  ;;  %3905 = vmatpush1.bf16.msra.mxu1 %v9320_v32  ;;  %v902_v27 = vld [vmem:[%s11137_s21 + $0x968] sm:$0xff]  ;;  %v9376_v31 = vcombine.low %v890_v16, %v894_v17  ;;  %v9504_v32 = vcombine.low %v1018_v19, %v1022_v20 }
 0x1ee   : > { %3865 = vmatprep.subr.bf16.mxu0 %v9201_v34  ;;  %3906 = vmatprep.subr.bf16.mxu1 %v9329_v35  ;;  %v1026_v28 = vld [vmem:[%s11137_s21 + $0xd48] sm:$0xff]  ;;  %v9385_v34 = vcombine.high %v898_v26, %v902_v27 }
 0x1ef   : > { %v1030_v29 = vld [vmem:[%s11137_s21 + $0xd68] sm:$0xff] }
 0x1f0   : > { %v9513_v35 = vcombine.high %v1026_v28, %v1030_v29  ;;  %v906_v36 = vld [vmem:[%s11137_s21 + $0x988] sm:$0xff] }
 0x1f1   : > { %3866 = vmatpush1.bf16.msra.mxu0 %v9200_v42  ;;  %3907 = vmatpush1.bf16.msra.mxu1 %v9328_v43  ;;  %v910_v37 = vld [vmem:[%s11137_s21 + $0x9a8] sm:$0xff]  ;;  %v9384_v42 = vcombine.low %v898_v26, %v902_v27  ;;  %v9512_v43 = vcombine.low %v1026_v28, %v1030_v29 }
 0x1f2   : > { %3867 = vmatprep.subr.bf16.mxu0 %v9209_v44  ;;  %3908 = vmatprep.subr.bf16.mxu1 %v9337_v45  ;;  %v1034_v39 = vld [vmem:[%s11137_s21 + $0xd88] sm:$0xff]  ;;  %v9393_v44 = vcombine.high %v906_v36, %v910_v37 }
 0x1f3   : > { %v1038_v40 = vld [vmem:[%s11137_s21 + $0xda8] sm:$0xff] }
 0x1f4   : > { %v9521_v45 = vcombine.high %v1034_v39, %v1038_v40  ;;  %v914_v46 = vld [vmem:[%s11137_s21 + $0x9c8] sm:$0xff] }
 0x1f5   : > { %3868 = vmatpush1.bf16.msra.mxu0 %v9208_v50  ;;  %3909 = vmatpush1.bf16.msra.mxu1 %v9336_v51  ;;  %v918_v47 = vld [vmem:[%s11137_s21 + $0x9e8] sm:$0xff]  ;;  %v9392_v50 = vcombine.low %v906_v36, %v910_v37  ;;  %v9520_v51 = vcombine.low %v1034_v39, %v1038_v40 }
 0x1f6   : > { %3919 = vmatprep.subr.bf16.mxu0 %v9345_v52  ;;  %3960 = vmatprep.subr.bf16.mxu1 %v9473_v53  ;;  %v1042_v48 = vld [vmem:[%s11137_s21 + $0xdc8] sm:$0xff]  ;;  %v9401_v52 = vcombine.high %v914_v46, %v918_v47 }
 0x1f7   : > { %v1046_v49 = vld [vmem:[%s11137_s21 + $0xde8] sm:$0xff] }
 0x1f8   : > { %3870 = vmatmul.mubr.bf16.vlgmr.msra.gmra.mrb[8].mxu0 %v11245_v18  ;;  %3911 = vmatmul.mubr.bf16.vlgmr.msra.gmra.mrb[8].mxu1 %v11250_v22  ;;  %v9529_v53 = vcombine.high %v1042_v48, %v1046_v49  ;;  %v922_v54 = vld [vmem:[%s11137_s21 + $0xa08] sm:$0xff] }
 0x1f9   : > { %3920 = vmatpush1.bf16.msra.mxu0 %v9344_v58  ;;  %3961 = vmatpush1.bf16.msra.mxu1 %v9472_v59  ;;  %v926_v55 = vld [vmem:[%s11137_s21 + $0xa28] sm:$0xff]  ;;  %v9400_v58 = vcombine.low %v914_v46, %v918_v47  ;;  %v9528_v59 = vcombine.low %v1042_v48, %v1046_v49 }
 0x1fa   : > { %3921 = vmatprep.subr.bf16.mxu0 %v9353_v62  ;;  %3962 = vmatprep.subr.bf16.mxu1 %v9481_v63  ;;  %v1050_v56 = vld [vmem:[%s11137_s21 + $0xe08] sm:$0xff]  ;;  %v9409_v62 = vcombine.high %v922_v54, %v926_v55 }
 0x1fb   : > { %3951 = vmatprep.mubr.bf16.mxu0 %v11255_v30  ;;  %3992 = vmatprep.mubr.bf16.mxu1 %v11260_v33  ;;  %v1054_v57 = vld [vmem:[%s11137_s21 + $0xe28] sm:$0xff] }
 0x1fc   : > { %v9537_v63 = vcombine.high %v1050_v56, %v1054_v57  ;;  %v930_v0 = vld [vmem:[%s11137_s21 + $0xa48] sm:$0xff] }
 0x1fd   : > { %3922 = vmatpush1.bf16.msra.mxu0 %v9352_v4  ;;  %3963 = vmatpush1.bf16.msra.mxu1 %v9480_v5  ;;  %v934_v1 = vld [vmem:[%s11137_s21 + $0xa68] sm:$0xff]  ;;  %v9408_v4 = vcombine.low %v922_v54, %v926_v55  ;;  %v9536_v5 = vcombine.low %v1050_v56, %v1054_v57 }
 0x1fe   : > { %3923 = vmatprep.subr.bf16.mxu0 %v9361_v6  ;;  %3964 = vmatprep.subr.bf16.mxu1 %v9489_v7  ;;  %v1058_v2 = vld [vmem:[%s11137_s21 + $0xe48] sm:$0xff]  ;;  %v9417_v6 = vcombine.high %v930_v0, %v934_v1 }
 0x1ff   : > { %v1062_v3 = vld [vmem:[%s11137_s21 + $0xe68] sm:$0xff] }
 0x200   : > { %v9545_v7 = vcombine.high %v1058_v2, %v1062_v3  ;;  %v938_v8 = vld [vmem:[%s11137_s21 + $0xa88] sm:$0xff] }
 0x201   : > { %3924 = vmatpush1.bf16.msra.mxu0 %v9360_v12  ;;  %3965 = vmatpush1.bf16.msra.mxu1 %v9488_v13  ;;  %v942_v9 = vld [vmem:[%s11137_s21 + $0xaa8] sm:$0xff]  ;;  %v9416_v12 = vcombine.low %v930_v0, %v934_v1  ;;  %v9544_v13 = vcombine.low %v1058_v2, %v1062_v3  ;;  %v603_v0 = vld [vmem:[%s11137_s21 + $0x10] sm:$0xff] }
 0x202   : > { %3925 = vmatprep.subr.bf16.mxu0 %v9369_v14  ;;  %3966 = vmatprep.subr.bf16.mxu1 %v9497_v15  ;;  %v1066_v10 = vld [vmem:[%s11137_s21 + $0xe88] sm:$0xff]  ;;  %v9425_v14 = vcombine.high %v938_v8, %v942_v9  ;;  %v607_v1 = vld [vmem:[%s11137_s21 + $0x30] sm:$0xff] }
 0x203   : > { %v1070_v11 = vld [vmem:[%s11137_s21 + $0xea8] sm:$0xff]  ;;  %v731_v2 = vld [vmem:[%s11137_s21 + $0x410] sm:$0xff] }
 0x204   : > { %v9553_v15 = vcombine.high %v1066_v10, %v1070_v11  ;;  %v946_v16 = vld [vmem:[%s11137_s21 + $0xac8] sm:$0xff]  ;;  %v735_v3 = vld [vmem:[%s11137_s21 + $0x430] sm:$0xff] }
 0x205   : > { %3926 = vmatpush1.bf16.msra.mxu0 %v9368_v21  ;;  %3967 = vmatpush1.bf16.msra.mxu1 %v9496_v23  ;;  %v950_v17 = vld [vmem:[%s11137_s21 + $0xae8] sm:$0xff]  ;;  %v9424_v21 = vcombine.low %v938_v8, %v942_v9  ;;  %v9552_v23 = vcombine.low %v1066_v10, %v1070_v11  ;;  %v611_v8 = vld [vmem:[%s11137_s21 + $0x50] sm:$0xff] }
 0x206   : > { %3927 = vmatprep.subr.bf16.mxu0 %v9377_v24  ;;  %3968 = vmatprep.subr.bf16.mxu1 %v9505_v25  ;;  %v1074_v19 = vld [vmem:[%s11137_s21 + $0xec8] sm:$0xff]  ;;  %v9433_v24 = vcombine.high %v946_v16, %v950_v17  ;;  %v615_v9 = vld [vmem:[%s11137_s21 + $0x70] sm:$0xff] }
 0x207   : > { %v1078_v20 = vld [vmem:[%s11137_s21 + $0xee8] sm:$0xff]  ;;  %v739_v10 = vld [vmem:[%s11137_s21 + $0x450] sm:$0xff] }
 0x208   : > { %v9561_v25 = vcombine.high %v1074_v19, %v1078_v20  ;;  %v954_v26 = vld [vmem:[%s11137_s21 + $0xb08] sm:$0xff]  ;;  %v743_v11 = vld [vmem:[%s11137_s21 + $0x470] sm:$0xff] }
 0x209   : > { %3928 = vmatpush1.bf16.msra.mxu0 %v9376_v31  ;;  %3969 = vmatpush1.bf16.msra.mxu1 %v9504_v32  ;;  %v958_v27 = vld [vmem:[%s11137_s21 + $0xb28] sm:$0xff]  ;;  %v9432_v31 = vcombine.low %v946_v16, %v950_v17  ;;  %v9560_v32 = vcombine.low %v1074_v19, %v1078_v20  ;;  %v619_v16 = vld [vmem:[%s11137_s21 + $0x90] sm:$0xff] }
 0x20a   : > { %3929 = vmatprep.subr.bf16.mxu0 %v9385_v34  ;;  %3970 = vmatprep.subr.bf16.mxu1 %v9513_v35  ;;  %v1082_v28 = vld [vmem:[%s11137_s21 + $0xf08] sm:$0xff]  ;;  %v9441_v34 = vcombine.high %v954_v26, %v958_v27  ;;  %v623_v17 = vld [vmem:[%s11137_s21 + $0xb0] sm:$0xff] }
 0x20b   : > { %v1086_v29 = vld [vmem:[%s11137_s21 + $0xf28] sm:$0xff]  ;;  %v747_v19 = vld [vmem:[%s11137_s21 + $0x490] sm:$0xff] }
 0x20c   : > { %v9569_v35 = vcombine.high %v1082_v28, %v1086_v29  ;;  %v962_v36 = vld [vmem:[%s11137_s21 + $0xb48] sm:$0xff]  ;;  %v751_v20 = vld [vmem:[%s11137_s21 + $0x4b0] sm:$0xff] }
 0x20d   : > { %3930 = vmatpush1.bf16.msra.mxu0 %v9384_v42  ;;  %3971 = vmatpush1.bf16.msra.mxu1 %v9512_v43  ;;  %v966_v37 = vld [vmem:[%s11137_s21 + $0xb68] sm:$0xff]  ;;  %v9440_v42 = vcombine.low %v954_v26, %v958_v27  ;;  %v9568_v43 = vcombine.low %v1082_v28, %v1086_v29  ;;  %v627_v26 = vld [vmem:[%s11137_s21 + $0xd0] sm:$0xff] }
 0x20e   : > { %3931 = vmatprep.subr.bf16.mxu0 %v9393_v44  ;;  %3972 = vmatprep.subr.bf16.mxu1 %v9521_v45  ;;  %v1090_v39 = vld [vmem:[%s11137_s21 + $0xf48] sm:$0xff]  ;;  %v9449_v44 = vcombine.high %v962_v36, %v966_v37  ;;  %v631_v27 = vld [vmem:[%s11137_s21 + $0xf0] sm:$0xff] }
 0x20f   : > { %v1094_v40 = vld [vmem:[%s11137_s21 + $0xf68] sm:$0xff]  ;;  %v755_v28 = vld [vmem:[%s11137_s21 + $0x4d0] sm:$0xff] }
 0x210   : > { %v9577_v45 = vcombine.high %v1090_v39, %v1094_v40  ;;  %v970_v46 = vld [vmem:[%s11137_s21 + $0xb88] sm:$0xff]  ;;  %v759_v29 = vld [vmem:[%s11137_s21 + $0x4f0] sm:$0xff] }
 0x211   : > { %3932 = vmatpush1.bf16.msra.mxu0 %v9392_v50  ;;  %3973 = vmatpush1.bf16.msra.mxu1 %v9520_v51  ;;  %v974_v47 = vld [vmem:[%s11137_s21 + $0xba8] sm:$0xff]  ;;  %v9448_v50 = vcombine.low %v962_v36, %v966_v37  ;;  %v9576_v51 = vcombine.low %v1090_v39, %v1094_v40  ;;  %v635_v36 = vld [vmem:[%s11137_s21 + $0x110] sm:$0xff] }
 0x212   : > { %3933 = vmatprep.subr.bf16.mxu0 %v9401_v52  ;;  %3974 = vmatprep.subr.bf16.mxu1 %v9529_v53  ;;  %v1098_v48 = vld [vmem:[%s11137_s21 + $0xf88] sm:$0xff]  ;;  %v9457_v52 = vcombine.high %v970_v46, %v974_v47  ;;  %v639_v37 = vld [vmem:[%s11137_s21 + $0x130] sm:$0xff] }
 0x213   : > { %v1102_v49 = vld [vmem:[%s11137_s21 + $0xfa8] sm:$0xff]  ;;  %v763_v39 = vld [vmem:[%s11137_s21 + $0x510] sm:$0xff] }
 0x214   : > { %v9585_v53 = vcombine.high %v1098_v48, %v1102_v49  ;;  %v978_v54 = vld [vmem:[%s11137_s21 + $0xbc8] sm:$0xff]  ;;  %v767_v40 = vld [vmem:[%s11137_s21 + $0x530] sm:$0xff] }
 0x215   : > { %3934 = vmatpush1.bf16.msra.mxu0 %v9400_v58  ;;  %3975 = vmatpush1.bf16.msra.mxu1 %v9528_v59  ;;  %v982_v55 = vld [vmem:[%s11137_s21 + $0xbe8] sm:$0xff]  ;;  %v9456_v58 = vcombine.low %v970_v46, %v974_v47  ;;  %v9584_v59 = vcombine.low %v1098_v48, %v1102_v49  ;;  %v643_v46 = vld [vmem:[%s11137_s21 + $0x150] sm:$0xff] }
 0x216   : > { %3935 = vmatprep.subr.bf16.mxu0 %v9409_v62  ;;  %3976 = vmatprep.subr.bf16.mxu1 %v9537_v63  ;;  %v1106_v56 = vld [vmem:[%s11137_s21 + $0xfc8] sm:$0xff]  ;;  %v9465_v62 = vcombine.high %v978_v54, %v982_v55  ;;  %v647_v47 = vld [vmem:[%s11137_s21 + $0x170] sm:$0xff] }
 0x217   : > { %v1110_v57 = vld [vmem:[%s11137_s21 + $0xfe8] sm:$0xff]  ;;  %v771_v48 = vld [vmem:[%s11137_s21 + $0x550] sm:$0xff] }
 0x218   : > { %v9593_v63 = vcombine.high %v1106_v56, %v1110_v57  ;;  %v775_v49 = vld [vmem:[%s11137_s21 + $0x570] sm:$0xff] }
 0x219   : > { %3936 = vmatpush1.bf16.msra.mxu0 %v9408_v4  ;;  %3977 = vmatpush1.bf16.msra.mxu1 %v9536_v5  ;;  %v9464_v4 = vcombine.low %v978_v54, %v982_v55  ;;  %v9592_v5 = vcombine.low %v1106_v56, %v1110_v57  ;;  %v651_v54 = vld [vmem:[%s11137_s21 + $0x190] sm:$0xff] }
 0x21a   : > { %3937 = vmatprep.subr.bf16.mxu0 %v9417_v6  ;;  %3978 = vmatprep.subr.bf16.mxu1 %v9545_v7  ;;  %v9091_v6 = vcombine.high %v603_v0, %v607_v1  ;;  %v9219_v7 = vcombine.high %v731_v2, %v735_v3  ;;  %v655_v55 = vld [vmem:[%s11137_s21 + $0x1b0] sm:$0xff] }
 0x21b   : > { %v779_v56 = vld [vmem:[%s11137_s21 + $0x590] sm:$0xff] }
 0x21c   : > { %v783_v57 = vld [vmem:[%s11137_s21 + $0x5b0] sm:$0xff] }
 0x21d   : > { %3938 = vmatpush1.bf16.msra.mxu0 %v9416_v12  ;;  %3979 = vmatpush1.bf16.msra.mxu1 %v9544_v13  ;;  %v9090_v12 = vcombine.low %v603_v0, %v607_v1  ;;  %v9218_v13 = vcombine.low %v731_v2, %v735_v3  ;;  %v9267_v0 = vcombine.high %v779_v56, %v783_v57  ;;  %v659_v1 = vld [vmem:[%s11137_s21 + $0x1d0] sm:$0xff] }
 0x21e   : > { %3939 = vmatprep.subr.bf16.mxu0 %v9425_v14  ;;  %3980 = vmatprep.subr.bf16.mxu1 %v9553_v15  ;;  %v9099_v14 = vcombine.high %v611_v8, %v615_v9  ;;  %v9227_v15 = vcombine.high %v739_v10, %v743_v11  ;;  %v663_v2 = vld [vmem:[%s11137_s21 + $0x1f0] sm:$0xff] }
 0x221   : > { %3940 = vmatpush1.bf16.msra.mxu0 %v9424_v21  ;;  %3981 = vmatpush1.bf16.msra.mxu1 %v9552_v23  ;;  %v9098_v21 = vcombine.low %v611_v8, %v615_v9  ;;  %v9226_v23 = vcombine.low %v739_v10, %v743_v11  ;;  %v9138_v10 = vcombine.low %v651_v54, %v655_v55 }
 0x222   : > { %3941 = vmatprep.subr.bf16.mxu0 %v9433_v24  ;;  %3982 = vmatprep.subr.bf16.mxu1 %v9561_v25  ;;  %v9107_v24 = vcombine.high %v619_v16, %v623_v17  ;;  %v9235_v25 = vcombine.high %v747_v19, %v751_v20 }
 0x225   : > { %3942 = vmatpush1.bf16.msra.mxu0 %v9432_v31  ;;  %3983 = vmatpush1.bf16.msra.mxu1 %v9560_v32  ;;  %v9106_v31 = vcombine.low %v619_v16, %v623_v17  ;;  %v9234_v32 = vcombine.low %v747_v19, %v751_v20  ;;  %v667_v19 = vld [vmem:[%s11137_s21 + $0x210] sm:$0xff] }
 0x226   : > { %3943 = vmatprep.subr.bf16.mxu0 %v9441_v34  ;;  %3984 = vmatprep.subr.bf16.mxu1 %v9569_v35  ;;  %v9115_v34 = vcombine.high %v627_v26, %v631_v27  ;;  %v9243_v35 = vcombine.high %v755_v28, %v759_v29  ;;  %v671_v20 = vld [vmem:[%s11137_s21 + $0x230] sm:$0xff] }
 0x229   : > { %3944 = vmatpush1.bf16.msra.mxu0 %v9440_v42  ;;  %3985 = vmatpush1.bf16.msra.mxu1 %v9568_v43  ;;  %v9114_v42 = vcombine.low %v627_v26, %v631_v27  ;;  %v9242_v43 = vcombine.low %v755_v28, %v759_v29  ;;  %v9155_v26 = vcombine.high %v667_v19, %v671_v20  ;;  %v675_v28 = vld [vmem:[%s11137_s21 + $0x250] sm:$0xff] }
 0x22a   : > { %3945 = vmatprep.subr.bf16.mxu0 %v9449_v44  ;;  %3986 = vmatprep.subr.bf16.mxu1 %v9577_v45  ;;  %v9123_v44 = vcombine.high %v635_v36, %v639_v37  ;;  %v9251_v45 = vcombine.high %v763_v39, %v767_v40  ;;  %v679_v29 = vld [vmem:[%s11137_s21 + $0x270] sm:$0xff] }
 0x22d   : > { %3946 = vmatpush1.bf16.msra.mxu0 %v9448_v50  ;;  %3987 = vmatpush1.bf16.msra.mxu1 %v9576_v51  ;;  %v9122_v50 = vcombine.low %v635_v36, %v639_v37  ;;  %v9250_v51 = vcombine.low %v763_v39, %v767_v40  ;;  %v9163_v36 = vcombine.high %v675_v28, %v679_v29  ;;  %v683_v39 = vld [vmem:[%s11137_s21 + $0x290] sm:$0xff] }
 0x22e   : > { %3947 = vmatprep.subr.bf16.mxu0 %v9457_v52  ;;  %3988 = vmatprep.subr.bf16.mxu1 %v9585_v53  ;;  %v9131_v52 = vcombine.high %v643_v46, %v647_v47  ;;  %v9259_v53 = vcombine.high %v771_v48, %v775_v49  ;;  %v687_v40 = vld [vmem:[%s11137_s21 + $0x2b0] sm:$0xff] }
 0x231   : > { %3948 = vmatpush1.bf16.msra.mxu0 %v9456_v58  ;;  %3989 = vmatpush1.bf16.msra.mxu1 %v9584_v59  ;;  %v9130_v58 = vcombine.low %v643_v46, %v647_v47  ;;  %v9258_v59 = vcombine.low %v771_v48, %v775_v49  ;;  %v9171_v46 = vcombine.high %v683_v39, %v687_v40  ;;  %v691_v48 = vld [vmem:[%s11137_s21 + $0x2d0] sm:$0xff] }
 0x232   : > { %3949 = vmatprep.subr.bf16.mxu0 %v9465_v62  ;;  %3990 = vmatprep.subr.bf16.mxu1 %v9593_v63  ;;  %v9139_v62 = vcombine.high %v651_v54, %v655_v55  ;;  %v695_v49 = vld [vmem:[%s11137_s21 + $0x2f0] sm:$0xff] }
 0x233   : > { %v9179_v54 = vcombine.high %v691_v48, %v695_v49 }
 0x235   : > { %3950 = vmatpush1.bf16.msra.mxu0 %v9464_v4  ;;  %3991 = vmatpush1.bf16.msra.mxu1 %v9592_v5  ;;  %v787_v5 = vld [vmem:[%s11137_s21 + $0x5d0] sm:$0xff] }
 0x236   : > { %4001 = vmatprep.subr.bf16.mxu0 %v9091_v6  ;;  %4042 = vmatprep.subr.bf16.mxu1 %v9219_v7  ;;  %v791_v6 = vld [vmem:[%s11137_s21 + $0x5f0] sm:$0xff] }
 0x237   : > { %v9275_v17 = vcombine.high %v787_v5, %v791_v6 }
 0x238   : > { %3952 = vmatmul.mubr.bf16.vlgmr.msra.gmra.mrb[12].mxu0 %v11325_v38  ;;  %3993 = vmatmul.mubr.bf16.vlgmr.msra.gmra.mrb[12].mxu1 %v11329_v41 }
 0x239   : > { %4002 = vmatpush1.bf16.msra.mxu0 %v9090_v12  ;;  %4043 = vmatpush1.bf16.msra.mxu1 %v9218_v13 }
 0x23a   : > { %4003 = vmatprep.subr.bf16.mxu0 %v9099_v14  ;;  %4044 = vmatprep.subr.bf16.mxu1 %v9227_v15  ;;  %v9266_v14 = vcombine.low %v779_v56, %v783_v57  ;;  %v9147_v15 = vcombine.high %v659_v1, %v663_v2  ;;  %v699_v56 = vld [vmem:[%s11137_s21 + $0x310] sm:$0xff] }
 0x23b   : > { %4033 = vmatprep.mubr.bf16.mxu0 %v11197_v60  ;;  %4074 = vmatprep.mubr.bf16.mxu1 %v11199_v61  ;;  %v703_v57 = vld [vmem:[%s11137_s21 + $0x330] sm:$0xff] }
 0x23d   : > { %4004 = vmatpush1.bf16.msra.mxu0 %v9098_v21  ;;  %4045 = vmatpush1.bf16.msra.mxu1 %v9226_v23  ;;  %v795_v21 = vld [vmem:[%s11137_s21 + $0x610] sm:$0xff] }
 0x23e   : > { %4005 = vmatprep.subr.bf16.mxu0 %v9107_v24  ;;  %4046 = vmatprep.subr.bf16.mxu1 %v9235_v25  ;;  %v799_v23 = vld [vmem:[%s11137_s21 + $0x630] sm:$0xff]  ;;  %v9146_v24 = vcombine.low %v659_v1, %v663_v2  ;;  %v9274_v25 = vcombine.low %v787_v5, %v791_v6  ;;  %v9186_v6 = vcombine.low %v699_v56, %v703_v57 }
 0x23f   : > { %v9283_v27 = vcombine.high %v795_v21, %v799_v23  ;;  %v707_v2 = vld [vmem:[%s11137_s21 + $0x350] sm:$0xff] }
 0x240   : > { %v839_v5 = vld [vmem:[%s11137_s21 + $0x770] sm:$0xff] }
 0x241   : > { %4006 = vmatpush1.bf16.msra.mxu0 %v9106_v31  ;;  %4047 = vmatpush1.bf16.msra.mxu1 %v9234_v32  ;;  %v803_v31 = vld [vmem:[%s11137_s21 + $0x650] sm:$0xff] }
 0x242   : > { %4007 = vmatprep.subr.bf16.mxu0 %v9115_v34  ;;  %4048 = vmatprep.subr.bf16.mxu1 %v9243_v35  ;;  %v807_v32 = vld [vmem:[%s11137_s21 + $0x670] sm:$0xff]  ;;  %v9154_v34 = vcombine.low %v667_v19, %v671_v20  ;;  %v9282_v35 = vcombine.low %v795_v21, %v799_v23 }
 0x243   : > { %v9291_v37 = vcombine.high %v803_v31, %v807_v32  ;;  %v723_v21 = vld [vmem:[%s11137_s21 + $0x3d0] sm:$0xff] }
 0x244   : > { %v727_v23 = vld [vmem:[%s11137_s21 + $0x3f0] sm:$0xff] }
 0x245   : > { %4008 = vmatpush1.bf16.msra.mxu0 %v9114_v42  ;;  %4049 = vmatpush1.bf16.msra.mxu1 %v9242_v43  ;;  %v811_v42 = vld [vmem:[%s11137_s21 + $0x690] sm:$0xff] }
 0x246   : > { %4009 = vmatprep.subr.bf16.mxu0 %v9123_v44  ;;  %4050 = vmatprep.subr.bf16.mxu1 %v9251_v45  ;;  %v815_v43 = vld [vmem:[%s11137_s21 + $0x6b0] sm:$0xff]  ;;  %v9162_v44 = vcombine.low %v675_v28, %v679_v29  ;;  %v9290_v45 = vcombine.low %v803_v31, %v807_v32  ;;  %v9211_v28 = vcombine.high %v723_v21, %v727_v23 }
 0x247   : > { %v9299_v47 = vcombine.high %v811_v42, %v815_v43  ;;  %v859_v31 = vld [vmem:[%s11137_s21 + $0x810] sm:$0xff] }
 0x248   : > { %v863_v32 = vld [vmem:[%s11137_s21 + $0x830] sm:$0xff] }
 0x249   : > { %4010 = vmatpush1.bf16.msra.mxu0 %v9122_v50  ;;  %4051 = vmatpush1.bf16.msra.mxu1 %v9250_v51  ;;  %v819_v50 = vld [vmem:[%s11137_s21 + $0x6d0] sm:$0xff] }
 0x24a   : > { %4011 = vmatprep.subr.bf16.mxu0 %v9131_v52  ;;  %4052 = vmatprep.subr.bf16.mxu1 %v9259_v53  ;;  %v3748_v3 = vpop.f32.mrb[0].mxu1  ;;  %v823_v51 = vld [vmem:[%s11137_s21 + $0x6f0] sm:$0xff]  ;;  %v9170_v52 = vcombine.low %v683_v39, %v687_v40  ;;  %v9298_v53 = vcombine.low %v811_v42, %v815_v43  ;;  %v9347_v39 = vcombine.high %v859_v31, %v863_v32 }
 0x24b   : > { %v3707_v63 = vpop.f32.mrb[0].mxu0  ;;  %v3750_v8 = vpop.f32.mrb[1].mxu1  ;;  %v9307_v55 = vcombine.high %v819_v50, %v823_v51  ;;  %v867_v42 = vld [vmem:[%s11137_s21 + $0x850] sm:$0xff] }
 0x24c   : > { %v3709_v4 = vpop.f32.mrb[1].mxu0  ;;  %v11495_v7 = vadd.f32 %v3748_v3, %v3707_v63  ;;  %v3752_v12 = vpop.f32.mrb[2].mxu1  ;;  %v9306_v63 = vcombine.low %v819_v50, %v823_v51  ;;  %v711_v3 = vld [vmem:[%s11137_s21 + $0x370] sm:$0xff] }
 0x24d   : > { %v3711_v9 = vpop.f32.mrb[2].mxu0  ;;  %4012 = vmatpush1.bf16.msra.mxu0 %v9130_v58  ;;  %v11497_v11 = vadd.f32 %v3750_v8, %v3709_v4  ;;  %4053 = vmatpush1.bf16.msra.mxu1 %v9258_v59  ;;  %v3753_v16 = vpop.f32.mrb[3].mxu1  ;;  %v827_v58 = vld [vmem:[%s11137_s21 + $0x710] sm:$0xff] }
 0x24e   : > { %v3712_v13 = vpop.f32.mrb[3].mxu0  ;;  %4013 = vmatprep.subr.bf16.mxu0 %v9139_v62  ;;  %4054 = vmatprep.subr.bf16.mxu1 %v9267_v0  ;;  %v831_v59 = vld [vmem:[%s11137_s21 + $0x730] sm:$0xff]  ;;  %v9178_v62 = vcombine.low %v691_v48, %v695_v49  ;;  %v9187_v0 = vcombine.high %v699_v56, %v703_v57  ;;  %v9195_v9 = vcombine.high %v707_v2, %v711_v3 }
 0x24f   : > { %v9315_v1 = vcombine.high %v827_v58, %v831_v59  ;;  %v835_v4 = vld [vmem:[%s11137_s21 + $0x750] sm:$0xff]  ;;  %v9314_v8 = vcombine.low %v827_v58, %v831_v59  ;;  %v9194_v16 = vcombine.low %v707_v2, %v711_v3 }
 0x250   : > { %v715_v12 = vld [vmem:[%s11137_s21 + $0x390] sm:$0xff] }
 0x251   : > { %4014 = vmatpush1.bf16.msra.mxu0 %v9138_v10  ;;  %4055 = vmatpush1.bf16.msra.mxu1 %v9266_v14  ;;  %v9323_v10 = vcombine.high %v835_v4, %v839_v5  ;;  %v719_v13 = vld [vmem:[%s11137_s21 + $0x3b0] sm:$0xff] }
 0x252   : > { %4015 = vmatprep.subr.bf16.mxu0 %v9147_v15  ;;  %4056 = vmatprep.subr.bf16.mxu1 %v9275_v17  ;;  %v843_v14 = vld [vmem:[%s11137_s21 + $0x790] sm:$0xff]  ;;  %v9322_v17 = vcombine.low %v835_v4, %v839_v5  ;;  %v9203_v19 = vcombine.high %v715_v12, %v719_v13 }
 0x253   : > { %v847_v15 = vld [vmem:[%s11137_s21 + $0x7b0] sm:$0xff] }
 0x254   : > { %v9331_v20 = vcombine.high %v843_v14, %v847_v15  ;;  %v871_v43 = vld [vmem:[%s11137_s21 + $0x870] sm:$0xff] }
 0x255   : > { %4016 = vmatpush1.bf16.msra.mxu0 %v9146_v24  ;;  %4057 = vmatpush1.bf16.msra.mxu1 %v9274_v25  ;;  %v851_v24 = vld [vmem:[%s11137_s21 + $0x7d0] sm:$0xff]  ;;  %v9355_v48 = vcombine.high %v867_v42, %v871_v43 }
 0x256   : > { %4017 = vmatprep.subr.bf16.mxu0 %v9155_v26  ;;  %4058 = vmatprep.subr.bf16.mxu1 %v9283_v27  ;;  %v855_v25 = vld [vmem:[%s11137_s21 + $0x7f0] sm:$0xff]  ;;  %v9202_v26 = vcombine.low %v715_v12, %v719_v13  ;;  %v9330_v27 = vcombine.low %v843_v14, %v847_v15 }
 0x257   : > { %v9339_v29 = vcombine.high %v851_v24, %v855_v25  ;;  %v875_v50 = vld [vmem:[%s11137_s21 + $0x890] sm:$0xff] }
 0x258   : > { %v879_v51 = vld [vmem:[%s11137_s21 + $0x8b0] sm:$0xff] }
 0x259   : > { %4018 = vmatpush1.bf16.msra.mxu0 %v9154_v34  ;;  %4059 = vmatpush1.bf16.msra.mxu1 %v9282_v35  ;;  %v987_v34 = vld [vmem:[%s11137_s21 + $0xc10] sm:$0xff]  ;;  %v9363_v56 = vcombine.high %v875_v50, %v879_v51 }
 0x25a   : > { %4019 = vmatprep.subr.bf16.mxu0 %v9163_v36  ;;  %4060 = vmatprep.subr.bf16.mxu1 %v9291_v37  ;;  %v991_v35 = vld [vmem:[%s11137_s21 + $0xc30] sm:$0xff]  ;;  %v9210_v36 = vcombine.low %v723_v21, %v727_v23  ;;  %v9338_v37 = vcombine.low %v851_v24, %v855_v25 }
 0x25b   : > { %v9475_v40 = vcombine.high %v987_v34, %v991_v35  ;;  %v883_v58 = vld [vmem:[%s11137_s21 + $0x8d0] sm:$0xff] }
 0x25c   : > { %v887_v59 = vld [vmem:[%s11137_s21 + $0x8f0] sm:$0xff] }
 0x25d   : > { %4020 = vmatpush1.bf16.msra.mxu0 %v9162_v44  ;;  %4061 = vmatpush1.bf16.msra.mxu1 %v9290_v45  ;;  %v995_v44 = vld [vmem:[%s11137_s21 + $0xc50] sm:$0xff]  ;;  %v9371_v2 = vcombine.high %v883_v58, %v887_v59 }
 0x25e   : > { %4021 = vmatprep.subr.bf16.mxu0 %v9171_v46  ;;  %4062 = vmatprep.subr.bf16.mxu1 %v9299_v47  ;;  %v999_v45 = vld [vmem:[%s11137_s21 + $0xc70] sm:$0xff]  ;;  %v9346_v46 = vcombine.low %v859_v31, %v863_v32  ;;  %v9474_v47 = vcombine.low %v987_v34, %v991_v35 }
 0x25f   : > { %v9483_v49 = vcombine.high %v995_v44, %v999_v45  ;;  %v891_v4 = vld [vmem:[%s11137_s21 + $0x910] sm:$0xff] }
 0x260   : > { %v895_v5 = vld [vmem:[%s11137_s21 + $0x930] sm:$0xff] }
 0x261   : > { %4022 = vmatpush1.bf16.msra.mxu0 %v9170_v52  ;;  %4063 = vmatpush1.bf16.msra.mxu1 %v9298_v53  ;;  %v1003_v52 = vld [vmem:[%s11137_s21 + $0xc90] sm:$0xff]  ;;  %v9379_v12 = vcombine.high %v891_v4, %v895_v5 }
 0x262   : > { %4023 = vmatprep.subr.bf16.mxu0 %v9179_v54  ;;  %4064 = vmatprep.subr.bf16.mxu1 %v9307_v55  ;;  %v1007_v53 = vld [vmem:[%s11137_s21 + $0xcb0] sm:$0xff]  ;;  %v9354_v54 = vcombine.low %v867_v42, %v871_v43  ;;  %v9482_v55 = vcombine.low %v995_v44, %v999_v45  ;;  %v577_v44 = vld [vmem:[#allocation2] sm:$0xff] }
 0x263   : > { %v9491_v57 = vcombine.high %v1003_v52, %v1007_v53  ;;  %v899_v14 = vld [vmem:[%s11137_s21 + $0x950] sm:$0xff] }
 0x264   : > { %v903_v15 = vld [vmem:[%s11137_s21 + $0x970] sm:$0xff] }
 0x265   : > { %4024 = vmatpush1.bf16.msra.mxu0 %v9178_v62  ;;  %4065 = vmatpush1.bf16.msra.mxu1 %v9306_v63  ;;  %v1011_v62 = vld [vmem:[%s11137_s21 + $0xcd0] sm:$0xff]  ;;  %v9387_v21 = vcombine.high %v899_v14, %v903_v15 }
 0x266   : > { %4025 = vmatprep.subr.bf16.mxu0 %v9187_v0  ;;  %4066 = vmatprep.subr.bf16.mxu1 %v9315_v1  ;;  %v1015_v63 = vld [vmem:[%s11137_s21 + $0xcf0] sm:$0xff]  ;;  %v9362_v0 = vcombine.low %v875_v50, %v879_v51  ;;  %v9490_v1 = vcombine.low %v1003_v52, %v1007_v53  ;;  %v578_v50 = vld [vmem:[#allocation2 + $0x8] sm:$0xff] }
 0x267   : > { %v9499_v3 = vcombine.high %v1011_v62, %v1015_v63  ;;  %v907_v24 = vld [vmem:[%s11137_s21 + $0x990] sm:$0xff] }
 0x268   : > { %v911_v25 = vld [vmem:[%s11137_s21 + $0x9b0] sm:$0xff] }
 0x269   : > { %4026 = vmatpush1.bf16.msra.mxu0 %v9186_v6  ;;  %4067 = vmatpush1.bf16.msra.mxu1 %v9314_v8  ;;  %v1019_v6 = vld [vmem:[%s11137_s21 + $0xd10] sm:$0xff]  ;;  %v9395_v31 = vcombine.high %v907_v24, %v911_v25 }
 0x26a   : > { %4027 = vmatprep.subr.bf16.mxu0 %v9195_v9  ;;  %4068 = vmatprep.subr.bf16.mxu1 %v9323_v10  ;;  %v1023_v8 = vld [vmem:[%s11137_s21 + $0xd30] sm:$0xff]  ;;  %v9370_v9 = vcombine.low %v883_v58, %v887_v59  ;;  %v9498_v10 = vcombine.low %v1011_v62, %v1015_v63 }
 0x26b   : > { %v9507_v13 = vcombine.high %v1019_v6, %v1023_v8  ;;  %v915_v35 = vld [vmem:[%s11137_s21 + $0x9d0] sm:$0xff] }
 0x26c   : > { %v1043_v42 = vld [vmem:[%s11137_s21 + $0xdd0] sm:$0xff] }
 0x26d   : > { %4028 = vmatpush1.bf16.msra.mxu0 %v9194_v16  ;;  %4069 = vmatpush1.bf16.msra.mxu1 %v9322_v17  ;;  %v1027_v16 = vld [vmem:[%s11137_s21 + $0xd50] sm:$0xff] }
 0x26e   : > { %4029 = vmatprep.subr.bf16.mxu0 %v9203_v19  ;;  %4070 = vmatprep.subr.bf16.mxu1 %v9331_v20  ;;  %v1031_v17 = vld [vmem:[%s11137_s21 + $0xd70] sm:$0xff]  ;;  %v9378_v19 = vcombine.low %v891_v4, %v895_v5  ;;  %v9506_v20 = vcombine.low %v1019_v6, %v1023_v8 }
 0x26f   : > { %v9515_v23 = vcombine.high %v1027_v16, %v1031_v17  ;;  %v1047_v43 = vld [vmem:[%s11137_s21 + $0xdf0] sm:$0xff] }
 0x270   : > { %v1051_v59 = vld [vmem:[%s11137_s21 + $0xe10] sm:$0xff] }
 0x271   : > { %4030 = vmatpush1.bf16.msra.mxu0 %v9202_v26  ;;  %4071 = vmatpush1.bf16.msra.mxu1 %v9330_v27  ;;  %v1035_v26 = vld [vmem:[%s11137_s21 + $0xd90] sm:$0xff] }
 0x272   : > { %4031 = vmatprep.subr.bf16.mxu0 %v9211_v28  ;;  %4072 = vmatprep.subr.bf16.mxu1 %v9339_v29  ;;  %v1039_v27 = vld [vmem:[%s11137_s21 + $0xdb0] sm:$0xff]  ;;  %v9386_v28 = vcombine.low %v899_v14, %v903_v15  ;;  %v9514_v29 = vcombine.low %v1027_v16, %v1031_v17 }
 0x273   : > { %v9523_v34 = vcombine.high %v1035_v26, %v1039_v27  ;;  %v9522_v52 = vcombine.low %v1035_v26, %v1039_v27  ;;  %v1055_v62 = vld [vmem:[%s11137_s21 + $0xe30] sm:$0xff] }
 0x274   : > { %v931_v4 = vld [vmem:[%s11137_s21 + $0xa50] sm:$0xff] }
 0x275   : > { %4032 = vmatpush1.bf16.msra.mxu0 %v9210_v36  ;;  %4073 = vmatpush1.bf16.msra.mxu1 %v9338_v37  ;;  %v919_v36 = vld [vmem:[%s11137_s21 + $0x9f0] sm:$0xff] }
 0x276   : > { %4083 = vmatprep.subr.bf16.mxu0 %v9347_v39  ;;  %4124 = vmatprep.subr.bf16.mxu1 %v9475_v40  ;;  %v9403_v53 = vcombine.high %v915_v35, %v919_v36  ;;  %v935_v5 = vld [vmem:[%s11137_s21 + $0xa70] sm:$0xff] }
 0x277   : > { %v1059_v6 = vld [vmem:[%s11137_s21 + $0xe50] sm:$0xff] }
 0x278   : > { %4034 = vmatmul.mubr.bf16.vlgmr.msra.gmra.mrb[16].mxu0 %v11245_v18  ;;  %4075 = vmatmul.mubr.bf16.vlgmr.msra.gmra.mrb[16].mxu1 %v11250_v22  ;;  %v1063_v8 = vld [vmem:[%s11137_s21 + $0xe70] sm:$0xff] }
 0x279   : > { %4084 = vmatpush1.bf16.msra.mxu0 %v9346_v46  ;;  %4125 = vmatpush1.bf16.msra.mxu1 %v9474_v47  ;;  %v939_v14 = vld [vmem:[%s11137_s21 + $0xa90] sm:$0xff] }
 0x27a   : > { %4085 = vmatprep.subr.bf16.mxu0 %v9355_v48  ;;  %4126 = vmatprep.subr.bf16.mxu1 %v9483_v49  ;;  %v9394_v48 = vcombine.low %v907_v24, %v911_v25  ;;  %v943_v15 = vld [vmem:[%s11137_s21 + $0xab0] sm:$0xff] }
 0x27b   : > { %4115 = vmatprep.mubr.bf16.mxu0 %v11255_v30  ;;  %4156 = vmatprep.mubr.bf16.mxu1 %v11260_v33  ;;  %v1067_v16 = vld [vmem:[%s11137_s21 + $0xe90] sm:$0xff] }
 0x27c   : > { %v1071_v17 = vld [vmem:[%s11137_s21 + $0xeb0] sm:$0xff] }
 0x27d   : > { %4086 = vmatpush1.bf16.msra.mxu0 %v9354_v54  ;;  %4127 = vmatpush1.bf16.msra.mxu1 %v9482_v55  ;;  %v947_v24 = vld [vmem:[%s11137_s21 + $0xad0] sm:$0xff] }
 0x27e   : > { %4087 = vmatprep.subr.bf16.mxu0 %v9363_v56  ;;  %4128 = vmatprep.subr.bf16.mxu1 %v9491_v57  ;;  %v923_v56 = vld [vmem:[%s11137_s21 + $0xa10] sm:$0xff] }
 0x27f   : > { %v927_v57 = vld [vmem:[%s11137_s21 + $0xa30] sm:$0xff] }
 0x280   : > { %v951_v25 = vld [vmem:[%s11137_s21 + $0xaf0] sm:$0xff] }
 0x281   : > { %4088 = vmatpush1.bf16.msra.mxu0 %v9362_v0  ;;  %4129 = vmatpush1.bf16.msra.mxu1 %v9490_v1  ;;  %v9402_v0 = vcombine.low %v915_v35, %v919_v36  ;;  %v9530_v1 = vcombine.low %v1043_v42, %v1047_v43  ;;  %v1075_v26 = vld [vmem:[%s11137_s21 + $0xed0] sm:$0xff] }
 0x282   : > { %4089 = vmatprep.subr.bf16.mxu0 %v9371_v2  ;;  %4130 = vmatprep.subr.bf16.mxu1 %v9499_v3  ;;  %v9411_v2 = vcombine.high %v923_v56, %v927_v57  ;;  %v9539_v3 = vcombine.high %v1051_v59, %v1055_v62  ;;  %v1079_v27 = vld [vmem:[%s11137_s21 + $0xef0] sm:$0xff] }
 0x283   : > { %v959_v35 = vld [vmem:[%s11137_s21 + $0xb30] sm:$0xff] }
 0x284   : > { %v1083_v36 = vld [vmem:[%s11137_s21 + $0xf10] sm:$0xff] }
 0x285   : > { %4090 = vmatpush1.bf16.msra.mxu0 %v9370_v9  ;;  %4131 = vmatpush1.bf16.msra.mxu1 %v9498_v10  ;;  %v9410_v9 = vcombine.low %v923_v56, %v927_v57  ;;  %v9538_v10 = vcombine.low %v1051_v59, %v1055_v62  ;;  %v983_v59 = vld [vmem:[%s11137_s21 + $0xbf0] sm:$0xff] }
 0x286   : > { %4091 = vmatprep.subr.bf16.mxu0 %v9379_v12  ;;  %4132 = vmatprep.subr.bf16.mxu1 %v9507_v13  ;;  %v9419_v12 = vcombine.high %v931_v4, %v935_v5  ;;  %v9547_v13 = vcombine.high %v1059_v6, %v1063_v8  ;;  %v1107_v62 = vld [vmem:[%s11137_s21 + $0xfd0] sm:$0xff] }
 0x289   : > { %4092 = vmatpush1.bf16.msra.mxu0 %v9378_v19  ;;  %4133 = vmatpush1.bf16.msra.mxu1 %v9506_v20  ;;  %v9418_v19 = vcombine.low %v931_v4, %v935_v5  ;;  %v9546_v20 = vcombine.low %v1059_v6, %v1063_v8  ;;  %v604_v4 = vld [vmem:[%s11137_s21 + $0x18] sm:$0xff] }
 0x28a   : > { %4093 = vmatprep.subr.bf16.mxu0 %v9387_v21  ;;  %4134 = vmatprep.subr.bf16.mxu1 %v9515_v23  ;;  %v9427_v21 = vcombine.high %v939_v14, %v943_v15  ;;  %v9555_v23 = vcombine.high %v1067_v16, %v1071_v17  ;;  %v608_v5 = vld [vmem:[%s11137_s21 + $0x38] sm:$0xff] }
 0x28b   : > { %v3789_v32 = vpop.f32.mrb[4].mxu0  ;;  %v3830_v39 = vpop.f32.mrb[4].mxu1  ;;  %v732_v6 = vld [vmem:[%s11137_s21 + $0x418] sm:$0xff] }
 0x28c   : > { %v3790_v37 = vadd.f32 %v3789_v32, %v11495_v7  ;;  %v3791_v40 = vpop.f32.mrb[5].mxu0  ;;  %v3832_v46 = vpop.f32.mrb[5].mxu1  ;;  %v9563_v32 = vcombine.high %v1075_v26, %v1079_v27  ;;  %v736_v8 = vld [vmem:[%s11137_s21 + $0x438] sm:$0xff] }
 0x28d   : > { %v3792_v45 = vadd.f32 %v3791_v40, %v11497_v11  ;;  %v3793_v47 = vpop.f32.mrb[6].mxu0  ;;  %4094 = vmatpush1.bf16.msra.mxu0 %v9386_v28  ;;  %v3834_v51 = vpop.f32.mrb[6].mxu1  ;;  %4135 = vmatpush1.bf16.msra.mxu1 %v9514_v29  ;;  %v9531_v11 = vcombine.high %v1043_v42, %v1047_v43  ;;  %v9426_v28 = vcombine.low %v939_v14, %v943_v15  ;;  %v612_v14 = vld [vmem:[%s11137_s21 + $0x58] sm:$0xff] }
 0x28e   : > { %v3831_v49 = vadd.f32 %v3830_v39, %v3790_v37  ;;  %v3794_v7 = vpop.f32.mrb[7].mxu0  ;;  %4095 = vmatprep.subr.bf16.mxu0 %v9395_v31  ;;  %v3835_v55 = vpop.f32.mrb[7].mxu1  ;;  %4136 = vmatprep.subr.bf16.mxu1 %v9523_v34  ;;  %v9554_v29 = vcombine.low %v1067_v16, %v1071_v17  ;;  %v9435_v31 = vcombine.high %v947_v24, %v951_v25  ;;  %v955_v34 = vld [vmem:[%s11137_s21 + $0xb10] sm:$0xff]  ;;  %v616_v15 = vld [vmem:[%s11137_s21 + $0x78] sm:$0xff] }
 0x28f   : > { %v3833_v54 = vadd.f32 %v3832_v46, %v3792_v45  ;;  %v1087_v37 = vld [vmem:[%s11137_s21 + $0xf30] sm:$0xff]  ;;  %v9434_v39 = vcombine.low %v947_v24, %v951_v25  ;;  %v9562_v40 = vcombine.low %v1075_v26, %v1079_v27  ;;  %v9443_v42 = vcombine.high %v955_v34, %v959_v35  ;;  %v740_v16 = vld [vmem:[%s11137_s21 + $0x458] sm:$0xff] }
 0x290   : > { %v4329_v58 = vadd.f32 %v3831_v49, %v577_v44  ;;  %v9571_v43 = vcombine.high %v1083_v36, %v1087_v37  ;;  %v963_v44 = vld [vmem:[%s11137_s21 + $0xb50] sm:$0xff]  ;;  %v9570_v49 = vcombine.low %v1083_v36, %v1087_v37  ;;  %v744_v17 = vld [vmem:[%s11137_s21 + $0x478] sm:$0xff] }
 0x291   : > { %v4330_v63 = vadd.f32 %v3833_v54, %v578_v50  ;;  %4096 = vmatpush1.bf16.msra.mxu0 %v9394_v48  ;;  %4137 = vmatpush1.bf16.msra.mxu1 %v9522_v52  ;;  %v967_v45 = vld [vmem:[%s11137_s21 + $0xb70] sm:$0xff]  ;;  %v9442_v48 = vcombine.low %v955_v34, %v959_v35  ;;  %v620_v24 = vld [vmem:[%s11137_s21 + $0x98] sm:$0xff] }
 0x292   : > { %4337 = vst [vmem:[#allocation2] sm:$0xff] %v4329_v58  ;;  %4097 = vmatprep.subr.bf16.mxu0 %v9403_v53  ;;  %4138 = vmatprep.subr.bf16.mxu1 %v9531_v11  ;;  %v1091_v46 = vld [vmem:[%s11137_s21 + $0xf50] sm:$0xff]  ;;  %v9451_v50 = vcombine.high %v963_v44, %v967_v45  ;;  %v9450_v55 = vcombine.low %v963_v44, %v967_v45  ;;  %v624_v25 = vld [vmem:[%s11137_s21 + $0xb8] sm:$0xff] }
 0x293   : > { %4338 = vst [vmem:[#allocation2 + $0x8] sm:$0xff] %v4330_v63  ;;  %v1095_v47 = vld [vmem:[%s11137_s21 + $0xf70] sm:$0xff]  ;;  %v748_v26 = vld [vmem:[%s11137_s21 + $0x498] sm:$0xff] }
 0x294   : > { %v9579_v51 = vcombine.high %v1091_v46, %v1095_v47  ;;  %v971_v7 = vld [vmem:[%s11137_s21 + $0xb90] sm:$0xff]  ;;  %v9578_v11 = vcombine.low %v1091_v46, %v1095_v47  ;;  %v752_v27 = vld [vmem:[%s11137_s21 + $0x4b8] sm:$0xff] }
 0x295   : > { %4098 = vmatpush1.bf16.msra.mxu0 %v9402_v0  ;;  %4139 = vmatpush1.bf16.msra.mxu1 %v9530_v1  ;;  %v975_v52 = vld [vmem:[%s11137_s21 + $0xbb0] sm:$0xff]  ;;  %v628_v34 = vld [vmem:[%s11137_s21 + $0xd8] sm:$0xff] }
 0x296   : > { %4099 = vmatprep.subr.bf16.mxu0 %v9411_v2  ;;  %4140 = vmatprep.subr.bf16.mxu1 %v9539_v3  ;;  %v1099_v53 = vld [vmem:[%s11137_s21 + $0xf90] sm:$0xff]  ;;  %v9459_v56 = vcombine.high %v971_v7, %v975_v52  ;;  %v9458_v0 = vcombine.low %v971_v7, %v975_v52  ;;  %v632_v35 = vld [vmem:[%s11137_s21 + $0xf8] sm:$0xff] }
 0x297   : > { %v1103_v54 = vld [vmem:[%s11137_s21 + $0xfb0] sm:$0xff]  ;;  %v756_v36 = vld [vmem:[%s11137_s21 + $0x4d8] sm:$0xff]  ;;  %v9116_v47 = vcombine.low %v628_v34, %v632_v35 }
 0x298   : > { %v9587_v57 = vcombine.high %v1099_v53, %v1103_v54  ;;  %v979_v58 = vld [vmem:[%s11137_s21 + $0xbd0] sm:$0xff]  ;;  %v9586_v1 = vcombine.low %v1099_v53, %v1103_v54  ;;  %v760_v37 = vld [vmem:[%s11137_s21 + $0x4f8] sm:$0xff] }
 0x299   : > { %4100 = vmatpush1.bf16.msra.mxu0 %v9410_v9  ;;  %4141 = vmatpush1.bf16.msra.mxu1 %v9538_v10  ;;  %v1111_v63 = vld [vmem:[%s11137_s21 + $0xff0] sm:$0xff]  ;;  %v9467_v2 = vcombine.high %v979_v58, %v983_v59  ;;  %v9466_v9 = vcombine.low %v979_v58, %v983_v59  ;;  %v636_v44 = vld [vmem:[%s11137_s21 + $0x118] sm:$0xff] }
 0x29a   : > { %4101 = vmatprep.subr.bf16.mxu0 %v9419_v12  ;;  %4142 = vmatprep.subr.bf16.mxu1 %v9547_v13  ;;  %v9595_v3 = vcombine.high %v1107_v62, %v1111_v63  ;;  %v9594_v10 = vcombine.low %v1107_v62, %v1111_v63  ;;  %v9093_v12 = vcombine.high %v604_v4, %v608_v5  ;;  %v640_v45 = vld [vmem:[%s11137_s21 + $0x138] sm:$0xff] }
 0x29b   : > { %v9221_v13 = vcombine.high %v732_v6, %v736_v8  ;;  %v764_v46 = vld [vmem:[%s11137_s21 + $0x518] sm:$0xff]  ;;  %v9124_v53 = vcombine.low %v636_v44, %v640_v45 }
 0x29c   : > { %v772_v7 = vld [vmem:[%s11137_s21 + $0x558] sm:$0xff] }
 0x29d   : > { %4102 = vmatpush1.bf16.msra.mxu0 %v9418_v19  ;;  %4143 = vmatpush1.bf16.msra.mxu1 %v9546_v20  ;;  %v9092_v19 = vcombine.low %v604_v4, %v608_v5  ;;  %v9220_v20 = vcombine.low %v732_v6, %v736_v8  ;;  %v776_v52 = vld [vmem:[%s11137_s21 + $0x578] sm:$0xff] }
 0x29e   : > { %4103 = vmatprep.subr.bf16.mxu0 %v9427_v21  ;;  %4144 = vmatprep.subr.bf16.mxu1 %v9555_v23  ;;  %v9101_v21 = vcombine.high %v612_v14, %v616_v15  ;;  %v9229_v23 = vcombine.high %v740_v16, %v744_v17  ;;  %v780_v58 = vld [vmem:[%s11137_s21 + $0x598] sm:$0xff]  ;;  %v9260_v63 = vcombine.low %v772_v7, %v776_v52 }
 0x29f   : > { %v784_v59 = vld [vmem:[%s11137_s21 + $0x5b8] sm:$0xff] }
 0x2a0   : > { %v664_v4 = vld [vmem:[%s11137_s21 + $0x1f8] sm:$0xff] }
 0x2a1   : > { %4104 = vmatpush1.bf16.msra.mxu0 %v9426_v28  ;;  %4145 = vmatpush1.bf16.msra.mxu1 %v9554_v29  ;;  %v9100_v28 = vcombine.low %v612_v14, %v616_v15  ;;  %v9228_v29 = vcombine.low %v740_v16, %v744_v17  ;;  %v788_v8 = vld [vmem:[%s11137_s21 + $0x5d8] sm:$0xff] }
 0x2a2   : > { %4105 = vmatprep.subr.bf16.mxu0 %v9435_v31  ;;  %4146 = vmatprep.subr.bf16.mxu1 %v9563_v32  ;;  %v9109_v31 = vcombine.high %v620_v24, %v624_v25  ;;  %v9237_v32 = vcombine.high %v748_v26, %v752_v27 }
 0x2a5   : > { %4106 = vmatpush1.bf16.msra.mxu0 %v9434_v39  ;;  %4147 = vmatpush1.bf16.msra.mxu1 %v9562_v40  ;;  %v9108_v39 = vcombine.low %v620_v24, %v624_v25  ;;  %v9236_v40 = vcombine.low %v748_v26, %v752_v27  ;;  %v668_v24 = vld [vmem:[%s11137_s21 + $0x218] sm:$0xff] }
 0x2a6   : > { %4107 = vmatprep.subr.bf16.mxu0 %v9443_v42  ;;  %4148 = vmatprep.subr.bf16.mxu1 %v9571_v43  ;;  %v9117_v42 = vcombine.high %v628_v34, %v632_v35  ;;  %v9245_v43 = vcombine.high %v756_v36, %v760_v37  ;;  %v672_v25 = vld [vmem:[%s11137_s21 + $0x238] sm:$0xff] }
 0x2a7   : > { %v796_v26 = vld [vmem:[%s11137_s21 + $0x618] sm:$0xff] }
 0x2a8   : > { %v800_v27 = vld [vmem:[%s11137_s21 + $0x638] sm:$0xff] }
 0x2a9   : > { %4108 = vmatpush1.bf16.msra.mxu0 %v9442_v48  ;;  %4149 = vmatpush1.bf16.msra.mxu1 %v9570_v49  ;;  %v9125_v48 = vcombine.high %v636_v44, %v640_v45  ;;  %v676_v34 = vld [vmem:[%s11137_s21 + $0x258] sm:$0xff] }
 0x2aa   : > { %4109 = vmatprep.subr.bf16.mxu0 %v9451_v50  ;;  %4150 = vmatprep.subr.bf16.mxu1 %v9579_v51  ;;  %v644_v50 = vld [vmem:[%s11137_s21 + $0x158] sm:$0xff] }
 0x2ab   : > { %v648_v51 = vld [vmem:[%s11137_s21 + $0x178] sm:$0xff] }
 0x2ac   : > { %v9132_v62 = vcombine.low %v644_v50, %v648_v51  ;;  %v680_v35 = vld [vmem:[%s11137_s21 + $0x278] sm:$0xff] }
 0x2ad   : > { %4110 = vmatpush1.bf16.msra.mxu0 %v9450_v55  ;;  %4151 = vmatpush1.bf16.msra.mxu1 %v9578_v11  ;;  %v9133_v55 = vcombine.high %v644_v50, %v648_v51  ;;  %v9261_v11 = vcombine.high %v772_v7, %v776_v52  ;;  %v684_v44 = vld [vmem:[%s11137_s21 + $0x298] sm:$0xff] }
 0x2ae   : > { %4111 = vmatprep.subr.bf16.mxu0 %v9459_v56  ;;  %4152 = vmatprep.subr.bf16.mxu1 %v9587_v57  ;;  %v652_v56 = vld [vmem:[%s11137_s21 + $0x198] sm:$0xff] }
 0x2af   : > { %v656_v57 = vld [vmem:[%s11137_s21 + $0x1b8] sm:$0xff] }
 0x2b0   : > { %v9140_v14 = vcombine.low %v652_v56, %v656_v57  ;;  %v688_v45 = vld [vmem:[%s11137_s21 + $0x2b8] sm:$0xff] }
 0x2b1   : > { %4112 = vmatpush1.bf16.msra.mxu0 %v9458_v0  ;;  %4153 = vmatpush1.bf16.msra.mxu1 %v9586_v1  ;;  %v9141_v0 = vcombine.high %v652_v56, %v656_v57  ;;  %v692_v50 = vld [vmem:[%s11137_s21 + $0x2d8] sm:$0xff] }
 0x2b2   : > { %4113 = vmatprep.subr.bf16.mxu0 %v9467_v2  ;;  %4154 = vmatprep.subr.bf16.mxu1 %v9595_v3  ;;  %v9269_v2 = vcombine.high %v780_v58, %v784_v59  ;;  %v660_v3 = vld [vmem:[%s11137_s21 + $0x1d8] sm:$0xff] }
 0x2b3   : > { %v696_v51 = vld [vmem:[%s11137_s21 + $0x2f8] sm:$0xff] }
 0x2b4   : > { %v820_v7 = vld [vmem:[%s11137_s21 + $0x6d8] sm:$0xff] }
 0x2b5   : > { %4114 = vmatpush1.bf16.msra.mxu0 %v9466_v9  ;;  %4155 = vmatpush1.bf16.msra.mxu1 %v9594_v10  ;;  %v792_v9 = vld [vmem:[%s11137_s21 + $0x5f8] sm:$0xff] }
 0x2b6   : > { %4165 = vmatprep.subr.bf16.mxu0 %v9093_v12  ;;  %4206 = vmatprep.subr.bf16.mxu1 %v9221_v13  ;;  %v824_v52 = vld [vmem:[%s11137_s21 + $0x6f8] sm:$0xff] }
 0x2b7   : > { %v700_v56 = vld [vmem:[%s11137_s21 + $0x318] sm:$0xff] }
 0x2b8   : > { %4116 = vmatmul.mubr.bf16.vlgmr.msra.gmra.mrb[20].mxu0 %v11325_v38  ;;  %4157 = vmatmul.mubr.bf16.vlgmr.msra.gmra.mrb[20].mxu1 %v11329_v41  ;;  %v704_v57 = vld [vmem:[%s11137_s21 + $0x338] sm:$0xff] }
 0x2b9   : > { %4166 = vmatpush1.bf16.msra.mxu0 %v9092_v19  ;;  %4207 = vmatpush1.bf16.msra.mxu1 %v9220_v20  ;;  %v9268_v19 = vcombine.low %v780_v58, %v784_v59  ;;  %v9149_v20 = vcombine.high %v660_v3, %v664_v4  ;;  %v828_v58 = vld [vmem:[%s11137_s21 + $0x718] sm:$0xff] }
 0x2ba   : > { %4167 = vmatprep.subr.bf16.mxu0 %v9101_v21  ;;  %4208 = vmatprep.subr.bf16.mxu1 %v9229_v23  ;;  %v9277_v23 = vcombine.high %v788_v8, %v792_v9  ;;  %v832_v59 = vld [vmem:[%s11137_s21 + $0x738] sm:$0xff] }
 0x2bb   : > { %4197 = vmatprep.mubr.bf16.mxu0 %v11197_v60  ;;  %4238 = vmatprep.mubr.bf16.mxu1 %v11199_v61  ;;  %v768_v60 = vld [vmem:[%s11137_s21 + $0x538] sm:$0xff]  ;;  %v9244_v61 = vcombine.low %v756_v36, %v760_v37 }
 0x2bc   : > { %v9253_v49 = vcombine.high %v764_v46, %v768_v60  ;;  %v9252_v54 = vcombine.low %v764_v46, %v768_v60  ;;  %v804_v36 = vld [vmem:[%s11137_s21 + $0x658] sm:$0xff] }
 0x2bd   : > { %4168 = vmatpush1.bf16.msra.mxu0 %v9100_v28  ;;  %4209 = vmatpush1.bf16.msra.mxu1 %v9228_v29  ;;  %v9148_v28 = vcombine.low %v660_v3, %v664_v4  ;;  %v9276_v29 = vcombine.low %v788_v8, %v792_v9  ;;  %v808_v37 = vld [vmem:[%s11137_s21 + $0x678] sm:$0xff]  ;;  %v9316_v8 = vcombine.low %v828_v58, %v832_v59 }
 0x2be   : > { %4169 = vmatprep.subr.bf16.mxu0 %v9109_v31  ;;  %4210 = vmatprep.subr.bf16.mxu1 %v9237_v32  ;;  %v9157_v31 = vcombine.high %v668_v24, %v672_v25  ;;  %v9285_v32 = vcombine.high %v796_v26, %v800_v27  ;;  %v812_v46 = vld [vmem:[%s11137_s21 + $0x698] sm:$0xff] }
 0x2bf   : > { %v816_v60 = vld [vmem:[%s11137_s21 + $0x6b8] sm:$0xff] }
 0x2c0   : > { %v712_v3 = vld [vmem:[%s11137_s21 + $0x378] sm:$0xff] }
 0x2c1   : > { %4170 = vmatpush1.bf16.msra.mxu0 %v9108_v39  ;;  %4211 = vmatpush1.bf16.msra.mxu1 %v9236_v40  ;;  %v9156_v39 = vcombine.low %v668_v24, %v672_v25  ;;  %v9284_v40 = vcombine.low %v796_v26, %v800_v27  ;;  %v836_v4 = vld [vmem:[%s11137_s21 + $0x758] sm:$0xff] }
 0x2c2   : > { %4171 = vmatprep.subr.bf16.mxu0 %v9117_v42  ;;  %4212 = vmatprep.subr.bf16.mxu1 %v9245_v43  ;;  %v9165_v42 = vcombine.high %v676_v34, %v680_v35  ;;  %v9293_v43 = vcombine.high %v804_v36, %v808_v37  ;;  %v724_v24 = vld [vmem:[%s11137_s21 + $0x3d8] sm:$0xff] }
 0x2c3   : > { %v728_v25 = vld [vmem:[%s11137_s21 + $0x3f8] sm:$0xff] }
 0x2c4   : > { %v852_v26 = vld [vmem:[%s11137_s21 + $0x7d8] sm:$0xff] }
 0x2c5   : > { %4172 = vmatpush1.bf16.msra.mxu0 %v9116_v47  ;;  %4213 = vmatpush1.bf16.msra.mxu1 %v9244_v61  ;;  %v9164_v47 = vcombine.low %v676_v34, %v680_v35  ;;  %v9292_v61 = vcombine.low %v804_v36, %v808_v37  ;;  %v856_v27 = vld [vmem:[%s11137_s21 + $0x7f8] sm:$0xff] }
 0x2c6   : > { %4173 = vmatprep.subr.bf16.mxu0 %v9125_v48  ;;  %4214 = vmatprep.subr.bf16.mxu1 %v9253_v49  ;;  %v9173_v48 = vcombine.high %v684_v44, %v688_v45  ;;  %v9301_v49 = vcombine.high %v812_v46, %v816_v60  ;;  %v860_v34 = vld [vmem:[%s11137_s21 + $0x818] sm:$0xff] }
 0x2c7   : > { %v864_v35 = vld [vmem:[%s11137_s21 + $0x838] sm:$0xff] }
 0x2c8   : > { %v988_v36 = vld [vmem:[%s11137_s21 + $0xc18] sm:$0xff] }
 0x2c9   : > { %4174 = vmatpush1.bf16.msra.mxu0 %v9124_v53  ;;  %4215 = vmatpush1.bf16.msra.mxu1 %v9252_v54  ;;  %v9172_v53 = vcombine.low %v684_v44, %v688_v45  ;;  %v9300_v54 = vcombine.low %v812_v46, %v816_v60  ;;  %v992_v37 = vld [vmem:[%s11137_s21 + $0xc38] sm:$0xff] }
 0x2ca   : > { %4175 = vmatprep.subr.bf16.mxu0 %v9133_v55  ;;  %4216 = vmatprep.subr.bf16.mxu1 %v9261_v11  ;;  %v9181_v55 = vcombine.high %v692_v50, %v696_v51  ;;  %v9309_v11 = vcombine.high %v820_v7, %v824_v52  ;;  %v868_v44 = vld [vmem:[%s11137_s21 + $0x858] sm:$0xff] }
 0x2cb   : > { %v3871_v1 = vpop.f32.mrb[8].mxu0  ;;  %v3912_v5 = vpop.f32.mrb[8].mxu1  ;;  %v872_v45 = vld [vmem:[%s11137_s21 + $0x878] sm:$0xff] }
 0x2cc   : > { %v3873_v6 = vpop.f32.mrb[9].mxu0  ;;  %v11637_v10 = vadd.f32 %v3912_v5, %v3871_v1  ;;  %v3914_v12 = vpop.f32.mrb[9].mxu1  ;;  %v9317_v1 = vcombine.high %v828_v58, %v832_v59  ;;  %v840_v5 = vld [vmem:[%s11137_s21 + $0x778] sm:$0xff] }
 0x2cd   : > { %v3875_v13 = vpop.f32.mrb[10].mxu0  ;;  %4176 = vmatpush1.bf16.msra.mxu0 %v9132_v62  ;;  %v11639_v15 = vadd.f32 %v3914_v12, %v3873_v6  ;;  %v3916_v16 = vpop.f32.mrb[10].mxu1  ;;  %4217 = vmatpush1.bf16.msra.mxu1 %v9260_v63  ;;  %v9180_v62 = vcombine.low %v692_v50, %v696_v51  ;;  %v9308_v63 = vcombine.low %v820_v7, %v824_v52  ;;  %v996_v46 = vld [vmem:[%s11137_s21 + $0xc58] sm:$0xff] }
 0x2ce   : > { %v3876_v17 = vpop.f32.mrb[11].mxu0  ;;  %4177 = vmatprep.subr.bf16.mxu0 %v9141_v0  ;;  %v3917_v21 = vpop.f32.mrb[11].mxu1  ;;  %4218 = vmatprep.subr.bf16.mxu1 %v9269_v2  ;;  %v9189_v0 = vcombine.high %v700_v56, %v704_v57  ;;  %v708_v2 = vld [vmem:[%s11137_s21 + $0x358] sm:$0xff]  ;;  %v9188_v6 = vcombine.low %v700_v56, %v704_v57  ;;  %v9325_v12 = vcombine.high %v836_v4, %v840_v5 }
 0x2cf   : > { %v9197_v9 = vcombine.high %v708_v2, %v712_v3  ;;  %v716_v13 = vld [vmem:[%s11137_s21 + $0x398] sm:$0xff] }
 0x2d0   : > { %v844_v16 = vld [vmem:[%s11137_s21 + $0x798] sm:$0xff] }
 0x2d1   : > { %4178 = vmatpush1.bf16.msra.mxu0 %v9140_v14  ;;  %4219 = vmatpush1.bf16.msra.mxu1 %v9268_v19  ;;  %v720_v14 = vld [vmem:[%s11137_s21 + $0x3b8] sm:$0xff]  ;;  %v9196_v19 = vcombine.low %v708_v2, %v712_v3 }
 0x2d2   : > { %4179 = vmatprep.subr.bf16.mxu0 %v9149_v20  ;;  %4220 = vmatprep.subr.bf16.mxu1 %v9277_v23  ;;  %v848_v17 = vld [vmem:[%s11137_s21 + $0x7b8] sm:$0xff]  ;;  %v9324_v20 = vcombine.low %v836_v4, %v840_v5  ;;  %v9205_v21 = vcombine.high %v716_v13, %v720_v14 }
 0x2d3   : > { %v9333_v23 = vcombine.high %v844_v16, %v848_v17  ;;  %v1000_v60 = vld [vmem:[%s11137_s21 + $0xc78] sm:$0xff] }
 0x2d4   : > { %v876_v50 = vld [vmem:[%s11137_s21 + $0x898] sm:$0xff] }
 0x2d5   : > { %4180 = vmatpush1.bf16.msra.mxu0 %v9148_v28  ;;  %4221 = vmatpush1.bf16.msra.mxu1 %v9276_v29  ;;  %v9204_v28 = vcombine.low %v716_v13, %v720_v14  ;;  %v9332_v29 = vcombine.low %v844_v16, %v848_v17  ;;  %v880_v51 = vld [vmem:[%s11137_s21 + $0x8b8] sm:$0xff] }
 0x2d6   : > { %4181 = vmatprep.subr.bf16.mxu0 %v9157_v31  ;;  %4222 = vmatprep.subr.bf16.mxu1 %v9285_v32  ;;  %v9213_v31 = vcombine.high %v724_v24, %v728_v25  ;;  %v9341_v32 = vcombine.high %v852_v26, %v856_v27  ;;  %v1004_v7 = vld [vmem:[%s11137_s21 + $0xc98] sm:$0xff] }
 0x2d7   : > { %v1008_v52 = vld [vmem:[%s11137_s21 + $0xcb8] sm:$0xff] }
 0x2d8   : > { %v884_v56 = vld [vmem:[%s11137_s21 + $0x8d8] sm:$0xff]  ;;  %v9492_v59 = vcombine.low %v1004_v7, %v1008_v52 }
 0x2d9   : > { %4182 = vmatpush1.bf16.msra.mxu0 %v9156_v39  ;;  %4223 = vmatpush1.bf16.msra.mxu1 %v9284_v40  ;;  %v9212_v39 = vcombine.low %v724_v24, %v728_v25  ;;  %v9340_v40 = vcombine.low %v852_v26, %v856_v27  ;;  %v888_v57 = vld [vmem:[%s11137_s21 + $0x8f8] sm:$0xff] }
 0x2da   : > { %4183 = vmatprep.subr.bf16.mxu0 %v9165_v42  ;;  %4224 = vmatprep.subr.bf16.mxu1 %v9293_v43  ;;  %v9349_v42 = vcombine.high %v860_v34, %v864_v35  ;;  %v9477_v43 = vcombine.high %v988_v36, %v992_v37  ;;  %v1016_v58 = vld [vmem:[%s11137_s21 + $0xcf8] sm:$0xff]  ;;  %v9372_v3 = vcombine.low %v884_v56, %v888_v57 }
 0x2db   : > { %v1020_v2 = vld [vmem:[%s11137_s21 + $0xd18] sm:$0xff] }
 0x2dd   : > { %4184 = vmatpush1.bf16.msra.mxu0 %v9164_v47  ;;  %4225 = vmatpush1.bf16.msra.mxu1 %v9292_v61  ;;  %v9348_v47 = vcombine.low %v860_v34, %v864_v35  ;;  %v9476_v61 = vcombine.low %v988_v36, %v992_v37  ;;  %v1044_v36 = vld [vmem:[%s11137_s21 + $0xdd8] sm:$0xff] }
 0x2de   : > { %4185 = vmatprep.subr.bf16.mxu0 %v9173_v48  ;;  %4226 = vmatprep.subr.bf16.mxu1 %v9301_v49  ;;  %v9357_v48 = vcombine.high %v868_v44, %v872_v45  ;;  %v9485_v49 = vcombine.high %v996_v46, %v1000_v60  ;;  %v1048_v37 = vld [vmem:[%s11137_s21 + $0xdf8] sm:$0xff] }
 0x2e1   : > { %4186 = vmatpush1.bf16.msra.mxu0 %v9172_v53  ;;  %4227 = vmatpush1.bf16.msra.mxu1 %v9300_v54  ;;  %v9356_v53 = vcombine.low %v868_v44, %v872_v45  ;;  %v9484_v54 = vcombine.low %v996_v46, %v1000_v60  ;;  %v580_v46 = vld [vmem:[#allocation2 + $0x18] sm:$0xff] }
 0x2e2   : > { %4187 = vmatprep.subr.bf16.mxu0 %v9181_v55  ;;  %4228 = vmatprep.subr.bf16.mxu1 %v9309_v11  ;;  %v9365_v55 = vcombine.high %v876_v50, %v880_v51  ;;  %v9493_v11 = vcombine.high %v1004_v7, %v1008_v52  ;;  %v1052_v52 = vld [vmem:[%s11137_s21 + $0xe18] sm:$0xff] }
 0x2e5   : > { %4188 = vmatpush1.bf16.msra.mxu0 %v9180_v62  ;;  %4229 = vmatpush1.bf16.msra.mxu1 %v9308_v63  ;;  %v9373_v62 = vcombine.high %v884_v56, %v888_v57 }
 0x2e6   : > { %4189 = vmatprep.subr.bf16.mxu0 %v9189_v0  ;;  %4230 = vmatprep.subr.bf16.mxu1 %v9317_v1  ;;  %v892_v0 = vld [vmem:[%s11137_s21 + $0x918] sm:$0xff] }
 0x2e7   : > { %v896_v1 = vld [vmem:[%s11137_s21 + $0x938] sm:$0xff] }
 0x2e8   : > { %v9381_v4 = vcombine.high %v892_v0, %v896_v1  ;;  %v9380_v13 = vcombine.low %v892_v0, %v896_v1 }
 0x2e9   : > { %4190 = vmatpush1.bf16.msra.mxu0 %v9188_v6  ;;  %4231 = vmatpush1.bf16.msra.mxu1 %v9316_v8  ;;  %v900_v6 = vld [vmem:[%s11137_s21 + $0x958] sm:$0xff] }
 0x2ea   : > { %4191 = vmatprep.subr.bf16.mxu0 %v9197_v9  ;;  %4232 = vmatprep.subr.bf16.mxu1 %v9325_v12  ;;  %v904_v8 = vld [vmem:[%s11137_s21 + $0x978] sm:$0xff] }
 0x2eb   : > { %v1028_v9 = vld [vmem:[%s11137_s21 + $0xd58] sm:$0xff]  ;;  %v9389_v16 = vcombine.high %v900_v6, %v904_v8  ;;  %v9388_v24 = vcombine.low %v900_v6, %v904_v8 }
 0x2ec   : > { %v1032_v12 = vld [vmem:[%s11137_s21 + $0xd78] sm:$0xff] }
 0x2ed   : > { %4192 = vmatpush1.bf16.msra.mxu0 %v9196_v19  ;;  %4233 = vmatpush1.bf16.msra.mxu1 %v9324_v20  ;;  %v9517_v17 = vcombine.high %v1028_v9, %v1032_v12  ;;  %v908_v19 = vld [vmem:[%s11137_s21 + $0x998] sm:$0xff]  ;;  %v9516_v25 = vcombine.low %v1028_v9, %v1032_v12 }
 0x2ee   : > { %4193 = vmatprep.subr.bf16.mxu0 %v9205_v21  ;;  %4234 = vmatprep.subr.bf16.mxu1 %v9333_v23  ;;  %v912_v20 = vld [vmem:[%s11137_s21 + $0x9b8] sm:$0xff] }
 0x2ef   : > { %v1036_v21 = vld [vmem:[%s11137_s21 + $0xd98] sm:$0xff]  ;;  %v9397_v26 = vcombine.high %v908_v19, %v912_v20  ;;  %v9396_v44 = vcombine.low %v908_v19, %v912_v20 }
 0x2f0   : > { %v1040_v23 = vld [vmem:[%s11137_s21 + $0xdb8] sm:$0xff] }
 0x2f1   : > { %4194 = vmatpush1.bf16.msra.mxu0 %v9204_v28  ;;  %4235 = vmatpush1.bf16.msra.mxu1 %v9332_v29  ;;  %v9525_v28 = vcombine.high %v1036_v21, %v1040_v23  ;;  %v916_v29 = vld [vmem:[%s11137_s21 + $0x9d8] sm:$0xff] }
 0x2f2   : > { %4195 = vmatprep.subr.bf16.mxu0 %v9213_v31  ;;  %4236 = vmatprep.subr.bf16.mxu1 %v9341_v32  ;;  %v920_v31 = vld [vmem:[%s11137_s21 + $0x9f8] sm:$0xff] }
 0x2f3   : > { %v948_v9 = vld [vmem:[%s11137_s21 + $0xad8] sm:$0xff] }
 0x2f4   : > { %v952_v12 = vld [vmem:[%s11137_s21 + $0xaf8] sm:$0xff] }
 0x2f5   : > { %4196 = vmatpush1.bf16.msra.mxu0 %v9212_v39  ;;  %4237 = vmatpush1.bf16.msra.mxu1 %v9340_v40  ;;  %v579_v39 = vld [vmem:[#allocation2 + $0x10] sm:$0xff]  ;;  %v9437_v19 = vcombine.high %v948_v9, %v952_v12 }
 0x2f6   : > { %4247 = vmatprep.subr.bf16.mxu0 %v9349_v42  ;;  %4288 = vmatprep.subr.bf16.mxu1 %v9477_v43 }
 0x2f8   : > { %4198 = vmatmul.mubr.bf16.vlgmr.msra.gmra.mrb[24].mxu0 %v11245_v18  ;;  %4239 = vmatmul.mubr.bf16.vlgmr.msra.gmra.mrb[24].mxu1 %v11250_v22  ;;  %v1012_v18 = vld [vmem:[%s11137_s21 + $0xcd8] sm:$0xff]  ;;  %v9364_v22 = vcombine.low %v876_v50, %v880_v51 }
 0x2f9   : > { %4248 = vmatpush1.bf16.msra.mxu0 %v9348_v47  ;;  %4289 = vmatpush1.bf16.msra.mxu1 %v9476_v61  ;;  %v9501_v63 = vcombine.high %v1012_v18, %v1016_v58  ;;  %v9524_v47 = vcombine.low %v1036_v21, %v1040_v23  ;;  %v9405_v61 = vcombine.high %v916_v29, %v920_v31  ;;  %v924_v50 = vld [vmem:[%s11137_s21 + $0xa18] sm:$0xff] }
 0x2fa   : > { %4249 = vmatprep.subr.bf16.mxu0 %v9357_v48  ;;  %4290 = vmatprep.subr.bf16.mxu1 %v9485_v49  ;;  %v928_v51 = vld [vmem:[%s11137_s21 + $0xa38] sm:$0xff] }
 0x2fb   : > { %4279 = vmatprep.mubr.bf16.mxu0 %v11255_v30  ;;  %4320 = vmatprep.mubr.bf16.mxu1 %v11260_v33  ;;  %v1024_v30 = vld [vmem:[%s11137_s21 + $0xd38] sm:$0xff]  ;;  %v9500_v33 = vcombine.low %v1012_v18, %v1016_v58  ;;  %v9413_v56 = vcombine.high %v924_v50, %v928_v51 }
 0x2fc   : > { %v9509_v5 = vcombine.high %v1020_v2, %v1024_v30  ;;  %v9508_v14 = vcombine.low %v1020_v2, %v1024_v30  ;;  %v932_v18 = vld [vmem:[%s11137_s21 + $0xa58] sm:$0xff] }
 0x2fd   : > { %4250 = vmatpush1.bf16.msra.mxu0 %v9356_v53  ;;  %4291 = vmatpush1.bf16.msra.mxu1 %v9484_v54  ;;  %v1056_v53 = vld [vmem:[%s11137_s21 + $0xe38] sm:$0xff] }
 0x2fe   : > { %4251 = vmatprep.subr.bf16.mxu0 %v9365_v55  ;;  %4292 = vmatprep.subr.bf16.mxu1 %v9493_v11  ;;  %v9404_v55 = vcombine.low %v916_v29, %v920_v31  ;;  %v9532_v11 = vcombine.low %v1044_v36, %v1048_v37  ;;  %v9541_v57 = vcombine.high %v1052_v52, %v1056_v53  ;;  %v936_v58 = vld [vmem:[%s11137_s21 + $0xa78] sm:$0xff] }
 0x2ff   : > { %v9421_v0 = vcombine.high %v932_v18, %v936_v58  ;;  %v940_v2 = vld [vmem:[%s11137_s21 + $0xa98] sm:$0xff] }
 0x300   : > { %v944_v30 = vld [vmem:[%s11137_s21 + $0xab8] sm:$0xff] }
 0x301   : > { %4252 = vmatpush1.bf16.msra.mxu0 %v9364_v22  ;;  %4293 = vmatpush1.bf16.msra.mxu1 %v9492_v59  ;;  %v1060_v22 = vld [vmem:[%s11137_s21 + $0xe58] sm:$0xff]  ;;  %v9429_v6 = vcombine.high %v940_v2, %v944_v30 }
 0x302   : > { %4253 = vmatprep.subr.bf16.mxu0 %v9373_v62  ;;  %4294 = vmatprep.subr.bf16.mxu1 %v9501_v63  ;;  %v1064_v59 = vld [vmem:[%s11137_s21 + $0xe78] sm:$0xff]  ;;  %v9412_v62 = vcombine.low %v924_v50, %v928_v51  ;;  %v9540_v63 = vcombine.low %v1052_v52, %v1056_v53 }
 0x303   : > { %v9549_v1 = vcombine.high %v1060_v22, %v1064_v59  ;;  %v956_v21 = vld [vmem:[%s11137_s21 + $0xb18] sm:$0xff] }
 0x304   : > { %v960_v23 = vld [vmem:[%s11137_s21 + $0xb38] sm:$0xff] }
 0x305   : > { %4254 = vmatpush1.bf16.msra.mxu0 %v9372_v3  ;;  %4295 = vmatpush1.bf16.msra.mxu1 %v9500_v33  ;;  %v1068_v3 = vld [vmem:[%s11137_s21 + $0xe98] sm:$0xff] }
 0x306   : > { %4255 = vmatprep.subr.bf16.mxu0 %v9381_v4  ;;  %4296 = vmatprep.subr.bf16.mxu1 %v9509_v5  ;;  %v1072_v33 = vld [vmem:[%s11137_s21 + $0xeb8] sm:$0xff]  ;;  %v9420_v4 = vcombine.low %v932_v18, %v936_v58  ;;  %v9548_v5 = vcombine.low %v1060_v22, %v1064_v59 }
 0x307   : > { %v9557_v8 = vcombine.high %v1068_v3, %v1072_v33  ;;  %v964_v31 = vld [vmem:[%s11137_s21 + $0xb58] sm:$0xff] }
 0x309   : > { %4256 = vmatpush1.bf16.msra.mxu0 %v9380_v13  ;;  %4297 = vmatpush1.bf16.msra.mxu1 %v9508_v14  ;;  %v1076_v13 = vld [vmem:[%s11137_s21 + $0xed8] sm:$0xff] }
 0x30a   : > { %4257 = vmatprep.subr.bf16.mxu0 %v9389_v16  ;;  %4298 = vmatprep.subr.bf16.mxu1 %v9517_v17  ;;  %v1080_v14 = vld [vmem:[%s11137_s21 + $0xef8] sm:$0xff]  ;;  %v9428_v16 = vcombine.low %v940_v2, %v944_v30  ;;  %v9556_v17 = vcombine.low %v1068_v3, %v1072_v33 }
 0x30b   : > { %v3953_v27 = vpop.f32.mrb[12].mxu0  ;;  %v3994_v34 = vpop.f32.mrb[12].mxu1  ;;  %v9565_v20 = vcombine.high %v1076_v13, %v1080_v14  ;;  %v581_v3 = vld [vmem:[#allocation2 + $0x20] sm:$0xff] }
 0x30c   : > { %v3954_v32 = vadd.f32 %v3953_v27, %v11637_v10  ;;  %v3955_v35 = vpop.f32.mrb[13].mxu0  ;;  %v3996_v42 = vpop.f32.mrb[13].mxu1  ;;  %v9564_v27 = vcombine.low %v1076_v13, %v1080_v14 }
 0x30d   : > { %v3956_v40 = vadd.f32 %v3955_v35, %v11639_v15  ;;  %v3957_v43 = vpop.f32.mrb[14].mxu0  ;;  %4258 = vmatpush1.bf16.msra.mxu0 %v9388_v24  ;;  %v3998_v60 = vpop.f32.mrb[14].mxu1  ;;  %4299 = vmatpush1.bf16.msra.mxu1 %v9516_v25  ;;  %v9533_v15 = vcombine.high %v1044_v36, %v1048_v37  ;;  %v1084_v24 = vld [vmem:[%s11137_s21 + $0xf18] sm:$0xff]  ;;  %v9444_v36 = vcombine.low %v956_v21, %v960_v23 }
 0x30e   : > { %v3995_v45 = vadd.f32 %v3994_v34, %v3954_v32  ;;  %v3958_v10 = vpop.f32.mrb[15].mxu0  ;;  %4259 = vmatprep.subr.bf16.mxu0 %v9397_v26  ;;  %v3999_v49 = vpop.f32.mrb[15].mxu1  ;;  %4300 = vmatprep.subr.bf16.mxu1 %v9525_v28  ;;  %v1088_v25 = vld [vmem:[%s11137_s21 + $0xf38] sm:$0xff]  ;;  %v9436_v26 = vcombine.low %v948_v9, %v952_v12  ;;  %v9445_v28 = vcombine.high %v956_v21, %v960_v23 }
 0x30f   : > { %v3997_v48 = vadd.f32 %v3996_v42, %v3956_v40  ;;  %v9573_v29 = vcombine.high %v1084_v24, %v1088_v25  ;;  %v968_v32 = vld [vmem:[%s11137_s21 + $0xb78] sm:$0xff]  ;;  %v9572_v37 = vcombine.low %v1084_v24, %v1088_v25 }
 0x310   : > { %v4331_v7 = vadd.f32 %v3995_v45, %v579_v39  ;;  %v1092_v34 = vld [vmem:[%s11137_s21 + $0xf58] sm:$0xff]  ;;  %v9453_v39 = vcombine.high %v964_v31, %v968_v32 }
 0x311   : > { %v4332_v54 = vadd.f32 %v3997_v48, %v580_v46  ;;  %4260 = vmatpush1.bf16.msra.mxu0 %v9396_v44  ;;  %4301 = vmatpush1.bf16.msra.mxu1 %v9524_v47  ;;  %v1096_v35 = vld [vmem:[%s11137_s21 + $0xf78] sm:$0xff]  ;;  %v9452_v46 = vcombine.low %v964_v31, %v968_v32 }
 0x312   : > { %4339 = vst [vmem:[#allocation2 + $0x10] sm:$0xff] %v4331_v7  ;;  %4261 = vmatprep.subr.bf16.mxu0 %v9405_v61  ;;  %4302 = vmatprep.subr.bf16.mxu1 %v9533_v15  ;;  %v9581_v40 = vcombine.high %v1092_v34, %v1096_v35  ;;  %v972_v42 = vld [vmem:[%s11137_s21 + $0xb98] sm:$0xff]  ;;  %v9580_v60 = vcombine.low %v1092_v34, %v1096_v35  ;;  %v583_v34 = vld [vmem:[#allocation2 + $0x30] sm:$0xff] }
 0x313   : > { %4340 = vst [vmem:[#allocation2 + $0x18] sm:$0xff] %v4332_v54  ;;  %v976_v43 = vld [vmem:[%s11137_s21 + $0xbb8] sm:$0xff] }
 0x314   : > { %v1100_v44 = vld [vmem:[%s11137_s21 + $0xf98] sm:$0xff]  ;;  %v9461_v10 = vcombine.high %v972_v42, %v976_v43  ;;  %v9460_v50 = vcombine.low %v972_v42, %v976_v43 }
 0x315   : > { %4262 = vmatpush1.bf16.msra.mxu0 %v9404_v55  ;;  %4303 = vmatpush1.bf16.msra.mxu1 %v9532_v11  ;;  %v1104_v45 = vld [vmem:[%s11137_s21 + $0xfb8] sm:$0xff] }
 0x316   : > { %4263 = vmatprep.subr.bf16.mxu0 %v9413_v56  ;;  %4304 = vmatprep.subr.bf16.mxu1 %v9541_v57  ;;  %v9589_v47 = vcombine.high %v1100_v44, %v1104_v45  ;;  %v980_v61 = vld [vmem:[%s11137_s21 + $0xbd8] sm:$0xff]  ;;  %v9588_v51 = vcombine.low %v1100_v44, %v1104_v45 }
 0x317   : > { %v984_v48 = vld [vmem:[%s11137_s21 + $0xbf8] sm:$0xff] }
 0x318   : > { %v1108_v49 = vld [vmem:[%s11137_s21 + $0xfd8] sm:$0xff]  ;;  %v9469_v7 = vcombine.high %v980_v61, %v984_v48  ;;  %v9468_v53 = vcombine.low %v980_v61, %v984_v48  ;;  %v4750_v61 = vld [vmem:[#allocation13 + $0x8] sm:$0xff] (!%p9598_p4) }
 0x319   : > { %4264 = vmatpush1.bf16.msra.mxu0 %v9412_v62  ;;  %4305 = vmatpush1.bf16.msra.mxu1 %v9540_v63  ;;  %v1112_v15 = vld [vmem:[%s11137_s21 + $0xff8] sm:$0xff] }
 0x31a   : > { %4265 = vmatprep.subr.bf16.mxu0 %v9421_v0  ;;  %4306 = vmatprep.subr.bf16.mxu1 %v9549_v1  ;;  %v9597_v52 = vcombine.high %v1108_v49, %v1112_v15  ;;  %v9596_v54 = vcombine.low %v1108_v49, %v1112_v15  ;;  %v4754_v49 = vld [vmem:[#allocation13 + $0x28] sm:$0xff] (!%p9598_p4) }
 0x31d   : > { %4266 = vmatpush1.bf16.msra.mxu0 %v9420_v4  ;;  %4307 = vmatpush1.bf16.msra.mxu1 %v9548_v5 }
 0x31e   : > { %4267 = vmatprep.subr.bf16.mxu0 %v9429_v6  ;;  %4308 = vmatprep.subr.bf16.mxu1 %v9557_v8 }
 0x321   : > { %4268 = vmatpush1.bf16.msra.mxu0 %v9428_v16  ;;  %4309 = vmatpush1.bf16.msra.mxu1 %v9556_v17 }
 0x322   : > { %4269 = vmatprep.subr.bf16.mxu0 %v9437_v19  ;;  %4310 = vmatprep.subr.bf16.mxu1 %v9565_v20 }
 0x325   : > { %4270 = vmatpush1.bf16.msra.mxu0 %v9436_v26  ;;  %4311 = vmatpush1.bf16.msra.mxu1 %v9564_v27 }
 0x326   : > { %4271 = vmatprep.subr.bf16.mxu0 %v9445_v28  ;;  %4312 = vmatprep.subr.bf16.mxu1 %v9573_v29 }
 0x329   : > { %4272 = vmatpush1.bf16.msra.mxu0 %v9444_v36  ;;  %4313 = vmatpush1.bf16.msra.mxu1 %v9572_v37 }
 0x32a   : > { %4273 = vmatprep.subr.bf16.mxu0 %v9453_v39  ;;  %4314 = vmatprep.subr.bf16.mxu1 %v9581_v40  ;;  %v584_v40 = vld [vmem:[#allocation2 + $0x38] sm:$0xff] }
 0x32d   : > { %4274 = vmatpush1.bf16.msra.mxu0 %v9452_v46  ;;  %4315 = vmatpush1.bf16.msra.mxu1 %v9580_v60 }
 0x32e   : > { %4275 = vmatprep.subr.bf16.mxu0 %v9461_v10  ;;  %4316 = vmatprep.subr.bf16.mxu1 %v9589_v47  ;;  %v4749_v10 = vld [vmem:[#allocation13] sm:$0xff] (!%p9598_p4) }
 0x32f   : > { %v4753_v47 = vld [vmem:[#allocation13 + $0x20] sm:$0xff] (!%p9598_p4) }
 0x330   : > { %v9608_v48 = vcombine.high (!%p9598_p4), %v4749_v10, %v4753_v47  ;;  %v9607_v15 = vcombine.low (!%p9598_p4), %v4749_v10, %v4753_v47  ;;  %v4806_v47 = vld [vmem:[#allocation13 + $0x1c8] sm:$0xff] (!%p9598_p4) }
 0x331   : > { %4276 = vmatpush1.bf16.msra.mxu0 %v9460_v50  ;;  %4317 = vmatpush1.bf16.msra.mxu1 %v9588_v51  ;;  %v4757_v50 = vld [vmem:[#allocation13 + $0x40] sm:$0xff] (!%p9598_p4) }
 0x332   : > { %4277 = vmatprep.subr.bf16.mxu0 %v9469_v7  ;;  %4318 = vmatprep.subr.bf16.mxu1 %v9597_v52  ;;  %v4761_v51 = vld [vmem:[#allocation13 + $0x60] sm:$0xff] (!%p9598_p4)  ;;  %v9610_v7 = vcombine.high (!%p9598_p4), %v4750_v61, %v4754_v49  ;;  %v9609_v52 = vcombine.low (!%p9598_p4), %v4750_v61, %v4754_v49  ;;  %v4810_v61 = vld [vmem:[#allocation13 + $0x1e8] sm:$0xff] (!%p9598_p4) }
 0x335   : > { %4278 = vmatpush1.bf16.msra.mxu0 %v9468_v53  ;;  %4319 = vmatpush1.bf16.msra.mxu1 %v9596_v54  ;;  %v9616_v53 = vcombine.high (!%p9598_p4), %v4757_v50, %v4761_v51  ;;  %v4758_v54 = vld [vmem:[#allocation13 + $0x48] sm:$0xff] (!%p9598_p4) }
 0x336   : > { %7863 = vmatprep.subr.bf16.mxu0 (!%p9598_p4), %v9608_v48  ;;  %8027 = vmatprep.subr.bf16.mxu1 (!%p9598_p4), %v9610_v7 }
 0x338   : > { %4280 = vmatmul.mubr.bf16.vlgmr.msra.gmra.mrb[28].mxu0 %v11325_v38  ;;  %4321 = vmatmul.mubr.bf16.vlgmr.msra.gmra.mrb[28].mxu1 %v11329_v41  ;;  %v582_v41 = vld [vmem:[#allocation2 + $0x28] sm:$0xff] }
 0x339   : > { %7864 = vmatpush1.bf16.msra.mxu0 (!%p9598_p4), %v9607_v15  ;;  %8028 = vmatpush1.bf16.msra.mxu1 (!%p9598_p4), %v9609_v52 }
 0x33a   : > { %7865 = vmatprep.subr.bf16.mxu0 (!%p9598_p4), %v9616_v53  ;;  %v9666_v53 = vcombine.high (!%p9598_p4), %v4806_v47, %v4810_v61 }
 0x34b   : > { %v4035_v55 = vpop.f32.mrb[16].mxu0  ;;  %v4076_v11 = vpop.f32.mrb[16].mxu1 }
 0x34c   : > { %v4037_v56 = vpop.f32.mrb[17].mxu0  ;;  %v4077_v57 = vadd.f32 %v4076_v11, %v4035_v55  ;;  %v4078_v18 = vpop.f32.mrb[17].mxu1  ;;  %v4762_v55 = vld [vmem:[#allocation13 + $0x68] sm:$0xff] (!%p9598_p4)  ;;  %v4765_v11 = vld [vmem:[#allocation13 + $0x80] sm:$0xff] (!%p9598_p4) }
 0x34d   : > { %v4039_v58 = vpop.f32.mrb[18].mxu0  ;;  %v4079_v22 = vadd.f32 %v4078_v18, %v4037_v56  ;;  %v4080_v59 = vpop.f32.mrb[18].mxu1  ;;  %v9618_v56 = vcombine.high (!%p9598_p4), %v4758_v54, %v4762_v55  ;;  %v4766_v18 = vld [vmem:[#allocation13 + $0x88] sm:$0xff] (!%p9598_p4) }
 0x34e   : > { %v4040_v62 = vpop.f32.mrb[19].mxu0  ;;  %v4081_v63 = vpop.f32.mrb[19].mxu1  ;;  %v4770_v58 = vld [vmem:[#allocation13 + $0xa8] sm:$0xff] (!%p9598_p4)  ;;  %v9617_v59 = vcombine.low (!%p9598_p4), %v4758_v54, %v4762_v55  ;;  %v4813_v54 = vld [vmem:[#allocation13 + $0x200] sm:$0xff] (!%p9598_p4) }
 0x34f   : > { %8029 = vmatprep.subr.bf16.mxu1 (!%p9598_p4), %v9618_v56  ;;  %v9626_v63 = vcombine.high (!%p9598_p4), %v4766_v18, %v4770_v58  ;;  %v4817_v55 = vld [vmem:[#allocation13 + $0x220] sm:$0xff] (!%p9598_p4) }
 0x350   : > { %8030 = vmatpush1.bf16.msra.mxu1 (!%p9598_p4), %v9617_v59 }
 0x351   : > { %8031 = vmatprep.subr.bf16.mxu1 (!%p9598_p4), %v9626_v63  ;;  %v9665_v63 = vcombine.low (!%p9598_p4), %v4806_v47, %v4810_v61 }
 0x38b   : > { %v4117_v0 = vpop.f32.mrb[20].mxu0  ;;  %v4158_v2 = vpop.f32.mrb[20].mxu1 }
 0x38c   : > { %v4118_v1 = vadd.f32 %v4117_v0, %v4077_v57  ;;  %v4119_v30 = vpop.f32.mrb[21].mxu0  ;;  %v4160_v4 = vpop.f32.mrb[21].mxu1  ;;  %v4769_v57 = vld [vmem:[#allocation13 + $0xa0] sm:$0xff] (!%p9598_p4) }
 0x38d   : > { %v4120_v33 = vadd.f32 %v4119_v30, %v4079_v22  ;;  %v4121_v38 = vpop.f32.mrb[22].mxu0  ;;  %v4162_v6 = vpop.f32.mrb[22].mxu1  ;;  %v9615_v22 = vcombine.low (!%p9598_p4), %v4757_v50, %v4761_v51  ;;  %v9624_v62 = vcombine.high (!%p9598_p4), %v4765_v11, %v4769_v57  ;;  %v4773_v0 = vld [vmem:[#allocation13 + $0xc0] sm:$0xff] (!%p9598_p4)  ;;  %v4778_v30 = vld [vmem:[#allocation13 + $0xe8] sm:$0xff] (!%p9598_p4) }
 0x38e   : > { %v4159_v5 = vadd.f32 %v4158_v2, %v4118_v1  ;;  %v4122_v8 = vpop.f32.mrb[23].mxu0  ;;  %v4163_v12 = vpop.f32.mrb[23].mxu1  ;;  %v4777_v1 = vld [vmem:[#allocation13 + $0xe0] sm:$0xff] (!%p9598_p4)  ;;  %v4774_v2 = vld [vmem:[#allocation13 + $0xc8] sm:$0xff] (!%p9598_p4)  ;;  %v4369_v6 = vlaneseq (!%p9598_p4) }
 0x38f   : > { %v4161_v9 = vadd.f32 %v4160_v4, %v4120_v33  ;;  %7866 = vmatpush1.bf16.msra.mxu0 (!%p9598_p4), %v9615_v22  ;;  %v9625_v33 = vcombine.low (!%p9598_p4), %v4766_v18, %v4770_v58  ;;  %v9632_v4 = vcombine.high (!%p9598_p4), %v4773_v0, %v4777_v1  ;;  %v9634_v38 = vcombine.high (!%p9598_p4), %v4774_v2, %v4778_v30  ;;  %v4782_v8 = vld [vmem:[#allocation13 + $0x108] sm:$0xff] (!%p9598_p4) }
 0x390   : > { %v4333_v13 = vadd.f32 %v4159_v5, %v581_v3  ;;  %v9623_v3 = vcombine.low (!%p9598_p4), %v4765_v11, %v4769_v57  ;;  %7867 = vmatprep.subr.bf16.mxu0 (!%p9598_p4), %v9624_v62  ;;  %v4781_v5 = vld [vmem:[#allocation13 + $0x100] sm:$0xff] (!%p9598_p4)  ;;  %v9631_v12 = vcombine.low (!%p9598_p4), %v4773_v0, %v4777_v1  ;;  %v4814_v57 = vld [vmem:[#allocation13 + $0x208] sm:$0xff] (!%p9598_p4)  ;;  %v9672_v0 = vcombine.high (!%p9598_p4), %v4813_v54, %v4817_v55 }
 0x391   : > { %v4334_v14 = vadd.f32 %v4161_v9, %v582_v41  ;;  %v4785_v41 = vld [vmem:[#allocation13 + $0x120] sm:$0xff] (!%p9598_p4)  ;;  %v4786_v9 = vld [vmem:[#allocation13 + $0x128] sm:$0xff] (!%p9598_p4)  ;;  %8032 = vmatpush1.bf16.msra.mxu1 (!%p9598_p4), %v9625_v33 }
 0x392   : > { %4341 = vst [vmem:[#allocation2 + $0x20] sm:$0xff] %v4333_v13  ;;  %v9633_v13 = vcombine.low (!%p9598_p4), %v4774_v2, %v4778_v30  ;;  %8033 = vmatprep.subr.bf16.mxu1 (!%p9598_p4), %v9634_v38  ;;  %v4350_v50 = vld [vmem:[#allocation2] sm:$0xff] (!%p9598_p4) }
 0x393   : > { %4342 = vst [vmem:[#allocation2 + $0x28] sm:$0xff] %v4334_v14  ;;  %7868 = vmatpush1.bf16.msra.mxu0 (!%p9598_p4), %v9623_v3  ;;  %v9640_v14 = vcombine.high (!%p9598_p4), %v4781_v5, %v4785_v41  ;;  %v4818_v18 = vld [vmem:[#allocation13 + $0x228] sm:$0xff] (!%p9598_p4)  ;;  %v4821_v3 = vld [vmem:[#allocation13 + $0x240] sm:$0xff] (!%p9598_p4) }
 0x394   : > { %7869 = vmatprep.subr.bf16.mxu0 (!%p9598_p4), %v9632_v4  ;;  %v9674_v30 = vcombine.high (!%p9598_p4), %v4814_v57, %v4818_v18  ;;  %v4825_v33 = vld [vmem:[#allocation13 + $0x260] sm:$0xff] (!%p9598_p4) }
 0x395   : > { %8034 = vmatpush1.bf16.msra.mxu1 (!%p9598_p4), %v9633_v13 }
 0x397   : > { %7870 = vmatpush1.bf16.msra.mxu0 (!%p9598_p4), %v9631_v12 }
 0x398   : > { %7871 = vmatprep.subr.bf16.mxu0 (!%p9598_p4), %v9640_v14  ;;  %v9673_v14 = vcombine.low (!%p9598_p4), %v4814_v57, %v4818_v18  ;;  %v4845_v18 = vld [vmem:[#allocation13 + $0x300] sm:$0xff] (!%p9598_p4) }
 0x3cb   : > { %v4199_v16 = vpop.f32.mrb[24].mxu0  ;;  %v4240_v17 = vpop.f32.mrb[24].mxu1 }
 0x3cc   : > { %v4201_v19 = vpop.f32.mrb[25].mxu0  ;;  %v4241_v20 = vadd.f32 %v4240_v17, %v4199_v16  ;;  %v4242_v21 = vpop.f32.mrb[25].mxu1  ;;  %v9642_v16 = vcombine.high (!%p9598_p4), %v4782_v8, %v4786_v9  ;;  %v4789_v17 = vld [vmem:[#allocation13 + $0x140] sm:$0xff] (!%p9598_p4) }
 0x3cd   : > { %v4203_v23 = vpop.f32.mrb[26].mxu0  ;;  %v4243_v24 = vadd.f32 %v4242_v21, %v4201_v19  ;;  %v4244_v25 = vpop.f32.mrb[26].mxu1  ;;  %v4793_v19 = vld [vmem:[#allocation13 + $0x160] sm:$0xff] (!%p9598_p4)  ;;  %v4790_v21 = vld [vmem:[#allocation13 + $0x148] sm:$0xff] (!%p9598_p4) }
 0x3ce   : > { %v4204_v26 = vpop.f32.mrb[27].mxu0  ;;  %v4245_v27 = vpop.f32.mrb[27].mxu1  ;;  %v4794_v23 = vld [vmem:[#allocation13 + $0x168] sm:$0xff] (!%p9598_p4)  ;;  %v9641_v25 = vcombine.low (!%p9598_p4), %v4782_v8, %v4786_v9  ;;  %8035 = vmatprep.subr.bf16.mxu1 (!%p9598_p4), %v9642_v16  ;;  %v9671_v9 = vcombine.low (!%p9598_p4), %v4813_v54, %v4817_v55  ;;  %v9680_v16 = vcombine.high (!%p9598_p4), %v4821_v3, %v4825_v33 }
 0x3cf   : > { %v9648_v26 = vcombine.high (!%p9598_p4), %v4789_v17, %v4793_v19  ;;  %v9650_v27 = vcombine.high (!%p9598_p4), %v4790_v21, %v4794_v23 }
 0x3d0   : > { %8036 = vmatpush1.bf16.msra.mxu1 (!%p9598_p4), %v9641_v25 }
 0x3d1   : > { %8037 = vmatprep.subr.bf16.mxu1 (!%p9598_p4), %v9650_v27  ;;  %v4830_v27 = vld [vmem:[#allocation13 + $0x288] sm:$0xff] (!%p9598_p4) }
 0x40b   : > { %v4281_v28 = vpop.f32.mrb[28].mxu0  ;;  %v4322_v31 = vpop.f32.mrb[28].mxu1 }
 0x40c   : > { %v4282_v29 = vadd.f32 %v4281_v28, %v4241_v20  ;;  %v4283_v32 = vpop.f32.mrb[29].mxu0  ;;  %v4324_v36 = vpop.f32.mrb[29].mxu1  ;;  %v11746_v20 = vshrl.u32 (!%p9598_p4), %v4369_v6, 7  ;;  %v4797_v28 = vld [vmem:[#allocation13 + $0x180] sm:$0xff] (!%p9598_p4) }
 0x40d   : > { %v4284_v35 = vadd.f32 %v4283_v32, %v4243_v24  ;;  %v4285_v37 = vpop.f32.mrb[30].mxu0  ;;  %v4326_v42 = vpop.f32.mrb[30].mxu1  ;;  %4348 = sbr.rel (%p9598_p4) target bundleno = 2010 (0x7da), region = 116  ;;  %v9639_v24 = vcombine.low (!%p9598_p4), %v4781_v5, %v4785_v41  ;;  %v4798_v32 = vld [vmem:[#allocation13 + $0x188] sm:$0xff] (!%p9598_p4) }
 0x40e   : > { %v4323_v39 = vadd.f32 %v4322_v31, %v4282_v29  ;;  %v4286_v43 = vpop.f32.mrb[31].mxu0  ;;  %v4327_v45 = vpop.f32.mrb[31].mxu1  ;;  %v4801_v29 = vld [vmem:[#allocation13 + $0x1a0] sm:$0xff] (!%p9598_p4)  ;;  %v11749_v31 = vsub.s32 (!%p9598_p4), 1, %v11746_v20  ;;  %v9647_v37 = vcombine.low (!%p9598_p4), %v4789_v17, %v4793_v19  ;;  %v4351_v42 = vld [vmem:[#allocation2 + $0x8] sm:$0xff] (!%p9598_p4) }
 0x40f   : > { %v4325_v44 = vadd.f32 %v4324_v36, %v4284_v35  ;;  %v11751_v35 = vstv (!%p9598_p4), %s4349_s29  ;;  %v11754_v36 = vsub.s32 (!%p9598_p4), 0, %v11746_v20  ;;  %7872 = vmatpush1.bf16.msra.mxu0 (!%p9598_p4), %v9639_v24  ;;  %v11756_v43 = vld [vmem:[#allocation9] sm:$0xff] (!%p9598_p4)  ;;  %v4805_v45 = vld [vmem:[#allocation13 + $0x1c0] sm:$0xff] (!%p9598_p4)  ;;  %v9655_v49 = vcombine.low (!%p9598_p4), %v4797_v28, %v4801_v29 }
 0x410   : > { %v4335_v46 = vadd.f32 %v4323_v39, %v583_v34  ;;  %v4802_v34 = vld [vmem:[#allocation13 + $0x1a8] sm:$0xff] (!%p9598_p4)  ;;  %7873 = vmatprep.subr.bf16.mxu0 (!%p9598_p4), %v9648_v26  ;;  %v9649_v39 = vcombine.low (!%p9598_p4), %v4790_v21, %v4794_v23  ;;  %v4376_v10 = vrot.slane (!%p9598_p4), %v11756_v43, %v11749_v31  ;;  %v4359_v52 = vmul.f32 (!%p9598_p4), %v11751_v35, %v4350_v50  ;;  %v4829_v23 = vld [vmem:[#allocation13 + $0x280] sm:$0xff] (!%p9598_p4) }
 0x411   : > { %v4336_v60 = vadd.f32 %v4325_v44, %v584_v40  ;;  %v9656_v40 = vcombine.high (!%p9598_p4), %v4797_v28, %v4801_v29  ;;  %v9658_v44 = vcombine.high (!%p9598_p4), %v4798_v32, %v4802_v34  ;;  %v4372_v48 = vrot.slane (!%p9598_p4), %v11756_v43, %v11754_v36  ;;  %v4822_v5 = vld [vmem:[#allocation13 + $0x248] sm:$0xff] (!%p9598_p4)  ;;  %v4833_v24 = vld [vmem:[#allocation13 + $0x2a0] sm:$0xff] (!%p9598_p4) }
 0x412   : > { %4343 = vst [vmem:[#allocation2 + $0x30] sm:$0xff] %v4335_v46  ;;  %v4809_v46 = vld [vmem:[#allocation13 + $0x1e0] sm:$0xff] (!%p9598_p4)  ;;  %8038 = vmatpush1.bf16.msra.mxu1 (!%p9598_p4), %v9649_v39  ;;  %v9657_v51 = vcombine.low (!%p9598_p4), %v4798_v32, %v4802_v34  ;;  %v4826_v41 = vld [vmem:[#allocation13 + $0x268] sm:$0xff] (!%p9598_p4)  ;;  %v9679_v34 = vcombine.low (!%p9598_p4), %v4821_v3, %v4825_v33 }
 0x413   : > { %4344 = vst [vmem:[#allocation2 + $0x38] sm:$0xff] %v4336_v60  ;;  %v4360_v60 = vmul.f32 (!%p9598_p4), %v11751_v35, %v4351_v42  ;;  %7874 = vmatpush1.bf16.msra.mxu0 (!%p9598_p4), %v9647_v37  ;;  %v9664_v7 = vcombine.high (!%p9598_p4), %v4805_v45, %v4809_v46  ;;  %8039 = vmatprep.subr.bf16.mxu1 (!%p9598_p4), %v9658_v44  ;;  %v4834_v28 = vld [vmem:[#allocation13 + $0x2a8] sm:$0xff] (!%p9598_p4) }
 0x414   : > { %7875 = vmatprep.subr.bf16.mxu0 %v9656_v40  ;;  %v11769_v58 = vadd.f32 %v4372_v48, %v4359_v52  ;;  %v9663_v22 = vcombine.low %v4805_v45, %v4809_v46  ;;  %v9682_v21 = vcombine.high %v4822_v5, %v4826_v41  ;;  %v9681_v40 = vcombine.low %v4822_v5, %v4826_v41  ;;  %v4838_v48 = vld [vmem:[#allocation13 + $0x2c8] sm:$0xff]  ;;  %v4853_v5 = vld [vmem:[#allocation13 + $0x340] sm:$0xff] }
 0x415   : > { %v11763_v15 = vadd.f32 %v4376_v10, %v4360_v60  ;;  %v9688_v42 = vcombine.high %v4829_v23, %v4833_v24  ;;  %v9690_v46 = vcombine.high %v4830_v27, %v4834_v28  ;;  %v4837_v60 = vld [vmem:[#allocation13 + $0x2c0] sm:$0xff]  ;;  %v9689_v54 = vcombine.low %v4830_v27, %v4834_v28  ;;  %v4866_v27 = vld [vmem:[#allocation13 + $0x3a8] sm:$0xff] }
 0x416   : > { %8040 = vmatpush1.bf16.msra.mxu1 %v9657_v51  ;;  %v4419_v1 = vrot.slane %v11769_v58, 4  ;;  %v4467_v2 = vmul.f32 %v11769_v58, %v11769_v58  ;;  %v4841_v10 = vld [vmem:[#allocation13 + $0x2e0] sm:$0xff]  ;;  %v11788_v28 = vsub.s32 2, %v11746_v20 }
 0x417   : > { %v4425_v11 = vrot.slane %v11763_v15, 4  ;;  %v4468_v56 = vmul.f32 %v11763_v15, %v11763_v15  ;;  %7876 = vmatpush1.bf16.msra.mxu0 %v9655_v49  ;;  %8041 = vmatprep.subr.bf16.mxu1 %v9666_v53  ;;  %v4842_v49 = vld [vmem:[#allocation13 + $0x2e8] sm:$0xff]  ;;  %v9696_v55 = vcombine.high %v4837_v60, %v4841_v10  ;;  %v4857_v41 = vld [vmem:[#allocation13 + $0x360] sm:$0xff] }
 0x418   : > { %7877 = vmatprep.subr.bf16.mxu0 %v9664_v7  ;;  %v4420_v6 = vadd.f32 %v4419_v1, %v11769_v58  ;;  %v4475_v8 = vrot.slane %v4467_v2, 4  ;;  %v9687_v7 = vcombine.low %v4829_v23, %v4833_v24  ;;  %v9698_v57 = vcombine.high %v4838_v48, %v4842_v49  ;;  %v4353_v23 = vld [vmem:[#allocation2 + $0x18] sm:$0xff] }
 0x419   : > { %v4426_v59 = vadd.f32 %v4425_v11, %v11763_v15  ;;  %v4481_v62 = vrot.slane %v4468_v56, 4  ;;  %v9697_v3 = vcombine.low %v4838_v48, %v4842_v49 }
 0x41a   : > { %8042 = vmatpush1.bf16.msra.mxu1 %v9665_v63  ;;  %v4421_v17 = vrot.slane %v4420_v6, 2  ;;  %v4476_v19 = vadd.f32 %v4475_v8, %v4467_v2  ;;  %v4850_v63 = vld [vmem:[#allocation13 + $0x328] sm:$0xff]  ;;  %v9695_v2 = vcombine.low %v4837_v60, %v4841_v10 }
 0x41b   : > { %v4427_v4 = vrot.slane %v4426_v59, 2  ;;  %v4482_v38 = vadd.f32 %v4481_v62, %v4468_v56  ;;  %7878 = vmatpush1.bf16.msra.mxu0 %v9663_v22  ;;  %8043 = vmatprep.subr.bf16.mxu1 %v9674_v30  ;;  %v4849_v22 = vld [vmem:[#allocation13 + $0x320] sm:$0xff]  ;;  %v4846_v62 = vld [vmem:[#allocation13 + $0x308] sm:$0xff] }
 0x41c   : > { %7879 = vmatprep.subr.bf16.mxu0 %v9672_v0  ;;  %v4422_v29 = vadd.f32 %v4421_v17, %v4420_v6  ;;  %v4477_v32 = vrot.slane %v4476_v19, 2  ;;  %v9704_v33 = vcombine.high %v4845_v18, %v4849_v22  ;;  %v4854_v8 = vld [vmem:[#allocation13 + $0x348] sm:$0xff]  ;;  %v9712_v17 = vcombine.high %v4853_v5, %v4857_v41 }
 0x41d   : > { %v4428_v12 = vadd.f32 %v4427_v4, %v4426_v59  ;;  %v4483_v13 = vrot.slane %v4482_v38, 2  ;;  %v4874_v60 = vld [vmem:[#allocation13 + $0x3e8] sm:$0xff] }
 0x41e   : > { %8044 = vmatpush1.bf16.msra.mxu1 %v9673_v14  ;;  %v4423_v44 = vrot.slane %v4422_v29, 1  ;;  %v4478_v45 = vadd.f32 %v4477_v32, %v4476_v19  ;;  %v11785_v14 = vsub.s32 3, %v11746_v20  ;;  %v4861_v19 = vld [vmem:[#allocation13 + $0x380] sm:$0xff]  ;;  %v9711_v32 = vcombine.low %v4853_v5, %v4857_v41 }
 0x41f   : > { %v4429_v25 = vrot.slane %v4428_v12, 1  ;;  %v4484_v26 = vadd.f32 %v4483_v13, %v4482_v38  ;;  %7880 = vmatpush1.bf16.msra.mxu0 %v9671_v9  ;;  %8045 = vmatprep.subr.bf16.mxu1 %v9682_v21  ;;  %v9706_v38 = vcombine.high %v4846_v62, %v4850_v63  ;;  %v4858_v9 = vld [vmem:[#allocation13 + $0x368] sm:$0xff]  ;;  %v9703_v13 = vcombine.low %v4845_v18, %v4849_v22 }
 0x420   : > { %7881 = vmatprep.subr.bf16.mxu0 %v9680_v16  ;;  %v4424_v50 = vadd.f32 %v4423_v44, %v4422_v29  ;;  %v4479_v51 = vrot.slane %v4478_v45, 1  ;;  %v9705_v16 = vcombine.low %v4846_v62, %v4850_v63  ;;  %v9714_v24 = vcombine.high %v4854_v8, %v4858_v9  ;;  %v4352_v29 = vld [vmem:[#allocation2 + $0x10] sm:$0xff] }
 0x421   : > { %v4430_v37 = vadd.f32 %v4429_v25, %v4428_v12  ;;  %v4485_v39 = vrot.slane %v4484_v26, 1  ;;  %v4865_v25 = vld [vmem:[#allocation13 + $0x3a0] sm:$0xff]  ;;  %v4361_v49 = vmul.f32 %v11751_v35, %v4352_v29 }
 0x422   : > { %8046 = vmatpush1.bf16.msra.mxu1 %v9681_v40  ;;  %v4480_v11 = vadd.f32 %v4479_v51, %v4478_v45  ;;  %v11780_v56 = vmul.f32 0.125, %v4424_v50  ;;  %v4384_v40 = vrot.slane %v11756_v43, %v11785_v14  ;;  %v9720_v44 = vcombine.high %v4861_v19, %v4865_v25 }
 0x423   : > { %v4486_v47 = vadd.f32 %v4485_v39, %v4484_v26  ;;  %v11776_v61 = vmul.f32 0.125, %v4430_v37  ;;  %7882 = vmatpush1.bf16.msra.mxu0 %v9679_v34  ;;  %8047 = vmatprep.subr.bf16.mxu1 %v9690_v46  ;;  %v4862_v26 = vld [vmem:[#allocation13 + $0x388] sm:$0xff]  ;;  %v11790_v34 = vld [vmem:[#allocation13 + $0x3c0] sm:$0xff]  ;;  %v4362_v39 = vmul.f32 %v11751_v35, %v4353_v23  ;;  %v9719_v10 = vcombine.low %v4861_v19, %v4865_v25 }
 0x424   : > { %7883 = vmatprep.subr.bf16.mxu0 %v9688_v42  ;;  %v4531_v0 = vmul.f32 0.125, %v4480_v11  ;;  %v4539_v1 = vmul.f32 %v11780_v56, %v11780_v56  ;;  %v11792_v37 = vld [vmem:[#allocation13 + $0x3e0] sm:$0xff]  ;;  %v9713_v42 = vcombine.low %v4854_v8, %v4858_v9  ;;  %v9722_v45 = vcombine.high %v4862_v26, %v4866_v27  ;;  %v4870_v46 = vld [vmem:[#allocation13 + $0x3c8] sm:$0xff] }
 0x425   : > { %v4532_v52 = vmul.f32 0.125, %v4486_v47  ;;  %v4540_v53 = vmul.f32 %v11776_v61, %v11776_v61  ;;  %v11797_v47 = vld [vmem:[#allocation10] sm:$0xff]  ;;  %v11799_v48 = vadd.f32 %v4384_v40, %v4362_v39  ;;  %v4380_v50 = vrot.slane %v11756_v43, %v11788_v28  ;;  %v11812_v11 = vld [vmem:[#allocation13 + $0x400] sm:$0xff] }
 0x426   : > { %8048 = vmatpush1.bf16.msra.mxu1 %v9689_v54  ;;  %v4547_v4 = vsub.f32 %v4531_v0, %v4539_v1  ;;  %v9721_v51 = vcombine.low %v4862_v26, %v4866_v27  ;;  %v9730_v54 = vcombine.high %v4870_v46, %v4874_v60  ;;  %v9729_v62 = vcombine.low %v4870_v46, %v4874_v60  ;;  %v11825_v0 = vld [vmem:[#allocation13 + $0x408] sm:$0xff] }
 0x427   : > { %v4548_v59 = vsub.f32 %v4532_v52, %v4540_v53  ;;  %7884 = vmatpush1.bf16.msra.mxu0 %v9687_v7  ;;  %8049 = vmatprep.subr.bf16.mxu1 %v9698_v57  ;;  %v9728_v7 = vcombine.high %v11790_v34, %v11792_v37  ;;  %v9727_v52 = vcombine.low %v11790_v34, %v11792_v37  ;;  %v11814_v57 = vld [vmem:[#allocation13 + $0x420] sm:$0xff]  ;;  %v4437_v18 = vrot.slane %v11799_v48, 4  ;;  %v11827_v1 = vld [vmem:[#allocation13 + $0x428] sm:$0xff] }
 0x428   : > { %7885 = vmatprep.subr.bf16.mxu0 %v9696_v55  ;;  %v4555_v12 = vmax.f32 %v4547_v4, 0.0  ;;  %v4564_v53 = vsub.f32 %v11763_v15, %v11776_v61  ;;  %v11810_v55 = vld [vmem:[#allocation12] sm:$0xff]  ;;  %v4470_v22 = vmul.f32 %v11799_v48, %v11799_v48  ;;  %v4603_v15 = vrot.slane %v11797_v47, %v11749_v31 }
 0x429   : > { %v4556_v30 = vmax.f32 %v4548_v59, 0.0  ;;  %v11819_v59 = vadd.f32 %v4380_v50, %v4361_v49  ;;  %v4563_v61 = vsub.f32 %v11769_v58, %v11780_v56  ;;  %v9736_v58 = vcombine.high %v11812_v11, %v11814_v57 }
 0x42a   : > { %8050 = vmatpush1.bf16.msra.mxu1 %v9697_v3  ;;  %v4571_v21 = vadd.f32 1e-05, %v4555_v12  ;;  %v4599_v56 = vrot.slane %v11797_v47, %v11754_v36 }
 0x42b   : > { %v4572_v6 = vadd.f32 1e-05, %v4556_v30  ;;  %7886 = vmatpush1.bf16.msra.mxu0 %v9695_v2  ;;  %8051 = vmatprep.subr.bf16.mxu1 %v9706_v38  ;;  %v4438_v2 = vadd.f32 %v4437_v18, %v11799_v48  ;;  %v4493_v30 = vrot.slane %v4470_v22, 4  ;;  %v4431_v3 = vrot.slane %v11819_v59, 4 }
 0x42c   : > { %7887 = vmatprep.subr.bf16.mxu0 %v9704_v33  ;;  %v4469_v33 = vmul.f32 %v11819_v59, %v11819_v59  ;;  %v4652_v38 = vrot.slane %v11810_v55, %v11749_v31 }
 0x42d   : > { %10318 = vrsqrt.f32 %v4572_v6  ;;  %v4439_v5 = vrot.slane %v4438_v2, 2  ;;  %v4494_v41 = vadd.f32 %v4493_v30, %v4470_v22  ;;  %v4432_v6 = vadd.f32 %v4431_v3, %v11819_v59 }
 0x42e   : > { %10320 = vrsqrt.f32 %v4571_v21  ;;  %8052 = vmatpush1.bf16.msra.mxu1 %v9705_v16  ;;  %v4487_v8 = vrot.slane %v4469_v33, 4  ;;  %v4648_v16 = vrot.slane %v11810_v55, %v11754_v36 }
 0x42f   : > { %7888 = vmatpush1.bf16.msra.mxu0 %v9703_v13  ;;  %8053 = vmatprep.subr.bf16.mxu1 %v9714_v24  ;;  %v9738_v13 = vcombine.high %v11825_v0, %v11827_v1  ;;  %v4440_v19 = vadd.f32 %v4439_v5, %v4438_v2  ;;  %v4495_v21 = vrot.slane %v4494_v41, 2  ;;  %v4433_v23 = vrot.slane %v4432_v6, 2  ;;  %v4886_v5 = vld [vmem:[#allocation13 + $0x448] sm:$0xff] }
 0x430   : > { %7889 = vmatprep.subr.bf16.mxu0 %v9712_v17  ;;  %v4488_v25 = vadd.f32 %v4487_v8, %v4469_v33  ;;  %v11851_v8 = vsub.s32 5, %v11746_v20 }
 0x431   : > { %v4441_v27 = vrot.slane %v4440_v19, 1  ;;  %v4496_v29 = vadd.f32 %v4495_v21, %v4494_v41  ;;  %v4890_v41 = vld [vmem:[#allocation13 + $0x468] sm:$0xff] }
 0x432   : > { %8054 = vmatpush1.bf16.msra.mxu1 %v9713_v42  ;;  %v4489_v37 = vrot.slane %v4488_v25, 2 }
 0x433   : > { %7890 = vmatpush1.bf16.msra.mxu0 %v9711_v32  ;;  %8055 = vmatprep.subr.bf16.mxu1 %v9722_v45  ;;  %v4434_v32 = vadd.f32 %v4433_v23, %v4432_v6  ;;  %v4442_v40 = vadd.f32 %v4441_v27, %v4440_v19  ;;  %v4497_v42 = vrot.slane %v4496_v29, 1  ;;  %v9746_v23 = vcombine.high %v4886_v5, %v4890_v41  ;;  %v4898_v27 = vld [vmem:[#allocation13 + $0x4a8] sm:$0xff] }
 0x434   : > { %7891 = vmatprep.subr.bf16.mxu0 %v9720_v44  ;;  %v4490_v46 = vadd.f32 %v4489_v37, %v4488_v25  ;;  %v4897_v25 = vld [vmem:[#allocation13 + $0x4a0] sm:$0xff]  ;;  %v4660_v37 = vrot.slane %v11810_v55, %v11785_v14 }
 0x435   : > { %v4435_v45 = vrot.slane %v4434_v32, 1  ;;  %v4526_v49 = vmul.f32 0.125, %v4442_v40 }
 0x436   : > { %8056 = vmatpush1.bf16.msra.mxu1 %v9721_v51 }
 0x437   : > { %v10319_v63 = vpop.eup %10318  ;;  %7892 = vmatpush1.bf16.msra.mxu0 %v9719_v10  ;;  %8057 = vmatprep.subr.bf16.mxu1 %v9730_v54  ;;  %v4498_v10 = vadd.f32 %v4497_v42, %v4496_v29 }
 0x438   : > { %v4588_v4 = vmul.f32 %v10319_v63, %v4564_v53  ;;  %v10321_v9 = vpop.eup %10320  ;;  %7893 = vmatprep.subr.bf16.mxu0 %v9728_v7  ;;  %v4542_v7 = vmul.f32 %v4526_v49, %v4526_v49  ;;  %v4491_v53 = vrot.slane %v4490_v46, 1 }
 0x439   : > { %v4587_v17 = vmul.f32 %v10321_v9, %v4563_v61  ;;  %v4534_v51 = vmul.f32 0.125, %v4498_v10  ;;  %v9735_v9 = vcombine.low %v11812_v11, %v11814_v57  ;;  %v4611_v11 = vrot.slane %v11797_v47, %v11785_v14 }
 0x43a   : > { %v4637_v12 = vmul.f32 %v4603_v15, %v4588_v4  ;;  %8058 = vmatpush1.bf16.msra.mxu1 %v9729_v62  ;;  %v4492_v22 = vadd.f32 %v4491_v53, %v4490_v46  ;;  %v4885_v4 = vld [vmem:[#allocation13 + $0x440] sm:$0xff]  ;;  %v4902_v46 = vld [vmem:[#allocation13 + $0x4c8] sm:$0xff] }
 0x43b   : > { %7894 = vmatpush1.bf16.msra.mxu0 %v9727_v52  ;;  %v4636_v26 = vmul.f32 %v4599_v56, %v4587_v17  ;;  %8068 = vmatprep.subr.bf16.mxu1 %v9738_v13  ;;  %v4436_v52 = vadd.f32 %v4435_v45, %v4434_v32  ;;  %v4550_v54 = vsub.f32 %v4534_v51, %v4542_v7  ;;  %v4889_v56 = vld [vmem:[#allocation13 + $0x460] sm:$0xff] }
 0x43c   : > { %v4686_v24 = vadd.f32 %v4652_v38, %v4637_v12  ;;  %7904 = vmatprep.subr.bf16.mxu0 %v9736_v58  ;;  %v4533_v63 = vmul.f32 0.125, %v4492_v22  ;;  %v4355_v12 = vld [vmem:[#allocation2 + $0x28] sm:$0xff]  ;;  %v9737_v13 = vcombine.low %v11825_v0, %v11827_v1  ;;  %v4566_v17 = vsub.f32 %v11799_v48, %v4526_v49  ;;  %v4905_v45 = vld [vmem:[#allocation13 + $0x4e0] sm:$0xff] }
 0x43d   : > { %v4685_v39 = vadd.f32 %v4648_v16, %v4636_v26  ;;  %v4558_v18 = vmax.f32 %v4550_v54, 0.0  ;;  %v11844_v62 = vmul.f32 0.125, %v4436_v52  ;;  %v9744_v21 = vcombine.high %v4885_v4, %v4889_v56  ;;  %v4894_v26 = vld [vmem:[#allocation13 + $0x488] sm:$0xff] }
 0x43e   : > { %v4702_v34 = vmin.f32 %v4686_v24, 0.0  ;;  %vm4694_vm0 = vcmp.gt.f32.partialorder %v4686_v24, 0.0  ;;  %v4364_v29 = vmul.f32 %v11751_v35, %v4355_v12  ;;  %v4392_v0 = vrot.slane %v11756_v43, %v11851_v8 }
 0x43f   : > { %v4701_v60 = vmin.f32 %v4685_v39, 0.0  ;;  %v4574_v15 = vadd.f32 1e-05, %v4558_v18  ;;  %v4541_v2 = vmul.f32 %v11844_v62, %v11844_v62  ;;  %vm4693_vm1 = vcmp.gt.f32.partialorder %v4685_v39, 0.0 }
 0x440   : > { %v4711_v44 = vmul.f32 1.442695, %v4702_v34  ;;  %v9743_v48 = vcombine.low %v4885_v4, %v4889_v56  ;;  %v9745_v32 = vcombine.low %v4886_v5, %v4890_v41  ;;  %v9754_v42 = vcombine.high %v4894_v26, %v4898_v27 }
 0x441   : > { %v4709_v50 = vmul.f32 1.442695, %v4701_v60  ;;  %v4549_v6 = vsub.f32 %v4533_v63, %v4541_v2  ;;  %v4906_v60 = vld [vmem:[#allocation13 + $0x4e8] sm:$0xff]  ;;  %v9753_v52 = vcombine.low %v4894_v26, %v4898_v27  ;;  %v4913_v63 = vld [vmem:[#allocation13 + $0x520] sm:$0xff] }
 0x442   : > { %10322 = vpow2.f32 %v4711_v44  ;;  %v4901_v44 = vld [vmem:[#allocation13 + $0x4c0] sm:$0xff]  ;;  %v4910_v2 = vld [vmem:[#allocation13 + $0x508] sm:$0xff]  ;;  %v9761_v56 = vcombine.low %v4902_v46, %v4906_v60 }
 0x443   : > { %10324 = vpow2.f32 %v4709_v50  ;;  %v4557_v57 = vmax.f32 %v4549_v6, 0.0  ;;  %v9760_v22 = vcombine.high %v4901_v44, %v4905_v45 }
 0x444   : > { %10326 = vrsqrt.f32 %v4574_v15  ;;  %v9762_v15 = vcombine.high %v4902_v46, %v4906_v60 }
 0x445   : > { %v4573_v49 = vadd.f32 1e-05, %v4557_v57 }
 0x447   : > { %10328 = vrsqrt.f32 %v4573_v49 }
 0x44c   : > { %v10323_v61 = vpop.eup %10322 }
 0x44d   : > { %v9600_v30 = vadd.f32 -1.0, %v10323_v61  ;;  %v10325_v3 = vpop.eup %10324  ;;  %v4909_v61 = vld [vmem:[#allocation13 + $0x500] sm:$0xff] }
 0x44e   : > { %v9599_v58 = vadd.f32 -1.0, %v10325_v3  ;;  %v10327_v1 = vpop.eup %10326 }
 0x44f   : > { %v4734_v33 = vsel %vm4694_vm0, %v4686_v24, %v9600_v30  ;;  %v4893_v24 = vld [vmem:[#allocation13 + $0x480] sm:$0xff]  ;;  %v4590_v34 = vmul.f32 %v10327_v1, %v4566_v17  ;;  %v4914_v30 = vld [vmem:[#allocation13 + $0x528] sm:$0xff]  ;;  %vm8916_vm0 = vcmask 7168  }
 0x450   : > { %v11848_v38 = vpack.c.bf16 %v4734_v33, %v4734_v33  ;;  %v4733_v16 = vsel %vm4693_vm1, %v4685_v39, %v9599_v58  ;;  %v11871_v39 = vadd.f32 %v4392_v0, %v4364_v29  ;;  %v9752_v40 = vcombine.high %v4893_v24, %v4897_v25  ;;  %v4918_v17 = vld [vmem:[#allocation13 + $0x548] sm:$0xff]  ;;  %v4925_v0 = vld [vmem:[#allocation13 + $0x580] sm:$0xff] }
 0x451   : > { %v11860_v19 = vpack.c.bf16 %v4733_v16, %v4733_v16  ;;  %v4639_v10 = vmul.f32 %v4611_v11, %v4590_v34  ;;  %v9751_v7 = vcombine.low %v4893_v24, %v4897_v25  ;;  %v9759_v58 = vcombine.low %v4901_v44, %v4905_v45  ;;  %v4921_v16 = vld [vmem:[#allocation13 + $0x560] sm:$0xff]  ;;  %v10329_v45 = vpop.eup %10328 }
 0x452   : > { %7895 = vmatprep.mubr.bf16.mxu0 %v11848_v38  ;;  %8059 = vmatprep.mubr.bf16.mxu1 %v11848_v38  ;;  %v4449_v50 = vrot.slane %v11871_v39, 4  ;;  %v4472_v51 = vmul.f32 %v11871_v39, %v11871_v39  ;;  %v9770_v12 = vcombine.high %v4910_v2, %v4914_v30  ;;  %v9767_v25 = vcombine.low %v4909_v61, %v4913_v63  ;;  %v4929_v1 = vld [vmem:[#allocation13 + $0x5a0] sm:$0xff] }
 0x453   : > { %7896 = vmatmul.mubr.bf16.vlgmr.msra.gmra.mrb[0].mxu0 %v11860_v19  ;;  %8060 = vmatmul.mubr.bf16.vlgmr.msra.gmra.mrb[0].mxu1 %v11860_v19  ;;  %v11876_v53 = vadd.f32 %v4660_v37, %v4639_v10  ;;  %v9769_v26 = vcombine.low %v4910_v2, %v4914_v30  ;;  %v4354_v44 = vld [vmem:[#allocation2 + $0x20] sm:$0xff]  ;;  %v4607_v30 = vrot.slane %v11797_v47, %v11788_v28 }
 0x454   : > { %7905 = vmatpush1.bf16.msra.mxu0 %v9735_v9  ;;  %8069 = vmatpush1.bf16.msra.mxu1 %v9737_v13  ;;  %v4450_v54 = vadd.f32 %v4449_v50, %v11871_v39  ;;  %v4505_v18 = vrot.slane %v4472_v51, 4  ;;  %v9768_v9 = vcombine.high %v4909_v61, %v4913_v63  ;;  %v4917_v13 = vld [vmem:[#allocation13 + $0x540] sm:$0xff]  ;;  %v9784_v50 = vcombine.high %v4925_v0, %v4929_v1 }
 0x455   : > { %7906 = vmatprep.subr.bf16.mxu0 %v9744_v21  ;;  %8070 = vmatprep.subr.bf16.mxu1 %v9746_v23  ;;  %v4704_v3 = vmin.f32 %v11876_v53, 0.0  ;;  %v4922_v21 = vld [vmem:[#allocation13 + $0x568] sm:$0xff]  ;;  %v9776_v57 = vcombine.high %v4917_v13, %v4921_v16  ;;  %v9775_v46 = vcombine.low %v4917_v13, %v4921_v16  ;;  %v4357_v61 = vld [vmem:[#allocation2 + $0x38] sm:$0xff]  ;;  %v9783_v63 = vcombine.low %v4925_v0, %v4929_v1 }
 0x456   : > { %v4451_v33 = vrot.slane %v4450_v54, 2  ;;  %v4506_v4 = vadd.f32 %v4505_v18, %v4472_v51  ;;  %v9778_v29 = vcombine.high %v4918_v17, %v4922_v21  ;;  %v9777_v60 = vcombine.low %v4918_v17, %v4922_v21  ;;  %v4942_v13 = vld [vmem:[#allocation13 + $0x608] sm:$0xff]  ;;  %v4953_v1 = vld [vmem:[#allocation13 + $0x660] sm:$0xff] }
 0x457   : > { %v4715_v5 = vmul.f32 1.442695, %v4704_v3  ;;  %vm4696_vm2 = vcmp.gt.f32.partialorder %v11876_v53, 0.0  ;;  %v4946_v16 = vld [vmem:[#allocation13 + $0x628] sm:$0xff] }
 0x458   : > { %7907 = vmatpush1.bf16.msra.mxu0 %v9743_v48  ;;  %8071 = vmatpush1.bf16.msra.mxu1 %v9745_v32  ;;  %v4452_v41 = vadd.f32 %v4451_v33, %v4450_v54  ;;  %v4507_v6 = vrot.slane %v4506_v4, 2  ;;  %v4926_v48 = vld [vmem:[#allocation13 + $0x588] sm:$0xff]  ;;  %v11890_v54 = vsub.s32 7, %v11746_v20 }
 0x459   : > { %7908 = vmatprep.subr.bf16.mxu0 %v9752_v40  ;;  %8072 = vmatprep.subr.bf16.mxu1 %v9754_v42  ;;  %10330 = vpow2.f32 %v4715_v5  ;;  %v4930_v32 = vld [vmem:[#allocation13 + $0x5a8] sm:$0xff]  ;;  %v11883_v40 = vsub.s32 4, %v11746_v20  ;;  %v4565_v42 = vsub.f32 %v11819_v59, %v11844_v62  ;;  %v4941_v5 = vld [vmem:[#allocation13 + $0x600] sm:$0xff] }
 0x45a   : > { %v4453_v23 = vrot.slane %v4452_v41, 1  ;;  %v4508_v24 = vadd.f32 %v4507_v6, %v4506_v4  ;;  %v9786_v51 = vcombine.high %v4926_v48, %v4930_v32  ;;  %v4934_v59 = vld [vmem:[#allocation13 + $0x5c8] sm:$0xff]  ;;  %v9785_v33 = vcombine.low %v4926_v48, %v4930_v32 }
 0x45b   : > { %v4938_v62 = vld [vmem:[#allocation13 + $0x5e8] sm:$0xff]  ;;  %v4589_v2 = vmul.f32 %v10329_v45, %v4565_v42  ;;  %v4366_v6 = vmul.f32 %v11751_v35, %v4357_v61  ;;  %v9801_v45 = vcombine.low %v4942_v13, %v4946_v16 }
 0x45c   : > { %7909 = vmatpush1.bf16.msra.mxu0 %v9751_v7  ;;  %8073 = vmatpush1.bf16.msra.mxu1 %v9753_v52  ;;  %v4454_v27 = vadd.f32 %v4453_v23, %v4452_v41  ;;  %v4509_v11 = vrot.slane %v4508_v24, 1  ;;  %v4933_v7 = vld [vmem:[#allocation13 + $0x5c0] sm:$0xff]  ;;  %v4954_v48 = vld [vmem:[#allocation13 + $0x668] sm:$0xff] }
 0x45d   : > { %7910 = vmatprep.subr.bf16.mxu0 %v9760_v22  ;;  %8074 = vmatprep.subr.bf16.mxu1 %v9762_v15  ;;  %v4937_v52 = vld [vmem:[#allocation13 + $0x5e0] sm:$0xff]  ;;  %v4363_v22 = vmul.f32 %v11751_v35, %v4354_v44  ;;  %v4388_v15 = vrot.slane %v11756_v43, %v11883_v40 }
 0x45e   : > { %v4510_v34 = vadd.f32 %v4509_v11, %v4508_v24  ;;  %v11880_v37 = vmul.f32 0.125, %v4454_v27  ;;  %v9792_v4 = vcombine.high %v4933_v7, %v4937_v52  ;;  %v4638_v24 = vmul.f32 %v4607_v30, %v4589_v2  ;;  %v4965_v30 = vld [vmem:[#allocation13 + $0x6c0] sm:$0xff] }
 0x45f   : > { %v11901_v21 = vadd.f32 %v4388_v15, %v4363_v22  ;;  %v9793_v27 = vcombine.low %v4934_v59, %v4938_v62 }
 0x460   : > { %7911 = vmatpush1.bf16.msra.mxu0 %v9759_v58  ;;  %8075 = vmatpush1.bf16.msra.mxu1 %v9761_v56  ;;  %v4536_v10 = vmul.f32 0.125, %v4510_v34  ;;  %v4544_v49 = vmul.f32 %v11880_v37, %v11880_v37  ;;  %v9794_v56 = vcombine.high %v4934_v59, %v4938_v62  ;;  %v4568_v22 = vsub.f32 %v11871_v39, %v11880_v37 }
 0x461   : > { %7912 = vmatprep.subr.bf16.mxu0 %v9768_v9  ;;  %8076 = vmatprep.subr.bf16.mxu1 %v9770_v12  ;;  %v4400_v9 = vrot.slane %v11756_v43, %v11890_v54  ;;  %v4945_v12 = vld [vmem:[#allocation13 + $0x620] sm:$0xff]  ;;  %v4443_v32 = vrot.slane %v11901_v21, 4  ;;  %v4471_v34 = vmul.f32 %v11901_v21, %v11901_v21 }
 0x462   : > { %v4552_v18 = vsub.f32 %v4536_v10, %v4544_v49  ;;  %v9800_v43 = vcombine.high %v4941_v5, %v4945_v12  ;;  %v9799_v44 = vcombine.low %v4941_v5, %v4945_v12  ;;  %v4957_v10 = vld [vmem:[#allocation13 + $0x680] sm:$0xff]  ;;  %v4966_v5 = vld [vmem:[#allocation13 + $0x6c8] sm:$0xff]  ;;  %v4668_v12 = vrot.slane %v11810_v55, %v11851_v8 }
 0x463   : > { %v10331_v3 = vpop.eup %10330  ;;  %v11908_v0 = vadd.f32 %v4400_v9, %v4366_v6  ;;  %v4961_v49 = vld [vmem:[#allocation13 + $0x6a0] sm:$0xff]  ;;  %v4444_v59 = vadd.f32 %v4443_v32, %v11901_v21  ;;  %v4499_v62 = vrot.slane %v4471_v34, 4 }
 0x464   : > { %7913 = vmatpush1.bf16.msra.mxu0 %v9767_v25  ;;  %8077 = vmatpush1.bf16.msra.mxu1 %v9769_v26  ;;  %v4560_v58 = vmax.f32 %v4552_v18, 0.0  ;;  %v9602_v41 = vadd.f32 -1.0, %v10331_v3  ;;  %v4656_v25 = vrot.slane %v11810_v55, %v11788_v28  ;;  %v9791_v26 = vcombine.low %v4933_v7, %v4937_v52  ;;  %v4958_v7 = vld [vmem:[#allocation13 + $0x688] sm:$0xff]  ;;  %v4969_v3 = vld [vmem:[#allocation13 + $0x6e0] sm:$0xff] }
 0x465   : > { %7914 = vmatprep.subr.bf16.mxu0 %v9776_v57  ;;  %8078 = vmatprep.subr.bf16.mxu1 %v9778_v29  ;;  %v9802_v57 = vcombine.high %v4942_v13, %v4946_v16  ;;  %v4949_v29 = vld [vmem:[#allocation13 + $0x640] sm:$0xff]  ;;  %v4962_v52 = vld [vmem:[#allocation13 + $0x6a8] sm:$0xff]  ;;  %v4445_v39 = vrot.slane %v4444_v59, 2  ;;  %v4500_v37 = vadd.f32 %v4499_v62, %v4471_v34  ;;  %v9815_v13 = vcombine.low %v4957_v10, %v4961_v49 }
 0x466   : > { %v4576_v17 = vadd.f32 1e-05, %v4560_v58  ;;  %v4736_v23 = vsel %vm4696_vm2, %v11876_v53, %v9602_v41  ;;  %v4950_v53 = vld [vmem:[#allocation13 + $0x648] sm:$0xff]  ;;  %v11915_v42 = vadd.f32 %v4656_v25, %v4638_v24  ;;  %v9807_v15 = vcombine.low %v4949_v29, %v4953_v1  ;;  %v4973_v24 = vld [vmem:[#allocation13 + $0x700] sm:$0xff] }
 0x467   : > { %v11906_v11 = vpack.c.bf16 %v4736_v23, %v4736_v23  ;;  %v9809_v61 = vcombine.low %v4950_v53, %v4954_v48  ;;  %v9818_v2 = vcombine.high %v4958_v7, %v4962_v52  ;;  %v4970_v41 = vld [vmem:[#allocation13 + $0x6e8] sm:$0xff]  ;;  %v9817_v16 = vcombine.low %v4958_v7, %v4962_v52  ;;  %v4977_v25 = vld [vmem:[#allocation13 + $0x720] sm:$0xff] }
 0x468   : > { %7915 = vmatpush1.bf16.msra.mxu0 %v9775_v46  ;;  %8079 = vmatpush1.bf16.msra.mxu1 %v9777_v60  ;;  %10332 = vrsqrt.f32 %v4576_v17  ;;  %v9808_v46 = vcombine.high %v4949_v29, %v4953_v1  ;;  %v9810_v60 = vcombine.high %v4950_v53, %v4954_v48  ;;  %v4703_v18 = vmin.f32 %v11915_v42, 0.0  ;;  %v4978_v29 = vld [vmem:[#allocation13 + $0x728] sm:$0xff] }
 0x469   : > { %7916 = vmatprep.subr.bf16.mxu0 %v9784_v50  ;;  %8080 = vmatprep.subr.bf16.mxu1 %v9786_v51  ;;  %v4461_v50 = vrot.slane %v11908_v0, 4  ;;  %v4474_v51 = vmul.f32 %v11908_v0, %v11908_v0  ;;  %v9824_v17 = vcombine.high %v4965_v30, %v4969_v3  ;;  %v9826_v23 = vcombine.high %v4966_v5, %v4970_v41  ;;  %v4986_v7 = vld [vmem:[#allocation13 + $0x768] sm:$0xff] }
 0x46a   : > { %7936 = vmatprep.mubr.bf16.mxu0 %v11906_v11  ;;  %8100 = vmatprep.mubr.bf16.mxu1 %v11906_v11  ;;  %v4713_v6 = vmul.f32 1.442695, %v4703_v18  ;;  %v4446_v1 = vadd.f32 %v4445_v39, %v4444_v59  ;;  %v4501_v53 = vrot.slane %v4500_v37, 2  ;;  %v9823_v32 = vcombine.low %v4965_v30, %v4969_v3  ;;  %v4993_v3 = vld [vmem:[#allocation13 + $0x7a0] sm:$0xff] }
 0x46b   : > { %v4517_v58 = vrot.slane %v4474_v51, 4  ;;  %v9825_v34 = vcombine.low %v4966_v5, %v4970_v41  ;;  %v9831_v18 = vcombine.low %v4973_v24, %v4977_v25  ;;  %vm4695_vm3 = vcmp.gt.f32.partialorder %v11915_v42, 0.0 }
 0x46c   : > { %7917 = vmatpush1.bf16.msra.mxu0 %v9783_v63  ;;  %8081 = vmatpush1.bf16.msra.mxu1 %v9785_v33  ;;  %v9816_v63 = vcombine.high %v4957_v10, %v4961_v49  ;;  %v4619_v33 = vrot.slane %v11797_v47, %v11851_v8  ;;  %10334 = vpow2.f32 %v4713_v6  ;;  %v4447_v52 = vrot.slane %v4446_v1, 1 }
 0x46d   : > { %7918 = vmatprep.subr.bf16.mxu0 %v9792_v4  ;;  %8082 = vmatprep.subr.bf16.mxu1 %v9794_v56  ;;  %v4462_v4 = vadd.f32 %v4461_v50, %v11908_v0  ;;  %v4502_v59 = vadd.f32 %v4501_v53, %v4500_v37 }
 0x470   : > { %7919 = vmatpush1.bf16.msra.mxu0 %v9791_v26  ;;  %8083 = vmatpush1.bf16.msra.mxu1 %v9793_v27  ;;  %v4463_v27 = vrot.slane %v4462_v4, 2 }
 0x471   : > { %7920 = vmatprep.subr.bf16.mxu0 %v9800_v43  ;;  %8084 = vmatprep.subr.bf16.mxu1 %v9802_v57  ;;  %v4518_v43 = vadd.f32 %v4517_v58, %v4474_v51  ;;  %v4974_v57 = vld [vmem:[#allocation13 + $0x708] sm:$0xff]  ;;  %v4448_v58 = vadd.f32 %v4447_v52, %v4446_v1  ;;  %v5005_v1 = vld [vmem:[#allocation13 + $0x800] sm:$0xff] }
 0x472   : > { %v10333_v56 = vpop.eup %10332  ;;  %v4464_v49 = vadd.f32 %v4463_v27, %v4462_v4  ;;  %v4982_v51 = vld [vmem:[#allocation13 + $0x748] sm:$0xff] }
 0x473   : > { %v4592_v9 = vmul.f32 %v10333_v56, %v4568_v22  ;;  %v4519_v50 = vrot.slane %v4518_v43, 2  ;;  %v9833_v22 = vcombine.low %v4974_v57, %v4978_v29  ;;  %v4994_v4 = vld [vmem:[#allocation13 + $0x7a8] sm:$0xff]  ;;  %v4503_v56 = vrot.slane %v4502_v59, 1 }
 0x474   : > { %7921 = vmatpush1.bf16.msra.mxu0 %v9799_v44  ;;  %8085 = vmatpush1.bf16.msra.mxu1 %v9801_v45  ;;  %v9832_v44 = vcombine.high %v4973_v24, %v4977_v25  ;;  %v9834_v45 = vcombine.high %v4974_v57, %v4978_v29  ;;  %v9841_v41 = vcombine.low %v4982_v51, %v4986_v7  ;;  %v11932_v25 = vmul.f32 0.125, %v4448_v58 }
 0x475   : > { %7922 = vmatprep.subr.bf16.mxu0 %v9808_v46  ;;  %8086 = vmatprep.subr.bf16.mxu1 %v9810_v60  ;;  %v4641_v26 = vmul.f32 %v4619_v33, %v4592_v9  ;;  %v4981_v46 = vld [vmem:[#allocation13 + $0x740] sm:$0xff]  ;;  %v4520_v30 = vadd.f32 %v4519_v50, %v4518_v43  ;;  %v4990_v33 = vld [vmem:[#allocation13 + $0x788] sm:$0xff]  ;;  %v4504_v24 = vadd.f32 %v4503_v56, %v4502_v59 }
 0x476   : > { %v4985_v60 = vld [vmem:[#allocation13 + $0x760] sm:$0xff]  ;;  %v10335_v39 = vpop.eup %10334  ;;  %v9850_v6 = vcombine.high %v4990_v33, %v4994_v4  ;;  %v9849_v27 = vcombine.low %v4990_v33, %v4994_v4 }
 0x477   : > { %v11929_v48 = vadd.f32 %v4668_v12, %v4641_v26  ;;  %v9839_v5 = vcombine.low %v4981_v46, %v4985_v60  ;;  %v4997_v9 = vld [vmem:[#allocation13 + $0x7c0] sm:$0xff]  ;;  %v9601_v57 = vadd.f32 -1.0, %v10335_v39  ;;  %v5022_v39 = vld [vmem:[#allocation13 + $0x888] sm:$0xff] }
 0x478   : > { %7923 = vmatpush1.bf16.msra.mxu0 %v9807_v15  ;;  %8087 = vmatpush1.bf16.msra.mxu1 %v9809_v61  ;;  %v9840_v15 = vcombine.high %v4981_v46, %v4985_v60  ;;  %v9842_v61 = vcombine.high %v4982_v51, %v4986_v7  ;;  %v5001_v12 = vld [vmem:[#allocation13 + $0x7e0] sm:$0xff]  ;;  %v4535_v46 = vmul.f32 0.125, %v4504_v24  ;;  %v4543_v60 = vmul.f32 %v11932_v25, %v11932_v25 }
 0x479   : > { %7924 = vmatprep.subr.bf16.mxu0 %v9816_v63  ;;  %8088 = vmatprep.subr.bf16.mxu1 %v9818_v2  ;;  %v4706_v10 = vmin.f32 %v11929_v48, 0.0  ;;  %v4989_v63 = vld [vmem:[#allocation13 + $0x780] sm:$0xff]  ;;  %v4465_v2 = vrot.slane %v4464_v49, 1  ;;  %v9856_v43 = vcombine.high %v4997_v9, %v5001_v12  ;;  %v4735_v51 = vsel %vm4695_vm3, %v11915_v42, %v9601_v57 }
 0x47a   : > { %v9848_v37 = vcombine.high %v4989_v63, %v4993_v3  ;;  %v9847_v26 = vcombine.low %v4989_v63, %v4993_v3  ;;  %vm4698_vm4 = vcmp.gt.f32.partialorder %v11929_v48, 0.0  ;;  %v5018_v63 = vld [vmem:[#allocation13 + $0x868] sm:$0xff]  ;;  %v5021_v56 = vld [vmem:[#allocation13 + $0x880] sm:$0xff] }
 0x47b   : > { %v4719_v62 = vmul.f32 1.442695, %v4706_v10  ;;  %v5033_v24 = vld [vmem:[#allocation13 + $0x8e0] sm:$0xff] }
 0x47c   : > { %7925 = vmatpush1.bf16.msra.mxu0 %v9815_v13  ;;  %8089 = vmatpush1.bf16.msra.mxu1 %v9817_v16  ;;  %v4466_v13 = vadd.f32 %v4465_v2, %v4464_v49  ;;  %v4521_v16 = vrot.slane %v4520_v30, 1  ;;  %v9855_v49 = vcombine.low %v4997_v9, %v5001_v12  ;;  %v4551_v2 = vsub.f32 %v4535_v46, %v4543_v60  ;;  %v5038_v46 = vld [vmem:[#allocation13 + $0x908] sm:$0xff] }
 0x47d   : > { %7926 = vmatprep.subr.bf16.mxu0 %v9824_v17  ;;  %8090 = vmatprep.subr.bf16.mxu1 %v9826_v23  ;;  %10336 = vpow2.f32 %v4719_v62  ;;  %v4998_v17 = vld [vmem:[#allocation13 + $0x7c8] sm:$0xff]  ;;  %v5013_v62 = vld [vmem:[#allocation13 + $0x840] sm:$0xff] }
 0x47e   : > { %v5002_v23 = vld [vmem:[#allocation13 + $0x7e8] sm:$0xff]  ;;  %v4522_v53 = vadd.f32 %v4521_v16, %v4520_v30  ;;  %v11943_v30 = vpack.c.bf16 %v4735_v51, %v4735_v51  ;;  %v4559_v9 = vmax.f32 %v4551_v2, 0.0  ;;  %v5057_v2 = vld [vmem:[#allocation13 + $0x9a0] sm:$0xff] }
 0x47f   : > { %v9858_v29 = vcombine.high %v4998_v17, %v5002_v23  ;;  %v9857_v50 = vcombine.low %v4998_v17, %v5002_v23  ;;  %v5029_v17 = vld [vmem:[#allocation13 + $0x8c0] sm:$0xff]  ;;  %v5042_v60 = vld [vmem:[#allocation13 + $0x928] sm:$0xff] }
 0x480   : > { %7927 = vmatpush1.bf16.msra.mxu0 %v9823_v32  ;;  %8091 = vmatpush1.bf16.msra.mxu1 %v9825_v34  ;;  %v11935_v32 = vmul.f32 0.125, %v4466_v13  ;;  %v5009_v34 = vld [vmem:[#allocation13 + $0x820] sm:$0xff]  ;;  %v9898_v51 = vcombine.high %v5038_v46, %v5042_v60 }
 0x481   : > { %7928 = vmatprep.subr.bf16.mxu0 %v9832_v44  ;;  %8092 = vmatprep.subr.bf16.mxu1 %v9834_v45  ;;  %v5006_v44 = vld [vmem:[#allocation13 + $0x808] sm:$0xff]  ;;  %v9864_v52 = vcombine.high %v5005_v1, %v5009_v34  ;;  %v9863_v3 = vcombine.low %v5005_v1, %v5009_v34  ;;  %v9888_v1 = vcombine.high %v5029_v17, %v5033_v24  ;;  %v5037_v34 = vld [vmem:[#allocation13 + $0x900] sm:$0xff] }
 0x482   : > { %v5010_v45 = vld [vmem:[#allocation13 + $0x828] sm:$0xff] }
 0x483   : > { %v9866_v59 = vcombine.high %v5006_v44, %v5010_v45  ;;  %v9865_v33 = vcombine.low %v5006_v44, %v5010_v45  ;;  %v5041_v45 = vld [vmem:[#allocation13 + $0x920] sm:$0xff] }
 0x484   : > { %7929 = vmatpush1.bf16.msra.mxu0 %v9831_v18  ;;  %8093 = vmatpush1.bf16.msra.mxu1 %v9833_v22  ;;  %v4538_v18 = vmul.f32 0.125, %v4522_v53  ;;  %v4546_v22 = vmul.f32 %v11935_v32, %v11935_v32 }
 0x485   : > { %7930 = vmatprep.subr.bf16.mxu0 %v9840_v15  ;;  %8094 = vmatprep.subr.bf16.mxu1 %v9842_v61  ;;  %v5017_v15 = vld [vmem:[#allocation13 + $0x860] sm:$0xff]  ;;  %v5014_v61 = vld [vmem:[#allocation13 + $0x848] sm:$0xff] }
 0x486   : > { %v9872_v4 = vcombine.high %v5013_v62, %v5017_v15  ;;  %v9874_v58 = vcombine.high %v5014_v61, %v5018_v63  ;;  %v9873_v12 = vcombine.low %v5014_v61, %v5018_v63  ;;  %v5053_v63 = vld [vmem:[#allocation13 + $0x980] sm:$0xff] }
 0x487   : > { %v10337_v10 = vpop.eup %10336 }
 0x488   : > { %7931 = vmatpush1.bf16.msra.mxu0 %v9839_v5  ;;  %8095 = vmatpush1.bf16.msra.mxu1 %v9841_v41  ;;  %v9604_v7 = vadd.f32 -1.0, %v10337_v10  ;;  %v4554_v5 = vsub.f32 %v4538_v18, %v4546_v22  ;;  %v5025_v41 = vld [vmem:[#allocation13 + $0x8a0] sm:$0xff]  ;;  %v9887_v10 = vcombine.low %v5029_v17, %v5033_v24  ;;  %v9895_v18 = vcombine.low %v5037_v34, %v5041_v45 }
 0x489   : > { %7932 = vmatprep.subr.bf16.mxu0 %v9848_v37  ;;  %8096 = vmatprep.subr.bf16.mxu1 %v9850_v6  ;;  %v5026_v37 = vld [vmem:[#allocation13 + $0x8a8] sm:$0xff]  ;;  %v9880_v13 = vcombine.high %v5021_v56, %v5025_v41  ;;  %v9879_v57 = vcombine.low %v5021_v56, %v5025_v41  ;;  %v9897_v22 = vcombine.low %v5038_v46, %v5042_v60 }
 0x48a   : > { %v4738_v42 = vsel %vm4698_vm4, %v11929_v48, %v9604_v7  ;;  %v9871_v48 = vcombine.low %v5013_v62, %v5017_v15  ;;  %v9882_v16 = vcombine.high %v5022_v39, %v5026_v37  ;;  %v4562_v23 = vmax.f32 %v4554_v5, 0.0  ;;  %v5045_v7 = vld [vmem:[#allocation13 + $0x940] sm:$0xff]  ;;  %v5050_v62 = vld [vmem:[#allocation13 + $0x968] sm:$0xff] }
 0x48b   : > { %v11946_v6 = vpack.c.bf16 %v4738_v42, %v4738_v42  ;;  %v5054_v42 = vld [vmem:[#allocation13 + $0x988] sm:$0xff]  ;;  %v4615_v24 = vrot.slane %v11797_v47, %v11883_v40 }
 0x48c   : > { %7933 = vmatpush1.bf16.msra.mxu0 %v9847_v26  ;;  %8097 = vmatpush1.bf16.msra.mxu1 %v9849_v27  ;;  %v5030_v26 = vld [vmem:[#allocation13 + $0x8c8] sm:$0xff]  ;;  %v4578_v44 = vadd.f32 1e-05, %v4562_v23 }
 0x48d   : > { %7934 = vmatprep.subr.bf16.mxu0 %v9856_v43  ;;  %8098 = vmatprep.subr.bf16.mxu1 %v9858_v29  ;;  %v5034_v27 = vld [vmem:[#allocation13 + $0x8e8] sm:$0xff]  ;;  %v4575_v43 = vadd.f32 1e-05, %v4559_v9  ;;  %v9881_v29 = vcombine.low %v5022_v39, %v5026_v37  ;;  %v9912_v39 = vcombine.high %v5053_v63, %v5057_v2  ;;  %v5061_v9 = vld [vmem:[#allocation13 + $0x9c0] sm:$0xff] }
 0x48e   : > { %v9890_v53 = vcombine.high %v5030_v26, %v5034_v27 }
 0x48f   : > { %10338 = vrsqrt.f32 %v4575_v43 }
 0x490   : > { %7935 = vmatpush1.bf16.msra.mxu0 %v9855_v49  ;;  %8099 = vmatpush1.bf16.msra.mxu1 %v9857_v50  ;;  %v9889_v49 = vcombine.low %v5030_v26, %v5034_v27  ;;  %v9896_v50 = vcombine.high %v5037_v34, %v5041_v45  ;;  %10340 = vrsqrt.f32 %v4578_v44  ;;  %v9911_v26 = vcombine.low %v5053_v63, %v5057_v2 }
 0x491   : > { %7945 = vmatprep.subr.bf16.mxu0 %v9864_v52  ;;  %8109 = vmatprep.subr.bf16.mxu1 %v9866_v59  ;;  %v5049_v52 = vld [vmem:[#allocation13 + $0x960] sm:$0xff]  ;;  %v5046_v59 = vld [vmem:[#allocation13 + $0x948] sm:$0xff]  ;;  %v4664_v45 = vrot.slane %v11810_v55, %v11883_v40 }
 0x492   : > { %v9904_v15 = vcombine.high %v5045_v7, %v5049_v52  ;;  %v9906_v61 = vcombine.high %v5046_v59, %v5050_v62  ;;  %v9903_v5 = vcombine.low %v5045_v7, %v5049_v52  ;;  %v9905_v41 = vcombine.low %v5046_v59, %v5050_v62  ;;  %v5078_v7 = vld [vmem:[#allocation13 + $0xa48] sm:$0xff]  ;;  %v11971_v62 = vld [vmem:[#allocation12] sm:$0xff] }
 0x493   : > { %7937 = vmatmul.mubr.bf16.vlgmr.msra.gmra.mrb[0].mxu0 %v11943_v30  ;;  %8101 = vmatmul.mubr.bf16.vlgmr.msra.gmra.mrb[0].mxu1 %v11943_v30  ;;  %v5082_v52 = vld [vmem:[#allocation13 + $0xa68] sm:$0xff] }
 0x494   : > { %7946 = vmatpush1.bf16.msra.mxu0 %v9863_v3  ;;  %8110 = vmatpush1.bf16.msra.mxu1 %v9865_v33  ;;  %v5058_v3 = vld [vmem:[#allocation13 + $0x9a8] sm:$0xff]  ;;  %v11953_v33 = vsub.s32 6, %v11746_v20  ;;  %v4570_v20 = vsub.f32 %v11908_v0, %v11935_v32  ;;  %v5073_v0 = vld [vmem:[#allocation13 + $0xa20] sm:$0xff] }
 0x495   : > { %7947 = vmatprep.subr.bf16.mxu0 %v9872_v4  ;;  %8111 = vmatprep.subr.bf16.mxu1 %v9874_v58  ;;  %v4567_v4 = vsub.f32 %v11901_v21, %v11932_v25  ;;  %v4356_v58 = vld [vmem:[#allocation2 + $0x30] sm:$0xff]  ;;  %v9914_v37 = vcombine.high %v5054_v42, %v5058_v3  ;;  %v10386_v21 = vld [vmem:[#allocation9] sm:$0xff]  ;;  %v9913_v27 = vcombine.low %v5054_v42, %v5058_v3  ;;  %v5085_v3 = vld [vmem:[#allocation13 + $0xa80] sm:$0xff] }
 0x496   : > { %7977 = vmatprep.mubr.bf16.mxu0 %v11946_v6  ;;  %8141 = vmatprep.mubr.bf16.mxu1 %v11946_v6  ;;  %v4396_v25 = vrot.slane %v10386_v21, %v11953_v33  ;;  %v5070_v32 = vld [vmem:[#allocation13 + $0xa08] sm:$0xff]  ;;  %v9938_v42 = vcombine.high %v5078_v7, %v5082_v52 }
 0x497   : > { %v5094_v21 = vld [vmem:[#allocation13 + $0xac8] sm:$0xff] }
 0x498   : > { %7948 = vmatpush1.bf16.msra.mxu0 %v9871_v48  ;;  %8112 = vmatpush1.bf16.msra.mxu1 %v9873_v12  ;;  %v5065_v48 = vld [vmem:[#allocation13 + $0x9e0] sm:$0xff]  ;;  %v5062_v12 = vld [vmem:[#allocation13 + $0x9c8] sm:$0xff] }
 0x499   : > { %7949 = vmatprep.subr.bf16.mxu0 %v9880_v13  ;;  %8113 = vmatprep.subr.bf16.mxu1 %v9882_v16  ;;  %v10339_v56 = vpop.eup %10338  ;;  %v5066_v13 = vld [vmem:[#allocation13 + $0x9e8] sm:$0xff]  ;;  %v4365_v16 = vmul.f32 %v11751_v35, %v4356_v58  ;;  %v9920_v43 = vcombine.high %v5061_v9, %v5065_v48  ;;  %v9919_v46 = vcombine.low %v5061_v9, %v5065_v48 }
 0x49a   : > { %v10341_v17 = vpop.eup %10340  ;;  %v4591_v23 = vmul.f32 %v10339_v56, %v4567_v4  ;;  %v5074_v35 = vld [vmem:[#allocation13 + $0xa28] sm:$0xff]  ;;  %v9921_v60 = vcombine.low %v5062_v12, %v5066_v13  ;;  %v5089_v4 = vld [vmem:[#allocation13 + $0xaa0] sm:$0xff]  ;;  %v9937_v48 = vcombine.low %v5078_v7, %v5082_v52 }
 0x49b   : > { %v11967_v44 = vadd.f32 %v4396_v25, %v4365_v16  ;;  %v9929_v63 = vcombine.low %v5070_v32, %v5074_v35  ;;  %v5086_v58 = vld [vmem:[#allocation13 + $0xa88] sm:$0xff]  ;;  %v5097_v16 = vld [vmem:[#allocation13 + $0xae0] sm:$0xff] }
 0x49c   : > { %7950 = vmatpush1.bf16.msra.mxu0 %v9879_v57  ;;  %8114 = vmatpush1.bf16.msra.mxu1 %v9881_v29  ;;  %v9922_v57 = vcombine.high %v5062_v12, %v5066_v13  ;;  %v5069_v29 = vld [vmem:[#allocation13 + $0xa00] sm:$0xff]  ;;  %v4640_v47 = vmul.f32 %v4615_v24, %v4591_v23  ;;  %v5090_v56 = vld [vmem:[#allocation13 + $0xaa8] sm:$0xff]  ;;  %v9944_v12 = vcombine.high %v5085_v3, %v5089_v4 }
 0x49d   : > { %7951 = vmatprep.subr.bf16.mxu0 %v9888_v1  ;;  %8115 = vmatprep.subr.bf16.mxu1 %v9890_v53  ;;  %v4594_v1 = vmul.f32 %v10341_v17, %v4570_v20  ;;  %v11963_v53 = vld [vmem:[#allocation10] sm:$0xff]  ;;  %v4455_v55 = vrot.slane %v11967_v44, 4  ;;  %v9946_v13 = vcombine.high %v5086_v58, %v5090_v56  ;;  %v5093_v20 = vld [vmem:[#allocation13 + $0xac0] sm:$0xff]  ;;  %v5098_v25 = vld [vmem:[#allocation13 + $0xae8] sm:$0xff] }
 0x49e   : > { %v4627_v34 = vrot.slane %v11963_v53, %v11890_v54  ;;  %v5110_v7 = vld [vmem:[#allocation13 + $0xb48] sm:$0xff] }
 0x49f   : > { %v5114_v52 = vld [vmem:[#allocation13 + $0xb68] sm:$0xff] }
 0x4a0   : > { %7952 = vmatpush1.bf16.msra.mxu0 %v9887_v10  ;;  %8116 = vmatpush1.bf16.msra.mxu1 %v9889_v49  ;;  %v9928_v10 = vcombine.high %v5069_v29, %v5073_v0  ;;  %v9930_v49 = vcombine.high %v5070_v32, %v5074_v35  ;;  %v4643_v59 = vmul.f32 %v4627_v34, %v4594_v1  ;;  %v5105_v32 = vld [vmem:[#allocation13 + $0xb20] sm:$0xff]  ;;  %v5102_v35 = vld [vmem:[#allocation13 + $0xb08] sm:$0xff] }
 0x4a1   : > { %7953 = vmatprep.subr.bf16.mxu0 %v9896_v50  ;;  %8117 = vmatprep.subr.bf16.mxu1 %v9898_v51  ;;  %v5077_v50 = vld [vmem:[#allocation13 + $0xa40] sm:$0xff]  ;;  %v5106_v1 = vld [vmem:[#allocation13 + $0xb28] sm:$0xff] }
 0x4a2   : > { %v5081_v51 = vld [vmem:[#allocation13 + $0xa60] sm:$0xff] }
 0x4a3   : > { %v9936_v2 = vcombine.high %v5077_v50, %v5081_v51  ;;  %v9935_v9 = vcombine.low %v5077_v50, %v5081_v51  ;;  %v5109_v50 = vld [vmem:[#allocation13 + $0xb40] sm:$0xff] }
 0x4a4   : > { %7954 = vmatpush1.bf16.msra.mxu0 %v9895_v18  ;;  %8118 = vmatpush1.bf16.msra.mxu1 %v9897_v22  ;;  %v4676_v18 = vrot.slane %v11971_v62, %v11890_v54  ;;  %v4473_v22 = vmul.f32 %v11967_v44, %v11967_v44  ;;  %v5113_v51 = vld [vmem:[#allocation13 + $0xb60] sm:$0xff] }
 0x4a5   : > { %7955 = vmatprep.subr.bf16.mxu0 %v9904_v15  ;;  %8119 = vmatprep.subr.bf16.mxu1 %v9906_v61  ;;  %v11978_v15 = vadd.f32 %v4664_v45, %v4640_v47  ;;  %v9927_v61 = vcombine.low %v5069_v29, %v5073_v0  ;;  %v9954_v29 = vcombine.high %v5094_v21, %v5098_v25  ;;  %v5101_v0 = vld [vmem:[#allocation13 + $0xb00] sm:$0xff] }
 0x4a7   : > { %vm4697_vm5 = vcmp.gt.f32.partialorder %v11978_v15, 0.0 }
 0x4a8   : > { %7956 = vmatpush1.bf16.msra.mxu0 %v9903_v5  ;;  %8120 = vmatpush1.bf16.msra.mxu1 %v9905_v41  ;;  %v11980_v5 = vadd.f32 %v4676_v18, %v4643_v59  ;;  %v4456_v41 = vadd.f32 %v4455_v55, %v11967_v44  ;;  %v9959_v55 = vcombine.low %v5101_v0, %v5105_v32 }
 0x4a9   : > { %7957 = vmatprep.subr.bf16.mxu0 %v9912_v39  ;;  %8121 = vmatprep.subr.bf16.mxu1 %v9914_v37  ;;  %v4511_v39 = vrot.slane %v4473_v22, 4  ;;  %v4705_v37 = vmin.f32 %v11978_v15, 0.0 }
 0x4aa   : > { %v4708_v17 = vmin.f32 %v11980_v5, 0.0  ;;  %v4457_v23 = vrot.slane %v4456_v41, 2  ;;  %vm4700_vm6 = vcmp.gt.f32.partialorder %v11980_v5, 0.0 }
 0x4ab   : > { %v4512_v24 = vadd.f32 %v4511_v39, %v4473_v22  ;;  %v9961_v22 = vcombine.low %v5102_v35, %v5106_v1  ;;  %v9969_v39 = vcombine.low %v5110_v7, %v5114_v52 }
 0x4ac   : > { %7958 = vmatpush1.bf16.msra.mxu0 %v9911_v26  ;;  %8122 = vmatpush1.bf16.msra.mxu1 %v9913_v27  ;;  %v4717_v26 = vmul.f32 1.442695, %v4705_v37  ;;  %v9943_v27 = vcombine.low %v5085_v3, %v5089_v4  ;;  %v4723_v34 = vmul.f32 1.442695, %v4708_v17  ;;  %v4458_v47 = vadd.f32 %v4457_v23, %v4456_v41  ;;  %v5118_v3 = vld [vmem:[#allocation13 + $0xb88] sm:$0xff] }
 0x4ad   : > { %7959 = vmatprep.subr.bf16.mxu0 %v9920_v43  ;;  %8123 = vmatprep.subr.bf16.mxu1 %v9922_v57  ;;  %v9945_v43 = vcombine.low %v5086_v58, %v5090_v56  ;;  %v9952_v57 = vcombine.high %v5093_v20, %v5097_v16  ;;  %v4513_v45 = vrot.slane %v4512_v24, 2  ;;  %v5122_v4 = vld [vmem:[#allocation13 + $0xba8] sm:$0xff]  ;;  %v9967_v41 = vcombine.low %v5109_v50, %v5113_v51 }
 0x4ae   : > { %10342 = vpow2.f32 %v4717_v26  ;;  %v4459_v59 = vrot.slane %v4458_v47, 1 }
 0x4af   : > { %10344 = vpow2.f32 %v4723_v34  ;;  %v4514_v18 = vadd.f32 %v4513_v45, %v4512_v24  ;;  %v9977_v24 = vcombine.low %v5118_v3, %v5122_v4 }
 0x4b0   : > { %7960 = vmatpush1.bf16.msra.mxu0 %v9919_v46  ;;  %8124 = vmatpush1.bf16.msra.mxu1 %v9921_v60  ;;  %v9951_v46 = vcombine.low %v5093_v20, %v5097_v16  ;;  %v9953_v60 = vcombine.low %v5094_v21, %v5098_v25  ;;  %v4460_v58 = vadd.f32 %v4459_v59, %v4458_v47  ;;  %v5126_v20 = vld [vmem:[#allocation13 + $0xbc8] sm:$0xff] }
 0x4b1   : > { %7961 = vmatprep.subr.bf16.mxu0 %v9928_v10  ;;  %8125 = vmatprep.subr.bf16.mxu1 %v9930_v49  ;;  %v9960_v10 = vcombine.high %v5101_v0, %v5105_v32  ;;  %v9962_v49 = vcombine.high %v5102_v35, %v5106_v1  ;;  %v4515_v56 = vrot.slane %v4514_v18, 1  ;;  %v5130_v16 = vld [vmem:[#allocation13 + $0xbe8] sm:$0xff] }
 0x4b2   : > { %v11985_v25 = vmul.f32 0.125, %v4460_v58  ;;  %v5134_v0 = vld [vmem:[#allocation13 + $0xc08] sm:$0xff]  ;;  %v9985_v45 = vcombine.low %v5126_v20, %v5130_v16 }
 0x4b3   : > { %v4516_v21 = vadd.f32 %v4515_v56, %v4514_v18  ;;  %v5138_v32 = vld [vmem:[#allocation13 + $0xc28] sm:$0xff] }
 0x4b4   : > { %7962 = vmatpush1.bf16.msra.mxu0 %v9927_v61  ;;  %8126 = vmatpush1.bf16.msra.mxu1 %v9929_v63  ;;  %v9968_v61 = vcombine.high %v5109_v50, %v5113_v51  ;;  %v9970_v63 = vcombine.high %v5110_v7, %v5114_v52  ;;  %v4545_v1 = vmul.f32 %v11985_v25, %v11985_v25  ;;  %v5145_v50 = vld [vmem:[#allocation13 + $0xc60] sm:$0xff]  ;;  %v5142_v51 = vld [vmem:[#allocation13 + $0xc48] sm:$0xff] }
 0x4b5   : > { %7963 = vmatprep.subr.bf16.mxu0 %v9936_v2  ;;  %8127 = vmatprep.subr.bf16.mxu1 %v9938_v42  ;;  %v5117_v2 = vld [vmem:[#allocation13 + $0xb80] sm:$0xff]  ;;  %v4537_v35 = vmul.f32 0.125, %v4516_v21  ;;  %v5146_v7 = vld [vmem:[#allocation13 + $0xc68] sm:$0xff] }
 0x4b6   : > { %v5121_v42 = vld [vmem:[#allocation13 + $0xba0] sm:$0xff]  ;;  %v10001_v56 = vcombine.low %v5142_v51, %v5146_v7 }
 0x4b7   : > { %v9975_v23 = vcombine.low %v5117_v2, %v5121_v42  ;;  %v4553_v52 = vsub.f32 %v4537_v35, %v4545_v1  ;;  %v5177_v35 = vld [vmem:[#allocation13 + $0xd60] sm:$0xff]  ;;  %v5174_v1 = vld [vmem:[#allocation13 + $0xd48] sm:$0xff] }
 0x4b8   : > { %7964 = vmatpush1.bf16.msra.mxu0 %v9935_v9  ;;  %8128 = vmatpush1.bf16.msra.mxu1 %v9937_v48  ;;  %v10343_v37 = vpop.eup %10342  ;;  %v9976_v9 = vcombine.high %v5117_v2, %v5121_v42  ;;  %v9978_v48 = vcombine.high %v5118_v3, %v5122_v4  ;;  %v5153_v2 = vld [vmem:[#allocation13 + $0xca0] sm:$0xff]  ;;  %v5150_v42 = vld [vmem:[#allocation13 + $0xc88] sm:$0xff] }
 0x4b9   : > { %7965 = vmatprep.subr.bf16.mxu0 %v9944_v12  ;;  %8129 = vmatprep.subr.bf16.mxu1 %v9946_v13  ;;  %v5125_v12 = vld [vmem:[#allocation13 + $0xbc0] sm:$0xff]  ;;  %v10345_v17 = vpop.eup %10344  ;;  %v9603_v26 = vadd.f32 -1.0, %v10343_v37  ;;  %v5154_v3 = vld [vmem:[#allocation13 + $0xca8] sm:$0xff]  ;;  %v4561_v58 = vmax.f32 %v4553_v52, 0.0 }
 0x4ba   : > { %v5129_v13 = vld [vmem:[#allocation13 + $0xbe0] sm:$0xff]  ;;  %v9606_v34 = vadd.f32 -1.0, %v10345_v17 }
 0x4bb   : > { %v9983_v47 = vcombine.low %v5125_v12, %v5129_v13  ;;  %v5157_v37 = vld [vmem:[#allocation13 + $0xcc0] sm:$0xff] }
 0x4bc   : > { %7966 = vmatpush1.bf16.msra.mxu0 %v9943_v27  ;;  %8130 = vmatpush1.bf16.msra.mxu1 %v9945_v43  ;;  %v9984_v27 = vcombine.high %v5125_v12, %v5129_v13  ;;  %v9986_v43 = vcombine.high %v5126_v20, %v5130_v16  ;;  %v4740_v18 = vsel %vm4700_vm6, %v11980_v5, %v9606_v34  ;;  %v5162_v12 = vld [vmem:[#allocation13 + $0xce8] sm:$0xff]  ;;  %v4577_v13 = vadd.f32 1e-05, %v4561_v58 }
 0x4bd   : > { %7967 = vmatprep.subr.bf16.mxu0 %v9952_v57  ;;  %8131 = vmatprep.subr.bf16.mxu1 %v9954_v29  ;;  %v5133_v57 = vld [vmem:[#allocation13 + $0xc00] sm:$0xff]  ;;  %v11995_v4 = vpack.c.bf16 %v4740_v18, %v4740_v18  ;;  %v10009_v16 = vcombine.low %v5150_v42, %v5154_v3  ;;  %v5178_v34 = vld [vmem:[#allocation13 + $0xd68] sm:$0xff]  ;;  %v4623_v58 = vrot.slane %v11963_v53, %v11953_v33 }
 0x4be   : > { %v5137_v29 = vld [vmem:[#allocation13 + $0xc20] sm:$0xff]  ;;  %10346 = vrsqrt.f32 %v4577_v13 }
 0x4c0   : > { %7968 = vmatpush1.bf16.msra.mxu0 %v9951_v46  ;;  %8132 = vmatpush1.bf16.msra.mxu1 %v9953_v60  ;;  %v4737_v46 = vsel %vm4697_vm5, %v11978_v15, %v9603_v26  ;;  %v9992_v60 = vcombine.high %v5133_v57, %v5137_v29  ;;  %v5166_v26 = vld [vmem:[#allocation13 + $0xd08] sm:$0xff] }
 0x4c1   : > { %7969 = vmatprep.subr.bf16.mxu0 %v9960_v10  ;;  %8133 = vmatprep.subr.bf16.mxu1 %v9962_v49  ;;  %v9994_v10 = vcombine.high %v5134_v0, %v5138_v32  ;;  %v5141_v49 = vld [vmem:[#allocation13 + $0xc40] sm:$0xff]  ;;  %v11992_v59 = vpack.c.bf16 %v4737_v46, %v4737_v46 }
 0x4c2   : > { %v10000_v15 = vcombine.high %v5141_v49, %v5145_v50  ;;  %v9999_v5 = vcombine.low %v5141_v49, %v5145_v50  ;;  %v5185_v49 = vld [vmem:[#allocation13 + $0xda0] sm:$0xff]  ;;  %v5182_v50 = vld [vmem:[#allocation13 + $0xd88] sm:$0xff] }
 0x4c4   : > { %7970 = vmatpush1.bf16.msra.mxu0 %v9959_v55  ;;  %8134 = vmatpush1.bf16.msra.mxu1 %v9961_v22  ;;  %v9991_v55 = vcombine.low %v5133_v57, %v5137_v29  ;;  %v9993_v22 = vcombine.low %v5134_v0, %v5138_v32  ;;  %v5173_v32 = vld [vmem:[#allocation13 + $0xd40] sm:$0xff] }
 0x4c5   : > { %7971 = vmatprep.subr.bf16.mxu0 %v9968_v61  ;;  %8135 = vmatprep.subr.bf16.mxu1 %v9970_v63  ;;  %v10002_v61 = vcombine.high %v5142_v51, %v5146_v7  ;;  %v5149_v63 = vld [vmem:[#allocation13 + $0xc80] sm:$0xff]  ;;  %v10032_v46 = vcombine.high %v5173_v32, %v5177_v35  ;;  %v5186_v51 = vld [vmem:[#allocation13 + $0xda8] sm:$0xff]  ;;  %v4569_v7 = vsub.f32 %v11967_v44, %v11985_v25 }
 0x4c6   : > { %v10007_v20 = vcombine.low %v5149_v63, %v5153_v2  ;;  %v10031_v18 = vcombine.low %v5173_v32, %v5177_v35  ;;  %v10041_v25 = vcombine.low %v5182_v50, %v5186_v51  ;;  %v5214_v32 = vld [vmem:[#allocation13 + $0xe88] sm:$0xff] }
 0x4c7   : > { %v5218_v35 = vld [vmem:[#allocation13 + $0xea8] sm:$0xff] }
 0x4c8   : > { %7972 = vmatpush1.bf16.msra.mxu0 %v9967_v41  ;;  %8136 = vmatpush1.bf16.msra.mxu1 %v9969_v39  ;;  %v10008_v41 = vcombine.high %v5149_v63, %v5153_v2  ;;  %v10010_v39 = vcombine.high %v5150_v42, %v5154_v3  ;;  %v10347_v52 = vpop.eup %10346  ;;  %v5193_v63 = vld [vmem:[#allocation13 + $0xde0] sm:$0xff]  ;;  %v5190_v2 = vld [vmem:[#allocation13 + $0xdc8] sm:$0xff] }
 0x4c9   : > { %7973 = vmatprep.subr.bf16.mxu0 %v9976_v9  ;;  %8137 = vmatprep.subr.bf16.mxu1 %v9978_v48  ;;  %v5161_v9 = vld [vmem:[#allocation13 + $0xce0] sm:$0xff]  ;;  %v5158_v48 = vld [vmem:[#allocation13 + $0xcc8] sm:$0xff]  ;;  %v4593_v3 = vmul.f32 %v10347_v52, %v4569_v7  ;;  %v10073_v52 = vcombine.low %v5214_v32, %v5218_v35 }
 0x4ca   : > { %v10016_v21 = vcombine.high %v5157_v37, %v5161_v9  ;;  %v10018_v17 = vcombine.high %v5158_v48, %v5162_v12  ;;  %v10017_v57 = vcombine.low %v5158_v48, %v5162_v12  ;;  %v5194_v42 = vld [vmem:[#allocation13 + $0xde8] sm:$0xff]  ;;  %v4672_v12 = vrot.slane %v11971_v62, %v11953_v33 }
 0x4cb   : > { %v4642_v48 = vmul.f32 %v4623_v58, %v4593_v3  ;;  %v10049_v53 = vcombine.low %v5190_v2, %v5194_v42 }
 0x4cc   : > { %7974 = vmatpush1.bf16.msra.mxu0 %v9975_v23  ;;  %8138 = vmatpush1.bf16.msra.mxu1 %v9977_v24  ;;  %v5165_v23 = vld [vmem:[#allocation13 + $0xd00] sm:$0xff] }
 0x4cd   : > { %7975 = vmatprep.subr.bf16.mxu0 %v9984_v27  ;;  %8139 = vmatprep.subr.bf16.mxu1 %v9986_v43  ;;  %v5169_v24 = vld [vmem:[#allocation13 + $0xd20] sm:$0xff]  ;;  %v5170_v27 = vld [vmem:[#allocation13 + $0xd28] sm:$0xff]  ;;  %v10015_v43 = vcombine.low %v5157_v37, %v5161_v9 }
 0x4ce   : > { %v10024_v29 = vcombine.high %v5165_v23, %v5169_v24  ;;  %v10026_v0 = vcombine.high %v5166_v26, %v5170_v27  ;;  %v5198_v37 = vld [vmem:[#allocation13 + $0xe08] sm:$0xff] }
 0x4cf   : > { %v5202_v9 = vld [vmem:[#allocation13 + $0xe28] sm:$0xff] }
 0x4d0   : > { %7976 = vmatpush1.bf16.msra.mxu0 %v9983_v47  ;;  %8140 = vmatpush1.bf16.msra.mxu1 %v9985_v45  ;;  %v10023_v47 = vcombine.low %v5165_v23, %v5169_v24  ;;  %v10025_v45 = vcombine.low %v5166_v26, %v5170_v27  ;;  %v5206_v23 = vld [vmem:[#allocation13 + $0xe48] sm:$0xff]  ;;  %v12007_v26 = vadd.f32 %v4672_v12, %v4642_v48  ;;  %v5245_v48 = vld [vmem:[#allocation13 + $0xf80] sm:$0xff] }
 0x4d1   : > { %7986 = vmatprep.subr.bf16.mxu0 %v9992_v60  ;;  %8150 = vmatprep.subr.bf16.mxu1 %v9994_v10  ;;  %v10034_v60 = vcombine.high %v5174_v1, %v5178_v34  ;;  %v5181_v10 = vld [vmem:[#allocation13 + $0xd80] sm:$0xff]  ;;  %v5210_v24 = vld [vmem:[#allocation13 + $0xe68] sm:$0xff] }
 0x4d2   : > { %v10039_v44 = vcombine.low %v5181_v10, %v5185_v49  ;;  %v5249_v12 = vld [vmem:[#allocation13 + $0xfa0] sm:$0xff]  ;;  %vm4699_vm7 = vcmp.gt.f32.partialorder %v12007_v26, 0.0 }
 0x4d3   : > { %7978 = vmatmul.mubr.bf16.vlgmr.msra.gmra.mrb[0].mxu0 %v11992_v59  ;;  %8142 = vmatmul.mubr.bf16.vlgmr.msra.gmra.mrb[0].mxu1 %v11992_v59 }
 0x4d4   : > { %7987 = vmatpush1.bf16.msra.mxu0 %v9991_v55  ;;  %8151 = vmatpush1.bf16.msra.mxu1 %v9993_v22  ;;  %v10033_v55 = vcombine.low %v5174_v1, %v5178_v34  ;;  %v10040_v22 = vcombine.high %v5181_v10, %v5185_v49  ;;  %v4707_v1 = vmin.f32 %v12007_v26, 0.0  ;;  %v5225_v10 = vld [vmem:[#allocation13 + $0xee0] sm:$0xff]  ;;  %v5222_v49 = vld [vmem:[#allocation13 + $0xec8] sm:$0xff] }
 0x4d5   : > { %7988 = vmatprep.subr.bf16.mxu0 %v10000_v15  ;;  %8152 = vmatprep.subr.bf16.mxu1 %v10002_v61  ;;  %v10042_v15 = vcombine.high %v5182_v50, %v5186_v51  ;;  %v5189_v61 = vld [vmem:[#allocation13 + $0xdc0] sm:$0xff]  ;;  %v5226_v50 = vld [vmem:[#allocation13 + $0xee8] sm:$0xff] }
 0x4d6   : > { %8018 = vmatprep.mubr.bf16.mxu0 %v11995_v4  ;;  %8182 = vmatprep.mubr.bf16.mxu1 %v11995_v4  ;;  %v10047_v13 = vcombine.low %v5189_v61, %v5193_v63  ;;  %v4721_v51 = vmul.f32 1.442695, %v4707_v1  ;;  %v4751_v1 = vld [vmem:[#allocation13 + $0x10] sm:$0xff] }
 0x4d8   : > { %7989 = vmatpush1.bf16.msra.mxu0 %v9999_v5  ;;  %8153 = vmatpush1.bf16.msra.mxu1 %v10001_v56  ;;  %v10048_v5 = vcombine.high %v5189_v61, %v5193_v63  ;;  %v10050_v56 = vcombine.high %v5190_v2, %v5194_v42  ;;  %v5230_v61 = vld [vmem:[#allocation13 + $0xf08] sm:$0xff]  ;;  %10348 = vpow2.f32 %v4721_v51  ;;  %v10081_v42 = vcombine.low %v5222_v49, %v5226_v50  ;;  %v4759_v51 = vld [vmem:[#allocation13 + $0x50] sm:$0xff] }
 0x4d9   : > { %7990 = vmatprep.subr.bf16.mxu0 %v10008_v41  ;;  %8154 = vmatprep.subr.bf16.mxu1 %v10010_v39  ;;  %v5197_v41 = vld [vmem:[#allocation13 + $0xe00] sm:$0xff]  ;;  %v5234_v63 = vld [vmem:[#allocation13 + $0xf28] sm:$0xff] }
 0x4da   : > { %v5201_v39 = vld [vmem:[#allocation13 + $0xe20] sm:$0xff]  ;;  %v10090_v58 = vcombine.high %v5230_v61, %v5234_v63 }
 0x4db   : > { %v10055_v27 = vcombine.low %v5197_v41, %v5201_v39 }
 0x4dc   : > { %7991 = vmatpush1.bf16.msra.mxu0 %v10007_v20  ;;  %8155 = vmatpush1.bf16.msra.mxu1 %v10009_v16  ;;  %v10056_v20 = vcombine.high %v5197_v41, %v5201_v39  ;;  %v10058_v16 = vcombine.high %v5198_v37, %v5202_v9  ;;  %v10089_v39 = vcombine.low %v5230_v61, %v5234_v63 }
 0x4dd   : > { %7992 = vmatprep.subr.bf16.mxu0 %v10016_v21  ;;  %8156 = vmatprep.subr.bf16.mxu1 %v10018_v17  ;;  %v5205_v21 = vld [vmem:[#allocation13 + $0xe40] sm:$0xff] }
 0x4de   : > { %v5209_v17 = vld [vmem:[#allocation13 + $0xe60] sm:$0xff] }
 0x4df   : > { %v10064_v62 = vcombine.high %v5205_v21, %v5209_v17  ;;  %v10063_v34 = vcombine.low %v5205_v21, %v5209_v17  ;;  %v10104_v17 = vcombine.high %v5245_v48, %v5249_v12 }
 0x4e0   : > { %7993 = vmatpush1.bf16.msra.mxu0 %v10015_v43  ;;  %8157 = vmatpush1.bf16.msra.mxu1 %v10017_v57  ;;  %v10057_v43 = vcombine.low %v5198_v37, %v5202_v9  ;;  %v10066_v57 = vcombine.high %v5206_v23, %v5210_v24 }
 0x4e1   : > { %7994 = vmatprep.subr.bf16.mxu0 %v10024_v29  ;;  %8158 = vmatprep.subr.bf16.mxu1 %v10026_v0  ;;  %v5213_v29 = vld [vmem:[#allocation13 + $0xe80] sm:$0xff] }
 0x4e2   : > { %v5217_v0 = vld [vmem:[#allocation13 + $0xea0] sm:$0xff]  ;;  %v10349_v21 = vpop.eup %10348 }
 0x4e3   : > { %v10071_v7 = vcombine.low %v5213_v29, %v5217_v0 }
 0x4e4   : > { %7995 = vmatpush1.bf16.msra.mxu0 %v10023_v47  ;;  %8159 = vmatpush1.bf16.msra.mxu1 %v10025_v45  ;;  %v10065_v47 = vcombine.low %v5206_v23, %v5210_v24  ;;  %v10072_v45 = vcombine.high %v5213_v29, %v5217_v0  ;;  %v5253_v24 = vld [vmem:[#allocation13 + $0xfc0] sm:$0xff]  ;;  %v9605_v0 = vadd.f32 -1.0, %v10349_v21  ;;  %v4788_v21 = vld [vmem:[#allocation13 + $0x138] sm:$0xff] }
 0x4e5   : > { %7996 = vmatprep.subr.bf16.mxu0 %v10032_v46  ;;  %8160 = vmatprep.subr.bf16.mxu1 %v10034_v60  ;;  %v10074_v46 = vcombine.high %v5214_v32, %v5218_v35  ;;  %v5221_v60 = vld [vmem:[#allocation13 + $0xec0] sm:$0xff] }
 0x4e6   : > { %v10079_v2 = vcombine.low %v5221_v60, %v5225_v10 }
 0x4e8   : > { %7997 = vmatpush1.bf16.msra.mxu0 %v10031_v18  ;;  %8161 = vmatpush1.bf16.msra.mxu1 %v10033_v55  ;;  %v10080_v18 = vcombine.high %v5221_v60, %v5225_v10  ;;  %v10082_v55 = vcombine.high %v5222_v49, %v5226_v50  ;;  %v4739_v10 = vsel %vm4699_vm7, %v12007_v26, %v9605_v0  ;;  %v4771_v26 = vld [vmem:[#allocation13 + $0xb0] sm:$0xff] }
 0x4e9   : > { %7998 = vmatprep.subr.bf16.mxu0 %v10040_v22  ;;  %8162 = vmatprep.subr.bf16.mxu1 %v10042_v15  ;;  %v5229_v22 = vld [vmem:[#allocation13 + $0xf00] sm:$0xff] }
 0x4ea   : > { %v5233_v15 = vld [vmem:[#allocation13 + $0xf20] sm:$0xff] }
 0x4eb   : > { %v10088_v3 = vcombine.high %v5229_v22, %v5233_v15  ;;  %v10087_v41 = vcombine.low %v5229_v22, %v5233_v15 }
 0x4ec   : > { %7999 = vmatpush1.bf16.msra.mxu0 %v10039_v44  ;;  %8163 = vmatpush1.bf16.msra.mxu1 %v10041_v25  ;;  %v5237_v44 = vld [vmem:[#allocation13 + $0xf40] sm:$0xff] }
 0x4ed   : > { %8000 = vmatprep.subr.bf16.mxu0 %v10048_v5  ;;  %8164 = vmatprep.subr.bf16.mxu1 %v10050_v56  ;;  %v5241_v25 = vld [vmem:[#allocation13 + $0xf60] sm:$0xff]  ;;  %v5238_v5 = vld [vmem:[#allocation13 + $0xf48] sm:$0xff] }
 0x4ee   : > { %v5242_v56 = vld [vmem:[#allocation13 + $0xf68] sm:$0xff]  ;;  %v10096_v37 = vcombine.high %v5237_v44, %v5241_v25 }
 0x4ef   : > { %v10098_v9 = vcombine.high %v5238_v5, %v5242_v56 }
 0x4f0   : > { %8001 = vmatpush1.bf16.msra.mxu0 %v10047_v13  ;;  %8165 = vmatpush1.bf16.msra.mxu1 %v10049_v53  ;;  %v5246_v13 = vld [vmem:[#allocation13 + $0xf88] sm:$0xff] }
 0x4f1   : > { %8002 = vmatprep.subr.bf16.mxu0 %v10056_v20  ;;  %8166 = vmatprep.subr.bf16.mxu1 %v10058_v16  ;;  %v5250_v53 = vld [vmem:[#allocation13 + $0xfa8] sm:$0xff]  ;;  %v10095_v20 = vcombine.low %v5237_v44, %v5241_v25  ;;  %v10097_v16 = vcombine.low %v5238_v5, %v5242_v56  ;;  %v4775_v56 = vld [vmem:[#allocation13 + $0xd0] sm:$0xff] }
 0x4f2   : > { %v10106_v23 = vcombine.high %v5246_v13, %v5250_v53  ;;  %v10105_v29 = vcombine.low %v5246_v13, %v5250_v53  ;;  %v4783_v53 = vld [vmem:[#allocation13 + $0x110] sm:$0xff] }
 0x4f4   : > { %8003 = vmatpush1.bf16.msra.mxu0 %v10055_v27  ;;  %8167 = vmatpush1.bf16.msra.mxu1 %v10057_v43  ;;  %v5257_v27 = vld [vmem:[#allocation13 + $0xfe0] sm:$0xff]  ;;  %v5254_v43 = vld [vmem:[#allocation13 + $0xfc8] sm:$0xff] }
 0x4f5   : > { %8004 = vmatprep.subr.bf16.mxu0 %v10064_v62  ;;  %8168 = vmatprep.subr.bf16.mxu1 %v10066_v57  ;;  %v5258_v62 = vld [vmem:[#allocation13 + $0xfe8] sm:$0xff]  ;;  %v10103_v57 = vcombine.low %v5245_v48, %v5249_v12  ;;  %v10112_v32 = vcombine.high %v5253_v24, %v5257_v27 }
 0x4f6   : > { %v10114_v35 = vcombine.high %v5254_v43, %v5258_v62  ;;  %v10113_v60 = vcombine.low %v5254_v43, %v5258_v62  ;;  %v4795_v43 = vld [vmem:[#allocation13 + $0x170] sm:$0xff]  ;;  %v4792_v62 = vld [vmem:[#allocation13 + $0x158] sm:$0xff] }
 0x4f8   : > { %8005 = vmatpush1.bf16.msra.mxu0 %v10063_v34  ;;  %8169 = vmatpush1.bf16.msra.mxu1 %v10065_v47  ;;  %v4755_v34 = vld [vmem:[#allocation13 + $0x30] sm:$0xff]  ;;  %v4752_v47 = vld [vmem:[#allocation13 + $0x18] sm:$0xff] }
 0x4f9   : > { %8006 = vmatprep.subr.bf16.mxu0 %v10072_v45  ;;  %8170 = vmatprep.subr.bf16.mxu1 %v10074_v46  ;;  %v4756_v45 = vld [vmem:[#allocation13 + $0x38] sm:$0xff]  ;;  %v10111_v46 = vcombine.low %v5253_v24, %v5257_v27  ;;  %v9612_v49 = vcombine.high %v4751_v1, %v4755_v34  ;;  %v9611_v22 = vcombine.low %v4751_v1, %v4755_v34  ;;  %v4791_v27 = vld [vmem:[#allocation13 + $0x150] sm:$0xff] }
 0x4fa   : > { %v9614_v50 = vcombine.high %v4752_v47, %v4756_v45  ;;  %v9613_v15 = vcombine.low %v4752_v47, %v4756_v45  ;;  %v4799_v1 = vld [vmem:[#allocation13 + $0x190] sm:$0xff]  ;;  %v4800_v47 = vld [vmem:[#allocation13 + $0x198] sm:$0xff] }
 0x4fb   : > { %v4803_v34 = vld [vmem:[#allocation13 + $0x1b0] sm:$0xff]  ;;  %v4804_v45 = vld [vmem:[#allocation13 + $0x1b8] sm:$0xff] }
 0x4fc   : > { %8007 = vmatpush1.bf16.msra.mxu0 %v10071_v7  ;;  %8171 = vmatpush1.bf16.msra.mxu1 %v10073_v52  ;;  %v4763_v7 = vld [vmem:[#allocation13 + $0x70] sm:$0xff]  ;;  %v4760_v52 = vld [vmem:[#allocation13 + $0x58] sm:$0xff] }
 0x4fd   : > { %8008 = vmatprep.subr.bf16.mxu0 %v10080_v18  ;;  %8172 = vmatprep.subr.bf16.mxu1 %v10082_v55  ;;  %v4764_v18 = vld [vmem:[#allocation13 + $0x78] sm:$0xff]  ;;  %v12012_v55 = vpack.c.bf16 %v4739_v10, %v4739_v10  ;;  %v9620_v61 = vcombine.high %v4759_v51, %v4763_v7  ;;  %v9660_v10 = vcombine.high %v4799_v1, %v4803_v34 }
 0x4fe   : > { %v9622_v63 = vcombine.high %v4760_v52, %v4764_v18  ;;  %v9621_v44 = vcombine.low %v4760_v52, %v4764_v18  ;;  %v4812_v52 = vld [vmem:[#allocation13 + $0x1f8] sm:$0xff]  ;;  %v9659_v18 = vcombine.low %v4799_v1, %v4803_v34  ;;  %v4851_v1 = vld [vmem:[#allocation13 + $0x330] sm:$0xff] }
 0x4ff   : > { %v4848_v34 = vld [vmem:[#allocation13 + $0x318] sm:$0xff] }
 0x500   : > { %8009 = vmatpush1.bf16.msra.mxu0 %v10079_v2  ;;  %8173 = vmatpush1.bf16.msra.mxu1 %v10081_v42  ;;  %v4767_v2 = vld [vmem:[#allocation13 + $0x90] sm:$0xff]  ;;  %v4768_v42 = vld [vmem:[#allocation13 + $0x98] sm:$0xff] }
 0x501   : > { %8010 = vmatprep.subr.bf16.mxu0 %v10088_v3  ;;  %8174 = vmatprep.subr.bf16.mxu1 %v10090_v58  ;;  %v4772_v3 = vld [vmem:[#allocation13 + $0xb8] sm:$0xff]  ;;  %v9619_v58 = vcombine.low %v4759_v51, %v4763_v7  ;;  %v9628_v25 = vcombine.high %v4767_v2, %v4771_v26  ;;  %v4811_v51 = vld [vmem:[#allocation13 + $0x1f0] sm:$0xff] }
 0x502   : > { %v9630_v5 = vcombine.high %v4768_v42, %v4772_v3  ;;  %v9629_v48 = vcombine.low %v4768_v42, %v4772_v3  ;;  %v4808_v7 = vld [vmem:[#allocation13 + $0x1d8] sm:$0xff] }
 0x503   : > { %v4820_v42 = vld [vmem:[#allocation13 + $0x238] sm:$0xff] }
 0x504   : > { %8011 = vmatpush1.bf16.msra.mxu0 %v10087_v41  ;;  %8175 = vmatpush1.bf16.msra.mxu1 %v10089_v39  ;;  %v4779_v41 = vld [vmem:[#allocation13 + $0xf0] sm:$0xff]  ;;  %v4776_v39 = vld [vmem:[#allocation13 + $0xd8] sm:$0xff] }
 0x505   : > { %8012 = vmatprep.subr.bf16.mxu0 %v10096_v37  ;;  %8176 = vmatprep.subr.bf16.mxu1 %v10098_v9  ;;  %v4780_v37 = vld [vmem:[#allocation13 + $0xf8] sm:$0xff]  ;;  %v9627_v9 = vcombine.low %v4767_v2, %v4771_v26  ;;  %v9636_v12 = vcombine.high %v4775_v56, %v4779_v41  ;;  %v4819_v2 = vld [vmem:[#allocation13 + $0x230] sm:$0xff] }
 0x506   : > { %v9638_v13 = vcombine.high %v4776_v39, %v4780_v37  ;;  %v4816_v26 = vld [vmem:[#allocation13 + $0x218] sm:$0xff] }
 0x508   : > { %8013 = vmatpush1.bf16.msra.mxu0 %v10095_v20  ;;  %8177 = vmatpush1.bf16.msra.mxu1 %v10097_v16  ;;  %v4787_v20 = vld [vmem:[#allocation13 + $0x130] sm:$0xff]  ;;  %v4784_v16 = vld [vmem:[#allocation13 + $0x118] sm:$0xff] }
 0x509   : > { %8014 = vmatprep.subr.bf16.mxu0 %v10104_v17  ;;  %8178 = vmatprep.subr.bf16.mxu1 %v10106_v23  ;;  %v9635_v17 = vcombine.low %v4775_v56, %v4779_v41  ;;  %v9637_v23 = vcombine.low %v4776_v39, %v4780_v37  ;;  %v9644_v24 = vcombine.high %v4783_v53, %v4787_v20  ;;  %v4827_v56 = vld [vmem:[#allocation13 + $0x270] sm:$0xff]  ;;  %v4824_v41 = vld [vmem:[#allocation13 + $0x258] sm:$0xff] }
 0x50a   : > { %v9645_v0 = vcombine.low %v4784_v16, %v4788_v21  ;;  %v4828_v39 = vld [vmem:[#allocation13 + $0x278] sm:$0xff] }
 0x50c   : > { %8015 = vmatpush1.bf16.msra.mxu0 %v10103_v57  ;;  %8179 = vmatpush1.bf16.msra.mxu1 %v10105_v29  ;;  %v4796_v57 = vld [vmem:[#allocation13 + $0x178] sm:$0xff]  ;;  %v9643_v29 = vcombine.low %v4783_v53, %v4787_v20  ;;  %v4835_v53 = vld [vmem:[#allocation13 + $0x2b0] sm:$0xff] }
 0x50d   : > { %8016 = vmatprep.subr.bf16.mxu0 %v10112_v32  ;;  %8180 = vmatprep.subr.bf16.mxu1 %v10114_v35  ;;  %v9652_v32 = vcombine.high %v4791_v27, %v4795_v43  ;;  %v9654_v35 = vcombine.high %v4792_v62, %v4796_v57  ;;  %v4832_v20 = vld [vmem:[#allocation13 + $0x298] sm:$0xff] }
 0x510   : > { %8017 = vmatpush1.bf16.msra.mxu0 %v10111_v46  ;;  %8181 = vmatpush1.bf16.msra.mxu1 %v10113_v60  ;;  %v9651_v46 = vcombine.low %v4791_v27, %v4795_v43  ;;  %v9653_v60 = vcombine.low %v4792_v62, %v4796_v57  ;;  %v4843_v27 = vld [vmem:[#allocation13 + $0x2f0] sm:$0xff]  ;;  %v4840_v43 = vld [vmem:[#allocation13 + $0x2d8] sm:$0xff] }
 0x511   : > { %8191 = vmatprep.subr.bf16.mxu0 %v9612_v49  ;;  %8355 = vmatprep.subr.bf16.mxu1 %v9614_v50  ;;  %v9662_v49 = vcombine.high %v4800_v47, %v4804_v45  ;;  %v4807_v50 = vld [vmem:[#allocation13 + $0x1d0] sm:$0xff]  ;;  %v4844_v62 = vld [vmem:[#allocation13 + $0x2f8] sm:$0xff] }
 0x512   : > { %v9667_v3 = vcombine.low %v4807_v50, %v4811_v51 }
 0x513   : > { %8019 = vmatmul.mubr.bf16.vlgmr.msra.gmra.mrb[0].mxu0 %v12012_v55  ;;  %8183 = vmatmul.mubr.bf16.vlgmr.msra.gmra.mrb[0].mxu1 %v12012_v55 }
 0x514   : > { %8192 = vmatpush1.bf16.msra.mxu0 %v9611_v22  ;;  %8356 = vmatpush1.bf16.msra.mxu1 %v9613_v15  ;;  %v9661_v22 = vcombine.low %v4800_v47, %v4804_v45  ;;  %v9668_v15 = vcombine.high %v4807_v50, %v4811_v51  ;;  %v4852_v47 = vld [vmem:[#allocation13 + $0x338] sm:$0xff]  ;;  %v4859_v50 = vld [vmem:[#allocation13 + $0x370] sm:$0xff] }
 0x515   : > { %8193 = vmatprep.subr.bf16.mxu0 %v9620_v61  ;;  %8357 = vmatprep.subr.bf16.mxu1 %v9622_v63  ;;  %v9670_v61 = vcombine.high %v4808_v7, %v4812_v52  ;;  %v4815_v63 = vld [vmem:[#allocation13 + $0x210] sm:$0xff]  ;;  %v4856_v51 = vld [vmem:[#allocation13 + $0x358] sm:$0xff] }
 0x516   : > { %8223 = vmatprep.mubr.bf16.mxu0 %v11848_v38  ;;  %8387 = vmatprep.mubr.bf16.mxu1 %v11848_v38  ;;  %v9646_v38 = vcombine.high %v4784_v16, %v4788_v21  ;;  %v9675_v37 = vcombine.low %v4815_v63, %v4819_v2  ;;  %v4836_v16 = vld [vmem:[#allocation13 + $0x2b8] sm:$0xff] }
 0x518   : > { %8194 = vmatpush1.bf16.msra.mxu0 %v9619_v58  ;;  %8358 = vmatpush1.bf16.msra.mxu1 %v9621_v44  ;;  %v9669_v58 = vcombine.low %v4808_v7, %v4812_v52  ;;  %v9676_v44 = vcombine.high %v4815_v63, %v4819_v2  ;;  %v4860_v7 = vld [vmem:[#allocation13 + $0x378] sm:$0xff]  ;;  %v4867_v63 = vld [vmem:[#allocation13 + $0x3b0] sm:$0xff] }
 0x519   : > { %8195 = vmatprep.subr.bf16.mxu0 %v9628_v25  ;;  %8359 = vmatprep.subr.bf16.mxu1 %v9630_v5  ;;  %v9678_v25 = vcombine.high %v4816_v26, %v4820_v42  ;;  %v4823_v5 = vld [vmem:[#allocation13 + $0x250] sm:$0xff]  ;;  %v4864_v2 = vld [vmem:[#allocation13 + $0x398] sm:$0xff] }
 0x51a   : > { %v9683_v21 = vcombine.low %v4823_v5, %v4827_v56 }
 0x51c   : > { %8196 = vmatpush1.bf16.msra.mxu0 %v9627_v9  ;;  %8360 = vmatpush1.bf16.msra.mxu1 %v9629_v48  ;;  %v9677_v9 = vcombine.low %v4816_v26, %v4820_v42  ;;  %v9684_v48 = vcombine.high %v4823_v5, %v4827_v56  ;;  %v4868_v26 = vld [vmem:[#allocation13 + $0x3b8] sm:$0xff]  ;;  %v4875_v5 = vld [vmem:[#allocation13 + $0x3f0] sm:$0xff] }
 0x51d   : > { %8197 = vmatprep.subr.bf16.mxu0 %v9636_v12  ;;  %8361 = vmatprep.subr.bf16.mxu1 %v9638_v13  ;;  %v9686_v12 = vcombine.high %v4824_v41, %v4828_v39  ;;  %v4831_v13 = vld [vmem:[#allocation13 + $0x290] sm:$0xff]  ;;  %v4872_v56 = vld [vmem:[#allocation13 + $0x3d8] sm:$0xff] }
 0x51e   : > { %v9691_v57 = vcombine.low %v4831_v13, %v4835_v53 }
 0x520   : > { %8198 = vmatpush1.bf16.msra.mxu0 %v9635_v17  ;;  %8362 = vmatpush1.bf16.msra.mxu1 %v9637_v23  ;;  %v9685_v17 = vcombine.low %v4824_v41, %v4828_v39  ;;  %v9692_v23 = vcombine.high %v4831_v13, %v4835_v53  ;;  %v4876_v41 = vld [vmem:[#allocation13 + $0x3f8] sm:$0xff]  ;;  %v4883_v13 = vld [vmem:[#allocation13 + $0x430] sm:$0xff] }
 0x521   : > { %8199 = vmatprep.subr.bf16.mxu0 %v9644_v24  ;;  %8363 = vmatprep.subr.bf16.mxu1 %v9646_v38  ;;  %v9694_v24 = vcombine.high %v4832_v20, %v4836_v16  ;;  %v4839_v38 = vld [vmem:[#allocation13 + $0x2d0] sm:$0xff]  ;;  %v4880_v53 = vld [vmem:[#allocation13 + $0x418] sm:$0xff] }
 0x522   : > { %v9699_v45 = vcombine.low %v4839_v38, %v4843_v27 }
 0x524   : > { %8200 = vmatpush1.bf16.msra.mxu0 %v9643_v29  ;;  %8364 = vmatpush1.bf16.msra.mxu1 %v9645_v0  ;;  %v9693_v29 = vcombine.low %v4832_v20, %v4836_v16  ;;  %v9700_v0 = vcombine.high %v4839_v38, %v4843_v27  ;;  %v4884_v20 = vld [vmem:[#allocation13 + $0x438] sm:$0xff]  ;;  %v4891_v38 = vld [vmem:[#allocation13 + $0x470] sm:$0xff] }
 0x525   : > { %8201 = vmatprep.subr.bf16.mxu0 %v9652_v32  ;;  %8365 = vmatprep.subr.bf16.mxu1 %v9654_v35  ;;  %v9702_v32 = vcombine.high %v4840_v43, %v4844_v62  ;;  %v4847_v35 = vld [vmem:[#allocation13 + $0x310] sm:$0xff]  ;;  %v4888_v27 = vld [vmem:[#allocation13 + $0x458] sm:$0xff] }
 0x526   : > { %v9707_v52 = vcombine.low %v4847_v35, %v4851_v1 }
 0x528   : > { %8202 = vmatpush1.bf16.msra.mxu0 %v9651_v46  ;;  %8366 = vmatpush1.bf16.msra.mxu1 %v9653_v60  ;;  %v9701_v46 = vcombine.low %v4840_v43, %v4844_v62  ;;  %v9708_v60 = vcombine.high %v4847_v35, %v4851_v1  ;;  %v4892_v43 = vld [vmem:[#allocation13 + $0x478] sm:$0xff]  ;;  %v4899_v35 = vld [vmem:[#allocation13 + $0x4b0] sm:$0xff] }
 0x529   : > { %8203 = vmatprep.subr.bf16.mxu0 %v9660_v10  ;;  %8367 = vmatprep.subr.bf16.mxu1 %v9662_v49  ;;  %v9710_v10 = vcombine.high %v4848_v34, %v4852_v47  ;;  %v4855_v49 = vld [vmem:[#allocation13 + $0x350] sm:$0xff]  ;;  %v4896_v1 = vld [vmem:[#allocation13 + $0x498] sm:$0xff] }
 0x52a   : > { %v9715_v42 = vcombine.low %v4855_v49, %v4859_v50 }
 0x52c   : > { %8204 = vmatpush1.bf16.msra.mxu0 %v9659_v18  ;;  %8368 = vmatpush1.bf16.msra.mxu1 %v9661_v22  ;;  %v9709_v18 = vcombine.low %v4848_v34, %v4852_v47  ;;  %v9716_v22 = vcombine.high %v4855_v49, %v4859_v50  ;;  %v4900_v34 = vld [vmem:[#allocation13 + $0x4b8] sm:$0xff]  ;;  %v4907_v49 = vld [vmem:[#allocation13 + $0x4f0] sm:$0xff] }
 0x52d   : > { %8205 = vmatprep.subr.bf16.mxu0 %v9668_v15  ;;  %8369 = vmatprep.subr.bf16.mxu1 %v9670_v61  ;;  %v9718_v15 = vcombine.high %v4856_v51, %v4860_v7  ;;  %v4863_v61 = vld [vmem:[#allocation13 + $0x390] sm:$0xff]  ;;  %v4904_v50 = vld [vmem:[#allocation13 + $0x4d8] sm:$0xff] }
 0x52e   : > { %v9723_v39 = vcombine.low %v4863_v61, %v4867_v63 }
 0x530   : > { %8206 = vmatpush1.bf16.msra.mxu0 %v9667_v3  ;;  %8370 = vmatpush1.bf16.msra.mxu1 %v9669_v58  ;;  %v9717_v3 = vcombine.low %v4856_v51, %v4860_v7  ;;  %v9724_v58 = vcombine.high %v4863_v61, %v4867_v63  ;;  %v4908_v51 = vld [vmem:[#allocation13 + $0x4f8] sm:$0xff] }
 0x531   : > { %8207 = vmatprep.subr.bf16.mxu0 %v9676_v44  ;;  %8371 = vmatprep.subr.bf16.mxu1 %v9678_v25  ;;  %v9726_v44 = vcombine.high %v4864_v2, %v4868_v26  ;;  %v4871_v25 = vld [vmem:[#allocation13 + $0x3d0] sm:$0xff]  ;;  %v4912_v61 = vld [vmem:[#allocation13 + $0x518] sm:$0xff] }
 0x532   : > { %v9731_v16 = vcombine.low %v4871_v25, %v4875_v5  ;;  %v4916_v63 = vld [vmem:[#allocation13 + $0x538] sm:$0xff] }
 0x534   : > { %8208 = vmatpush1.bf16.msra.mxu0 %v9675_v37  ;;  %8372 = vmatpush1.bf16.msra.mxu1 %v9677_v9  ;;  %v9725_v37 = vcombine.low %v4864_v2, %v4868_v26  ;;  %v9732_v9 = vcombine.high %v4871_v25, %v4875_v5  ;;  %v9765_v26 = vcombine.low %v4904_v50, %v4908_v51  ;;  %v4924_v25 = vld [vmem:[#allocation13 + $0x578] sm:$0xff] }
 0x535   : > { %8209 = vmatprep.subr.bf16.mxu0 %v9684_v48  ;;  %8373 = vmatprep.subr.bf16.mxu1 %v9686_v12  ;;  %v9734_v48 = vcombine.high %v4872_v56, %v4876_v41  ;;  %v4879_v12 = vld [vmem:[#allocation13 + $0x410] sm:$0xff] }
 0x536   : > { %v9739_v62 = vcombine.low %v4879_v12, %v4883_v13 }
 0x538   : > { %8210 = vmatpush1.bf16.msra.mxu0 %v9683_v21  ;;  %8374 = vmatpush1.bf16.msra.mxu1 %v9685_v17  ;;  %v9733_v21 = vcombine.low %v4872_v56, %v4876_v41  ;;  %v9740_v17 = vcombine.high %v4879_v12, %v4883_v13  ;;  %v9773_v56 = vcombine.low %v4912_v61, %v4916_v63  ;;  %v4932_v12 = vld [vmem:[#allocation13 + $0x5b8] sm:$0xff] }
 0x539   : > { %8211 = vmatprep.subr.bf16.mxu0 %v9692_v23  ;;  %8375 = vmatprep.subr.bf16.mxu1 %v9694_v24  ;;  %v9742_v23 = vcombine.high %v4880_v53, %v4884_v20  ;;  %v4887_v24 = vld [vmem:[#allocation13 + $0x450] sm:$0xff] }
 0x53a   : > { %v9747_v47 = vcombine.low %v4887_v24, %v4891_v38 }
 0x53c   : > { %8212 = vmatpush1.bf16.msra.mxu0 %v9691_v57  ;;  %8376 = vmatpush1.bf16.msra.mxu1 %v9693_v29  ;;  %v9741_v57 = vcombine.low %v4880_v53, %v4884_v20  ;;  %v9748_v29 = vcombine.high %v4887_v24, %v4891_v38  ;;  %v4940_v24 = vld [vmem:[#allocation13 + $0x5f8] sm:$0xff] }
 0x53d   : > { %8213 = vmatprep.subr.bf16.mxu0 %v9700_v0  ;;  %8377 = vmatprep.subr.bf16.mxu1 %v9702_v32  ;;  %v9750_v0 = vcombine.high %v4888_v27, %v4892_v43  ;;  %v4895_v32 = vld [vmem:[#allocation13 + $0x490] sm:$0xff] }
 0x53e   : > { %v9755_v7 = vcombine.low %v4895_v32, %v4899_v35 }
 0x540   : > { %8214 = vmatpush1.bf16.msra.mxu0 %v9699_v45  ;;  %8378 = vmatpush1.bf16.msra.mxu1 %v9701_v46  ;;  %v9749_v45 = vcombine.low %v4888_v27, %v4892_v43  ;;  %v9756_v46 = vcombine.high %v4895_v32, %v4899_v35  ;;  %v4948_v32 = vld [vmem:[#allocation13 + $0x638] sm:$0xff] }
 0x541   : > { %8215 = vmatprep.subr.bf16.mxu0 %v9708_v60  ;;  %8379 = vmatprep.subr.bf16.mxu1 %v9710_v10  ;;  %v9758_v60 = vcombine.high %v4896_v1, %v4900_v34  ;;  %v4903_v10 = vld [vmem:[#allocation13 + $0x4d0] sm:$0xff] }
 0x542   : > { %v9763_v2 = vcombine.low %v4903_v10, %v4907_v49 }
 0x544   : > { %8216 = vmatpush1.bf16.msra.mxu0 %v9707_v52  ;;  %8380 = vmatpush1.bf16.msra.mxu1 %v9709_v18  ;;  %v9764_v52 = vcombine.high %v4903_v10, %v4907_v49  ;;  %v9766_v18 = vcombine.high %v4904_v50, %v4908_v51  ;;  %v4956_v10 = vld [vmem:[#allocation13 + $0x678] sm:$0xff] }
 0x545   : > { %8217 = vmatprep.subr.bf16.mxu0 %v9716_v22  ;;  %8381 = vmatprep.subr.bf16.mxu1 %v9718_v15  ;;  %v4911_v22 = vld [vmem:[#allocation13 + $0x510] sm:$0xff] }
 0x546   : > { %v4915_v15 = vld [vmem:[#allocation13 + $0x530] sm:$0xff] }
 0x547   : > { %v9771_v5 = vcombine.low %v4911_v22, %v4915_v15 }
 0x548   : > { %8218 = vmatpush1.bf16.msra.mxu0 %v9715_v42  ;;  %8382 = vmatpush1.bf16.msra.mxu1 %v9717_v3  ;;  %v9772_v42 = vcombine.high %v4911_v22, %v4915_v15  ;;  %v4919_v3 = vld [vmem:[#allocation13 + $0x550] sm:$0xff]  ;;  %v4964_v22 = vld [vmem:[#allocation13 + $0x6b8] sm:$0xff] }
 0x549   : > { %8219 = vmatprep.subr.bf16.mxu0 %v9724_v58  ;;  %8383 = vmatprep.subr.bf16.mxu1 %v9726_v44  ;;  %v4923_v58 = vld [vmem:[#allocation13 + $0x570] sm:$0xff]  ;;  %v4920_v44 = vld [vmem:[#allocation13 + $0x558] sm:$0xff] }
 0x54a   : > { %v9780_v41 = vcombine.high %v4919_v3, %v4923_v58  ;;  %v9779_v13 = vcombine.low %v4919_v3, %v4923_v58  ;;  %v9781_v53 = vcombine.low %v4920_v44, %v4924_v25  ;;  %v4972_v3 = vld [vmem:[#allocation13 + $0x6f8] sm:$0xff] }
 0x54c   : > { %8220 = vmatpush1.bf16.msra.mxu0 %v9723_v39  ;;  %8384 = vmatpush1.bf16.msra.mxu1 %v9725_v37  ;;  %v9782_v39 = vcombine.high %v4920_v44, %v4924_v25  ;;  %v4927_v37 = vld [vmem:[#allocation13 + $0x590] sm:$0xff] }
 0x54d   : > { %8221 = vmatprep.subr.bf16.mxu0 %v9732_v9  ;;  %8385 = vmatprep.subr.bf16.mxu1 %v9734_v48  ;;  %v4931_v9 = vld [vmem:[#allocation13 + $0x5b0] sm:$0xff]  ;;  %v4928_v48 = vld [vmem:[#allocation13 + $0x598] sm:$0xff] }
 0x54e   : > { %v9788_v20 = vcombine.high %v4927_v37, %v4931_v9  ;;  %v9787_v38 = vcombine.low %v4927_v37, %v4931_v9  ;;  %v9789_v27 = vcombine.low %v4928_v48, %v4932_v12  ;;  %v4980_v37 = vld [vmem:[#allocation13 + $0x738] sm:$0xff] }
 0x550   : > { %8222 = vmatpush1.bf16.msra.mxu0 %v9731_v16  ;;  %8386 = vmatpush1.bf16.msra.mxu1 %v9733_v21  ;;  %v9790_v16 = vcombine.high %v4928_v48, %v4932_v12  ;;  %v4935_v21 = vld [vmem:[#allocation13 + $0x5d0] sm:$0xff] }
 0x551   : > { %8232 = vmatprep.subr.bf16.mxu0 %v9740_v17  ;;  %8396 = vmatprep.subr.bf16.mxu1 %v9742_v23  ;;  %v4939_v17 = vld [vmem:[#allocation13 + $0x5f0] sm:$0xff]  ;;  %v4936_v23 = vld [vmem:[#allocation13 + $0x5d8] sm:$0xff] }
 0x552   : > { %v9796_v43 = vcombine.high %v4935_v21, %v4939_v17  ;;  %v9795_v35 = vcombine.low %v4935_v21, %v4939_v17  ;;  %v4988_v21 = vld [vmem:[#allocation13 + $0x778] sm:$0xff] }
 0x553   : > { %8224 = vmatmul.mubr.bf16.vlgmr.msra.gmra.mrb[4].mxu0 %v11860_v19  ;;  %8388 = vmatmul.mubr.bf16.vlgmr.msra.gmra.mrb[4].mxu1 %v11860_v19  ;;  %v9757_v19 = vcombine.low %v4896_v1, %v4900_v34  ;;  %v9797_v1 = vcombine.low %v4936_v23, %v4940_v24 }
 0x554   : > { %8233 = vmatpush1.bf16.msra.mxu0 %v9739_v62  ;;  %8397 = vmatpush1.bf16.msra.mxu1 %v9741_v57  ;;  %v9798_v62 = vcombine.high %v4936_v23, %v4940_v24  ;;  %v4943_v57 = vld [vmem:[#allocation13 + $0x610] sm:$0xff] }
 0x555   : > { %8234 = vmatprep.subr.bf16.mxu0 %v9748_v29  ;;  %8398 = vmatprep.subr.bf16.mxu1 %v9750_v0  ;;  %v4947_v29 = vld [vmem:[#allocation13 + $0x630] sm:$0xff]  ;;  %v4944_v0 = vld [vmem:[#allocation13 + $0x618] sm:$0xff] }
 0x556   : > { %8264 = vmatprep.mubr.bf16.mxu0 %v11906_v11  ;;  %8428 = vmatprep.mubr.bf16.mxu1 %v11906_v11  ;;  %v9774_v11 = vcombine.high %v4912_v61, %v4916_v63  ;;  %v9804_v34 = vcombine.high %v4943_v57, %v4947_v29  ;;  %v9803_v49 = vcombine.low %v4943_v57, %v4947_v29  ;;  %v4996_v57 = vld [vmem:[#allocation13 + $0x7b8] sm:$0xff] }
 0x557   : > { %v9805_v50 = vcombine.low %v4944_v0, %v4948_v32 }
 0x558   : > { %8235 = vmatpush1.bf16.msra.mxu0 %v9747_v47  ;;  %8399 = vmatpush1.bf16.msra.mxu1 %v9749_v45  ;;  %v9806_v47 = vcombine.high %v4944_v0, %v4948_v32  ;;  %v4951_v45 = vld [vmem:[#allocation13 + $0x650] sm:$0xff] }
 0x559   : > { %8236 = vmatprep.subr.bf16.mxu0 %v9756_v46  ;;  %8400 = vmatprep.subr.bf16.mxu1 %v9758_v60  ;;  %v4955_v46 = vld [vmem:[#allocation13 + $0x670] sm:$0xff]  ;;  %v4952_v60 = vld [vmem:[#allocation13 + $0x658] sm:$0xff] }
 0x55a   : > { %v9812_v51 = vcombine.high %v4951_v45, %v4955_v46  ;;  %v9811_v15 = vcombine.low %v4951_v45, %v4955_v46  ;;  %v9813_v61 = vcombine.low %v4952_v60, %v4956_v10  ;;  %v5004_v45 = vld [vmem:[#allocation13 + $0x7f8] sm:$0xff] }
 0x55c   : > { %8237 = vmatpush1.bf16.msra.mxu0 %v9755_v7  ;;  %8401 = vmatpush1.bf16.msra.mxu1 %v9757_v19  ;;  %v9814_v7 = vcombine.high %v4952_v60, %v4956_v10  ;;  %v4959_v19 = vld [vmem:[#allocation13 + $0x690] sm:$0xff] }
 0x55d   : > { %8238 = vmatprep.subr.bf16.mxu0 %v9764_v52  ;;  %8402 = vmatprep.subr.bf16.mxu1 %v9766_v18  ;;  %v4963_v52 = vld [vmem:[#allocation13 + $0x6b0] sm:$0xff]  ;;  %v4960_v18 = vld [vmem:[#allocation13 + $0x698] sm:$0xff] }
 0x55e   : > { %v9820_v63 = vcombine.high %v4959_v19, %v4963_v52  ;;  %v9819_v58 = vcombine.low %v4959_v19, %v4963_v52  ;;  %v9821_v44 = vcombine.low %v4960_v18, %v4964_v22  ;;  %v5012_v19 = vld [vmem:[#allocation13 + $0x838] sm:$0xff] }
 0x560   : > { %8239 = vmatpush1.bf16.msra.mxu0 %v9763_v2  ;;  %8403 = vmatpush1.bf16.msra.mxu1 %v9765_v26  ;;  %v9822_v2 = vcombine.high %v4960_v18, %v4964_v22  ;;  %v4967_v26 = vld [vmem:[#allocation13 + $0x6d0] sm:$0xff] }
 0x561   : > { %8240 = vmatprep.subr.bf16.mxu0 %v9772_v42  ;;  %8404 = vmatprep.subr.bf16.mxu1 %v9774_v11  ;;  %v4971_v42 = vld [vmem:[#allocation13 + $0x6f0] sm:$0xff]  ;;  %v4968_v11 = vld [vmem:[#allocation13 + $0x6d8] sm:$0xff] }
 0x562   : > { %v9828_v25 = vcombine.high %v4967_v26, %v4971_v42  ;;  %v9827_v9 = vcombine.low %v4967_v26, %v4971_v42  ;;  %v9829_v48 = vcombine.low %v4968_v11, %v4972_v3  ;;  %v5020_v26 = vld [vmem:[#allocation13 + $0x878] sm:$0xff] }
 0x564   : > { %8241 = vmatpush1.bf16.msra.mxu0 %v9771_v5  ;;  %8405 = vmatpush1.bf16.msra.mxu1 %v9773_v56  ;;  %v9830_v5 = vcombine.high %v4968_v11, %v4972_v3  ;;  %v4975_v56 = vld [vmem:[#allocation13 + $0x710] sm:$0xff] }
 0x565   : > { %8242 = vmatprep.subr.bf16.mxu0 %v9780_v41  ;;  %8406 = vmatprep.subr.bf16.mxu1 %v9782_v39  ;;  %v4979_v41 = vld [vmem:[#allocation13 + $0x730] sm:$0xff]  ;;  %v4976_v39 = vld [vmem:[#allocation13 + $0x718] sm:$0xff] }
 0x566   : > { %v9836_v12 = vcombine.high %v4975_v56, %v4979_v41  ;;  %v9835_v17 = vcombine.low %v4975_v56, %v4979_v41  ;;  %v9837_v23 = vcombine.low %v4976_v39, %v4980_v37  ;;  %v5028_v56 = vld [vmem:[#allocation13 + $0x8b8] sm:$0xff] }
 0x568   : > { %8243 = vmatpush1.bf16.msra.mxu0 %v9779_v13  ;;  %8407 = vmatpush1.bf16.msra.mxu1 %v9781_v53  ;;  %v9838_v13 = vcombine.high %v4976_v39, %v4980_v37  ;;  %v4983_v53 = vld [vmem:[#allocation13 + $0x750] sm:$0xff] }
 0x569   : > { %8244 = vmatprep.subr.bf16.mxu0 %v9788_v20  ;;  %8408 = vmatprep.subr.bf16.mxu1 %v9790_v16  ;;  %v4987_v20 = vld [vmem:[#allocation13 + $0x770] sm:$0xff]  ;;  %v4984_v16 = vld [vmem:[#allocation13 + $0x758] sm:$0xff] }
 0x56a   : > { %v9844_v24 = vcombine.high %v4983_v53, %v4987_v20  ;;  %v9843_v29 = vcombine.low %v4983_v53, %v4987_v20  ;;  %v9845_v0 = vcombine.low %v4984_v16, %v4988_v21  ;;  %v5036_v53 = vld [vmem:[#allocation13 + $0x8f8] sm:$0xff] }
 0x56c   : > { %8245 = vmatpush1.bf16.msra.mxu0 %v9787_v38  ;;  %8409 = vmatpush1.bf16.msra.mxu1 %v9789_v27  ;;  %v9846_v38 = vcombine.high %v4984_v16, %v4988_v21  ;;  %v4991_v27 = vld [vmem:[#allocation13 + $0x790] sm:$0xff] }
 0x56d   : > { %8246 = vmatprep.subr.bf16.mxu0 %v9796_v43  ;;  %8410 = vmatprep.subr.bf16.mxu1 %v9798_v62  ;;  %v4995_v43 = vld [vmem:[#allocation13 + $0x7b0] sm:$0xff]  ;;  %v4992_v62 = vld [vmem:[#allocation13 + $0x798] sm:$0xff] }
 0x56e   : > { %v9852_v32 = vcombine.high %v4991_v27, %v4995_v43  ;;  %v9851_v46 = vcombine.low %v4991_v27, %v4995_v43  ;;  %v9853_v60 = vcombine.low %v4992_v62, %v4996_v57 }
 0x570   : > { %8247 = vmatpush1.bf16.msra.mxu0 %v9795_v35  ;;  %8411 = vmatpush1.bf16.msra.mxu1 %v9797_v1  ;;  %v9854_v35 = vcombine.high %v4992_v62, %v4996_v57  ;;  %v4999_v1 = vld [vmem:[#allocation13 + $0x7d0] sm:$0xff] }
 0x571   : > { %8248 = vmatprep.subr.bf16.mxu0 %v9804_v34  ;;  %8412 = vmatprep.subr.bf16.mxu1 %v9806_v47  ;;  %v5003_v34 = vld [vmem:[#allocation13 + $0x7f0] sm:$0xff]  ;;  %v5000_v47 = vld [vmem:[#allocation13 + $0x7d8] sm:$0xff] }
 0x572   : > { %v9860_v10 = vcombine.high %v4999_v1, %v5003_v34  ;;  %v9859_v52 = vcombine.low %v4999_v1, %v5003_v34  ;;  %v9861_v18 = vcombine.low %v5000_v47, %v5004_v45  ;;  %v5047_v57 = vld [vmem:[#allocation13 + $0x950] sm:$0xff] }
 0x574   : > { %8249 = vmatpush1.bf16.msra.mxu0 %v9803_v49  ;;  %8413 = vmatpush1.bf16.msra.mxu1 %v9805_v50  ;;  %v9862_v49 = vcombine.high %v5000_v47, %v5004_v45  ;;  %v5007_v50 = vld [vmem:[#allocation13 + $0x810] sm:$0xff] }
 0x575   : > { %8250 = vmatprep.subr.bf16.mxu0 %v9812_v51  ;;  %8414 = vmatprep.subr.bf16.mxu1 %v9814_v7  ;;  %v5011_v51 = vld [vmem:[#allocation13 + $0x830] sm:$0xff]  ;;  %v5008_v7 = vld [vmem:[#allocation13 + $0x818] sm:$0xff] }
 0x576   : > { %v9868_v22 = vcombine.high %v5007_v50, %v5011_v51  ;;  %v9867_v42 = vcombine.low %v5007_v50, %v5011_v51  ;;  %v9869_v11 = vcombine.low %v5008_v7, %v5012_v19  ;;  %v5055_v45 = vld [vmem:[#allocation13 + $0x990] sm:$0xff] }
 0x578   : > { %8251 = vmatpush1.bf16.msra.mxu0 %v9811_v15  ;;  %8415 = vmatpush1.bf16.msra.mxu1 %v9813_v61  ;;  %v9870_v15 = vcombine.high %v5008_v7, %v5012_v19  ;;  %v5015_v61 = vld [vmem:[#allocation13 + $0x850] sm:$0xff] }
 0x579   : > { %8252 = vmatprep.subr.bf16.mxu0 %v9820_v63  ;;  %8416 = vmatprep.subr.bf16.mxu1 %v9822_v2  ;;  %v5019_v63 = vld [vmem:[#allocation13 + $0x870] sm:$0xff]  ;;  %v5016_v2 = vld [vmem:[#allocation13 + $0x858] sm:$0xff] }
 0x57a   : > { %v9876_v3 = vcombine.high %v5015_v61, %v5019_v63  ;;  %v9875_v41 = vcombine.low %v5015_v61, %v5019_v63  ;;  %v9877_v39 = vcombine.low %v5016_v2, %v5020_v26  ;;  %v5063_v19 = vld [vmem:[#allocation13 + $0x9d0] sm:$0xff] }
 0x57c   : > { %8253 = vmatpush1.bf16.msra.mxu0 %v9819_v58  ;;  %8417 = vmatpush1.bf16.msra.mxu1 %v9821_v44  ;;  %v9878_v58 = vcombine.high %v5016_v2, %v5020_v26  ;;  %v5023_v44 = vld [vmem:[#allocation13 + $0x890] sm:$0xff] }
 0x57d   : > { %8254 = vmatprep.subr.bf16.mxu0 %v9828_v25  ;;  %8418 = vmatprep.subr.bf16.mxu1 %v9830_v5  ;;  %v5027_v25 = vld [vmem:[#allocation13 + $0x8b0] sm:$0xff]  ;;  %v5024_v5 = vld [vmem:[#allocation13 + $0x898] sm:$0xff] }
 0x57e   : > { %v9884_v37 = vcombine.high %v5023_v44, %v5027_v25  ;;  %v9883_v20 = vcombine.low %v5023_v44, %v5027_v25  ;;  %v5071_v26 = vld [vmem:[#allocation13 + $0xa10] sm:$0xff] }
 0x580   : > { %8255 = vmatpush1.bf16.msra.mxu0 %v9827_v9  ;;  %8419 = vmatpush1.bf16.msra.mxu1 %v9829_v48  ;;  %v9886_v9 = vcombine.high %v5024_v5, %v5028_v56  ;;  %v5031_v48 = vld [vmem:[#allocation13 + $0x8d0] sm:$0xff] }
 0x581   : > { %8256 = vmatprep.subr.bf16.mxu0 %v9836_v12  ;;  %8420 = vmatprep.subr.bf16.mxu1 %v9838_v13  ;;  %v5035_v12 = vld [vmem:[#allocation13 + $0x8f0] sm:$0xff]  ;;  %v5032_v13 = vld [vmem:[#allocation13 + $0x8d8] sm:$0xff] }
 0x582   : > { %v9892_v16 = vcombine.high %v5031_v48, %v5035_v12  ;;  %v9894_v21 = vcombine.high %v5032_v13, %v5036_v53  ;;  %v9891_v27 = vcombine.low %v5031_v48, %v5035_v12  ;;  %v9893_v43 = vcombine.low %v5032_v13, %v5036_v53  ;;  %v5087_v53 = vld [vmem:[#allocation13 + $0xa90] sm:$0xff] }
 0x584   : > { %8257 = vmatpush1.bf16.msra.mxu0 %v9835_v17  ;;  %8421 = vmatpush1.bf16.msra.mxu1 %v9837_v23  ;;  %v5039_v17 = vld [vmem:[#allocation13 + $0x910] sm:$0xff] }
 0x585   : > { %8258 = vmatprep.subr.bf16.mxu0 %v9844_v24  ;;  %8422 = vmatprep.subr.bf16.mxu1 %v9846_v38  ;;  %v5043_v23 = vld [vmem:[#allocation13 + $0x930] sm:$0xff]  ;;  %v5040_v24 = vld [vmem:[#allocation13 + $0x918] sm:$0xff] }
 0x586   : > { %v5044_v38 = vld [vmem:[#allocation13 + $0x938] sm:$0xff]  ;;  %v9900_v62 = vcombine.high %v5039_v17, %v5043_v23 }
 0x587   : > { %v9901_v1 = vcombine.low %v5040_v24, %v5044_v38 }
 0x588   : > { %8259 = vmatpush1.bf16.msra.mxu0 %v9843_v29  ;;  %8423 = vmatpush1.bf16.msra.mxu1 %v9845_v0  ;;  %v5051_v29 = vld [vmem:[#allocation13 + $0x970] sm:$0xff]  ;;  %v5048_v0 = vld [vmem:[#allocation13 + $0x958] sm:$0xff] }
 0x589   : > { %8260 = vmatprep.subr.bf16.mxu0 %v9852_v32  ;;  %8424 = vmatprep.subr.bf16.mxu1 %v9854_v35  ;;  %v5052_v32 = vld [vmem:[#allocation13 + $0x978] sm:$0xff]  ;;  %v9899_v35 = vcombine.low %v5039_v17, %v5043_v23  ;;  %v9908_v34 = vcombine.high %v5047_v57, %v5051_v29 }
 0x58a   : > { %v9910_v47 = vcombine.high %v5048_v0, %v5052_v32  ;;  %v9909_v50 = vcombine.low %v5048_v0, %v5052_v32  ;;  %v5103_v32 = vld [vmem:[#allocation13 + $0xb10] sm:$0xff] }
 0x58c   : > { %8261 = vmatpush1.bf16.msra.mxu0 %v9851_v46  ;;  %8425 = vmatpush1.bf16.msra.mxu1 %v9853_v60  ;;  %v5059_v46 = vld [vmem:[#allocation13 + $0x9b0] sm:$0xff]  ;;  %v5056_v60 = vld [vmem:[#allocation13 + $0x998] sm:$0xff] }
 0x58d   : > { %8262 = vmatprep.subr.bf16.mxu0 %v9860_v10  ;;  %8426 = vmatprep.subr.bf16.mxu1 %v9862_v49  ;;  %v5060_v10 = vld [vmem:[#allocation13 + $0x9b8] sm:$0xff]  ;;  %v9907_v49 = vcombine.low %v5047_v57, %v5051_v29  ;;  %v9916_v51 = vcombine.high %v5055_v45, %v5059_v46 }
 0x58e   : > { %v9918_v7 = vcombine.high %v5056_v60, %v5060_v10  ;;  %v9917_v61 = vcombine.low %v5056_v60, %v5060_v10  ;;  %v5111_v10 = vld [vmem:[#allocation13 + $0xb50] sm:$0xff] }
 0x590   : > { %8263 = vmatpush1.bf16.msra.mxu0 %v9859_v52  ;;  %8427 = vmatpush1.bf16.msra.mxu1 %v9861_v18  ;;  %v5067_v52 = vld [vmem:[#allocation13 + $0x9f0] sm:$0xff]  ;;  %v5064_v18 = vld [vmem:[#allocation13 + $0x9d8] sm:$0xff] }
 0x591   : > { %8273 = vmatprep.subr.bf16.mxu0 %v9868_v22  ;;  %8437 = vmatprep.subr.bf16.mxu1 %v9870_v15  ;;  %v5068_v22 = vld [vmem:[#allocation13 + $0x9f8] sm:$0xff]  ;;  %v9915_v15 = vcombine.low %v5055_v45, %v5059_v46  ;;  %v9924_v63 = vcombine.high %v5063_v19, %v5067_v52 }
 0x592   : > { %v9926_v2 = vcombine.high %v5064_v18, %v5068_v22  ;;  %v9925_v44 = vcombine.low %v5064_v18, %v5068_v22  ;;  %v5119_v22 = vld [vmem:[#allocation13 + $0xb90] sm:$0xff] }
 0x593   : > { %8265 = vmatmul.mubr.bf16.vlgmr.msra.gmra.mrb[4].mxu0 %v11943_v30  ;;  %8429 = vmatmul.mubr.bf16.vlgmr.msra.gmra.mrb[4].mxu1 %v11943_v30  ;;  %v9885_v30 = vcombine.low %v5024_v5, %v5028_v56  ;;  %v5079_v56 = vld [vmem:[#allocation13 + $0xa50] sm:$0xff] }
 0x594   : > { %8274 = vmatpush1.bf16.msra.mxu0 %v9867_v42  ;;  %8438 = vmatpush1.bf16.msra.mxu1 %v9869_v11  ;;  %v5075_v42 = vld [vmem:[#allocation13 + $0xa30] sm:$0xff]  ;;  %v5072_v11 = vld [vmem:[#allocation13 + $0xa18] sm:$0xff] }
 0x595   : > { %8275 = vmatprep.subr.bf16.mxu0 %v9876_v3  ;;  %8439 = vmatprep.subr.bf16.mxu1 %v9878_v58  ;;  %v5076_v3 = vld [vmem:[#allocation13 + $0xa38] sm:$0xff]  ;;  %v9923_v58 = vcombine.low %v5063_v19, %v5067_v52  ;;  %v9932_v25 = vcombine.high %v5071_v26, %v5075_v42 }
 0x596   : > { %8305 = vmatprep.mubr.bf16.mxu0 %v11946_v6  ;;  %8469 = vmatprep.mubr.bf16.mxu1 %v11946_v6  ;;  %v9902_v6 = vcombine.high %v5040_v24, %v5044_v38  ;;  %v9934_v5 = vcombine.high %v5072_v11, %v5076_v3  ;;  %v9933_v48 = vcombine.low %v5072_v11, %v5076_v3  ;;  %v5095_v38 = vld [vmem:[#allocation13 + $0xad0] sm:$0xff] }
 0x597   : > { %v5127_v3 = vld [vmem:[#allocation13 + $0xbd0] sm:$0xff] }
 0x598   : > { %8276 = vmatpush1.bf16.msra.mxu0 %v9875_v41  ;;  %8440 = vmatpush1.bf16.msra.mxu1 %v9877_v39  ;;  %v5083_v41 = vld [vmem:[#allocation13 + $0xa70] sm:$0xff]  ;;  %v5080_v39 = vld [vmem:[#allocation13 + $0xa58] sm:$0xff] }
 0x599   : > { %8277 = vmatprep.subr.bf16.mxu0 %v9884_v37  ;;  %8441 = vmatprep.subr.bf16.mxu1 %v9886_v9  ;;  %v5084_v37 = vld [vmem:[#allocation13 + $0xa78] sm:$0xff]  ;;  %v9931_v9 = vcombine.low %v5071_v26, %v5075_v42  ;;  %v9940_v12 = vcombine.high %v5079_v56, %v5083_v41 }
 0x59a   : > { %v9942_v13 = vcombine.high %v5080_v39, %v5084_v37  ;;  %v9941_v17 = vcombine.low %v5080_v39, %v5084_v37  ;;  %v5135_v37 = vld [vmem:[#allocation13 + $0xc10] sm:$0xff] }
 0x59c   : > { %8278 = vmatpush1.bf16.msra.mxu0 %v9883_v20  ;;  %8442 = vmatpush1.bf16.msra.mxu1 %v9885_v30  ;;  %v5091_v20 = vld [vmem:[#allocation13 + $0xab0] sm:$0xff]  ;;  %v5088_v30 = vld [vmem:[#allocation13 + $0xa98] sm:$0xff] }
 0x59d   : > { %8279 = vmatprep.subr.bf16.mxu0 %v9892_v16  ;;  %8443 = vmatprep.subr.bf16.mxu1 %v9894_v21  ;;  %v5092_v16 = vld [vmem:[#allocation13 + $0xab8] sm:$0xff]  ;;  %v9939_v21 = vcombine.low %v5079_v56, %v5083_v41  ;;  %v9948_v23 = vcombine.high %v5087_v53, %v5091_v20 }
 0x59e   : > { %v9950_v24 = vcombine.high %v5088_v30, %v5092_v16  ;;  %v9949_v57 = vcombine.low %v5088_v30, %v5092_v16  ;;  %v5143_v16 = vld [vmem:[#allocation13 + $0xc50] sm:$0xff] }
 0x5a0   : > { %8280 = vmatpush1.bf16.msra.mxu0 %v9891_v27  ;;  %8444 = vmatpush1.bf16.msra.mxu1 %v9893_v43  ;;  %v5099_v27 = vld [vmem:[#allocation13 + $0xaf0] sm:$0xff]  ;;  %v5096_v43 = vld [vmem:[#allocation13 + $0xad8] sm:$0xff] }
 0x5a1   : > { %8281 = vmatprep.subr.bf16.mxu0 %v9900_v62  ;;  %8445 = vmatprep.subr.bf16.mxu1 %v9902_v6  ;;  %v5100_v62 = vld [vmem:[#allocation13 + $0xaf8] sm:$0xff]  ;;  %v9947_v6 = vcombine.low %v5087_v53, %v5091_v20  ;;  %v9956_v29 = vcombine.high %v5095_v38, %v5099_v27 }
 0x5a2   : > { %v9958_v0 = vcombine.high %v5096_v43, %v5100_v62  ;;  %v9957_v45 = vcombine.low %v5096_v43, %v5100_v62  ;;  %v5151_v62 = vld [vmem:[#allocation13 + $0xc90] sm:$0xff] }
 0x5a4   : > { %8282 = vmatpush1.bf16.msra.mxu0 %v9899_v35  ;;  %8446 = vmatpush1.bf16.msra.mxu1 %v9901_v1  ;;  %v5107_v35 = vld [vmem:[#allocation13 + $0xb30] sm:$0xff]  ;;  %v5104_v1 = vld [vmem:[#allocation13 + $0xb18] sm:$0xff] }
 0x5a5   : > { %8283 = vmatprep.subr.bf16.mxu0 %v9908_v34  ;;  %8447 = vmatprep.subr.bf16.mxu1 %v9910_v47  ;;  %v5108_v34 = vld [vmem:[#allocation13 + $0xb38] sm:$0xff]  ;;  %v9955_v47 = vcombine.low %v5095_v38, %v5099_v27  ;;  %v9964_v46 = vcombine.high %v5103_v32, %v5107_v35 }
 0x5a6   : > { %v9966_v60 = vcombine.high %v5104_v1, %v5108_v34  ;;  %v9965_v19 = vcombine.low %v5104_v1, %v5108_v34  ;;  %v5159_v34 = vld [vmem:[#allocation13 + $0xcd0] sm:$0xff] }
 0x5a8   : > { %8284 = vmatpush1.bf16.msra.mxu0 %v9907_v49  ;;  %8448 = vmatpush1.bf16.msra.mxu1 %v9909_v50  ;;  %v5115_v49 = vld [vmem:[#allocation13 + $0xb70] sm:$0xff]  ;;  %v5112_v50 = vld [vmem:[#allocation13 + $0xb58] sm:$0xff] }
 0x5a9   : > { %8285 = vmatprep.subr.bf16.mxu0 %v9916_v51  ;;  %8449 = vmatprep.subr.bf16.mxu1 %v9918_v7  ;;  %v5116_v51 = vld [vmem:[#allocation13 + $0xb78] sm:$0xff]  ;;  %v9963_v7 = vcombine.low %v5103_v32, %v5107_v35  ;;  %v9972_v52 = vcombine.high %v5111_v10, %v5115_v49 }
 0x5aa   : > { %v9974_v18 = vcombine.high %v5112_v50, %v5116_v51  ;;  %v9973_v26 = vcombine.low %v5112_v50, %v5116_v51  ;;  %v5167_v50 = vld [vmem:[#allocation13 + $0xd10] sm:$0xff] }
 0x5ab   : > { %v5171_v51 = vld [vmem:[#allocation13 + $0xd30] sm:$0xff] }
 0x5ac   : > { %8286 = vmatpush1.bf16.msra.mxu0 %v9915_v15  ;;  %8450 = vmatpush1.bf16.msra.mxu1 %v9917_v61  ;;  %v5123_v15 = vld [vmem:[#allocation13 + $0xbb0] sm:$0xff]  ;;  %v5120_v61 = vld [vmem:[#allocation13 + $0xb98] sm:$0xff] }
 0x5ad   : > { %8287 = vmatprep.subr.bf16.mxu0 %v9924_v63  ;;  %8451 = vmatprep.subr.bf16.mxu1 %v9926_v2  ;;  %v5124_v63 = vld [vmem:[#allocation13 + $0xbb8] sm:$0xff]  ;;  %v9971_v2 = vcombine.low %v5111_v10, %v5115_v49  ;;  %v9980_v42 = vcombine.high %v5119_v22, %v5123_v15 }
 0x5ae   : > { %v9982_v11 = vcombine.high %v5120_v61, %v5124_v63  ;;  %v9981_v56 = vcombine.low %v5120_v61, %v5124_v63  ;;  %v12032_v61 = vld [vmem:[#allocation13 + $0xd50] sm:$0xff] }
 0x5af   : > { %v12034_v63 = vld [vmem:[#allocation13 + $0xd70] sm:$0xff] }
 0x5b0   : > { %8288 = vmatpush1.bf16.msra.mxu0 %v9923_v58  ;;  %8452 = vmatpush1.bf16.msra.mxu1 %v9925_v44  ;;  %v5131_v58 = vld [vmem:[#allocation13 + $0xbf0] sm:$0xff]  ;;  %v5128_v44 = vld [vmem:[#allocation13 + $0xbd8] sm:$0xff] }
 0x5b1   : > { %8289 = vmatprep.subr.bf16.mxu0 %v9932_v25  ;;  %8453 = vmatprep.subr.bf16.mxu1 %v9934_v5  ;;  %v5132_v25 = vld [vmem:[#allocation13 + $0xbf8] sm:$0xff]  ;;  %v9979_v5 = vcombine.low %v5119_v22, %v5123_v15  ;;  %v9988_v41 = vcombine.high %v5127_v3, %v5131_v58  ;;  %v10028_v22 = vcombine.high %v5167_v50, %v5171_v51  ;;  %v12030_v15 = vld [vmem:[#allocation15] sm:$0xff] }
 0x5b2   : > { %v9990_v39 = vcombine.high %v5128_v44, %v5132_v25  ;;  %v9989_v53 = vcombine.low %v5128_v44, %v5132_v25  ;;  %v12044_v44 = vld [vmem:[#allocation13 + $0xd98] sm:$0xff] }
 0x5b3   : > { %v12046_v25 = vld [vmem:[#allocation13 + $0xdb8] sm:$0xff] }
 0x5b4   : > { %8290 = vmatpush1.bf16.msra.mxu0 %v9931_v9  ;;  %8454 = vmatpush1.bf16.msra.mxu1 %v9933_v48  ;;  %v5139_v9 = vld [vmem:[#allocation13 + $0xc30] sm:$0xff]  ;;  %v5136_v48 = vld [vmem:[#allocation13 + $0xc18] sm:$0xff] }
 0x5b5   : > { %8291 = vmatprep.subr.bf16.mxu0 %v9940_v12  ;;  %8455 = vmatprep.subr.bf16.mxu1 %v9942_v13  ;;  %v5140_v12 = vld [vmem:[#allocation13 + $0xc38] sm:$0xff]  ;;  %v9987_v13 = vcombine.low %v5127_v3, %v5131_v58  ;;  %v9996_v20 = vcombine.high %v5135_v37, %v5139_v9  ;;  %v12042_v58 = vld [vmem:[#allocation13 + $0xdb0] sm:$0xff] }
 0x5b6   : > { %v9998_v30 = vcombine.high %v5136_v48, %v5140_v12  ;;  %v9997_v38 = vcombine.low %v5136_v48, %v5140_v12  ;;  %v5278_v48 = vrot.slane %v12030_v15, %v11785_v14  ;;  %v10036_v12 = vcombine.high %v12032_v61, %v12034_v63 }
 0x5b8   : > { %8292 = vmatpush1.bf16.msra.mxu0 %v9939_v21  ;;  %8456 = vmatpush1.bf16.msra.mxu1 %v9941_v17  ;;  %v5147_v21 = vld [vmem:[#allocation13 + $0xc70] sm:$0xff]  ;;  %v5144_v17 = vld [vmem:[#allocation13 + $0xc58] sm:$0xff] }
 0x5b9   : > { %8293 = vmatprep.subr.bf16.mxu0 %v9948_v23  ;;  %8457 = vmatprep.subr.bf16.mxu1 %v9950_v24  ;;  %v5148_v23 = vld [vmem:[#allocation13 + $0xc78] sm:$0xff]  ;;  %v9995_v24 = vcombine.low %v5135_v37, %v5139_v9  ;;  %v10004_v27 = vcombine.high %v5143_v16, %v5147_v21  ;;  %v12056_v37 = vld [vmem:[#allocation13 + $0xdf0] sm:$0xff] }
 0x5ba   : > { %v10006_v43 = vcombine.high %v5144_v17, %v5148_v23  ;;  %v10005_v32 = vcombine.low %v5144_v17, %v5148_v23  ;;  %v12058_v9 = vld [vmem:[#allocation13 + $0xdd8] sm:$0xff] }
 0x5bc   : > { %8294 = vmatpush1.bf16.msra.mxu0 %v9947_v6  ;;  %8458 = vmatpush1.bf16.msra.mxu1 %v9949_v57  ;;  %v5155_v6 = vld [vmem:[#allocation13 + $0xcb0] sm:$0xff]  ;;  %v5152_v57 = vld [vmem:[#allocation13 + $0xc98] sm:$0xff] }
 0x5bd   : > { %8295 = vmatprep.subr.bf16.mxu0 %v9956_v29  ;;  %8459 = vmatprep.subr.bf16.mxu1 %v9958_v0  ;;  %v5156_v29 = vld [vmem:[#allocation13 + $0xcb8] sm:$0xff]  ;;  %v10003_v0 = vcombine.low %v5143_v16, %v5147_v21  ;;  %v10012_v35 = vcombine.high %v5151_v62, %v5155_v6  ;;  %v10035_v16 = vcombine.low %v12032_v61, %v12034_v63 }
 0x5be   : > { %v10014_v1 = vcombine.high %v5152_v57, %v5156_v29 }
 0x5c0   : > { %8296 = vmatpush1.bf16.msra.mxu0 %v9955_v47  ;;  %8460 = vmatpush1.bf16.msra.mxu1 %v9957_v45  ;;  %v5163_v47 = vld [vmem:[#allocation13 + $0xcf0] sm:$0xff]  ;;  %v5160_v45 = vld [vmem:[#allocation13 + $0xcd8] sm:$0xff] }
 0x5c1   : > { %8297 = vmatprep.subr.bf16.mxu0 %v9964_v46  ;;  %8461 = vmatprep.subr.bf16.mxu1 %v9966_v60  ;;  %v5164_v46 = vld [vmem:[#allocation13 + $0xcf8] sm:$0xff]  ;;  %v10011_v60 = vcombine.low %v5151_v62, %v5155_v6  ;;  %v10020_v10 = vcombine.high %v5159_v34, %v5163_v47  ;;  %v10046_v62 = vcombine.high %v12044_v44, %v12046_v25 }
 0x5c2   : > { %v10022_v49 = vcombine.high %v5160_v45, %v5164_v46 }
 0x5c4   : > { %8298 = vmatpush1.bf16.msra.mxu0 %v9963_v7  ;;  %8462 = vmatpush1.bf16.msra.mxu1 %v9965_v19  ;;  %v5168_v7 = vld [vmem:[#allocation13 + $0xd18] sm:$0xff] }
 0x5c5   : > { %8299 = vmatprep.subr.bf16.mxu0 %v9972_v52  ;;  %8463 = vmatprep.subr.bf16.mxu1 %v9974_v18  ;;  %v5172_v19 = vld [vmem:[#allocation13 + $0xd38] sm:$0xff]  ;;  %v10019_v52 = vcombine.low %v5159_v34, %v5163_v47  ;;  %v10021_v18 = vcombine.low %v5160_v45, %v5164_v46  ;;  %v12106_v47 = vld [vmem:[#allocation13 + $0xe90] sm:$0xff] }
 0x5c6   : > { %v10029_v3 = vcombine.low %v5168_v7, %v5172_v19  ;;  %v12108_v45 = vld [vmem:[#allocation13 + $0xeb0] sm:$0xff] }
 0x5c8   : > { %8300 = vmatpush1.bf16.msra.mxu0 %v9971_v2  ;;  %8464 = vmatpush1.bf16.msra.mxu1 %v9973_v26  ;;  %v12036_v2 = vld [vmem:[#allocation13 + $0xd58] sm:$0xff] }
 0x5c9   : > { %8301 = vmatprep.subr.bf16.mxu0 %v9980_v42  ;;  %8465 = vmatprep.subr.bf16.mxu1 %v9982_v11  ;;  %v12038_v26 = vld [vmem:[#allocation13 + $0xd78] sm:$0xff]  ;;  %v12040_v42 = vld [vmem:[#allocation13 + $0xd90] sm:$0xff]  ;;  %v10027_v11 = vcombine.low %v5167_v50, %v5171_v51 }
 0x5ca   : > { %v10037_v21 = vcombine.low %v12036_v2, %v12038_v26  ;;  %v10043_v17 = vcombine.low %v12040_v42, %v12042_v58  ;;  %v10044_v23 = vcombine.high %v12040_v42, %v12042_v58 }
 0x5cc   : > { %8302 = vmatpush1.bf16.msra.mxu0 %v9979_v5  ;;  %8466 = vmatpush1.bf16.msra.mxu1 %v9981_v56  ;;  %v5266_v5 = vrot.slane %v12030_v15, %v11754_v36  ;;  %v5274_v56 = vrot.slane %v12030_v15, %v11788_v28 }
 0x5cd   : > { %8303 = vmatprep.subr.bf16.mxu0 %v9988_v41  ;;  %8467 = vmatprep.subr.bf16.mxu1 %v9990_v39  ;;  %v5270_v41 = vrot.slane %v12030_v15, %v11749_v31  ;;  %v12054_v39 = vld [vmem:[#allocation13 + $0xdd0] sm:$0xff] }
 0x5ce   : > { %v10051_v6 = vcombine.low %v12054_v39, %v12056_v37 }
 0x5d0   : > { %8304 = vmatpush1.bf16.msra.mxu0 %v9987_v13  ;;  %8468 = vmatpush1.bf16.msra.mxu1 %v9989_v53  ;;  %v10038_v13 = vcombine.high %v12036_v2, %v12038_v26  ;;  %v12066_v53 = vld [vmem:[#allocation13 + $0xdf8] sm:$0xff] }
 0x5d1   : > { %8314 = vmatprep.subr.bf16.mxu0 %v9996_v20  ;;  %8478 = vmatprep.subr.bf16.mxu1 %v9998_v30  ;;  %v12068_v20 = vld [vmem:[#allocation13 + $0xe10] sm:$0xff] }
 0x5d2   : > { %v12070_v30 = vld [vmem:[#allocation13 + $0xe30] sm:$0xff] }
 0x5d3   : > { %8306 = vmatmul.mubr.bf16.vlgmr.msra.gmra.mrb[4].mxu0 %v11992_v59  ;;  %8470 = vmatmul.mubr.bf16.vlgmr.msra.gmra.mrb[4].mxu1 %v11992_v59  ;;  %v10013_v59 = vcombine.low %v5152_v57, %v5156_v29  ;;  %v10052_v57 = vcombine.high %v12054_v39, %v12056_v37  ;;  %v12094_v29 = vld [vmem:[#allocation13 + $0xe70] sm:$0xff]  ;;  %v10060_v34 = vcombine.high %v12068_v20, %v12070_v30 }
 0x5d4   : > { %8315 = vmatpush1.bf16.msra.mxu0 %v9995_v24  ;;  %8479 = vmatpush1.bf16.msra.mxu1 %v9997_v38  ;;  %v12080_v24 = vld [vmem:[#allocation13 + $0xe18] sm:$0xff] }
 0x5d5   : > { %8316 = vmatprep.subr.bf16.mxu0 %v10004_v27  ;;  %8480 = vmatprep.subr.bf16.mxu1 %v10006_v43  ;;  %v12082_v38 = vld [vmem:[#allocation13 + $0xe38] sm:$0xff]  ;;  %v12084_v27 = vld [vmem:[#allocation13 + $0xe50] sm:$0xff]  ;;  %v10045_v43 = vcombine.low %v12044_v44, %v12046_v25 }
 0x5d6   : > { %8346 = vmatprep.mubr.bf16.mxu0 %v11995_v4  ;;  %8510 = vmatprep.mubr.bf16.mxu1 %v11995_v4  ;;  %v10030_v4 = vcombine.high %v5168_v7, %v5172_v19 }
 0x5d8   : > { %8317 = vmatpush1.bf16.msra.mxu0 %v10003_v0  ;;  %8481 = vmatpush1.bf16.msra.mxu1 %v10005_v32  ;;  %v12096_v0 = vld [vmem:[#allocation13 + $0xe58] sm:$0xff] }
 0x5d9   : > { %8318 = vmatprep.subr.bf16.mxu0 %v10012_v35  ;;  %8482 = vmatprep.subr.bf16.mxu1 %v10014_v1  ;;  %v12098_v32 = vld [vmem:[#allocation13 + $0xe78] sm:$0xff]  ;;  %v10053_v35 = vcombine.low %v12058_v9, %v12066_v53  ;;  %v10054_v1 = vcombine.high %v12058_v9, %v12066_v53 }
 0x5dc   : > { %8319 = vmatpush1.bf16.msra.mxu0 %v10011_v60  ;;  %8483 = vmatpush1.bf16.msra.mxu1 %v10013_v59  ;;  %v10062_v59 = vcombine.high %v12080_v24, %v12082_v38 }
 0x5dd   : > { %8320 = vmatprep.subr.bf16.mxu0 %v10020_v10  ;;  %8484 = vmatprep.subr.bf16.mxu1 %v10022_v49  ;;  %v12116_v10 = vld [vmem:[#allocation13 + $0xe98] sm:$0xff] }
 0x5de   : > { %v12118_v49 = vld [vmem:[#allocation13 + $0xeb8] sm:$0xff] }
 0x5e0   : > { %8321 = vmatpush1.bf16.msra.mxu0 %v10019_v52  ;;  %8485 = vmatpush1.bf16.msra.mxu1 %v10021_v18 }
 0x5e1   : > { %8322 = vmatprep.subr.bf16.mxu0 %v10028_v22  ;;  %8486 = vmatprep.subr.bf16.mxu1 %v10030_v4 }
 0x5e4   : > { %8323 = vmatpush1.bf16.msra.mxu0 %v10027_v11  ;;  %8487 = vmatpush1.bf16.msra.mxu1 %v10029_v3 }
 0x5e5   : > { %8324 = vmatprep.subr.bf16.mxu0 %v10036_v12  ;;  %8488 = vmatprep.subr.bf16.mxu1 %v10038_v13 }
 0x5e6   : > { %v8020_v50 = vpop.f32.mrb[0].mxu0  ;;  %v8184_v51 = vpop.f32.mrb[0].mxu1 }
 0x5e7   : > { %v12128_v22 = vadd.f32 %v8020_v50, %v5266_v5  ;;  %v12130_v4 = vadd.f32 %v8184_v51, %v5274_v56  ;;  %v8022_v61 = vpop.f32.mrb[1].mxu0  ;;  %v8186_v63 = vpop.f32.mrb[1].mxu1 }
 0x5e8   : > { %v12136_v11 = vadd.f32 %v8022_v61, %v5270_v41  ;;  %v12138_v3 = vadd.f32 %v8186_v63, %v5278_v48  ;;  %v8024_v44 = vpop.f32.mrb[2].mxu0  ;;  %v8188_v25 = vpop.f32.mrb[2].mxu1  ;;  %8325 = vmatpush1.bf16.msra.mxu0 %v10035_v16  ;;  %8489 = vmatpush1.bf16.msra.mxu1 %v10037_v21 }
 0x5e9   : > { %v8521_v56 = vrot.slane %v12128_v22, 4  ;;  %v8569_v12 = vmul.f32 %v12128_v22, %v12128_v22  ;;  %v8533_v13 = vrot.slane %v12130_v4, 4  ;;  %v8571_v41 = vmul.f32 %v12130_v4, %v12130_v4  ;;  %v8025_v50 = vpop.f32.mrb[3].mxu0  ;;  %v8189_v48 = vpop.f32.mrb[3].mxu1  ;;  %8326 = vmatprep.subr.bf16.mxu0 %v10044_v23  ;;  %8490 = vmatprep.subr.bf16.mxu1 %v10046_v62 }
 0x5ea   : > { %v8527_v16 = vrot.slane %v12136_v11, 4  ;;  %v8570_v21 = vmul.f32 %v12136_v11, %v12136_v11  ;;  %v8539_v51 = vrot.slane %v12138_v3, 4  ;;  %v8572_v61 = vmul.f32 %v12138_v3, %v12138_v3 }
 0x5eb   : > { %v8522_v63 = vadd.f32 %v12128_v22, %v8521_v56  ;;  %v8577_v44 = vrot.slane %v8569_v12, 4  ;;  %v8534_v25 = vadd.f32 %v12130_v4, %v8533_v13  ;;  %v8589_v2 = vrot.slane %v8571_v41, 4 }
 0x5ec   : > { %v8528_v50 = vadd.f32 %v12136_v11, %v8527_v16  ;;  %v8583_v23 = vrot.slane %v8570_v21, 4  ;;  %v8540_v62 = vadd.f32 %v12138_v3, %v8539_v51  ;;  %v8595_v48 = vrot.slane %v8572_v61, 4  ;;  %8327 = vmatpush1.bf16.msra.mxu0 %v10043_v17  ;;  %8491 = vmatpush1.bf16.msra.mxu1 %v10045_v43 }
 0x5ed   : > { %v8523_v5 = vrot.slane %v8522_v63, 2  ;;  %v8578_v26 = vadd.f32 %v8577_v44, %v8569_v12  ;;  %v8535_v52 = vrot.slane %v8534_v25, 2  ;;  %v8590_v7 = vadd.f32 %v8589_v2, %v8571_v41  ;;  %8328 = vmatprep.subr.bf16.mxu0 %v10052_v57  ;;  %8492 = vmatprep.subr.bf16.mxu1 %v10054_v1 }
 0x5ee   : > { %v8529_v56 = vrot.slane %v8528_v50, 2  ;;  %v8584_v13 = vadd.f32 %v8583_v23, %v8570_v21  ;;  %v8541_v16 = vrot.slane %v8540_v62, 2  ;;  %v8596_v18 = vadd.f32 %v8595_v48, %v8572_v61  ;;  %v5228_v23 = vld [vmem:[#allocation13 + $0xef8] sm:$0xff] }
 0x5ef   : > { %v8524_v51 = vadd.f32 %v8523_v5, %v8522_v63  ;;  %v8579_v19 = vrot.slane %v8578_v26, 2  ;;  %v8536_v60 = vadd.f32 %v8535_v52, %v8534_v25  ;;  %v8591_v46 = vrot.slane %v8590_v7, 2 }
 0x5f0   : > { %v8530_v42 = vadd.f32 %v8529_v56, %v8528_v50  ;;  %v8585_v58 = vrot.slane %v8584_v13, 2  ;;  %v8542_v17 = vadd.f32 %v8541_v16, %v8540_v62  ;;  %v8597_v43 = vrot.slane %v8596_v18, 2  ;;  %8329 = vmatpush1.bf16.msra.mxu0 %v10051_v6  ;;  %8493 = vmatpush1.bf16.msra.mxu1 %v10053_v35  ;;  %v5224_v50 = vld [vmem:[#allocation13 + $0xed8] sm:$0xff] }
 0x5f1   : > { %v8525_v57 = vrot.slane %v8524_v51, 1  ;;  %v8580_v1 = vadd.f32 %v8579_v19, %v8578_v26  ;;  %v8537_v2 = vrot.slane %v8536_v60, 1  ;;  %v8592_v12 = vadd.f32 %v8591_v46, %v8590_v7  ;;  %8330 = vmatprep.subr.bf16.mxu0 %v10060_v34  ;;  %8494 = vmatprep.subr.bf16.mxu1 %v10062_v59 }
 0x5f2   : > { %v8531_v52 = vrot.slane %v8530_v42, 1  ;;  %v8586_v5 = vadd.f32 %v8585_v58, %v8584_v13  ;;  %v8543_v39 = vrot.slane %v8542_v17, 1  ;;  %v8598_v37 = vadd.f32 %v8597_v43, %v8596_v18 }
 0x5f3   : > { %v8526_v6 = vadd.f32 %v8525_v57, %v8524_v51  ;;  %v8581_v41 = vrot.slane %v8580_v1, 1  ;;  %v8538_v9 = vadd.f32 %v8537_v2, %v8536_v60  ;;  %v8593_v53 = vrot.slane %v8592_v12, 1 }
 0x5f4   : > { %v8532_v35 = vadd.f32 %v8531_v52, %v8530_v42  ;;  %v8587_v19 = vrot.slane %v8586_v5, 1  ;;  %v8544_v26 = vadd.f32 %v8543_v39, %v8542_v17  ;;  %v8599_v46 = vrot.slane %v8598_v37, 1 }
 0x5f5   : > { %v12383_v7 = vcombine.low %v12068_v20, %v12070_v30  ;;  %v12384_v34 = vcombine.low %v12080_v24, %v12082_v38  ;;  %v8582_v59 = vadd.f32 %v8581_v41, %v8580_v1  ;;  %v12182_v21 = vmul.f32 0.125, %v8526_v6  ;;  %v5223_v20 = vld [vmem:[#allocation13 + $0xed0] sm:$0xff] }
 0x5f6   : > { %v8594_v18 = vadd.f32 %v8593_v53, %v8592_v12  ;;  %v12184_v61 = vmul.f32 0.125, %v8538_v9  ;;  %v12385_v60 = vcombine.high %v12084_v27, %v12094_v29  ;;  %v12386_v63 = vcombine.high %v12096_v0, %v12098_v32  ;;  %v5227_v30 = vld [vmem:[#allocation13 + $0xef0] sm:$0xff] }
 0x5f7   : > { %8331 = vmatpush1.bf16.msra.mxu0 %v12383_v7  ;;  %8495 = vmatpush1.bf16.msra.mxu1 %v12384_v34  ;;  %v8588_v44 = vadd.f32 %v8587_v19, %v8586_v5  ;;  %v12192_v25 = vmul.f32 0.125, %v8532_v35  ;;  %v8600_v24 = vadd.f32 %v8599_v46, %v8598_v37  ;;  %v12194_v38 = vmul.f32 0.125, %v8544_v26  ;;  %v5236_v37 = vld [vmem:[#allocation13 + $0xf38] sm:$0xff]  ;;  %v5239_v34 = vld [vmem:[#allocation13 + $0xf50] sm:$0xff] }
 0x5f8   : > { %8332 = vmatprep.subr.bf16.mxu0 %v12385_v60  ;;  %8496 = vmatprep.subr.bf16.mxu1 %v12386_v63  ;;  %v8633_v62 = vmul.f32 0.125, %v8582_v59  ;;  %v8641_v48 = vmul.f32 %v12182_v21, %v12182_v21  ;;  %v8635_v56 = vmul.f32 0.125, %v8594_v18  ;;  %v10077_v13 = vcombine.low %v12116_v10, %v12118_v49  ;;  %v5243_v59 = vld [vmem:[#allocation13 + $0xf70] sm:$0xff]  ;;  %v5240_v63 = vld [vmem:[#allocation13 + $0xf58] sm:$0xff] }
 0x5f9   : > { %v8643_v16 = vmul.f32 %v12184_v61, %v12184_v61  ;;  %v8634_v51 = vmul.f32 0.125, %v8588_v44  ;;  %v8642_v42 = vmul.f32 %v12192_v25, %v12192_v25  ;;  %v12387_v58 = vcombine.low %v12084_v27, %v12094_v29  ;;  %v5231_v29 = vld [vmem:[#allocation13 + $0xf10] sm:$0xff]  ;;  %v5244_v44 = vld [vmem:[#allocation13 + $0xf78] sm:$0xff] }
 0x5fa   : > { %v12388_v17 = vcombine.low %v12096_v0, %v12098_v32  ;;  %v10084_v43 = vcombine.high %v5223_v20, %v5227_v30  ;;  %v8649_v57 = vsub.f32 %v8633_v62, %v8641_v48  ;;  %v8636_v1 = vmul.f32 0.125, %v8600_v24  ;;  %v5235_v0 = vld [vmem:[#allocation13 + $0xf30] sm:$0xff]  ;;  %v5232_v32 = vld [vmem:[#allocation13 + $0xf18] sm:$0xff] }
 0x5fb   : > { %8333 = vmatpush1.bf16.msra.mxu0 %v12387_v58  ;;  %v8644_v2 = vmul.f32 %v12194_v38, %v12194_v38  ;;  %v12389_v12 = vcombine.high %v12106_v47, %v12108_v45  ;;  %v12390_v52 = vcombine.high %v12116_v10, %v12118_v49  ;;  %v10086_v27 = vcombine.high %v5224_v50, %v5228_v23  ;;  %v5248_v62 = vld [vmem:[#allocation13 + $0xf98] sm:$0xff] }
 0x5fc   : > { %8497 = vmatpush1.bf16.msra.mxu1 %v12388_v17  ;;  %v8651_v5 = vsub.f32 %v8635_v56, %v8643_v16  ;;  %v8650_v39 = vsub.f32 %v8634_v51, %v8642_v42  ;;  %v8657_v6 = vmax.f32 %v8649_v57, 0.0  ;;  %v12391_v35 = vcombine.low %v12106_v47, %v12108_v45  ;;  %v5252_v48 = vld [vmem:[#allocation13 + $0xfb8] sm:$0xff]  ;;  %v12221_v56 = vld [vmem:[#allocation16] sm:$0xff]  ;;  %v5255_v17 = vld [vmem:[#allocation13 + $0xfd0] sm:$0xff] }
 0x5fd   : > { %8334 = vmatprep.subr.bf16.mxu0 %v12389_v12  ;;  %8498 = vmatprep.subr.bf16.mxu1 %v12390_v52  ;;  %v8652_v41 = vsub.f32 %v8636_v1, %v8644_v2  ;;  %v10083_v19 = vcombine.low %v5223_v20, %v5227_v30  ;;  %v10085_v26 = vcombine.low %v5224_v50, %v5228_v23  ;;  %v5247_v50 = vld [vmem:[#allocation13 + $0xf90] sm:$0xff]  ;;  %v5256_v57 = vld [vmem:[#allocation13 + $0xfd8] sm:$0xff] }
 0x5fe   : > { %v8659_v9 = vmax.f32 %v8651_v5, 0.0  ;;  %v8658_v53 = vmax.f32 %v8650_v39, 0.0  ;;  %v8673_v10 = vadd.f32 1e-05, %v8657_v6  ;;  %v10092_v46 = vcombine.high %v5231_v29, %v5235_v0  ;;  %v5251_v23 = vld [vmem:[#allocation13 + $0xfb0] sm:$0xff]  ;;  %v5260_v1 = vld [vmem:[#allocation13 + $0xff8] sm:$0xff] }
 0x5ff   : > { %8335 = vmatpush1.bf16.msra.mxu0 %v12391_v35  ;;  %v8660_v49 = vmax.f32 %v8652_v41, 0.0  ;;  %v10094_v7 = vcombine.high %v5232_v32, %v5236_v37  ;;  %v10091_v47 = vcombine.low %v5231_v29, %v5235_v0  ;;  %v10093_v45 = vcombine.low %v5232_v32, %v5236_v37 }
 0x600   : > { %8499 = vmatpush1.bf16.msra.mxu1 %v10077_v13  ;;  %8336 = vmatprep.subr.bf16.mxu0 %v10084_v43  ;;  %v8675_v18 = vadd.f32 1e-05, %v8659_v9  ;;  %v8674_v60 = vadd.f32 1e-05, %v8658_v53  ;;  %10350 = vrsqrt.f32 %v8673_v10  ;;  %v10100_v20 = vcombine.high %v5239_v34, %v5243_v59  ;;  %v12223_v13 = vld [vmem:[#allocation18] sm:$0xff] }
 0x601   : > { %8500 = vmatprep.subr.bf16.mxu1 %v10086_v27  ;;  %v8676_v24 = vadd.f32 1e-05, %v8660_v49  ;;  %v10102_v30 = vcombine.high %v5240_v63, %v5244_v44  ;;  %v10099_v16 = vcombine.low %v5239_v34, %v5243_v59  ;;  %v10101_v51 = vcombine.low %v5240_v63, %v5244_v44  ;;  %v5259_v43 = vld [vmem:[#allocation13 + $0xff0] sm:$0xff] }
 0x602   : > { %10352 = vrsqrt.f32 %v8675_v18  ;;  %v10108_v42 = vcombine.high %v5247_v50, %v5251_v23  ;;  %v10110_v58 = vcombine.high %v5248_v62, %v5252_v48  ;;  %v8701_v2 = vrot.slane %v12221_v56, %v11754_v36 }
 0x603   : > { %8337 = vmatpush1.bf16.msra.mxu0 %v10083_v19  ;;  %10354 = vrsqrt.f32 %v8674_v60  ;;  %v8750_v12 = vrot.slane %v12223_v13, %v11754_v36  ;;  %v8709_v52 = vrot.slane %v12221_v56, %v11788_v28  ;;  %v8705_v27 = vrot.slane %v12221_v56, %v11749_v31 }
 0x604   : > { %8501 = vmatpush1.bf16.msra.mxu1 %v10085_v26  ;;  %8338 = vmatprep.subr.bf16.mxu0 %v10092_v46  ;;  %10356 = vrsqrt.f32 %v8676_v24  ;;  %v8665_v29 = vsub.f32 %v12128_v22, %v12182_v21  ;;  %v10107_v5 = vcombine.low %v5247_v50, %v5251_v23  ;;  %v10109_v39 = vcombine.low %v5248_v62, %v5252_v48  ;;  %v12251_v62 = vld [vmem:[#allocation19] sm:$0xff] }
 0x605   : > { %8502 = vmatprep.subr.bf16.mxu1 %v10094_v7  ;;  %v8667_v32 = vsub.f32 %v12130_v4, %v12184_v61  ;;  %v10116_v37 = vcombine.high %v5255_v17, %v5259_v43  ;;  %v10118_v6 = vcombine.high %v5256_v57, %v5260_v1  ;;  %v8758_v53 = vrot.slane %v12223_v13, %v11788_v28 }
 0x606   : > { %v8666_v22 = vsub.f32 %v12136_v11, %v12192_v25  ;;  %v8713_v21 = vrot.slane %v12221_v56, %v11785_v14  ;;  %v8754_v4 = vrot.slane %v12223_v13, %v11749_v31  ;;  %v8668_v61 = vsub.f32 %v12138_v3, %v12194_v38 }
 0x607   : > { %8339 = vmatpush1.bf16.msra.mxu0 %v10091_v47  ;;  %v10115_v26 = vcombine.low %v5255_v17, %v5259_v43  ;;  %v10117_v7 = vcombine.low %v5256_v57, %v5260_v1  ;;  %v8762_v25 = vrot.slane %v12223_v13, %v11785_v14 }
 0x608   : > { %8503 = vmatpush1.bf16.msra.mxu1 %v10093_v45  ;;  %8340 = vmatprep.subr.bf16.mxu0 %v10100_v20 }
 0x609   : > { %8504 = vmatprep.subr.bf16.mxu1 %v10102_v30 }
 0x60a   : > { %v10351_v0 = vpop.eup %10350 }
 0x60b   : > { %8341 = vmatpush1.bf16.msra.mxu0 %v10099_v16  ;;  %v8689_v9 = vmul.f32 %v10351_v0, %v8665_v29  ;;  %v8848_v16 = vrot.slane %v12251_v62, %v11754_v36  ;;  %v8860_v29 = vrot.slane %v12251_v62, %v11785_v14  ;;  %v5294_v14 = vrot.slane %v12030_v15, %v11890_v54 }
 0x60c   : > { %8505 = vmatpush1.bf16.msra.mxu1 %v10101_v51  ;;  %8342 = vmatprep.subr.bf16.mxu0 %v10108_v42  ;;  %v10353_v41 = vpop.eup %10352 }
 0x60d   : > { %8506 = vmatprep.subr.bf16.mxu1 %v10110_v58  ;;  %v10355_v35 = vpop.eup %10354  ;;  %v8691_v19 = vmul.f32 %v10353_v41, %v8667_v32  ;;  %v8738_v49 = vmul.f32 %v8701_v2, %v8689_v9  ;;  %v8856_v2 = vrot.slane %v12251_v62, %v11788_v28  ;;  %v5282_v28 = vrot.slane %v12030_v15, %v11883_v40 }
 0x60e   : > { %v10357_v10 = vpop.eup %10356  ;;  %v8690_v46 = vmul.f32 %v10355_v35, %v8666_v22  ;;  %v5290_v41 = vrot.slane %v12030_v15, %v11953_v33  ;;  %v5286_v9 = vrot.slane %v12030_v15, %v11851_v8 }
 0x60f   : > { %8343 = vmatpush1.bf16.msra.mxu0 %v10107_v5  ;;  %v8740_v34 = vmul.f32 %v8709_v52, %v8691_v19  ;;  %v8692_v11 = vmul.f32 %v10357_v10, %v8668_v61  ;;  %v8787_v59 = vadd.f32 %v8750_v12, %v8738_v49 }
 0x610   : > { %8507 = vmatpush1.bf16.msra.mxu1 %v10109_v39  ;;  %8344 = vmatprep.subr.bf16.mxu0 %v10116_v37  ;;  %v8739_v18 = vmul.f32 %v8705_v27, %v8690_v46 }
 0x611   : > { %8508 = vmatprep.subr.bf16.mxu1 %v10118_v6  ;;  %v8789_v60 = vadd.f32 %v8758_v53, %v8740_v34  ;;  %v8741_v63 = vmul.f32 %v8713_v21, %v8692_v11  ;;  %v8803_v44 = vmin.f32 %v8787_v59, 0.0  ;;  %vm8795_vm8 = vcmp.gt.f32.partialorder %v8787_v59, 0.0 }
 0x612   : > { %v8788_v3 = vadd.f32 %v8754_v4, %v8739_v18 }
 0x613   : > { %8345 = vmatpush1.bf16.msra.mxu0 %v10115_v26  ;;  %v8805_v38 = vmin.f32 %v8789_v60, 0.0  ;;  %v8790_v24 = vadd.f32 %v8762_v25, %v8741_v63  ;;  %v8811_v47 = vmul.f32 1.442695, %v8803_v44  ;;  %vm8797_vm10 = vcmp.gt.f32.partialorder %v8789_v60, 0.0 }
 0x614   : > { %8509 = vmatpush1.bf16.msra.mxu1 %v10117_v7  ;;  %v8804_v45 = vmin.f32 %v8788_v3, 0.0  ;;  %vm8796_vm9 = vcmp.gt.f32.partialorder %v8788_v3, 0.0 }
 0x615   : > { %v8815_v20 = vmul.f32 1.442695, %v8805_v38  ;;  %v8806_v30 = vmin.f32 %v8790_v24, 0.0  ;;  %10358 = vpow2.f32 %v8811_v47  ;;  %vm8798_vm11 = vcmp.gt.f32.partialorder %v8790_v24, 0.0 }
 0x616   : > { %8347 = vmatmul.mubr.bf16.vlgmr.msra.gmra.mrb[4].mxu0 %v12012_v55  ;;  %v8813_v50 = vmul.f32 1.442695, %v8804_v45 }
 0x617   : > { %8511 = vmatmul.mubr.bf16.vlgmr.msra.gmra.mrb[4].mxu1 %v12012_v55  ;;  %10360 = vpow2.f32 %v8815_v20  ;;  %v8817_v23 = vmul.f32 1.442695, %v8806_v30  ;;  %v8852_v55 = vrot.slane %v12251_v62, %v11749_v31 }
 0x618   : > { %10362 = vpow2.f32 %v8813_v50 }
 0x619   : > { %10364 = vpow2.f32 %v8817_v23 }
 0x61f   : > { %v10359_v48 = vpop.eup %10358 }
 0x620   : > { %v10119_v42 = vadd.f32 -1.0, %v10359_v48 }
 0x621   : > { %v10361_v51 = vpop.eup %10360 }
 0x622   : > { %v10363_v58 = vpop.eup %10362  ;;  %v10121_v17 = vadd.f32 -1.0, %v10361_v51  ;;  %v8835_v1 = vsel %vm8795_vm8, %v8787_v59, %v10119_v42 }
 0x623   : > { %v10365_v43 = vpop.eup %10364  ;;  %v10120_v57 = vadd.f32 -1.0, %v10363_v58  ;;  %v8885_v52 = vmul.f32 %v8848_v16, %v8835_v1 }
 0x624   : > { %v10122_v12 = vadd.f32 -1.0, %v10365_v43  ;;  %v8837_v36 = vsel %vm8797_vm10, %v8789_v60, %v10121_v17 }
 0x625   : > { %v8836_v27 = vsel %vm8796_vm9, %v8788_v3, %v10120_v57  ;;  %v8887_v0 = vmul.f32 %v8856_v2, %v8837_v36 }
 0x626   : > { %v8886_v5 = vmul.f32 %v8852_v55, %v8836_v27  ;;  %v8838_v39 = vsel %vm8798_vm11, %v8790_v24, %v10122_v12 }
 0x627   : > { %v8888_v32 = vmul.f32 %v8860_v29, %v8838_v39 }
 0x628   : > { %v8893_v31 = vadd.f32 %v8886_v5, %v8885_v52 }
 0x62a   : > { %v8894_v37 = vadd.f32 %v8893_v31, %v8887_v0 }
 0x62c   : > { %v12261_v6 = vadd.f32 %v8894_v37, %v8888_v32 }
 0x6e9   : > { %v8348_v53 = vpop.f32.mrb[4].mxu0 }
 0x6ea   : > { %v8512_v22 = vpop.f32.mrb[4].mxu1  ;;  %v12271_v21 = vadd.f32 %v8348_v53, %v5282_v28  ;;  %v8350_v19 = vpop.f32.mrb[5].mxu0 }
 0x6eb   : > { %v12273_v35 = vadd.f32 %v8512_v22, %v5290_v41  ;;  %v8514_v4 = vpop.f32.mrb[5].mxu1  ;;  %v12275_v61 = vadd.f32 %v8350_v19, %v5286_v9  ;;  %v8352_v10 = vpop.f32.mrb[6].mxu0 }
 0x6ec   : > { %v12277_v26 = vadd.f32 %v8514_v4, %v5294_v14  ;;  %v8516_v49 = vpop.f32.mrb[6].mxu1  ;;  %v8545_v46 = vrot.slane %v12271_v21, 4  ;;  %v8573_v7 = vmul.f32 %v12271_v21, %v12271_v21  ;;  %v8353_v11 = vpop.f32.mrb[7].mxu0 }
 0x6ed   : > { %v8557_v15 = vrot.slane %v12273_v35, 4  ;;  %v8575_v34 = vmul.f32 %v12273_v35, %v12273_v35  ;;  %v8517_v25 = vpop.f32.mrb[7].mxu1  ;;  %v8551_v59 = vrot.slane %v12275_v61, 4  ;;  %v8574_v18 = vmul.f32 %v12275_v61, %v12275_v61 }
 0x6ee   : > { %v8563_v60 = vrot.slane %v12277_v26, 4  ;;  %v8576_v63 = vmul.f32 %v12277_v26, %v12277_v26  ;;  %v8546_v44 = vadd.f32 %v12271_v21, %v8545_v46  ;;  %v8601_v3 = vrot.slane %v8573_v7, 4 }
 0x6ef   : > { %v8558_v38 = vadd.f32 %v12273_v35, %v8557_v15  ;;  %v8613_v24 = vrot.slane %v8575_v34, 4  ;;  %v8552_v47 = vadd.f32 %v12275_v61, %v8551_v59  ;;  %v8607_v45 = vrot.slane %v8574_v18, 4 }
 0x6f0   : > { %v8564_v20 = vadd.f32 %v12277_v26, %v8563_v60  ;;  %v8619_v30 = vrot.slane %v8576_v63, 4  ;;  %v8547_v50 = vrot.slane %v8546_v44, 2  ;;  %v8602_v23 = vadd.f32 %v8601_v3, %v8573_v7 }
 0x6f1   : > { %v8559_v48 = vrot.slane %v8558_v38, 2  ;;  %v8614_v16 = vadd.f32 %v8613_v24, %v8575_v34  ;;  %v8553_v51 = vrot.slane %v8552_v47, 2  ;;  %v8608_v42 = vadd.f32 %v8607_v45, %v8574_v18 }
 0x6f2   : > { %v8565_v58 = vrot.slane %v8564_v20, 2  ;;  %v8620_v17 = vadd.f32 %v8619_v30, %v8576_v63  ;;  %v8548_v55 = vadd.f32 %v8547_v50, %v8546_v44  ;;  %v8603_v43 = vrot.slane %v8602_v23, 2 }
 0x6f3   : > { %v8560_v57 = vadd.f32 %v8559_v48, %v8558_v38  ;;  %v8615_v1 = vrot.slane %v8614_v16, 2  ;;  %v8554_v2 = vadd.f32 %v8553_v51, %v8552_v47  ;;  %v8609_v12 = vrot.slane %v8608_v42, 2 }
 0x6f4   : > { %v8566_v52 = vadd.f32 %v8565_v58, %v8564_v20  ;;  %v8621_v27 = vrot.slane %v8620_v17, 2  ;;  %v8549_v36 = vrot.slane %v8548_v55, 1  ;;  %v8604_v29 = vadd.f32 %v8603_v43, %v8602_v23 }
 0x6f5   : > { %v8561_v5 = vrot.slane %v8560_v57, 1  ;;  %v8616_v39 = vadd.f32 %v8615_v1, %v8614_v16  ;;  %v8555_v0 = vrot.slane %v8554_v2, 1  ;;  %v8610_v31 = vadd.f32 %v8609_v12, %v8608_v42 }
 0x6f6   : > { %v8567_v32 = vrot.slane %v8566_v52, 1  ;;  %v8622_v37 = vadd.f32 %v8621_v27, %v8620_v17  ;;  %v8550_v28 = vadd.f32 %v8549_v36, %v8548_v55  ;;  %v8605_v41 = vrot.slane %v8604_v29, 1 }
 0x6f7   : > { %v8562_v9 = vadd.f32 %v8561_v5, %v8560_v57  ;;  %v8617_v14 = vrot.slane %v8616_v39, 1  ;;  %v8556_v53 = vadd.f32 %v8555_v0, %v8554_v2  ;;  %v8611_v22 = vrot.slane %v8610_v31, 1 }
 0x6f8   : > { %v8568_v19 = vadd.f32 %v8567_v32, %v8566_v52  ;;  %v8623_v4 = vrot.slane %v8622_v37, 1  ;;  %v8606_v10 = vadd.f32 %v8605_v41, %v8604_v29  ;;  %v8629_v49 = vmul.f32 0.125, %v8550_v28 }
 0x6f9   : > { %v8618_v46 = vadd.f32 %v8617_v14, %v8616_v39  ;;  %v8631_v7 = vmul.f32 0.125, %v8562_v9  ;;  %v8612_v15 = vadd.f32 %v8611_v22, %v8610_v31  ;;  %v8630_v34 = vmul.f32 0.125, %v8556_v53 }
 0x6fa   : > { %v8624_v11 = vadd.f32 %v8623_v4, %v8622_v37  ;;  %v8632_v25 = vmul.f32 0.125, %v8568_v19  ;;  %v8637_v59 = vmul.f32 0.125, %v8606_v10  ;;  %v8645_v18 = vmul.f32 %v8629_v49, %v8629_v49 }
 0x6fb   : > { %v8639_v60 = vmul.f32 0.125, %v8618_v46  ;;  %v8647_v63 = vmul.f32 %v8631_v7, %v8631_v7  ;;  %v8638_v44 = vmul.f32 0.125, %v8612_v15  ;;  %v8646_v3 = vmul.f32 %v8630_v34, %v8630_v34 }
 0x6fc   : > { %v8653_v38 = vsub.f32 %v8637_v59, %v8645_v18  ;;  %v8640_v24 = vmul.f32 0.125, %v8624_v11  ;;  %v8648_v47 = vmul.f32 %v8632_v25, %v8632_v25  ;;  %v8669_v55 = vsub.f32 %v12271_v21, %v8629_v49 }
 0x6fd   : > { %v8655_v45 = vsub.f32 %v8639_v60, %v8647_v63  ;;  %v8654_v20 = vsub.f32 %v8638_v44, %v8646_v3  ;;  %v8717_v43 = vrot.slane %v12221_v56, %v11883_v40  ;;  %v8671_v1 = vsub.f32 %v12273_v35, %v8631_v7 }
 0x6fe   : > { %v8661_v30 = vmax.f32 %v8653_v38, 0.0  ;;  %v8656_v50 = vsub.f32 %v8640_v24, %v8648_v47  ;;  %v8725_v2 = vrot.slane %v12221_v56, %v11953_v33  ;;  %v8670_v27 = vsub.f32 %v12275_v61, %v8630_v34 }
 0x6ff   : > { %v8663_v23 = vmax.f32 %v8655_v45, 0.0  ;;  %v8662_v48 = vmax.f32 %v8654_v20, 0.0  ;;  %v8721_v36 = vrot.slane %v12221_v56, %v11851_v8  ;;  %v8766_v29 = vrot.slane %v12223_v13, %v11883_v40 }
 0x700   : > { %v8677_v16 = vadd.f32 1e-05, %v8661_v30  ;;  %v8664_v51 = vmax.f32 %v8656_v50, 0.0  ;;  %v8672_v39 = vsub.f32 %v12277_v26, %v8632_v25  ;;  %v8729_v35 = vrot.slane %v12221_v56, %v11890_v54 }
 0x701   : > { %v8679_v42 = vadd.f32 1e-05, %v8663_v23  ;;  %v8678_v58 = vadd.f32 1e-05, %v8662_v48  ;;  %v8774_v0 = vrot.slane %v12223_v13, %v11953_v33  ;;  %v8770_v61 = vrot.slane %v12223_v13, %v11851_v8 }
 0x702   : > { %10366 = vrsqrt.f32 %v8677_v16  ;;  %v8680_v17 = vadd.f32 1e-05, %v8664_v51  ;;  %v8778_v9 = vrot.slane %v12223_v13, %v11890_v54  ;;  %v8864_v13 = vrot.slane %v12251_v62, %v11883_v40 }
 0x703   : > { %10368 = vrsqrt.f32 %v8679_v42  ;;  %v8868_v44 = vrot.slane %v12251_v62, %v11851_v8  ;;  %v8872_v47 = vrot.slane %v12251_v62, %v11953_v33  ;;  %v8876_v50 = vrot.slane %v12251_v62, %v11890_v54  ;;  %v10127_v33 = vld [vmem:[#allocation4] ss:$0 sm:$0xff] }
 0x704   : > { %10370 = vrsqrt.f32 %v8678_v58 }
 0x705   : > { %10372 = vrsqrt.f32 %v8680_v17 }
 0x70c   : > { %v10367_v57 = vpop.eup %10366 }
 0x70d   : > { %v10369_v12 = vpop.eup %10368  ;;  %v8693_v52 = vmul.f32 %v10367_v57, %v8669_v55 }
 0x70e   : > { %v10371_v21 = vpop.eup %10370  ;;  %v8695_v5 = vmul.f32 %v10369_v12, %v8671_v1 }
 0x70f   : > { %v10373_v31 = vpop.eup %10372  ;;  %v8742_v32 = vmul.f32 %v8717_v43, %v8693_v52  ;;  %v8694_v37 = vmul.f32 %v10371_v21, %v8670_v27 }
 0x710   : > { %v8696_v28 = vmul.f32 %v10373_v31, %v8672_v39  ;;  %v8744_v41 = vmul.f32 %v8725_v2, %v8695_v5 }
 0x711   : > { %v8743_v14 = vmul.f32 %v8721_v36, %v8694_v37  ;;  %v8791_v53 = vadd.f32 %v8766_v29, %v8742_v32 }
 0x712   : > { %v8745_v26 = vmul.f32 %v8729_v35, %v8696_v28  ;;  %v8793_v22 = vadd.f32 %v8774_v0, %v8744_v41 }
 0x713   : > { %v8792_v19 = vadd.f32 %v8770_v61, %v8743_v14  ;;  %v8807_v56 = vmin.f32 %v8791_v53, 0.0  ;;  %vm8799_vm12 = vcmp.gt.f32.partialorder %v8791_v53, 0.0 }
 0x714   : > { %v8794_v4 = vadd.f32 %v8778_v9, %v8745_v26  ;;  %v8809_v10 = vmin.f32 %v8793_v22, 0.0  ;;  %vm8801_vm14 = vcmp.gt.f32.partialorder %v8793_v22, 0.0 }
 0x715   : > { %v8808_v49 = vmin.f32 %v8792_v19, 0.0  ;;  %v8819_v46 = vmul.f32 1.442695, %v8807_v56  ;;  %vm8800_vm13 = vcmp.gt.f32.partialorder %v8792_v19, 0.0 }
 0x716   : > { %v8810_v7 = vmin.f32 %v8794_v4, 0.0  ;;  %v8823_v15 = vmul.f32 1.442695, %v8809_v10  ;;  %vm8802_vm15 = vcmp.gt.f32.partialorder %v8794_v4, 0.0 }
 0x717   : > { %10374 = vpow2.f32 %v8819_v46  ;;  %v8821_v34 = vmul.f32 1.442695, %v8808_v49 }
 0x718   : > { %10376 = vpow2.f32 %v8823_v15  ;;  %v8825_v11 = vmul.f32 1.442695, %v8810_v7 }
 0x719   : > { %10378 = vpow2.f32 %v8821_v34 }
 0x71a   : > { %10380 = vpow2.f32 %v8825_v11 }
 0x721   : > { %v10375_v25 = vpop.eup %10374 }
 0x722   : > { %v10377_v59 = vpop.eup %10376  ;;  %v10123_v18 = vadd.f32 -1.0, %v10375_v25 }
 0x723   : > { %v10379_v60 = vpop.eup %10378  ;;  %v10125_v63 = vadd.f32 -1.0, %v10377_v59 }
 0x724   : > { %v10381_v3 = vpop.eup %10380  ;;  %v10124_v38 = vadd.f32 -1.0, %v10379_v60  ;;  %v8839_v24 = vsel %vm8799_vm12, %v8791_v53, %v10123_v18 }
 0x725   : > { %v10126_v45 = vadd.f32 -1.0, %v10381_v3  ;;  %v8889_v20 = vmul.f32 %v8864_v13, %v8839_v24  ;;  %v8841_v40 = vsel %vm8801_vm14, %v8793_v22, %v10125_v63 }
 0x726   : > { %v8840_v30 = vsel %vm8800_vm13, %v8792_v19, %v10124_v38  ;;  %v8891_v16 = vmul.f32 %v8872_v47, %v8841_v40 }
 0x727   : > { %v8890_v23 = vmul.f32 %v8868_v44, %v8840_v30  ;;  %v8896_v48 = vadd.f32 %v12261_v6, %v8889_v20  ;;  %v8842_v8 = vsel %vm8802_vm15, %v8794_v4, %v10126_v45 }
 0x728   : > { %v8892_v42 = vmul.f32 %v8876_v50, %v8842_v8 }
 0x729   : > { %v8897_v51 = vadd.f32 %v8896_v48, %v8890_v23 }
 0x72b   : > { %v8898_v58 = vadd.f32 %v8897_v51, %v8891_v16 }
 0x72d   : > { %v8899_v17 = vadd.f32 %v8898_v58, %v8892_v42 }
 0x72f   : > { %8900 = vadd.xlane.f32.xlu0 %v8899_v17 }
 0x7bc   : > { %v8901_v55 = vpop.xlane.xlu0 %8900 }
 0x7bd   : > { %v8909_v43 = vadd.f32 %v10127_v33, %v8901_v55 }
 0x7bf   : > { %v10128_v57 = vmul.f32 -1.442695, %v8909_v43 }
 0x7c1   : > { %10382 = vpow2.f32 %v10128_v57 }
 0x7cb   : > { %v10383_v1 = vpop.eup %10382 }
 0x7cc   : > { %v8913_v2 = vadd.f32 1.0, %v10383_v1 }
 0x7ce   : > { %10384 = vrcp.f32 %v8913_v2 }
 0x7d8   : > { %v10385_v54 = vpop.eup %10384 }
 0x7d9   : > { %8917 = vst.msk [vmem:[%s12392_s3] sm:$0xff] %vm8916_vm0, %v10385_v54 }
 0x7da PF: > { %p32_p10 = scmp.ge.s32.totalorder %s11024_s23, 4   ;;  %s12393_s25 = smov %s10723_s26 }
 0x7db   : > { %s12394_s26 = smov %s10727_s27  ;;  %s12395_s27 = smov %s11036_s13 }
 0x7dc   : > { %s12396_s0 = smov %s11024_s23  ;;  %34 = sbr.rel (!%p32_p10) target bundleno = 14 (0xe), region = 157 }
 0x7e3   :  { %8929 = vsyncpa [#allocation6], 1 }
 0x7e4   :  { %8931 = vsyncpa [#allocation6 + $0x1], 1 }
 0x7e5   :  { %8932 = vsyncpa [#allocation8], 1 }
 0x7e6   :  { %8934 = vsyncpa [#allocation8 + $0x1], 1 }
 0x7e7   :  { %8935 = vsyncpa [#allocation11], 1 }
 0x7e8   :  { %8936 = vsyncpa [#allocation14], 1 }
 0x7e9   :  { %8937 = vsyncpa [#allocation17], 1 }
 0x7ea   :  { %8938 = vsyncpa [#allocation20], 1 }

</bundles_post_ra>
